<compile_context>
chip_gen: v5e
topology: v5e:2x2
jax: 0.10.0
libtpu: 0.0.40
codegen_flags: <defaults>
</compile_context>

<pallas_src>
import jax
import jax.numpy as jnp
from jax.experimental import pallas as pl
from jax.experimental.pallas import tpu as pltpu


def inception_kernel(x_ref,
                     wh_ref, bh_ref,      # fused 1x1 head  [Cin, c1+c20+c30]
                     w22_ref, b22_ref,    # 3x3 conv        [9*c20, c21]
                     w32_ref, b32_ref,    # 5x5 conv        [25*c30, c31]
                     w4_ref, b4_ref,      # pool-branch 1x1 [Cin, c4]
                     out_ref,
                     p1_ref, p2pad_ref, p3pad_ref, p4_ref, xpool_ref):
    _, H, W, Cin = x_ref.shape
    TH = out_ref.shape[1]                 # rows per strip
    c1 = p1_ref.shape[-1]
    c20 = p2pad_ref.shape[-1]
    c30 = p3pad_ref.shape[-1]
    c21 = w22_ref.shape[1]
    c31 = w32_ref.shape[1]

    s = pl.program_id(1)                  # row-strip index (sequential axis)

    def dot_bias_relu(a_bf16, w_ref, b_ref):
        y = jnp.dot(a_bf16, w_ref[...], preferred_element_type=jnp.float32)
        return jnp.maximum(y + b_ref[...], 0.0)

    # ---- once per image (strip 0): fused 1x1 heads + pooling branch ------
    @pl.when(s == 0)
    def _():
        x = x_ref[0]                                       # [H, W, Cin] f32
        xb = x.reshape(H * W, Cin).astype(jnp.bfloat16)

        # One MXU matmul for the three 1x1 convs that all read x.
        head = dot_bias_relu(xb, wh_ref, bh_ref)           # [H*W, c1+c20+c30]
        p1_ref[...] = head[:, 0:c1].reshape(H, W, c1)

        # Branch-2 head into zero-padded bf16 scratch (border-only init).
        zr2 = jnp.zeros((1, W + 2, c20), jnp.bfloat16)
        zc2 = jnp.zeros((H + 2, 1, c20), jnp.bfloat16)
        p2pad_ref[0:1, :, :] = zr2
        p2pad_ref[H + 1:H + 2, :, :] = zr2
        p2pad_ref[:, 0:1, :] = zc2
        p2pad_ref[:, W + 1:W + 2, :] = zc2
        p2pad_ref[1:H + 1, 1:W + 1, :] = (
            head[:, c1:c1 + c20].astype(jnp.bfloat16).reshape(H, W, c20))

        # Branch-3 head into zero-padded bf16 scratch (border-only init).
        zr3 = jnp.zeros((2, W + 4, c30), jnp.bfloat16)
        zc3 = jnp.zeros((H + 4, 2, c30), jnp.bfloat16)
        p3pad_ref[0:2, :, :] = zr3
        p3pad_ref[H + 2:H + 4, :, :] = zr3
        p3pad_ref[:, 0:2, :] = zc3
        p3pad_ref[:, W + 2:W + 4, :] = zc3
        p3pad_ref[2:H + 2, 2:W + 2, :] = (
            head[:, c1 + c20:].astype(jnp.bfloat16).reshape(H, W, c30))

        # Branch 4: 3x3/s1/p1 max-pool (f32 compares, separable) + 1x1 conv.
        ninf_r = jnp.full((1, W + 2, Cin), -jnp.inf, jnp.float32)
        ninf_c = jnp.full((H + 2, 1, Cin), -jnp.inf, jnp.float32)
        xpool_ref[0:1, :, :] = ninf_r
        xpool_ref[H + 1:H + 2, :, :] = ninf_r
        xpool_ref[:, 0:1, :] = ninf_c
        xpool_ref[:, W + 1:W + 2, :] = ninf_c
        xpool_ref[1:H + 1, 1:W + 1, :] = x
        xp = xpool_ref[...]
        rowmax = jnp.maximum(jnp.maximum(xp[:, 0:W, :], xp[:, 1:W + 1, :]),
                             xp[:, 2:W + 2, :])            # [H+2, W, Cin]
        pooled = jnp.maximum(jnp.maximum(rowmax[0:H], rowmax[1:H + 1]),
                             rowmax[2:H + 2])              # [H, W, Cin]
        p4_ref[...] = dot_bias_relu(
            pooled.reshape(H * W, Cin).astype(jnp.bfloat16),
            w4_ref, b4_ref).reshape(H, W, p4_ref.shape[-1])

    # ---- every row strip: fused KxK im2col matmuls, one lane-dense store -
    r0 = pl.multiple_of(s * TH, TH)

    p1s = p1_ref[pl.ds(r0, TH), :, :]                      # [TH, W, c1] f32
    p4s = p4_ref[pl.ds(r0, TH), :, :]                      # [TH, W, c4] f32

    p2blk = p2pad_ref[pl.ds(r0, TH + 2), :, :]             # bf16 halo block
    cols2 = [p2blk[dy:dy + TH, dx:dx + W, :]
             for dy in range(3) for dx in range(3)]
    im2col2 = jnp.concatenate(cols2, axis=-1).reshape(TH * W, 9 * c20)
    p2 = dot_bias_relu(im2col2, w22_ref, b22_ref).reshape(TH, W, c21)

    p3blk = p3pad_ref[pl.ds(r0, TH + 4), :, :]             # bf16 halo block
    cols3 = [p3blk[dy:dy + TH, dx:dx + W, :]
             for dy in range(5) for dx in range(5)]
    im2col3 = jnp.concatenate(cols3, axis=-1).reshape(TH * W, 25 * c30)
    p3 = dot_bias_relu(im2col3, w32_ref, b32_ref).reshape(TH, W, c31)

    # Single full-cout (lane-dense) store for this strip.
    out_ref[0] = jnp.concatenate([p1s, p2, p3, p4s], axis=-1)


def _pick_row_strip(H):
    for th in (32, 16, 8):
        if H % th == 0 and H // th >= 2:
            return th
    return H


def _vmem_limit_bytes():
    try:
        cap = int(pltpu.get_tpu_info().vmem_capacity_bytes)
    except Exception:
        cap = 64 * 1024 * 1024
    return int(max(32 * 1024 * 1024, min((cap * 3) // 4, 100 * 1024 * 1024)))


def make_params(key, in_channels, c1, c2, c3, c4):
    keys = jax.random.split(key, 12)

    def w(k, shape):
        return (0.1 * jax.random.normal(k, shape)).astype(jnp.float32)

    return dict(
        w1=w(keys[0], (in_channels, c1)),      b1=w(keys[1], (1, c1)),
        w21=w(keys[2], (in_channels, c2[0])),  b21=w(keys[3], (1, c2[0])),
        w22=w(keys[4], (3, 3, c2[0], c2[1])),  b22=w(keys[5], (1, c2[1])),
        w31=w(keys[6], (in_channels, c3[0])),  b31=w(keys[7], (1, c3[0])),
        w32=w(keys[8], (5, 5, c3[0], c3[1])),  b32=w(keys[9], (1, c3[1])),
        w4=w(keys[10], (in_channels, c4)),     b4=w(keys[11], (1, c4)),
    )


def inception_forward(x_nchw, params, row_strip=None):
    # NCHW -> NHWC outside the kernel (channels on the lane dim).
    x = jnp.transpose(x_nchw, (0, 2, 3, 1)).astype(jnp.float32)
    N, H, W, Cin = x.shape
    c1 = params["w1"].shape[1]
    c20, c21 = params["w22"].shape[2], params["w22"].shape[3]
    c30, c31 = params["w32"].shape[2], params["w32"].shape[3]
    c4 = params["w4"].shape[1]
    cout = c1 + c21 + c31 + c4

    TH = row_strip or _pick_row_strip(H)
    assert H % TH == 0
    S = H // TH

    bf = jnp.bfloat16
    # Fuse the three 1x1 convs that read x into one weight / bias.
    w_head = jnp.concatenate(
        [params["w1"], params["w21"], params["w31"]], axis=1).astype(bf)
    b_head = jnp.concatenate(
        [params["b1"], params["b21"], params["b31"]], axis=1)
    ordered = [
        w_head, b_head,
        params["w22"].reshape(9 * c20, c21).astype(bf), params["b22"],
        params["w32"].reshape(25 * c30, c31).astype(bf), params["b32"],
        params["w4"].astype(bf), params["b4"],
    ]

    def full_spec(a):
        r = a.ndim
        return pl.BlockSpec(a.shape, lambda n, s, _r=r: (0,) * _r)

    out_nhwc = pl.pallas_call(
        inception_kernel,
        out_shape=jax.ShapeDtypeStruct((N, H, W, cout), jnp.float32),
        grid=(N, S),
        in_specs=[pl.BlockSpec((1, H, W, Cin), lambda n, s: (n, 0, 0, 0))]
                 + [full_spec(a) for a in ordered],
        out_specs=pl.BlockSpec((1, TH, W, cout), lambda n, s: (n, s, 0, 0)),
        scratch_shapes=[
            pltpu.VMEM((H, W, c1), jnp.float32),            # p1 (full image)
            pltpu.VMEM((H + 2, W + 2, c20), jnp.bfloat16),  # zero-padded p2a
            pltpu.VMEM((H + 4, W + 4, c30), jnp.bfloat16),  # zero-padded p3a
            pltpu.VMEM((H, W, c4), jnp.float32),            # p4 (full image)
            pltpu.VMEM((H + 2, W + 2, Cin), jnp.float32),   # -inf padded x
        ],
        compiler_params=pltpu.CompilerParams(
            dimension_semantics=("parallel", "arbitrary"),
            vmem_limit_bytes=_vmem_limit_bytes()),
    )(x, *ordered)

    return jnp.transpose(out_nhwc, (0, 3, 1, 2))              # NHWC -> NCHW


def inception_reference(x_nchw, params):
    """Pure-JAX reference (lax.conv / reduce_window) for correctness checking."""
    x = jnp.transpose(x_nchw, (0, 2, 3, 1)).astype(jnp.float32)
    dn = ("NHWC", "HWIO", "NHWC")

    def conv(inp, w, b, pad):
        if w.ndim == 2:
            w = w.reshape(1, 1, *w.shape)
        y = jax.lax.conv_general_dilated(inp, w, (1, 1),
                                         ((pad, pad), (pad, pad)),
                                         dimension_numbers=dn)
        return y + b.reshape(1, 1, 1, -1)

    relu = lambda a: jnp.maximum(a, 0.0)
    p1 = relu(conv(x, params["w1"], params["b1"], 0))
    p2 = relu(conv(relu(conv(x, params["w21"], params["b21"], 0)),
                   params["w22"], params["b22"], 1))
    p3 = relu(conv(relu(conv(x, params["w31"], params["b31"], 0)),
                   params["w32"], params["b32"], 2))
    pooled = jax.lax.reduce_window(x, -jnp.inf, jax.lax.max,
                                   (1, 3, 3, 1), (1, 1, 1, 1),
                                   ((0, 0), (1, 1), (1, 1), (0, 0)))
    p4 = relu(conv(pooled, params["w4"], params["b4"], 0))
    out = jnp.concatenate([p1, p2, p3, p4], axis=-1)
    return jnp.transpose(out, (0, 3, 1, 2))


if __name__ == "__main__":
    key = jax.random.PRNGKey(0)
    kx, kp = jax.random.split(key)

    N, Cin, H, W = 2, 4, 16, 16
    c1, c2, c3, c4 = 8, (8, 16), (4, 8), 8

    x = jax.random.normal(kx, (N, Cin, H, W), dtype=jnp.float32)
    params = make_params(kp, Cin, c1, c2, c3, c4)

    out = jax.block_until_ready(inception_forward(x, params))
    ref = jax.block_until_ready(inception_reference(x, params))

    assert out.shape == (N, c1 + c2[1] + c3[1] + c4, H, W), out.shape
    max_err = float(jnp.max(jnp.abs(out - ref)))
    # bf16 matmul operands with f32 accumulation -> loosened tolerance.
    assert jnp.allclose(out, ref, atol=2e-2, rtol=2e-2), max_err

    print("KERNEL_OK")
</pallas_src>

<mosaic_0001>
module attributes {stable_mosaic.version = 11 : i64} {
  func.func @inception_kernel(%arg0: i32, %arg1: i32, %arg2: memref<1x16x16x4xf32, #tpu.memory_space<vmem>>, %arg3: memref<4x20xbf16, #tpu.memory_space<vmem>>, %arg4: memref<1x20xf32, #tpu.memory_space<vmem>>, %arg5: memref<72x16xbf16, #tpu.memory_space<vmem>>, %arg6: memref<1x16xf32, #tpu.memory_space<vmem>>, %arg7: memref<100x8xbf16, #tpu.memory_space<vmem>>, %arg8: memref<1x8xf32, #tpu.memory_space<vmem>>, %arg9: memref<4x8xbf16, #tpu.memory_space<vmem>>, %arg10: memref<1x8xf32, #tpu.memory_space<vmem>>, %arg11: memref<1x8x16x40xf32, #tpu.memory_space<vmem>>, %arg12: memref<16x16x8xf32, #tpu.memory_space<vmem>>, %arg13: memref<18x18x8xbf16, #tpu.memory_space<vmem>>, %arg14: memref<20x20x4xbf16, #tpu.memory_space<vmem>>, %arg15: memref<16x16x8xf32, #tpu.memory_space<vmem>>, %arg16: memref<18x18x4xf32, #tpu.memory_space<vmem>>) attributes {dimension_semantics = [#tpu.dimension_semantics<parallel>, #tpu.dimension_semantics<arbitrary>], iteration_bounds = array<i64: 2, 2>, scalar_prefetch = 0 : i64, scratch_operands = 5 : i64, tpu.core_type = #tpu.core_type<tc>, window_params = [{transform_indices = @transform_0, window_bounds = array<i64: 1, 16, 16, 4>}, {pipeline_mode = #tpu.pipeline_mode<synchronous>, transform_indices = @transform_1, window_bounds = array<i64: 4, 20>}, {pipeline_mode = #tpu.pipeline_mode<synchronous>, transform_indices = @transform_2, window_bounds = array<i64: 1, 20>}, {pipeline_mode = #tpu.pipeline_mode<synchronous>, transform_indices = @transform_3, window_bounds = array<i64: 72, 16>}, {pipeline_mode = #tpu.pipeline_mode<synchronous>, transform_indices = @transform_4, window_bounds = array<i64: 1, 16>}, {pipeline_mode = #tpu.pipeline_mode<synchronous>, transform_indices = @transform_5, window_bounds = array<i64: 100, 8>}, {pipeline_mode = #tpu.pipeline_mode<synchronous>, transform_indices = @transform_6, window_bounds = array<i64: 1, 8>}, {pipeline_mode = #tpu.pipeline_mode<synchronous>, transform_indices = @transform_7, window_bounds = array<i64: 4, 8>}, {pipeline_mode = #tpu.pipeline_mode<synchronous>, transform_indices = @transform_8, window_bounds = array<i64: 1, 8>}, {transform_indices = @transform_9, window_bounds = array<i64: 1, 8, 16, 40>}]} {
    %c0_i32 = arith.constant 0 : i32
    %0 = arith.cmpi eq, %arg1, %c0_i32 : i32
    %1 = arith.extui %0 : i1 to i32
    %c0_i32_0 = arith.constant 0 : i32
    %2 = arith.cmpi ne, %1, %c0_i32_0 : i32
    scf.if %2 {
      %c0_23 = arith.constant 0 : index
      %c0_24 = arith.constant 0 : index
      %c0_25 = arith.constant 0 : index
      %c0_26 = arith.constant 0 : index
      %73 = vector.load %arg2[%c0_23, %c0_24, %c0_25, %c0_26] : memref<1x16x16x4xf32, #tpu.memory_space<vmem>>, vector<1x16x16x4xf32>
      %74 = vector.shape_cast %73 : vector<1x16x16x4xf32> to vector<16x16x4xf32>
      %75 = vector.shape_cast %74 : vector<16x16x4xf32> to vector<256x4xf32>
      %76 = arith.truncf %75 : vector<256x4xf32> to vector<256x4xbf16>
      %c0_27 = arith.constant 0 : index
      %c0_28 = arith.constant 0 : index
      %77 = vector.load %arg3[%c0_27, %c0_28] : memref<4x20xbf16, #tpu.memory_space<vmem>>, vector<4x20xbf16>
      %cst_29 = arith.constant dense<0.000000e+00> : vector<256x20xf32>
      %78 = tpu.matmul %76, %77, %cst_29 {dimension_numbers = #tpu.dot_dimension_numbers<[1], [0], [0], [1], [0, 0, 1, 1], [], []>} : vector<256x4xbf16>, vector<4x20xbf16>, vector<256x20xf32> -> vector<256x20xf32>
      %c0_30 = arith.constant 0 : index
      %c0_31 = arith.constant 0 : index
      %79 = vector.load %arg4[%c0_30, %c0_31] : memref<1x20xf32, #tpu.memory_space<vmem>>, vector<1x20xf32>
      %80 = vector.broadcast %79 : vector<1x20xf32> to vector<256x20xf32>
      %81 = arith.addf %78, %80 : vector<256x20xf32>
      %cst_32 = arith.constant 0.000000e+00 : f32
      %82 = vector.broadcast %cst_32 : f32 to vector<256x20xf32>
      %83 = arith.maximumf %81, %82 : vector<256x20xf32>
      %84 = vector.extract_strided_slice %83 {offsets = [0, 0], sizes = [256, 8], strides = [1, 1]} : vector<256x20xf32> to vector<256x8xf32>
      %85 = vector.shape_cast %84 : vector<256x8xf32> to vector<16x16x8xf32>
      %c0_33 = arith.constant 0 : index
      %c0_34 = arith.constant 0 : index
      %c0_35 = arith.constant 0 : index
      %86 = vector.load %arg12[%c0_33, %c0_34, %c0_35] : memref<16x16x8xf32, #tpu.memory_space<vmem>>, vector<16x16x8xf32>
      tpu.vector_store %arg12[%c0_33, %c0_34, %c0_35], %85 {strides = array<i32>} : memref<16x16x8xf32, #tpu.memory_space<vmem>>, vector<16x16x8xf32>,
      %cst_36 = arith.constant 0.000000e+00 : bf16
      %87 = vector.broadcast %cst_36 : bf16 to vector<1x18x8xbf16>
      %cst_37 = arith.constant 0.000000e+00 : bf16
      %88 = vector.broadcast %cst_37 : bf16 to vector<18x1x8xbf16>
      %c0_38 = arith.constant 0 : index
      %c0_39 = arith.constant 0 : index
      %c0_40 = arith.constant 0 : index
      %89 = vector.load %arg13[%c0_38, %c0_39, %c0_40] : memref<18x18x8xbf16, #tpu.memory_space<vmem>>, vector<1x18x8xbf16>
      tpu.vector_store %arg13[%c0_38, %c0_39, %c0_40], %87 {strides = array<i32>} : memref<18x18x8xbf16, #tpu.memory_space<vmem>>, vector<1x18x8xbf16>,
      %c17 = arith.constant 17 : index
      %c0_41 = arith.constant 0 : index
      %c0_42 = arith.constant 0 : index
      %90 = vector.load %arg13[%c17, %c0_41, %c0_42] : memref<18x18x8xbf16, #tpu.memory_space<vmem>>, vector<1x18x8xbf16>
      tpu.vector_store %arg13[%c17, %c0_41, %c0_42], %87 {strides = array<i32>} : memref<18x18x8xbf16, #tpu.memory_space<vmem>>, vector<1x18x8xbf16>,
      %c0_43 = arith.constant 0 : index
      %c0_44 = arith.constant 0 : index
      %c0_45 = arith.constant 0 : index
      %91 = vector.load %arg13[%c0_43, %c0_44, %c0_45] : memref<18x18x8xbf16, #tpu.memory_space<vmem>>, vector<18x1x8xbf16>
      tpu.vector_store %arg13[%c0_43, %c0_44, %c0_45], %88 {strides = array<i32>} : memref<18x18x8xbf16, #tpu.memory_space<vmem>>, vector<18x1x8xbf16>,
      %c0_46 = arith.constant 0 : index
      %c17_47 = arith.constant 17 : index
      %c0_48 = arith.constant 0 : index
      %92 = vector.load %arg13[%c0_46, %c17_47, %c0_48] : memref<18x18x8xbf16, #tpu.memory_space<vmem>>, vector<18x1x8xbf16>
      tpu.vector_store %arg13[%c0_46, %c17_47, %c0_48], %88 {strides = array<i32>} : memref<18x18x8xbf16, #tpu.memory_space<vmem>>, vector<18x1x8xbf16>,
      %93 = vector.extract_strided_slice %83 {offsets = [0, 8], sizes = [256, 8], strides = [1, 1]} : vector<256x20xf32> to vector<256x8xf32>
      %94 = arith.truncf %93 : vector<256x8xf32> to vector<256x8xbf16>
      %95 = vector.shape_cast %94 : vector<256x8xbf16> to vector<16x16x8xbf16>
      %c1 = arith.constant 1 : index
      %c1_49 = arith.constant 1 : index
      %c0_50 = arith.constant 0 : index
      %96 = vector.load %arg13[%c1, %c1_49, %c0_50] : memref<18x18x8xbf16, #tpu.memory_space<vmem>>, vector<16x16x8xbf16>
      tpu.vector_store %arg13[%c1, %c1_49, %c0_50], %95 {strides = array<i32>} : memref<18x18x8xbf16, #tpu.memory_space<vmem>>, vector<16x16x8xbf16>,
      %cst_51 = arith.constant 0.000000e+00 : bf16
      %97 = vector.broadcast %cst_51 : bf16 to vector<2x20x4xbf16>
      %cst_52 = arith.constant 0.000000e+00 : bf16
      %98 = vector.broadcast %cst_52 : bf16 to vector<20x2x4xbf16>
      %c0_53 = arith.constant 0 : index
      %c0_54 = arith.constant 0 : index
      %c0_55 = arith.constant 0 : index
      %99 = vector.load %arg14[%c0_53, %c0_54, %c0_55] : memref<20x20x4xbf16, #tpu.memory_space<vmem>>, vector<2x20x4xbf16>
      tpu.vector_store %arg14[%c0_53, %c0_54, %c0_55], %97 {strides = array<i32>} : memref<20x20x4xbf16, #tpu.memory_space<vmem>>, vector<2x20x4xbf16>,
      %c18 = arith.constant 18 : index
      %c0_56 = arith.constant 0 : index
      %c0_57 = arith.constant 0 : index
      %100 = vector.load %arg14[%c18, %c0_56, %c0_57] : memref<20x20x4xbf16, #tpu.memory_space<vmem>>, vector<2x20x4xbf16>
      tpu.vector_store %arg14[%c18, %c0_56, %c0_57], %97 {strides = array<i32>} : memref<20x20x4xbf16, #tpu.memory_space<vmem>>, vector<2x20x4xbf16>,
      %c0_58 = arith.constant 0 : index
      %c0_59 = arith.constant 0 : index
      %c0_60 = arith.constant 0 : index
      %101 = vector.load %arg14[%c0_58, %c0_59, %c0_60] : memref<20x20x4xbf16, #tpu.memory_space<vmem>>, vector<20x2x4xbf16>
      tpu.vector_store %arg14[%c0_58, %c0_59, %c0_60], %98 {strides = array<i32>} : memref<20x20x4xbf16, #tpu.memory_space<vmem>>, vector<20x2x4xbf16>,
      %c0_61 = arith.constant 0 : index
      %c18_62 = arith.constant 18 : index
      %c0_63 = arith.constant 0 : index
      %102 = vector.load %arg14[%c0_61, %c18_62, %c0_63] : memref<20x20x4xbf16, #tpu.memory_space<vmem>>, vector<20x2x4xbf16>
      tpu.vector_store %arg14[%c0_61, %c18_62, %c0_63], %98 {strides = array<i32>} : memref<20x20x4xbf16, #tpu.memory_space<vmem>>, vector<20x2x4xbf16>,
      %103 = vector.extract_strided_slice %83 {offsets = [0, 16], sizes = [256, 4], strides = [1, 1]} : vector<256x20xf32> to vector<256x4xf32>
      %104 = arith.truncf %103 : vector<256x4xf32> to vector<256x4xbf16>
      %105 = vector.shape_cast %104 : vector<256x4xbf16> to vector<16x16x4xbf16>
      %c2 = arith.constant 2 : index
      %c2_64 = arith.constant 2 : index
      %c0_65 = arith.constant 0 : index
      %106 = vector.load %arg14[%c2, %c2_64, %c0_65] : memref<20x20x4xbf16, #tpu.memory_space<vmem>>, vector<16x16x4xbf16>
      tpu.vector_store %arg14[%c2, %c2_64, %c0_65], %105 {strides = array<i32>} : memref<20x20x4xbf16, #tpu.memory_space<vmem>>, vector<16x16x4xbf16>,
      %cst_66 = arith.constant 0xFF800000 : f32
      %107 = vector.broadcast %cst_66 : f32 to vector<1x18x4xf32>
      %cst_67 = arith.constant 0xFF800000 : f32
      %108 = vector.broadcast %cst_67 : f32 to vector<18x1x4xf32>
      %c0_68 = arith.constant 0 : index
      %c0_69 = arith.constant 0 : index
      %c0_70 = arith.constant 0 : index
      %109 = vector.load %arg16[%c0_68, %c0_69, %c0_70] : memref<18x18x4xf32, #tpu.memory_space<vmem>>, vector<1x18x4xf32>
      tpu.vector_store %arg16[%c0_68, %c0_69, %c0_70], %107 {strides = array<i32>} : memref<18x18x4xf32, #tpu.memory_space<vmem>>, vector<1x18x4xf32>,
      %c17_71 = arith.constant 17 : index
      %c0_72 = arith.constant 0 : index
      %c0_73 = arith.constant 0 : index
      %110 = vector.load %arg16[%c17_71, %c0_72, %c0_73] : memref<18x18x4xf32, #tpu.memory_space<vmem>>, vector<1x18x4xf32>
      tpu.vector_store %arg16[%c17_71, %c0_72, %c0_73], %107 {strides = array<i32>} : memref<18x18x4xf32, #tpu.memory_space<vmem>>, vector<1x18x4xf32>,
      %c0_74 = arith.constant 0 : index
      %c0_75 = arith.constant 0 : index
      %c0_76 = arith.constant 0 : index
      %111 = vector.load %arg16[%c0_74, %c0_75, %c0_76] : memref<18x18x4xf32, #tpu.memory_space<vmem>>, vector<18x1x4xf32>
      tpu.vector_store %arg16[%c0_74, %c0_75, %c0_76], %108 {strides = array<i32>} : memref<18x18x4xf32, #tpu.memory_space<vmem>>, vector<18x1x4xf32>,
      %c0_77 = arith.constant 0 : index
      %c17_78 = arith.constant 17 : index
      %c0_79 = arith.constant 0 : index
      %112 = vector.load %arg16[%c0_77, %c17_78, %c0_79] : memref<18x18x4xf32, #tpu.memory_space<vmem>>, vector<18x1x4xf32>
      tpu.vector_store %arg16[%c0_77, %c17_78, %c0_79], %108 {strides = array<i32>} : memref<18x18x4xf32, #tpu.memory_space<vmem>>, vector<18x1x4xf32>,
      %c1_80 = arith.constant 1 : index
      %c1_81 = arith.constant 1 : index
      %c0_82 = arith.constant 0 : index
      %113 = vector.load %arg16[%c1_80, %c1_81, %c0_82] : memref<18x18x4xf32, #tpu.memory_space<vmem>>, vector<16x16x4xf32>
      tpu.vector_store %arg16[%c1_80, %c1_81, %c0_82], %74 {strides = array<i32>} : memref<18x18x4xf32, #tpu.memory_space<vmem>>, vector<16x16x4xf32>,
      %c0_83 = arith.constant 0 : index
      %c0_84 = arith.constant 0 : index
      %c0_85 = arith.constant 0 : index
      %114 = vector.load %arg16[%c0_83, %c0_84, %c0_85] : memref<18x18x4xf32, #tpu.memory_space<vmem>>, vector<18x18x4xf32>
      %115 = vector.extract_strided_slice %114 {offsets = [0, 0, 0], sizes = [18, 16, 4], strides = [1, 1, 1]} : vector<18x18x4xf32> to vector<18x16x4xf32>
      %116 = vector.extract_strided_slice %114 {offsets = [0, 1, 0], sizes = [18, 16, 4], strides = [1, 1, 1]} : vector<18x18x4xf32> to vector<18x16x4xf32>
      %117 = arith.maximumf %115, %116 : vector<18x16x4xf32>
      %118 = vector.extract_strided_slice %114 {offsets = [0, 2, 0], sizes = [18, 16, 4], strides = [1, 1, 1]} : vector<18x18x4xf32> to vector<18x16x4xf32>
      %119 = arith.maximumf %117, %118 : vector<18x16x4xf32>
      %120 = vector.extract_strided_slice %119 {offsets = [0, 0, 0], sizes = [16, 16, 4], strides = [1, 1, 1]} : vector<18x16x4xf32> to vector<16x16x4xf32>
      %121 = vector.extract_strided_slice %119 {offsets = [1, 0, 0], sizes = [16, 16, 4], strides = [1, 1, 1]} : vector<18x16x4xf32> to vector<16x16x4xf32>
      %122 = arith.maximumf %120, %121 : vector<16x16x4xf32>
      %123 = vector.extract_strided_slice %119 {offsets = [2, 0, 0], sizes = [16, 16, 4], strides = [1, 1, 1]} : vector<18x16x4xf32> to vector<16x16x4xf32>
      %124 = arith.maximumf %122, %123 : vector<16x16x4xf32>
      %125 = vector.shape_cast %124 : vector<16x16x4xf32> to vector<256x4xf32>
      %126 = arith.truncf %125 : vector<256x4xf32> to vector<256x4xbf16>
      %c0_86 = arith.constant 0 : index
      %c0_87 = arith.constant 0 : index
      %127 = vector.load %arg9[%c0_86, %c0_87] : memref<4x8xbf16, #tpu.memory_space<vmem>>, vector<4x8xbf16>
      %cst_88 = arith.constant dense<0.000000e+00> : vector<256x8xf32>
      %128 = tpu.matmul %126, %127, %cst_88 {dimension_numbers = #tpu.dot_dimension_numbers<[1], [0], [0], [1], [0, 0, 1, 1], [], []>} : vector<256x4xbf16>, vector<4x8xbf16>, vector<256x8xf32> -> vector<256x8xf32>
      %c0_89 = arith.constant 0 : index
      %c0_90 = arith.constant 0 : index
      %129 = vector.load %arg10[%c0_89, %c0_90] : memref<1x8xf32, #tpu.memory_space<vmem>>, vector<1x8xf32>
      %130 = vector.broadcast %129 : vector<1x8xf32> to vector<256x8xf32>
      %131 = arith.addf %128, %130 : vector<256x8xf32>
      %cst_91 = arith.constant 0.000000e+00 : f32
      %132 = vector.broadcast %cst_91 : f32 to vector<256x8xf32>
      %133 = arith.maximumf %131, %132 : vector<256x8xf32>
      %134 = vector.shape_cast %133 : vector<256x8xf32> to vector<16x16x8xf32>
      %c0_92 = arith.constant 0 : index
      %c0_93 = arith.constant 0 : index
      %c0_94 = arith.constant 0 : index
      %135 = vector.load %arg15[%c0_92, %c0_93, %c0_94] : memref<16x16x8xf32, #tpu.memory_space<vmem>>, vector<16x16x8xf32>
      tpu.vector_store %arg15[%c0_92, %c0_93, %c0_94], %134 {strides = array<i32>} : memref<16x16x8xf32, #tpu.memory_space<vmem>>, vector<16x16x8xf32>,
    } else {
    }
    %c8_i32 = arith.constant 8 : i32
    %3 = arith.muli %arg1, %c8_i32 : i32
    %4 = tpu.assume_multiple %3, 8 : i32
    %5 = arith.index_cast %4 : i32 to index
    %c0 = arith.constant 0 : index
    %c0_1 = arith.constant 0 : index
    %6 = vector.load %arg12[%5, %c0, %c0_1] : memref<16x16x8xf32, #tpu.memory_space<vmem>>, vector<8x16x8xf32>
    %7 = arith.index_cast %4 : i32 to index
    %c0_2 = arith.constant 0 : index
    %c0_3 = arith.constant 0 : index
    %8 = vector.load %arg15[%7, %c0_2, %c0_3] : memref<16x16x8xf32, #tpu.memory_space<vmem>>, vector<8x16x8xf32>
    %9 = arith.index_cast %4 : i32 to index
    %c0_4 = arith.constant 0 : index
    %c0_5 = arith.constant 0 : index
    %10 = vector.load %arg13[%9, %c0_4, %c0_5] : memref<18x18x8xbf16, #tpu.memory_space<vmem>>, vector<10x18x8xbf16>
    %11 = vector.extract_strided_slice %10 {offsets = [0, 0, 0], sizes = [8, 16, 8], strides = [1, 1, 1]} : vector<10x18x8xbf16> to vector<8x16x8xbf16>
    %12 = vector.extract_strided_slice %10 {offsets = [0, 1, 0], sizes = [8, 16, 8], strides = [1, 1, 1]} : vector<10x18x8xbf16> to vector<8x16x8xbf16>
    %13 = vector.extract_strided_slice %10 {offsets = [0, 2, 0], sizes = [8, 16, 8], strides = [1, 1, 1]} : vector<10x18x8xbf16> to vector<8x16x8xbf16>
    %14 = vector.extract_strided_slice %10 {offsets = [1, 0, 0], sizes = [8, 16, 8], strides = [1, 1, 1]} : vector<10x18x8xbf16> to vector<8x16x8xbf16>
    %15 = vector.extract_strided_slice %10 {offsets = [1, 1, 0], sizes = [8, 16, 8], strides = [1, 1, 1]} : vector<10x18x8xbf16> to vector<8x16x8xbf16>
    %16 = vector.extract_strided_slice %10 {offsets = [1, 2, 0], sizes = [8, 16, 8], strides = [1, 1, 1]} : vector<10x18x8xbf16> to vector<8x16x8xbf16>
    %17 = vector.extract_strided_slice %10 {offsets = [2, 0, 0], sizes = [8, 16, 8], strides = [1, 1, 1]} : vector<10x18x8xbf16> to vector<8x16x8xbf16>
    %18 = vector.extract_strided_slice %10 {offsets = [2, 1, 0], sizes = [8, 16, 8], strides = [1, 1, 1]} : vector<10x18x8xbf16> to vector<8x16x8xbf16>
    %19 = vector.extract_strided_slice %10 {offsets = [2, 2, 0], sizes = [8, 16, 8], strides = [1, 1, 1]} : vector<10x18x8xbf16> to vector<8x16x8xbf16>
    %20 = tpu.concatenate %11, %12, %13, %14, %15, %16, %17, %18, %19 in 2 : vector<8x16x8xbf16>, vector<8x16x8xbf16>, vector<8x16x8xbf16>, vector<8x16x8xbf16>, vector<8x16x8xbf16>, vector<8x16x8xbf16>, vector<8x16x8xbf16>, vector<8x16x8xbf16>, vector<8x16x8xbf16> -> vector<8x16x72xbf16>
    %21 = vector.shape_cast %20 : vector<8x16x72xbf16> to vector<128x72xbf16>
    %c0_6 = arith.constant 0 : index
    %c0_7 = arith.constant 0 : index
    %22 = vector.load %arg5[%c0_6, %c0_7] : memref<72x16xbf16, #tpu.memory_space<vmem>>, vector<72x16xbf16>
    %cst = arith.constant dense<0.000000e+00> : vector<128x16xf32>
    %23 = tpu.matmul %21, %22, %cst {dimension_numbers = #tpu.dot_dimension_numbers<[1], [0], [0], [1], [0, 0, 1, 1], [], []>} : vector<128x72xbf16>, vector<72x16xbf16>, vector<128x16xf32> -> vector<128x16xf32>
    %c0_8 = arith.constant 0 : index
    %c0_9 = arith.constant 0 : index
    %24 = vector.load %arg6[%c0_8, %c0_9] : memref<1x16xf32, #tpu.memory_space<vmem>>, vector<1x16xf32>
    %25 = vector.broadcast %24 : vector<1x16xf32> to vector<128x16xf32>
    %26 = arith.addf %23, %25 : vector<128x16xf32>
    %cst_10 = arith.constant 0.000000e+00 : f32
    %27 = vector.broadcast %cst_10 : f32 to vector<128x16xf32>
    %28 = arith.maximumf %26, %27 : vector<128x16xf32>
    %29 = vector.shape_cast %28 : vector<128x16xf32> to vector<8x16x16xf32>
    %30 = arith.index_cast %4 : i32 to index
    %c0_11 = arith.constant 0 : index
    %c0_12 = arith.constant 0 : index
    %31 = vector.load %arg14[%30, %c0_11, %c0_12] : memref<20x20x4xbf16, #tpu.memory_space<vmem>>, vector<12x20x4xbf16>
    %32 = vector.extract_strided_slice %31 {offsets = [0, 0, 0], sizes = [8, 16, 4], strides = [1, 1, 1]} : vector<12x20x4xbf16> to vector<8x16x4xbf16>
    %33 = vector.extract_strided_slice %31 {offsets = [0, 1, 0], sizes = [8, 16, 4], strides = [1, 1, 1]} : vector<12x20x4xbf16> to vector<8x16x4xbf16>
    %34 = vector.extract_strided_slice %31 {offsets = [0, 2, 0], sizes = [8, 16, 4], strides = [1, 1, 1]} : vector<12x20x4xbf16> to vector<8x16x4xbf16>
    %35 = vector.extract_strided_slice %31 {offsets = [0, 3, 0], sizes = [8, 16, 4], strides = [1, 1, 1]} : vector<12x20x4xbf16> to vector<8x16x4xbf16>
    %36 = vector.extract_strided_slice %31 {offsets = [0, 4, 0], sizes = [8, 16, 4], strides = [1, 1, 1]} : vector<12x20x4xbf16> to vector<8x16x4xbf16>
    %37 = vector.extract_strided_slice %31 {offsets = [1, 0, 0], sizes = [8, 16, 4], strides = [1, 1, 1]} : vector<12x20x4xbf16> to vector<8x16x4xbf16>
    %38 = vector.extract_strided_slice %31 {offsets = [1, 1, 0], sizes = [8, 16, 4], strides = [1, 1, 1]} : vector<12x20x4xbf16> to vector<8x16x4xbf16>
    %39 = vector.extract_strided_slice %31 {offsets = [1, 2, 0], sizes = [8, 16, 4], strides = [1, 1, 1]} : vector<12x20x4xbf16> to vector<8x16x4xbf16>
    %40 = vector.extract_strided_slice %31 {offsets = [1, 3, 0], sizes = [8, 16, 4], strides = [1, 1, 1]} : vector<12x20x4xbf16> to vector<8x16x4xbf16>
    %41 = vector.extract_strided_slice %31 {offsets = [1, 4, 0], sizes = [8, 16, 4], strides = [1, 1, 1]} : vector<12x20x4xbf16> to vector<8x16x4xbf16>
    %42 = vector.extract_strided_slice %31 {offsets = [2, 0, 0], sizes = [8, 16, 4], strides = [1, 1, 1]} : vector<12x20x4xbf16> to vector<8x16x4xbf16>
    %43 = vector.extract_strided_slice %31 {offsets = [2, 1, 0], sizes = [8, 16, 4], strides = [1, 1, 1]} : vector<12x20x4xbf16> to vector<8x16x4xbf16>
    %44 = vector.extract_strided_slice %31 {offsets = [2, 2, 0], sizes = [8, 16, 4], strides = [1, 1, 1]} : vector<12x20x4xbf16> to vector<8x16x4xbf16>
    %45 = vector.extract_strided_slice %31 {offsets = [2, 3, 0], sizes = [8, 16, 4], strides = [1, 1, 1]} : vector<12x20x4xbf16> to vector<8x16x4xbf16>
    %46 = vector.extract_strided_slice %31 {offsets = [2, 4, 0], sizes = [8, 16, 4], strides = [1, 1, 1]} : vector<12x20x4xbf16> to vector<8x16x4xbf16>
    %47 = vector.extract_strided_slice %31 {offsets = [3, 0, 0], sizes = [8, 16, 4], strides = [1, 1, 1]} : vector<12x20x4xbf16> to vector<8x16x4xbf16>
    %48 = vector.extract_strided_slice %31 {offsets = [3, 1, 0], sizes = [8, 16, 4], strides = [1, 1, 1]} : vector<12x20x4xbf16> to vector<8x16x4xbf16>
    %49 = vector.extract_strided_slice %31 {offsets = [3, 2, 0], sizes = [8, 16, 4], strides = [1, 1, 1]} : vector<12x20x4xbf16> to vector<8x16x4xbf16>
    %50 = vector.extract_strided_slice %31 {offsets = [3, 3, 0], sizes = [8, 16, 4], strides = [1, 1, 1]} : vector<12x20x4xbf16> to vector<8x16x4xbf16>
    %51 = vector.extract_strided_slice %31 {offsets = [3, 4, 0], sizes = [8, 16, 4], strides = [1, 1, 1]} : vector<12x20x4xbf16> to vector<8x16x4xbf16>
    %52 = vector.extract_strided_slice %31 {offsets = [4, 0, 0], sizes = [8, 16, 4], strides = [1, 1, 1]} : vector<12x20x4xbf16> to vector<8x16x4xbf16>
    %53 = vector.extract_strided_slice %31 {offsets = [4, 1, 0], sizes = [8, 16, 4], strides = [1, 1, 1]} : vector<12x20x4xbf16> to vector<8x16x4xbf16>
    %54 = vector.extract_strided_slice %31 {offsets = [4, 2, 0], sizes = [8, 16, 4], strides = [1, 1, 1]} : vector<12x20x4xbf16> to vector<8x16x4xbf16>
    %55 = vector.extract_strided_slice %31 {offsets = [4, 3, 0], sizes = [8, 16, 4], strides = [1, 1, 1]} : vector<12x20x4xbf16> to vector<8x16x4xbf16>
    %56 = vector.extract_strided_slice %31 {offsets = [4, 4, 0], sizes = [8, 16, 4], strides = [1, 1, 1]} : vector<12x20x4xbf16> to vector<8x16x4xbf16>
    %57 = tpu.concatenate %32, %33, %34, %35, %36, %37, %38, %39, %40, %41, %42, %43, %44, %45, %46, %47 in 2 : vector<8x16x4xbf16>, vector<8x16x4xbf16>, vector<8x16x4xbf16>, vector<8x16x4xbf16>, vector<8x16x4xbf16>, vector<8x16x4xbf16>, vector<8x16x4xbf16>, vector<8x16x4xbf16>, vector<8x16x4xbf16>, vector<8x16x4xbf16>, vector<8x16x4xbf16>, vector<8x16x4xbf16>, vector<8x16x4xbf16>, vector<8x16x4xbf16>, vector<8x16x4xbf16>, vector<8x16x4xbf16> -> vector<8x16x64xbf16>
    %58 = tpu.concatenate %48, %49, %50, %51, %52, %53, %54, %55, %56 in 2 : vector<8x16x4xbf16>, vector<8x16x4xbf16>, vector<8x16x4xbf16>, vector<8x16x4xbf16>, vector<8x16x4xbf16>, vector<8x16x4xbf16>, vector<8x16x4xbf16>, vector<8x16x4xbf16>, vector<8x16x4xbf16> -> vector<8x16x36xbf16>
    %59 = tpu.concatenate %57, %58 in 2 : vector<8x16x64xbf16>, vector<8x16x36xbf16> -> vector<8x16x100xbf16>
    %60 = vector.shape_cast %59 : vector<8x16x100xbf16> to vector<128x100xbf16>
    %c0_13 = arith.constant 0 : index
    %c0_14 = arith.constant 0 : index
    %61 = vector.load %arg7[%c0_13, %c0_14] : memref<100x8xbf16, #tpu.memory_space<vmem>>, vector<100x8xbf16>
    %cst_15 = arith.constant dense<0.000000e+00> : vector<128x8xf32>
    %62 = tpu.matmul %60, %61, %cst_15 {dimension_numbers = #tpu.dot_dimension_numbers<[1], [0], [0], [1], [0, 0, 1, 1], [], []>} : vector<128x100xbf16>, vector<100x8xbf16>, vector<128x8xf32> -> vector<128x8xf32>
    %c0_16 = arith.constant 0 : index
    %c0_17 = arith.constant 0 : index
    %63 = vector.load %arg8[%c0_16, %c0_17] : memref<1x8xf32, #tpu.memory_space<vmem>>, vector<1x8xf32>
    %64 = vector.broadcast %63 : vector<1x8xf32> to vector<128x8xf32>
    %65 = arith.addf %62, %64 : vector<128x8xf32>
    %cst_18 = arith.constant 0.000000e+00 : f32
    %66 = vector.broadcast %cst_18 : f32 to vector<128x8xf32>
    %67 = arith.maximumf %65, %66 : vector<128x8xf32>
    %68 = vector.shape_cast %67 : vector<128x8xf32> to vector<8x16x8xf32>
    %69 = tpu.concatenate %6, %29, %68, %8 in 2 : vector<8x16x8xf32>, vector<8x16x16xf32>, vector<8x16x8xf32>, vector<8x16x8xf32> -> vector<8x16x40xf32>
    %c0_19 = arith.constant 0 : index
    %c0_20 = arith.constant 0 : index
    %c0_21 = arith.constant 0 : index
    %c0_22 = arith.constant 0 : index
    %70 = vector.load %arg11[%c0_19, %c0_20, %c0_21, %c0_22] : memref<1x8x16x40xf32, #tpu.memory_space<vmem>>, vector<1x8x16x40xf32>
    %71 = vector.shape_cast %70 : vector<1x8x16x40xf32> to vector<8x16x40xf32>
    %72 = vector.shape_cast %69 : vector<8x16x40xf32> to vector<1x8x16x40xf32>
    tpu.vector_store %arg11[%c0_19, %c0_20, %c0_21, %c0_22], %72 {strides = array<i32>} : memref<1x8x16x40xf32, #tpu.memory_space<vmem>>, vector<1x8x16x40xf32>,
    return
  }
  func.func @transform_0(%arg0: i32, %arg1: i32) -> (i32, i32, i32, i32) {
    %c0_i32 = arith.constant 0 : i32
    %c0_i32_0 = arith.constant 0 : i32
    %c0_i32_1 = arith.constant 0 : i32
    %c0_i32_2 = arith.constant 0 : i32
    return %arg0, %c0_i32, %c0_i32_0, %c0_i32_1 : i32, i32, i32, i32
  }
  func.func @transform_1(%arg0: i32, %arg1: i32) -> (i32, i32) {
    %c0_i32 = arith.constant 0 : i32
    %c0_i32_0 = arith.constant 0 : i32
    %c0_i32_1 = arith.constant 0 : i32
    return %c0_i32, %c0_i32_0 : i32, i32
  }
  func.func @transform_2(%arg0: i32, %arg1: i32) -> (i32, i32) {
    %c0_i32 = arith.constant 0 : i32
    %c0_i32_0 = arith.constant 0 : i32
    %c0_i32_1 = arith.constant 0 : i32
    return %c0_i32, %c0_i32_0 : i32, i32
  }
  func.func @transform_3(%arg0: i32, %arg1: i32) -> (i32, i32) {
    %c0_i32 = arith.constant 0 : i32
    %c0_i32_0 = arith.constant 0 : i32
    %c0_i32_1 = arith.constant 0 : i32
    return %c0_i32, %c0_i32_0 : i32, i32
  }
  func.func @transform_4(%arg0: i32, %arg1: i32) -> (i32, i32) {
    %c0_i32 = arith.constant 0 : i32
    %c0_i32_0 = arith.constant 0 : i32
    %c0_i32_1 = arith.constant 0 : i32
    return %c0_i32, %c0_i32_0 : i32, i32
  }
  func.func @transform_5(%arg0: i32, %arg1: i32) -> (i32, i32) {
    %c0_i32 = arith.constant 0 : i32
    %c0_i32_0 = arith.constant 0 : i32
    %c0_i32_1 = arith.constant 0 : i32
    return %c0_i32, %c0_i32_0 : i32, i32
  }
  func.func @transform_6(%arg0: i32, %arg1: i32) -> (i32, i32) {
    %c0_i32 = arith.constant 0 : i32
    %c0_i32_0 = arith.constant 0 : i32
    %c0_i32_1 = arith.constant 0 : i32
    return %c0_i32, %c0_i32_0 : i32, i32
  }
  func.func @transform_7(%arg0: i32, %arg1: i32) -> (i32, i32) {
    %c0_i32 = arith.constant 0 : i32
    %c0_i32_0 = arith.constant 0 : i32
    %c0_i32_1 = arith.constant 0 : i32
    return %c0_i32, %c0_i32_0 : i32, i32
  }
  func.func @transform_8(%arg0: i32, %arg1: i32) -> (i32, i32) {
    %c0_i32 = arith.constant 0 : i32
    %c0_i32_0 = arith.constant 0 : i32
    %c0_i32_1 = arith.constant 0 : i32
    return %c0_i32, %c0_i32_0 : i32, i32
  }
  func.func @transform_9(%arg0: i32, %arg1: i32) -> (i32, i32, i32, i32) {
    %c0_i32 = arith.constant 0 : i32
    %c0_i32_0 = arith.constant 0 : i32
    %c0_i32_1 = arith.constant 0 : i32
    return %arg0, %arg1, %c0_i32, %c0_i32_0 : i32, i32, i32, i32
  }
}

</mosaic_0001>

<bundles_post_ra>
// kernel: tpu_custom_call.1
= control target key start
LH: loop header
LB: loop body
LE: loop exit
PB: predicated region body
PF: predicated region fallthrough
CT: control target
= control target key end

     0   :  { %14 = vsyncpa [#allocation8], 0  ;;  %s9923_s0 = inlined_call_operand.vmem [shape: f32[2,16,16,4], index: 0, kind: input, shape index: {}]   ;;  %s9924_s1 = inlined_call_operand.vmem [shape: bf16[4,20], index: 1, kind: input, shape index: {}]   ;;  %s9925_s2 = inlined_call_operand.vmem [shape: f32[1,20], index: 2, kind: input, shape index: {}]   ;;  %s9926_s3 = inlined_call_operand.vmem [shape: bf16[72,16], index: 3, kind: input, shape index: {}]   ;;  %s9927_s4 = inlined_call_operand.vmem [shape: f32[1,16], index: 4, kind: input, shape index: {}]   ;;  %s9928_s5 = inlined_call_operand.vmem [shape: bf16[100,8], index: 5, kind: input, shape index: {}]   ;;  %s9929_s6 = inlined_call_operand.vmem [shape: f32[1,8], index: 6, kind: input, shape index: {}]   ;;  %s9930_s7 = inlined_call_operand.vmem [shape: bf16[4,8], index: 7, kind: input, shape index: {}]   ;;  %s9931_s8 = inlined_call_operand.vmem [shape: f32[1,8], index: 8, kind: input, shape index: {}]   ;;  %s9932_s9 = inlined_call_operand.hbm [shape: f32[2,16,16,40], index: 9, kind: output, shape index: {}]  }
   0x1   :  { %16 = vsyncpa [#allocation8 + $0x1], 0  ;;  %s5644_s30 = smov 0   ;;  %s5646_s10 = smov 0  }
   0x2   :  { %s5648_s11 = smov 0   ;;  %s5650_s12 = smov 0  }
   0x3   :  { %s5652_s13 = smov 0   ;;  %s5654_s14 = smov 0  }
   0x4   :  { %s5656_s15 = smov 0   ;;  %s5658_s16 = smov 0  }
   0x5 LB: > { %10053 = sst [smem:[#allocation10_spill]] %s5563_s14  ;;  %s5117_s17 = sadd.s32 4294967295, %s5571_s16   ;;  %s5571_s16 = sphi %s5658_s16, %s22_s16   ;;  %s5567_s15 = sphi %s5656_s15, %s10384_s15   ;;  %s5563_s14 = sphi %s5654_s14, %s10378_s14   ;;  %s5559_s13 = sphi %s5652_s13, %s10383_s13   ;;  %s5555_s12 = sphi %s5650_s12, %s10377_s12   ;;  %s5551_s11 = sphi %s5648_s11, %s10382_s11   ;;  %s5547_s10 = sphi %s5646_s10, %s10381_s10   ;;  %s5543_s30 = sphi %s5644_s30, %s10380_s30  }
   0x6   : > { %s5118_s18 = sadd.s32 4294967294, %s5571_s16   ;;  %s31_s19 = sadd.s32 1, %s5563_s14 }
   0x7   : > { %p32_p0 = scmp.ge.s32.totalorder %s31_s19, 2  ;;  %s34_s20 = sadd.s32 1, %s5567_s15 }
   0x8   : > { %p247_p1 = scmp.ne.s32.totalorder %s5551_s11, %s5547_s10  ;;  %p248_p2 = scmp.eq.s32.totalorder %s5117_s17, 3 }
   0x9   : > { %s10386_s19 = smov (%p32_p0, %s31_s19), 0  ;;  %s10388_s20 = smov (!%p32_p0, %s34_s20), %s5567_s15 }
   0xa   : > { %10054 = sst [smem:[#allocation11_spill]] %s10386_s19  ;;  %s233_s21 = ssub.s32 %s5563_s14, %s10386_s19 }
   0xb   : > { %p5695_p3 = por %p248_p2, %p247_p1  ;;  %p36_p4 = scmp.ge.s32.totalorder %s10388_s20, 2 }
   0xc   : > { %p253_p5 = scmp.ne.s32.totalorder %s5547_s10, %s5543_s30  ;;  %p254_p6 = scmp.eq.s32.totalorder %s5118_s18, 3 }
   0xd   : > { %p5121_p7 = scmp.ge.s32.totalorder %s5571_s16, 1  ;;  %s10390_s20 = smov (%p36_p4, %s10388_s20), 0 }
   0xe   : > { %10056 = sst [smem:[#allocation12_spill]] %s10390_s20  ;;  %p5704_p8 = por %p254_p6, %p253_p5 }
   0xf   : > { %p304_p9 = scmp.lt.s32.totalorder %s5571_s16, 5  ;;  %s232_s24 = ssub.s32 %s5567_s15, %s10390_s20 }
  0x10   : > { %s237_s25 = sadd.s32 1, %s5551_s11  ;;  %s234_s26 = sor.u32 %s233_s21, %s232_s24 }
  0x11   : > { %p305_p10 = pnand %p5121_p7, %p304_p9  ;;  %p235_p11 = scmp.eq.s32.totalorder %s234_s26, 0 }
  0x13   : > { %s5713_s27 = scalar_select %p235_p11, %s5551_s11, %s237_s25  }
  0x14   : > { %308 = sbr.rel (%p305_p10) target bundleno = 1849 (0x739), region = 56 }
  0x19   : > { %s9936_s28 = sand.u32 1, %s5547_s10   ;;  %p340_p12 = scmp.lt.s32.totalorder %s5559_s13, 1 }
  0x1a   : > { %s5122_s29 = sshll.u32 %s9936_s28, 7  ;;  %p5125_p13 = scmp.ne.s32.totalorder %s5555_s12, 0 }
  0x1b   : > { %s341_s17 = scalar_select %p340_p12, %s5559_s13, 1 }
  0x1c   : > { %s5725_s21 = scalar_lea.vmem [#allocation7], %s5122_s29  ;;  %350 = sbr.rel (%p5125_p13) target bundleno = 565 (0x235), region = 60 }
  0x1d   : > { %s5314_s18 = sshll.u32 %s341_s17, 8  ;;  %s5573_s26 = smov (!%p5125_p13), 112  }
  0x1e   : > { %s5723_s20 = scalar_lea.vmem %s9923_s0, %s5314_s18  ;;  %s5574_s29 = smov (!%p5125_p13), 120  }
  0x21   : > { %v399_v0 = vld [vmem:[%s9924_s1] sm:$0x3]  ;;  %vm453_vm0 = vcmask 1041408   ;;  %v352_v2 = vld [vmem:[%s5723_s20 + $0x8] sm:$0xff]  ;;  %vm404_vm1 = vcmask 31744   ;;  %v353_v8 = vld [vmem:[%s5723_s20 + $0x10] sm:$0xff] }
  0x22   : > { %v351_v1 = vld [vmem:[%s5723_s20] sm:$0xff]  ;;  %v455_v3 = vsel %vm453_vm0, %v399_v0, 0  ;;  %v368_v6 = vld [vmem:[%s5723_s20 + $0x88] sm:$0xff]  ;;  %1709 = vst.msk [vmem:[#allocation6 + $0x21] sm:$0xff] %vm404_vm1, %v352_v2  ;;  %v354_v9 = vld [vmem:[%s5723_s20 + $0x18] sm:$0xff]  ;;  %vm578_vm2 = vcmask 64512  }
  0x23   : > { %v383_v4 = vpack.c.bf16 %v352_v2, %v351_v1  ;;  %1708 = vst.msk [vmem:[#allocation6 + $0x19] sm:$0xff] %vm404_vm1, %v351_v1  ;;  %v367_v5 = vld [vmem:[%s5723_s20 + $0x80] sm:$0xff]  ;;  %464 = vmatpush.bf16.msra.mxu0 %v455_v3  ;;  %5351 = vmatpush.bf16.msra.mxu2 %v455_v3  ;;  %v369_v10 = vld [vmem:[%s5723_s20 + $0x90] sm:$0xff]  ;;  %v370_v11 = vld [vmem:[%s5723_s20 + $0x98] sm:$0xff]  ;;  %v384_v18 = vpack.c.bf16 %v354_v9, %v353_v8  ;;  %vm1387_vm3 = vcmask 1040384   ;;  %vm1388_vm4 = vcmask 1044484  }
  0x24   : > { %v391_v7 = vpack.c.bf16 %v368_v6, %v367_v5  ;;  %1724 = vst.msk [vmem:[#allocation6 + $0xd9] sm:$0xff] %vm404_vm1, %v367_v5  ;;  %v355_v12 = vld [vmem:[%s5723_s20 + $0x20] sm:$0xff]  ;;  %v356_v13 = vld [vmem:[%s5723_s20 + $0x28] sm:$0xff]  ;;  %v357_v16 = vld [vmem:[%s5723_s20 + $0x30] sm:$0xff]  ;;  %v392_v19 = vpack.c.bf16 %v370_v11, %v369_v10  ;;  %vm621_vm6 = vsmask.f32 256 }
  0x25   : > { %1725 = vst.msk [vmem:[#allocation6 + $0xe1] sm:$0xff] %vm404_vm1, %v368_v6  ;;  %v371_v14 = vld [vmem:[%s5723_s20 + $0xa0] sm:$0xff]  ;;  %v372_v15 = vld [vmem:[%s5723_s20 + $0xa8] sm:$0xff]  ;;  %v358_v17 = vld [vmem:[%s5723_s20 + $0x38] sm:$0xff]  ;;  %v385_v24 = vpack.c.bf16 %v356_v13, %v355_v12  ;;  %vm765_vm7 = vsmask.f32 4368 }
  0x26   : > { %5126 = vmatmul.msk.bf16.vlgmr.msra.gmra.mxu0 %vm404_vm1, %v383_v4  ;;  %5134 = vmatmul.msk.bf16.vlgmr.msra.gmra.mxu2 %vm404_vm1, %v391_v7  ;;  %1710 = vst.msk [vmem:[#allocation6 + $0x31] sm:$0xff] %vm404_vm1, %v353_v8  ;;  %v373_v20 = vld [vmem:[%s5723_s20 + $0xb0] sm:$0xff]  ;;  %v374_v21 = vld [vmem:[%s5723_s20 + $0xb8] sm:$0xff]  ;;  %v359_v22 = vld [vmem:[%s5723_s20 + $0x40] sm:$0xff]  ;;  %v393_v25 = vpack.c.bf16 %v372_v15, %v371_v14  ;;  %v386_v26 = vpack.c.bf16 %v358_v17, %v357_v16  ;;  %vm1313_vm9 = vcmask 24576   ;;  %vm1848_vm10 = vcmask 1046528  }
  0x27   : > { %1711 = vst.msk [vmem:[#allocation6 + $0x39] sm:$0xff] %vm404_vm1, %v354_v9  ;;  %v360_v23 = vld [vmem:[%s5723_s20 + $0x48] sm:$0xff]  ;;  %v394_v27 = vpack.c.bf16 %v374_v21, %v373_v20  ;;  %v375_v29 = vld [vmem:[%s5723_s20 + $0xc0] sm:$0xff]  ;;  %v361_v32 = vld [vmem:[%s5723_s20 + $0x50] sm:$0xff]  ;;  %vm2011_vm11 = vcmask 1045504   ;;  %vm1301_vm12 = vcmask 25600  }
  0x28   : > { %1726 = vst.msk [vmem:[#allocation6 + $0xf1] sm:$0xff] %vm404_vm1, %v369_v10  ;;  %v387_v28 = vpack.c.bf16 %v360_v23, %v359_v22  ;;  %v376_v30 = vld [vmem:[%s5723_s20 + $0xc8] sm:$0xff]  ;;  %v362_v33 = vld [vmem:[%s5723_s20 + $0x58] sm:$0xff]  ;;  %v5790_v35 = vld [vmem:[%s9925_s2] ss:$0 sm:$0xff]  ;;  %vm1334_vm13 = vcmask 25601  }
  0x29   : > { %1727 = vst.msk [vmem:[#allocation6 + $0xf9] sm:$0xff] %vm404_vm1, %v370_v11  ;;  %v395_v31 = vpack.c.bf16 %v376_v30, %v375_v29  ;;  %v388_v34 = vpack.c.bf16 %v362_v33, %v361_v32  ;;  %v377_v38 = vld [vmem:[%s5723_s20 + $0xd0] sm:$0xff]  ;;  %v378_v39 = vld [vmem:[%s5723_s20 + $0xd8] sm:$0xff]  ;;  %vm5808_vm5 = vmor %vm1387_vm3, %vm1388_vm4  ;;  %vm614_vm14 = vcmask 57344   ;;  %vm677_vm15 = vsmask.f32 7938 }
  0x2a   : > { %1712 = vst.msk [vmem:[#allocation6 + $0x49] sm:$0xff] %vm404_vm1, %v355_v12  ;;  %v396_v40 = vpack.c.bf16 %v378_v39, %v377_v38  ;;  %v363_v5 = vld [vmem:[%s5723_s20 + $0x60] sm:$0xff]  ;;  %v364_v6 = vld [vmem:[%s5723_s20 + $0x68] sm:$0xff]  ;;  %vm5862_vm8 = vmor %vm621_vm6, %vm765_vm7  ;;  %vm1615_vm3 = vcmask 27649   ;;  %vm1298_vm7 = vcmask 27648  }
  0x2b   : > { %1713 = vst.msk [vmem:[#allocation6 + $0x51] sm:$0xff] %vm404_vm1, %v356_v13  ;;  %v389_v8 = vpack.c.bf16 %v364_v6, %v363_v5  ;;  %vm6398_vm4 = vmand %vm614_vm14, %vm621_vm6  ;;  %vm611_vm6 = vcmask 60416  }
  0x2c   : > { %1728 = vst.msk [vmem:[#allocation6 + $0x109] sm:$0xff] %vm404_vm1, %v371_v14 }
  0x2d   : > { %1729 = vst.msk [vmem:[#allocation6 + $0x111] sm:$0xff] %vm404_vm1, %v372_v15 }
  0x2e   : > { %1714 = vst.msk [vmem:[#allocation6 + $0x61] sm:$0xff] %vm404_vm1, %v357_v16 }
  0x2f   : > { %1715 = vst.msk [vmem:[#allocation6 + $0x69] sm:$0xff] %vm404_vm1, %v358_v17 }
  0x30   : > { %1730 = vst.msk [vmem:[#allocation6 + $0x121] sm:$0xff] %vm404_vm1, %v373_v20 }
  0x31   : > { %1731 = vst.msk [vmem:[#allocation6 + $0x129] sm:$0xff] %vm404_vm1, %v374_v21 }
  0x32   : > { %1716 = vst.msk [vmem:[#allocation6 + $0x79] sm:$0xff] %vm404_vm1, %v359_v22 }
  0x33   : > { %1717 = vst.msk [vmem:[#allocation6 + $0x81] sm:$0xff] %vm404_vm1, %v360_v23 }
  0x34   : > { %1732 = vst.msk [vmem:[#allocation6 + $0x139] sm:$0xff] %vm404_vm1, %v375_v29 }
  0x35   : > { %1733 = vst.msk [vmem:[#allocation6 + $0x141] sm:$0xff] %vm404_vm1, %v376_v30 }
  0x36   : > { %5127 = vmatmul.msk.bf16.gmra.mxu0 %vm404_vm1, %v384_v18  ;;  %5135 = vmatmul.msk.bf16.gmra.mxu2 %vm404_vm1, %v392_v19  ;;  %1718 = vst.msk [vmem:[#allocation6 + $0x91] sm:$0xff] %vm404_vm1, %v361_v32 }
  0x37   : > { %1719 = vst.msk [vmem:[#allocation6 + $0x99] sm:$0xff] %vm404_vm1, %v362_v33 }
  0x38   : > { %1734 = vst.msk [vmem:[#allocation6 + $0x151] sm:$0xff] %vm404_vm1, %v377_v38 }
  0x39   : > { %1735 = vst.msk [vmem:[#allocation6 + $0x159] sm:$0xff] %vm404_vm1, %v378_v39 }
  0x3a   : > { %1720 = vst.msk [vmem:[#allocation6 + $0xa9] sm:$0xff] %vm404_vm1, %v363_v5 }
  0x3b   : > { %1721 = vst.msk [vmem:[#allocation6 + $0xb1] sm:$0xff] %vm404_vm1, %v364_v6 }
  0x46   : > { %5128 = vmatmul.msk.bf16.gmra.mxu0 %vm404_vm1, %v385_v24  ;;  %5136 = vmatmul.msk.bf16.gmra.mxu2 %vm404_vm1, %v393_v25 }
  0x56   : > { %5129 = vmatmul.msk.bf16.gmra.mxu0 %vm404_vm1, %v386_v26  ;;  %5137 = vmatmul.msk.bf16.gmra.mxu2 %vm404_vm1, %v394_v27 }
  0x66   : > { %5130 = vmatmul.msk.bf16.gmra.mxu0 %vm404_vm1, %v387_v28  ;;  %5138 = vmatmul.msk.bf16.gmra.mxu2 %vm404_vm1, %v395_v31 }
  0x76   : > { %5131 = vmatmul.msk.bf16.gmra.mxu0 %vm404_vm1, %v388_v34  ;;  %5139 = vmatmul.msk.bf16.gmra.mxu2 %vm404_vm1, %v396_v40 }
  0x86   : > { %5132 = vmatmul.msk.bf16.gmra.mxu0 %vm404_vm1, %v389_v8  ;;  %v365_v8 = vld [vmem:[%s5723_s20 + $0x70] sm:$0xff] }
  0x87   : > { %1722 = vst.msk [vmem:[#allocation6 + $0xc1] sm:$0xff] %vm404_vm1, %v365_v8 }
  0xa3   : > { %v466_v36 = vpop.f32.mrf.mxu0 }
  0xa4   : > { %v467_v37 = vadd.f32 %v5790_v35, %v466_v36  ;;  %v379_v36 = vld [vmem:[%s5723_s20 + $0xe0] sm:$0xff] }
  0xa5   : > { %1736 = vst.msk [vmem:[#allocation6 + $0x169] sm:$0xff] %vm404_vm1, %v379_v36 }
  0xa6   : > { %v546_v41 = vmax.f32 %v467_v37, 0.0  ;;  %v380_v37 = vld [vmem:[%s5723_s20 + $0xe8] sm:$0xff] }
  0xa7   : > { %v397_v39 = vpack.c.bf16 %v380_v37, %v379_v36  ;;  %1737 = vst.msk [vmem:[#allocation6 + $0x171] sm:$0xff] %vm404_vm1, %v380_v37 }
  0xa8   : > { %579 = vst.msk [vmem:[#allocation2] sm:$0xff] %vm578_vm2, %v546_v41  ;;  %v733_v42 = vpack.c.bf16 %v546_v41, %v546_v41 }
  0xa9   : > { %v506_v43 = vpop.f32.mrf.mxu2  ;;  %5140 = vmatmul.msk.bf16.gmra.mxu2 %vm404_vm1, %v397_v39 }
  0xaa   : > { %v507_v44 = vadd.f32 %v5790_v35, %v506_v43  ;;  %v1390_v45 = vrot.slane %v733_v42, 7  ;;  %v768_v46 = vshrl.u32 %v733_v42, 16  ;;  %v771_v53 = vshll.u32 %v733_v42, 16 }
  0xab   : > { %v468_v47 = vpop.f32.mrf.mxu0 }
  0xac   : > { %v562_v48 = vmax.f32 %v507_v44, 0.0  ;;  %v469_v49 = vadd.f32 %v5790_v35, %v468_v47  ;;  %1470 = vrot.lane.b32.xlu0 %v1390_v45, %s5573_s26  ;;  %v5803_v51 = vrot.slane %v768_v46, 7  ;;  %v1391_v56 = vrot.slane %v1390_v45, 4 }
  0xae   : > { %595 = vst.msk [vmem:[#allocation2 + $0x80] sm:$0xff] %vm578_vm2, %v562_v48  ;;  %v547_v50 = vmax.f32 %v469_v49, 0.0  ;;  %v773_v58 = vor.u32 %v771_v53, %v5803_v51  ;;  %v749_v2 = vpack.c.bf16 %v562_v48, %v562_v48  ;;  %v774_v47 = vrot.slane %v5803_v51, 4 }
  0xb0   : > { %580 = vst.msk [vmem:[#allocation2 + $0x8] sm:$0xff] %vm578_vm2, %v547_v50  ;;  %v5806_v52 = vpack.c.bf16 %v547_v50, %v547_v50  ;;  %v1430_v11 = vrot.slane %v749_v2, 7  ;;  %v904_v13 = vshrl.u32 %v749_v2, 16  ;;  %v907_v21 = vshll.u32 %v749_v2, 16 }
  0xb1   : > { %v508_v54 = vpop.f32.mrf.mxu2 }
  0xb2   : > { %v509_v57 = vadd.f32 %v5790_v35, %v508_v54  ;;  %v1392_v59 = vrot.slane %v5806_v52, 7  ;;  %v776_v61 = vshrl.u32 %v5806_v52, 16  ;;  %v906_v20 = vrot.slane %v904_v13, 7 }
  0xb3   : > { %v471_v60 = vpop.f32.mrf.mxu0  ;;  %v1431_v23 = vrot.slane %v1430_v11, 4  ;;  %v779_v38 = vshll.u32 %v5806_v52, 16 }
  0xb4   : > { %v563_v62 = vmax.f32 %v509_v57, 0.0  ;;  %1039 = vrot.lane.b32.xlu0 %v773_v58, %s5574_s29  ;;  %v1393_v63 = vsel %vm5808_vm5, %v1391_v56, %v1392_v59  ;;  %v1394_v0 = vrot.slane %v1392_v59, 4  ;;  %v472_v1 = vadd.f32 %v5790_v35, %v471_v60 }
  0xb5   : > { %1472 = vrot.lane.b32.xlu1 %v1393_v63, %s5573_s26  ;;  %v778_v7 = vrot.slane %v776_v61, 7  ;;  %v909_v26 = vor.u32 %v907_v21, %v906_v20  ;;  %v910_v45 = vrot.slane %v906_v20, 4 }
  0xb6   : > { %596 = vst.msk [vmem:[#allocation2 + $0x88] sm:$0xff] %vm578_vm2, %v563_v62  ;;  %v750_v3 = vpack.c.bf16 %v563_v62, %v563_v62  ;;  %1474 = vrot.lane.b32.xlu2 %v1394_v0, %s5573_s26  ;;  %v548_v4 = vmax.f32 %v472_v1, 0.0 }
  0xb7   : > { %v783_v15 = vrot.slane %v778_v7, 4  ;;  %v781_v43 = vor.u32 %v779_v38, %v778_v7 }
  0xb8   : > { %581 = vst.msk [vmem:[#allocation2 + $0x10] sm:$0xff] %vm578_vm2, %v548_v4  ;;  %v1432_v9 = vrot.slane %v750_v3, 7  ;;  %v912_v22 = vshrl.u32 %v750_v3, 16  ;;  %v915_v29 = vshll.u32 %v750_v3, 16  ;;  %v735_v42 = vpack.c.bf16 %v548_v4, %v548_v4 }
  0xb9   : > { %v511_v10 = vpop.f32.mrf.mxu2  ;;  %v782_v52 = vsel %vm5862_vm8, %v774_v47, %v781_v43 }
  0xba   : > { %v1434_v12 = vrot.slane %v1432_v9, 4  ;;  %v512_v14 = vadd.f32 %v5790_v35, %v511_v10  ;;  %v914_v27 = vrot.slane %v912_v22, 7  ;;  %v1433_v31 = vsel %vm5808_vm5, %v1431_v23, %v1432_v9  ;;  %v366_v9 = vld [vmem:[%s5723_s20 + $0x78] sm:$0xff] }
  0xbb   : > { %v473_v16 = vpop.f32.mrf.mxu0  ;;  %v785_v53 = vshrl.u32 %v735_v42, 16  ;;  %v788_v61 = vshll.u32 %v735_v42, 16  ;;  %v1395_v0 = vrot.slane %v735_v42, 7  ;;  %1723 = vst.msk [vmem:[#allocation6 + $0xc9] sm:$0xff] %vm404_vm1, %v366_v9 }
  0xbc   : > { %1518 = vrot.lane.b32.xlu0 %v1430_v11, %s5573_s26  ;;  %v474_v17 = vadd.f32 %v5790_v35, %v473_v16  ;;  %v5832_v18 = vmax.f32 %v512_v14, 0.0  ;;  %v919_v32 = vrot.slane %v914_v27, 4  ;;  %v917_v46 = vor.u32 %v915_v29, %v914_v27 }
  0xbd   : > { %1043 = vrot.lane.b32.xlu1 %v783_v15, %s5574_s29  ;;  %v787_v60 = vrot.slane %v785_v53, 7  ;;  %v390_v11 = vpack.c.bf16 %v366_v9, %v365_v8 }
  0xbe   : > { %1522 = vrot.lane.b32.xlu2 %v1434_v12, %s5573_s26  ;;  %v549_v19 = vmax.f32 %v474_v17, 0.0  ;;  %597 = vst.msk [vmem:[#allocation2 + $0x90] sm:$0xff] %vm578_vm2, %v5832_v18  ;;  %v918_v56 = vsel %vm5862_vm8, %v910_v45, %v917_v46  ;;  %v751_v6 = vpack.c.bf16 %v5832_v18, %v5832_v18  ;;  %v1396_v12 = vrot.slane %v1395_v0, 4 }
  0xbf   : > { %v790_v3 = vor.u32 %v788_v61, %v787_v60  ;;  %v791_v13 = vrot.slane %v787_v60, 4  ;;  %5133 = vmatmul.msk.bf16.gmra.mxu0 %vm404_vm1, %v390_v11 }
  0xc0   : > { %582 = vst.msk [vmem:[#allocation2 + $0x18] sm:$0xff] %vm578_vm2, %v549_v19  ;;  %v5839_v25 = vpack.c.bf16 %v549_v19, %v549_v19  ;;  %v1435_v16 = vrot.slane %v751_v6, 7  ;;  %v921_v17 = vshrl.u32 %v751_v6, 16  ;;  %v924_v22 = vshll.u32 %v751_v6, 16 }
  0xc1   : > { %v513_v24 = vpop.f32.mrf.mxu2 }
  0xc2   : > { %v514_v28 = vadd.f32 %v5790_v35, %v513_v24  ;;  %v1397_v40 = vrot.slane %v5839_v25, 7  ;;  %v793_v57 = vshrl.u32 %v5839_v25, 16  ;;  %v796_v5 = vshll.u32 %v5839_v25, 16  ;;  %v381_v24 = vld [vmem:[%s5723_s20 + $0xf0] sm:$0xff]  ;;  %v382_v25 = vld [vmem:[%s5723_s20 + $0xf8] sm:$0xff] }
  0xc3   : > { %v476_v30 = vpop.f32.mrf.mxu0  ;;  %v923_v21 = vrot.slane %v921_v17, 7  ;;  %1738 = vst.msk [vmem:[#allocation6 + $0x181] sm:$0xff] %vm404_vm1, %v381_v24 }
  0xc4   : > { %1087 = vrot.lane.b32.xlu0 %v909_v26, %s5574_s29  ;;  %v5845_v33 = vmax.f32 %v514_v28, 0.0  ;;  %v477_v34 = vadd.f32 %v5790_v35, %v476_v30  ;;  %v1399_v49 = vrot.slane %v1397_v40, 4  ;;  %v795_v62 = vrot.slane %v793_v57, 7  ;;  %1739 = vst.msk [vmem:[#allocation6 + $0x189] sm:$0xff] %vm404_vm1, %v382_v25 }
  0xc5   : > { %1520 = vrot.lane.b32.xlu1 %v1433_v31, %s5573_s26  ;;  %v1398_v19 = vsel %vm5808_vm5, %v1396_v12, %v1397_v40  ;;  %v398_v28 = vpack.c.bf16 %v382_v25, %v381_v24  ;;  %v1436_v30 = vrot.slane %v1435_v16, 4  ;;  %v5575_v40 = vmov -inf  }
  0xc6   : > { %1091 = vrot.lane.b32.xlu2 %v919_v32, %s5574_s29  ;;  %598 = vst.msk [vmem:[#allocation2 + $0x98] sm:$0xff] %vm578_vm2, %v5845_v33  ;;  %v5857_v41 = vmax.f32 %v477_v34, 0.0  ;;  %v800_v1 = vrot.slane %v795_v62, 4  ;;  %v798_v14 = vor.u32 %v796_v5, %v795_v62  ;;  %v752_v18 = vpack.c.bf16 %v5845_v33, %v5845_v33 }
  0xc7   : > { %5141 = vmatmul.msk.bf16.gmra.mxu2 %vm404_vm1, %v398_v28  ;;  %v926_v33 = vor.u32 %v924_v22, %v923_v21  ;;  %1679 = vst.msk [vmem:[#allocation6 + $0xc0] sm:$0x1] %vm1313_vm9, %v5575_v40  ;;  %v927_v45 = vrot.slane %v923_v21, 4 }
  0xc8   : > { %583 = vst.msk [vmem:[#allocation2 + $0x20] sm:$0xff] %vm578_vm2, %v5857_v41  ;;  %v799_v20 = vsel %vm5862_vm8, %v791_v13, %v798_v14  ;;  %v929_v26 = vshrl.u32 %v752_v18, 16  ;;  %v737_v29 = vpack.c.bf16 %v5857_v41, %v5857_v41  ;;  %v1437_v31 = vrot.slane %v752_v18, 7 }
  0xc9   : > { %v516_v48 = vpop.f32.mrf.mxu2  ;;  %v932_v36 = vshll.u32 %v752_v18, 16  ;;  %1680 = vst.msk [vmem:[#allocation6 + $0xd8] sm:$0x1] %vm1313_vm9, %v5575_v40 }
  0xca   : > { %v517_v50 = vadd.f32 %v5790_v35, %v516_v48  ;;  %v931_v34 = vrot.slane %v929_v26, 7  ;;  %v1438_v37 = vsel %vm5808_vm5, %v1436_v30, %v1437_v31  ;;  %v1439_v38 = vrot.slane %v1437_v31, 4  ;;  %1681 = vst.msk [vmem:[#allocation6 + $0xf0] sm:$0x1] %vm1313_vm9, %v5575_v40 }
  0xcb   : > { %v478_v54 = vpop.f32.mrf.mxu0  ;;  %v802_v39 = vshrl.u32 %v737_v29, 16  ;;  %v1400_v42 = vrot.slane %v737_v29, 7  ;;  %1697 = vst.msk [vmem:[#allocation6 + $0xd1] sm:$0x1] %vm1313_vm9, %v5575_v40 }
  0xcc   : > { %1041 = vrot.lane.b32.xlu0 %v782_v52, %s5574_s29  ;;  %v479_v58 = vadd.f32 %v5790_v35, %v478_v54  ;;  %v5877_v59 = vmax.f32 %v517_v50, 0.0  ;;  %v934_v46 = vor.u32 %v932_v36, %v931_v34  ;;  %1698 = vst.msk [vmem:[#allocation6 + $0xe9] sm:$0x1] %vm1313_vm9, %v5575_v40  ;;  %v936_v57 = vrot.slane %v931_v34, 4 }
  0xcd   : > { %1089 = vrot.lane.b32.xlu1 %v918_v56, %s5574_s29  ;;  %v5947_v48 = vrot.slane %v802_v39, 7  ;;  %v1401_v52 = vrot.slane %v1400_v42, 4  ;;  %1699 = vst.msk [vmem:[#allocation6 + $0x101] sm:$0x1] %vm1313_vm9, %v5575_v40  ;;  %v2254_v39 = vld [vmem:[%s9930_s7] sm:$0x3] }
  0xce   : > { %1480 = vrot.lane.b32.xlu2 %v1399_v49, %s5573_s26  ;;  %v5881_v51 = vmax.f32 %v479_v58, 0.0  ;;  %599 = vst.msk [vmem:[#allocation2 + $0xa0] sm:$0xff] %vm578_vm2, %v5877_v59  ;;  %v805_v49 = vshll.u32 %v737_v29, 16  ;;  %v935_v56 = vsel %vm5862_vm8, %v927_v45, %v934_v46  ;;  %v5963_v58 = vld [vmem:[#allocation6 + $0xc0] sm:$0xff]  ;;  %v2308_v46 = vsel %vm453_vm0, %v2254_v39, 0  ;;  %vm6350_vm0 = vmand %vm614_vm14, %vm677_vm15 }
  0xcf   : > { %1664 = vst.msk [vmem:[#allocation6] sm:$0xff] %vm404_vm1, %v5575_v40  ;;  %v2052_v21 = vrot.slane %v5963_v58, 2  ;;  %5352 = vmatpush.bf16.msra.mxu3 %v2308_v46  ;;  %2317 = vmatpush.bf16.msra.mxu1 %v2308_v46 }
  0xd0   : > { %584 = vst.msk [vmem:[#allocation2 + $0x28] sm:$0xff] %vm578_vm2, %v5881_v51  ;;  %v5936_v41 = vpack.c.bf16 %v5881_v51, %v5881_v51  ;;  %v5965_v51 = vld [vmem:[#allocation6 + $0xc8] sm:$0xff]  ;;  %v807_v61 = vor.u32 %v805_v49, %v5947_v48  ;;  %v5970_v62 = vld [vmem:[#allocation6 + $0xd8] sm:$0xff] }
  0xd1   : > { %v518_v63 = vpop.f32.mrf.mxu2  ;;  %1665 = vst.msk [vmem:[#allocation6 + $0x8] sm:$0xff] %vm404_vm1, %v5575_v40  ;;  %v5983_v6 = vld [vmem:[#allocation6 + $0xf0] sm:$0xff]  ;;  %v2053_v22 = vrot.slane %v5965_v51, 2 }
  0xd2   : > { %v519_v2 = vadd.f32 %v5790_v35, %v518_v63  ;;  %v810_v50 = vshrl.u32 %v5936_v41, 16  ;;  %v1402_v53 = vrot.slane %v5936_v41, 7  ;;  %v813_v60 = vshll.u32 %v5936_v41, 16  ;;  %v5972_v63 = vld [vmem:[#allocation6 + $0xe0] sm:$0xff]  ;;  %1668 = vst.msk [vmem:[#allocation6 + $0x198] sm:$0xff] %vm404_vm1, %v5575_v40 }
  0xd3   : > { %v481_v7 = vpop.f32.mrf.mxu0  ;;  %v1766_v8 = vld [vmem:[#allocation6 + $0xd0] sm:$0x3]  ;;  %v1895_v11 = vrot.slane %v5972_v63, 1  ;;  %v1899_v12 = vrot.slane %v5983_v6, 1  ;;  %1669 = vst.msk [vmem:[#allocation6 + $0x1a0] sm:$0xff] %vm404_vm1, %v5575_v40  ;;  %v2054_v36 = vsel %vm2011_vm11, %v2052_v21, %v2053_v22  ;;  %v2058_v45 = vrot.slane %v5972_v63, 2 }
  0xd4   : > { %1476 = vrot.lane.b32.xlu0 %v1395_v0, %s5573_s26  ;;  %v5889_v4 = vmax.f32 %v519_v2, 0.0  ;;  %v482_v10 = vadd.f32 %v5790_v35, %v481_v7  ;;  %v1889_v0 = vrot.slane %v5963_v58, 1  ;;  %v5978_v2 = vrot.slane %v810_v50, 7  ;;  %v5985_v7 = vld [vmem:[#allocation6 + $0xf8] sm:$0xff]  ;;  %v1769_v13 = vld [vmem:[#allocation6 + $0xe8] sm:$0x3] }
  0xd5   : > { %1045 = vrot.lane.b32.xlu1 %v790_v3, %s5574_s29  ;;  %v1403_v3 = vsel %vm5808_vm5, %v1401_v52, %v1402_v53  ;;  %v1404_v5 = vrot.slane %v1402_v53, 4  ;;  %v1892_v14 = vrot.slane %v1766_v8, 1  ;;  %v1772_v18 = vld [vmem:[#allocation6 + $0x100] sm:$0x3]  ;;  %1672 = vst.msk [vmem:[#allocation6 + $0x18] sm:$0x1] %vm1313_vm9, %v5575_v40  ;;  %v753_v52 = vpack.c.bf16 %v5877_v59, %v5877_v59 }
  0xd6   : > { %1049 = vrot.lane.b32.xlu2 %v800_v1, %s5574_s29  ;;  %600 = vst.msk [vmem:[#allocation2 + $0xa8] sm:$0xff] %vm578_vm2, %v5889_v4  ;;  %v5903_v15 = vmax.f32 %v482_v10, 0.0  ;;  %v1890_v1 = vrot.slane %v5965_v51, 1  ;;  %v1894_v10 = vrot.slane %v5970_v62, 1  ;;  %v1902_v26 = vrot.slane %v1772_v18, 1 }
  0xd7   : > { %1673 = vst.msk [vmem:[#allocation6 + $0x30] sm:$0x1] %vm1313_vm9, %v5575_v40  ;;  %v2060_v49 = vrot.slane %v1769_v13, 2  ;;  %v2062_v50 = vrot.slane %v5983_v6, 2  ;;  %v808_v59 = vrot.slane %v5947_v48, 4  ;;  %v1440_v41 = vrot.slane %v753_v52, 7 }
  0xd8   : > { %585 = vst.msk [vmem:[#allocation2 + $0x30] sm:$0xff] %vm578_vm2, %v5903_v15  ;;  %v1891_v9 = vsel %vm1848_vm10, %v1889_v0, %v1890_v1  ;;  %v1893_v24 = vsel %vm1848_vm10, %v1890_v1, %v1892_v14 }
  0xd9   : > { %v521_v43 = vpop.f32.mrf.mxu2  ;;  %v1991_v17 = vmax.f32 %v5963_v58, %v1891_v9  ;;  %v1992_v30 = vmax.f32 %v5965_v51, %v1893_v24  ;;  %1674 = vst.msk [vmem:[#allocation6 + $0x48] sm:$0x1] %vm1313_vm9, %v5575_v40  ;;  %v2061_v58 = vsel %vm2011_vm11, %v2058_v45, %v2060_v49  ;;  %v754_v9 = vpack.c.bf16 %v5889_v4, %v5889_v4 }
  0xda   : > { %v522_v47 = vadd.f32 %v5790_v35, %v521_v43  ;;  %v2057_v43 = vrot.slane %v5970_v62, 2  ;;  %1675 = vst.msk [vmem:[#allocation6 + $0x60] sm:$0x1] %vm1313_vm9, %v5575_v40 }
  0xdb   : > { %v483_v23 = vpop.f32.mrf.mxu0  ;;  %v6040_v51 = vmax.f32 %v1991_v17, %v2054_v36  ;;  %1676 = vst.msk [vmem:[#allocation6 + $0x78] sm:$0x1] %vm1313_vm9, %v5575_v40  ;;  %v1442_v17 = vrot.slane %v754_v9, 7 }
  0xdc   : > { %1524 = vrot.lane.b32.xlu0 %v1435_v16, %s5573_s26  ;;  %v484_v27 = vadd.f32 %v5790_v35, %v483_v23  ;;  %v5953_v54 = vmax.f32 %v522_v47, 0.0  ;;  %v1900_v16 = vrot.slane %v5985_v7, 1  ;;  %v2059_v53 = vsel %vm2011_vm11, %v2057_v43, %v2058_v45  ;;  %1677 = vst.msk [vmem:[#allocation6 + $0x90] sm:$0x1] %vm1313_vm9, %v5575_v40 }
  0xdd   : > { %1478 = vrot.lane.b32.xlu1 %v1398_v19, %s5573_s26  ;;  %v1896_v19 = vsel %vm1848_vm10, %v1894_v10, %v1895_v11  ;;  %1678 = vst.msk [vmem:[#allocation6 + $0xa8] sm:$0x1] %vm1313_vm9, %v5575_v40  ;;  %v5576_v43 = vmov 0  }
  0xde   : > { %1047 = vrot.lane.b32.xlu2 %v799_v20, %s5574_s29  ;;  %v5924_v32 = vmax.f32 %v484_v27, 0.0  ;;  %601 = vst.msk [vmem:[#allocation2 + $0xb0] sm:$0xff] %vm578_vm2, %v5953_v54  ;;  %v1897_v20 = vrot.slane %v1769_v13, 1  ;;  %v1901_v25 = vsel %vm1848_vm10, %v1899_v12, %v1900_v16  ;;  %v1993_v27 = vmax.f32 %v5970_v62, %v1896_v19 }
  0xdf   : > { %v1995_v31 = vmax.f32 %v5983_v6, %v1901_v25  ;;  %1682 = vst.msk [vmem:[#allocation6 + $0x108] sm:$0x1] %vm1313_vm9, %v5575_v40  ;;  %v941_v13 = vshll.u32 %v753_v52, 16 }
  0xe0   : > { %586 = vst.msk [vmem:[#allocation2 + $0x38] sm:$0xff] %vm578_vm2, %v5924_v32  ;;  %v1898_v29 = vsel %vm1848_vm10, %v1895_v11, %v1897_v20  ;;  %v6044_v62 = vmax.f32 %v1993_v27, %v2059_v53  ;;  %v817_v11 = vrot.slane %v5978_v2, 4  ;;  %v949_v20 = vshll.u32 %v754_v9, 16 }
  0xe1   : > { %v523_v23 = vpop.f32.mrf.mxu2  ;;  %v1994_v34 = vmax.f32 %v5972_v63, %v1898_v29  ;;  %v815_v63 = vor.u32 %v813_v60, %v5978_v2  ;;  %v938_v60 = vshrl.u32 %v753_v52, 16  ;;  %1683 = vst.msk [vmem:[#allocation6 + $0x120] sm:$0x1] %vm1313_vm9, %v5575_v40  ;;  %v946_v2 = vshrl.u32 %v754_v9, 16 }
  0xe2   : > { %v524_v28 = vadd.f32 %v5790_v35, %v523_v23  ;;  %v2190_v48 = vmax.f32 %v6040_v51, %v6044_v62  ;;  %1684 = vst.msk [vmem:[#allocation6 + $0x138] sm:$0x1] %vm1313_vm9, %v5575_v40  ;;  %v739_v23 = vpack.c.bf16 %v5903_v15, %v5903_v15  ;;  %v740_v29 = vpack.c.bf16 %v5924_v32, %v5924_v32 }
  0xe3   : > { %v816_v10 = vsel %vm5862_vm8, %v808_v59, %v815_v63  ;;  %1685 = vst.msk [vmem:[#allocation6 + $0x150] sm:$0x1] %vm1313_vm9, %v5575_v40  ;;  %v940_v4 = vrot.slane %v938_v60, 7  ;;  %v948_v19 = vrot.slane %v946_v2, 7  ;;  %v6157_v52 = vpack.c.bf16 %v5953_v54, %v5953_v54 }
  0xe4   : > { %1093 = vrot.lane.b32.xlu0 %v926_v33, %s5574_s29  ;;  %v1903_v33 = vsel %vm1848_vm10, %v1900_v16, %v1902_v26  ;;  %1686 = vst.msk [vmem:[#allocation6 + $0x168] sm:$0x1] %vm1313_vm9, %v5575_v40  ;;  %v1441_v16 = vrot.slane %v1440_v41, 4  ;;  %v486_v26 = vpop.f32.mrf.mxu0  ;;  %v1405_v15 = vrot.slane %v739_v23, 7  ;;  %v822_v32 = vshll.u32 %v739_v23, 16 }
  0xe5   : > { %1526 = vrot.lane.b32.xlu1 %v1438_v37, %s5573_s26  ;;  %v2055_v37 = vrot.slane %v1766_v8, 2  ;;  %1687 = vst.msk [vmem:[#allocation6 + $0x180] sm:$0x1] %vm1313_vm9, %v5575_v40  ;;  %v944_v24 = vrot.slane %v940_v4, 4  ;;  %v951_v25 = vor.u32 %v949_v20, %v948_v19  ;;  %v487_v27 = vadd.f32 %v5790_v35, %v486_v26 }
  0xe6   : > { %1528 = vrot.lane.b32.xlu2 %v1439_v38, %s5573_s26  ;;  %v6018_v38 = vmax.f32 %v524_v28, 0.0  ;;  %1690 = vst.msk [vmem:[#allocation6 + $0x29] sm:$0x1] %vm1313_vm9, %v5575_v40  ;;  %v1443_v21 = vsel %vm5808_vm5, %v1441_v16, %v1442_v17  ;;  %v819_v28 = vshrl.u32 %v739_v23, 16  ;;  %v827_v36 = vshrl.u32 %v740_v29, 16 }
  0xe7   : > { %v2056_v47 = vsel %vm2011_vm11, %v2053_v22, %v2055_v37  ;;  %1691 = vst.msk [vmem:[#allocation6 + $0x41] sm:$0x1] %vm1313_vm9, %v5575_v40  ;;  %v1444_v22 = vrot.slane %v1442_v17, 4  ;;  %v1406_v37 = vrot.slane %v1405_v15, 4 }
  0xe8   : > { %602 = vst.msk [vmem:[#allocation2 + $0xb8] sm:$0xff] %vm578_vm2, %v6018_v38  ;;  %v829_v46 = vrot.slane %v827_v36, 7  ;;  %v1773_v36 = vld [vmem:[#allocation6 + $0x108] sm:$0xff] }
  0xe9   : > { %1692 = vst.msk [vmem:[#allocation6 + $0x59] sm:$0x1] %vm1313_vm9, %v5575_v40 }
  0xea   : > { %1693 = vst.msk [vmem:[#allocation6 + $0x71] sm:$0x1] %vm1313_vm9, %v5575_v40  ;;  %v834_v59 = vrot.slane %v829_v46, 4 }
  0xeb   : > { %1694 = vst.msk [vmem:[#allocation6 + $0x89] sm:$0x1] %vm1313_vm9, %v5575_v40 }
  0xec   : > { %1482 = vrot.lane.b32.xlu0 %v1400_v42, %s5573_s26  ;;  %v1996_v42 = vmax.f32 %v5985_v7, %v1903_v33  ;;  %1695 = vst.msk [vmem:[#allocation6 + $0xa1] sm:$0x1] %vm1313_vm9, %v5575_v40  ;;  %v6133_v33 = vmax.f32 %v487_v27, 0.0 }
  0xed   : > { %1095 = vrot.lane.b32.xlu1 %v935_v56, %s5574_s29  ;;  %v2063_v56 = vrot.slane %v5985_v7, 2  ;;  %1696 = vst.msk [vmem:[#allocation6 + $0xb9] sm:$0x1] %vm1313_vm9, %v5575_v40  ;;  %v6207_v60 = vld [vmem:[#allocation6 + $0x28] sm:$0x3] }
  0xee   : > { %1097 = vrot.lane.b32.xlu2 %v936_v57, %s5574_s29  ;;  %v2065_v57 = vrot.slane %v1772_v18, 2  ;;  %v943_v18 = vor.u32 %v941_v13, %v940_v4  ;;  %1700 = vst.msk [vmem:[#allocation6 + $0x119] sm:$0x1] %vm1313_vm9, %v5575_v40  ;;  %v1857_v13 = vrot.slane %v6207_v60, 1 }
  0xef   : > { %v2064_v0 = vsel %vm2011_vm11, %v2062_v50, %v2063_v56  ;;  %1701 = vst.msk [vmem:[#allocation6 + $0x131] sm:$0x1] %vm1313_vm9, %v5575_v40 }
  0xf0   : > { %v2066_v1 = vsel %vm2011_vm11, %v2063_v56, %v2065_v57  ;;  %1702 = vst.msk [vmem:[#allocation6 + $0x149] sm:$0x1] %vm1313_vm9, %v5575_v40 }
  0xf1   : > { %v6060_v6 = vmax.f32 %v1996_v42, %v2066_v1  ;;  %1703 = vst.msk [vmem:[#allocation6 + $0x161] sm:$0x1] %vm1313_vm9, %v5575_v40  ;;  %v1407_v42 = vrot.slane %v740_v29, 7  ;;  %v6199_v1 = vld [vmem:[#allocation6 + $0x8] sm:$0xff] }
  0xf2   : > { %1704 = vst.msk [vmem:[#allocation6 + $0x179] sm:$0x1] %vm1313_vm9, %v5575_v40  ;;  %v2013_v27 = vrot.slane %v6199_v1, 2 }
  0xf3   : > { %1705 = vst.msk [vmem:[#allocation6 + $0x191] sm:$0x1] %vm1313_vm9, %v5575_v40  ;;  %v1408_v49 = vsel %vm5808_vm5, %v1406_v37, %v1407_v42  ;;  %v1409_v50 = vrot.slane %v1407_v42, 4  ;;  %v1774_v37 = vld [vmem:[#allocation6 + $0x110] sm:$0xff]  ;;  %v2020_v42 = vrot.slane %v6207_v60, 2 }
  0xf4   : > { %1051 = vrot.lane.b32.xlu0 %v807_v61, %s5574_s29  ;;  %v6042_v61 = vmax.f32 %v1992_v30, %v2056_v47  ;;  %v952_v30 = vsel %vm5862_vm8, %v944_v24, %v951_v25  ;;  %1671 = vst.msk [vmem:[#allocation6] sm:$0x1] %vm1313_vm9, %v5575_v40  ;;  %v830_v47 = vshll.u32 %v740_v29, 16  ;;  %v6257_v24 = vpack.c.bf16 %v6133_v33, %v6133_v33 }
  0xf5   : > { %1484 = vrot.lane.b32.xlu1 %v1403_v3, %s5573_s26  ;;  %v6056_v3 = vmax.f32 %v1994_v34, %v2061_v58  ;;  %v821_v34 = vrot.slane %v819_v28, 7  ;;  %1688 = vst.msk [vmem:[#allocation6 + $0x198] sm:$0x1] %vm1313_vm9, %v5575_v40  ;;  %v1445_v58 = vrot.slane %v6157_v52, 7 }
  0xf6   : > { %1486 = vrot.lane.b32.xlu2 %v1404_v5, %s5573_s26  ;;  %v6058_v5 = vmax.f32 %v1995_v31, %v2064_v0  ;;  %v953_v31 = vrot.slane %v948_v19, 4  ;;  %587 = vst.msk [vmem:[#allocation2 + $0x40] sm:$0xff] %vm578_vm2, %v6133_v33  ;;  %v832_v57 = vor.u32 %v830_v47, %v829_v46  ;;  %v6195_v0 = vpack.c.bf16 %v6018_v38, %v6018_v38  ;;  %v6215_v38 = vld [vmem:[#allocation6 + $0x40] sm:$0x3] }
  0xf7   : > { %v2191_v7 = vmax.f32 %v6042_v61, %v6056_v3  ;;  %1302 = vst.msk [vmem:[#allocation4 + $0x8] sm:$0x3] %vm1301_vm12, %v5576_v43  ;;  %v824_v45 = vor.u32 %v822_v32, %v821_v34  ;;  %v825_v56 = vrot.slane %v821_v34, 4  ;;  %v1862_v16 = vrot.slane %v6215_v38, 1 }
  0xf8   : > { %v2222_v8 = vmax.f32 %v2190_v48, %v6058_v5  ;;  %1305 = vst.msk [vmem:[#allocation4 + $0x14] sm:$0x3] %vm1301_vm12, %v5576_v43  ;;  %v6201_v48 = vld [vmem:[#allocation6 + $0x18] sm:$0xff]  ;;  %v963_v4 = vshrl.u32 %v6195_v0, 16  ;;  %v966_v17 = vshll.u32 %v6195_v0, 16  ;;  %v958_v34 = vshll.u32 %v6157_v52, 16 }
  0xf9   : > { %v2223_v12 = vmax.f32 %v2191_v7, %v6060_v6  ;;  %1309 = vst.msk [vmem:[#allocation4 + $0xe0] sm:$0x3] %vm1301_vm12, %v5576_v43  ;;  %v833_v54 = vsel %vm5862_vm8, %v825_v56, %v832_v57  ;;  %v6209_v7 = vld [vmem:[#allocation6 + $0x30] sm:$0xff]  ;;  %v2017_v29 = vrot.slane %v6201_v48, 2  ;;  %v1447_v32 = vrot.slane %v6195_v0, 7 }
  0xfa   : > { %1312 = vst.msk [vmem:[#allocation4 + $0xec] sm:$0x3] %vm1301_vm12, %v5576_v43  ;;  %v6245_v20 = vrot.slane %v963_v4, 7  ;;  %v1904_v46 = vrot.slane %v1773_v36, 1  ;;  %v1775_v56 = vld [vmem:[#allocation6 + $0x118] sm:$0x3] }
  0xfb   : > { %v2246_v14 = vpack.c.bf16 %v2223_v12, %v2222_v8  ;;  %1316 = vst.msk [vmem:[#allocation4 + $0x18] sm:$0x1] %vm1313_vm9, %v5576_v43  ;;  %v6190_v63 = vld [vmem:[#allocation6] sm:$0xff]  ;;  %v6211_v8 = vld [vmem:[#allocation6 + $0x38] sm:$0xff] }
  0xfc   : > { %1530 = vrot.lane.b32.xlu0 %v1440_v41, %s5573_s26  ;;  %1317 = vst.msk [vmem:[#allocation4 + $0x24] sm:$0x1] %vm1313_vm9, %v5576_v43  ;;  %v6203_v41 = vld [vmem:[#allocation6 + $0x20] sm:$0xff]  ;;  %v1849_v9 = vrot.slane %v6190_v63, 1  ;;  %v1860_v2 = vrot.slane %v6211_v8, 1  ;;  %v2012_v26 = vrot.slane %v6190_v63, 2 }
  0xfd   : > { %1053 = vrot.lane.b32.xlu1 %v816_v10, %s5574_s29  ;;  %5150 = vmatmul.msk.bf16.vlgmr.msra.gmra.mxu3 %vm404_vm1, %v2246_v14  ;;  %1318 = vst.msk [vmem:[#allocation4 + $0x30] sm:$0x1] %vm1313_vm9, %v5576_v43  ;;  %v1850_v10 = vrot.slane %v6199_v1, 1  ;;  %v1855_v12 = vrot.slane %v6203_v41, 1  ;;  %v1859_v14 = vrot.slane %v6209_v7, 1  ;;  %v2023_v57 = vrot.slane %v6211_v8, 2 }
  0xfe   : > { %1055 = vrot.lane.b32.xlu2 %v817_v11, %s5574_s29  ;;  %1319 = vst.msk [vmem:[#allocation4 + $0x3c] sm:$0x1] %vm1313_vm9, %v5576_v43  ;;  %v1854_v11 = vrot.slane %v6201_v48, 1  ;;  %v6262_v25 = vsel %vm1848_vm10, %v1860_v2, %v1862_v16 }
  0xff   : > { %1320 = vst.msk [vmem:[#allocation4 + $0x48] sm:$0x1] %vm1313_vm9, %v5576_v43  ;;  %v6253_v23 = vsel %vm1848_vm10, %v1859_v14, %v1860_v2  ;;  %v1980_v47 = vmax.f32 %v6211_v8, %v6262_v25  ;;  %v2070_v14 = vrot.slane %v1775_v56, 2 }
 0x100   : > { %1321 = vst.msk [vmem:[#allocation4 + $0x54] sm:$0x1] %vm1313_vm9, %v5576_v43  ;;  %v6243_v19 = vsel %vm1848_vm10, %v1854_v11, %v1855_v12  ;;  %v1979_v33 = vmax.f32 %v6209_v7, %v6253_v23  ;;  %v2067_v11 = vrot.slane %v1773_v36, 2  ;;  %v526_v23 = vpop.f32.mrf.mxu2 }
 0x101   : > { %1322 = vst.msk [vmem:[#allocation4 + $0x60] sm:$0x1] %vm1313_vm9, %v5576_v43  ;;  %v1977_v28 = vmax.f32 %v6201_v48, %v6243_v19 }
 0x102   : > { %1323 = vst.msk [vmem:[#allocation4 + $0x6c] sm:$0x1] %vm1313_vm9, %v5576_v43 }
 0x103   : > { %1324 = vst.msk [vmem:[#allocation4 + $0x78] sm:$0x1] %vm1313_vm9, %v5576_v43 }
 0x104   : > { %1099 = vrot.lane.b32.xlu0 %v943_v18, %s5574_s29  ;;  %1325 = vst.msk [vmem:[#allocation4 + $0x84] sm:$0x1] %vm1313_vm9, %v5576_v43  ;;  %v6240_v18 = vsel %vm1848_vm10, %v1849_v9, %v1850_v10  ;;  %v1907_v9 = vrot.slane %v1775_v56, 1  ;;  %v2025_v56 = vrot.slane %v6215_v38, 2 }
 0x105   : > { %1532 = vrot.lane.b32.xlu1 %v1443_v21, %s5573_s26  ;;  %1326 = vst.msk [vmem:[#allocation4 + $0x90] sm:$0x1] %vm1313_vm9, %v5576_v43  ;;  %v1446_v21 = vrot.slane %v1445_v58, 4 }
 0x106   : > { %1534 = vrot.lane.b32.xlu2 %v1444_v22, %s5573_s26  ;;  %1327 = vst.msk [vmem:[#allocation4 + $0x9c] sm:$0x1] %vm1313_vm9, %v5576_v43  ;;  %v6250_v22 = vsel %vm1848_vm10, %v1855_v12, %v1857_v13  ;;  %v968_v12 = vor.u32 %v966_v17, %v6245_v20  ;;  %v2068_v13 = vrot.slane %v1774_v37, 2  ;;  %v2192_v17 = vmax.f32 %v6044_v62, %v6058_v5 }
 0x107   : > { %1328 = vst.msk [vmem:[#allocation4 + $0xa8] sm:$0x1] %vm1313_vm9, %v5576_v43 }
 0x108   : > { %1329 = vst.msk [vmem:[#allocation4 + $0xb4] sm:$0x1] %vm1313_vm9, %v5576_v43 }
 0x109   : > { %1330 = vst.msk [vmem:[#allocation4 + $0xc0] sm:$0x1] %vm1313_vm9, %v5576_v43 }
 0x10a   : > { %1331 = vst.msk [vmem:[#allocation4 + $0xcc] sm:$0x1] %vm1313_vm9, %v5576_v43 }
 0x10b   : > { %1335 = vst.msk [vmem:[#allocation4 + $0x8] sm:$0x2] %vm1334_vm13, %v5576_v43 }
 0x10c   : > { %1488 = vrot.lane.b32.xlu0 %v1405_v15, %s5573_s26  ;;  %1336 = vst.msk [vmem:[#allocation4 + $0x14] sm:$0x2] %vm1334_vm13, %v5576_v43  ;;  %v1975_v15 = vmax.f32 %v6190_v63, %v6240_v18  ;;  %v1410_v18 = vrot.slane %v6257_v24, 7 }
 0x10d   : > { %1101 = vrot.lane.b32.xlu1 %v952_v30, %s5574_s29  ;;  %1337 = vst.msk [vmem:[#allocation4 + $0x20] sm:$0x2] %vm1334_vm13, %v5576_v43  ;;  %v955_v30 = vshrl.u32 %v6157_v52, 16  ;;  %v1448_v52 = vsel %vm5808_vm5, %v1446_v21, %v1447_v32 }
 0x10e   : > { %1103 = vrot.lane.b32.xlu2 %v953_v31, %s5574_s29  ;;  %1338 = vst.msk [vmem:[#allocation4 + $0x2c] sm:$0x2] %vm1334_vm13, %v5576_v43  ;;  %v1978_v31 = vmax.f32 %v6203_v41, %v6250_v22  ;;  %v6404_v22 = vld [vmem:[#allocation3 + $0xc] sm:$0x1] }
 0x10f   : > { %1339 = vst.msk [vmem:[#allocation4 + $0x38] sm:$0x2] %vm1334_vm13, %v5576_v43 }
 0x110   : > { %v1475_v39 = vpop.permute.xlu2 %1474  ;;  %1340 = vst.msk [vmem:[#allocation4 + $0x44] sm:$0x2] %vm1334_vm13, %v5576_v43 }
 0x111   : > { %1618 = vst.msk [vmem:[#allocation4 + $0x20] sm:$0x1] %vm1313_vm9, %v1475_v39  ;;  %v2018_v39 = vrot.slane %v6203_v41, 2 }
 0x112   : > { %1341 = vst.msk [vmem:[#allocation4 + $0x50] sm:$0x2] %vm1334_vm13, %v5576_v43 }
 0x113   : > { %1342 = vst.msk [vmem:[#allocation4 + $0x5c] sm:$0x2] %vm1334_vm13, %v5576_v43 }
 0x114   : > { %1057 = vrot.lane.b32.xlu0 %v824_v45, %s5574_s29  ;;  %1343 = vst.msk [vmem:[#allocation4 + $0x68] sm:$0x2] %vm1334_vm13, %v5576_v43  ;;  %v957_v45 = vrot.slane %v955_v30, 7 }
 0x115   : > { %1490 = vrot.lane.b32.xlu1 %v1408_v49, %s5573_s26  ;;  %1344 = vst.msk [vmem:[#allocation4 + $0x74] sm:$0x2] %vm1334_vm13, %v5576_v43  ;;  %v2022_v49 = vrot.slane %v6209_v7, 2 }
 0x116   : > { %1492 = vrot.lane.b32.xlu2 %v1409_v50, %s5573_s26  ;;  %1345 = vst.msk [vmem:[#allocation4 + $0x80] sm:$0x2] %vm1334_vm13, %v5576_v43  ;;  %v961_v2 = vrot.slane %v957_v45, 4 }
 0x117   : > { %1346 = vst.msk [vmem:[#allocation4 + $0x8c] sm:$0x2] %vm1334_vm13, %v5576_v43 }
 0x118   : > { %v1523_v53 = vpop.permute.xlu2 %1522  ;;  %1347 = vst.msk [vmem:[#allocation4 + $0x98] sm:$0x2] %vm1334_vm13, %v5576_v43 }
 0x119   : > { %1642 = vst.msk [vmem:[#allocation4 + $0x80] sm:$0x1] %vm1313_vm9, %v1523_v53  ;;  %v1449_v53 = vrot.slane %v1447_v32, 4  ;;  %v2071_v32 = vsel %vm2011_vm11, %v2068_v13, %v2070_v14  ;;  %v2026_v14 = vsel %vm2011_vm11, %v2023_v57, %v2025_v56 }
 0x11a   : > { %1348 = vst.msk [vmem:[#allocation4 + $0xa4] sm:$0x2] %vm1334_vm13, %v5576_v43 }
 0x11b   : > { %1349 = vst.msk [vmem:[#allocation4 + $0xb0] sm:$0x2] %vm1334_vm13, %v5576_v43 }
 0x11c   : > { %1536 = vrot.lane.b32.xlu0 %v1445_v58, %s5573_s26  ;;  %v488_v58 = vpop.f32.mrf.mxu0  ;;  %1350 = vst.msk [vmem:[#allocation4 + $0xbc] sm:$0x2] %vm1334_vm13, %v5576_v43 }
 0x11d   : > { %1059 = vrot.lane.b32.xlu1 %v833_v54, %s5574_s29  ;;  %v960_v54 = vor.u32 %v958_v34, %v957_v45  ;;  %v489_v60 = vadd.f32 %v5790_v35, %v488_v58  ;;  %v2069_v34 = vsel %vm2011_vm11, %v2067_v11, %v2068_v13  ;;  %v2193_v45 = vmax.f32 %v6056_v3, %v6060_v6 }
 0x11e   : > { %1061 = vrot.lane.b32.xlu2 %v834_v59, %s5574_s29  ;;  %v6291_v50 = vpop.permute.xlu0 %1470  ;;  %v1905_v59 = vrot.slane %v1774_v37, 1  ;;  %1351 = vst.msk [vmem:[#allocation4 + $0xc8] sm:$0x2] %vm1334_vm13, %v5576_v43  ;;  %v969_v11 = vsel %vm5862_vm8, %v961_v2, %v968_v12 }
 0x11f   : > { %v6312_v35 = vmax.f32 %v489_v60, 0.0  ;;  %1352 = vst.msk [vmem:[#allocation4 + $0xd4] sm:$0x2] %vm1334_vm13, %v5576_v43  ;;  %v706_v60 = vld [vmem:[#allocation3 + $0x74] sm:$0x1] }
 0x120   : > { %v6301_v0 = vpop.permute.xlu2 %1091  ;;  %v1906_v4 = vsel %vm1848_vm10, %v1904_v46, %v1905_v59  ;;  %v1908_v16 = vsel %vm1848_vm10, %v1905_v59, %v1907_v9  ;;  %v6323_v46 = vld [vmem:[#allocation6 + $0x48] sm:$0xff]  ;;  %v2024_v59 = vsel %vm2011_vm11, %v2022_v49, %v2023_v57  ;;  %1353 = vst.msk [vmem:[#allocation4 + $0xe0] sm:$0x2] %vm1334_vm13, %v5576_v43  ;;  %v707_v48 = vsel %vm6350_vm0, 0, %v706_v60 }
 0x121   : > { %v1997_v21 = vmax.f32 %v1773_v36, %v1906_v4  ;;  %v1998_v30 = vmax.f32 %v1774_v37, %v1908_v16  ;;  %v2014_v36 = vsel %vm2011_vm11, %v2012_v26, %v2013_v27  ;;  %v2019_v37 = vsel %vm2011_vm11, %v2017_v29, %v2018_v39  ;;  %1354 = vst.msk [vmem:[#allocation4 + $0xec] sm:$0x2] %vm1334_vm13, %v5576_v43 }
 0x122   : > { %v2138_v12 = vmax.f32 %v1975_v15, %v2014_v36  ;;  %v6367_v4 = vpack.c.bf16 %v6312_v35, %v6312_v35  ;;  %1666 = vst.msk [vmem:[#allocation6 + $0x10] sm:$0x3] %vm1301_vm12, %v5575_v40  ;;  %v6377_v2 = vmax.f32 %v1977_v28, %v2019_v37  ;;  %v6390_v15 = vmax.f32 %v1979_v33, %v2024_v59 }
 0x123   : > { %v6336_v58 = vmax.f32 %v1997_v21, %v2069_v34  ;;  %v6342_v9 = vmax.f32 %v1998_v30, %v2071_v32  ;;  %1689 = vst.msk [vmem:[#allocation6 + $0x11] sm:$0x1] %vm1313_vm9, %v5575_v40  ;;  %v2027_v57 = vrot.slane %v6323_v46, 2  ;;  %v970_v32 = vrot.slane %v6245_v20, 4 }
 0x124   : > { %1105 = vrot.lane.b32.xlu0 %v960_v54, %s5574_s29  ;;  %v2021_v54 = vsel %vm2011_vm11, %v2018_v39, %v2020_v42  ;;  %v1864_v39 = vrot.slane %v6323_v46, 1  ;;  %615 = vst.msk [vmem:[#allocation3 + $0x8] sm:$0x1] %vm614_vm14, %v5576_v43  ;;  %v844_v21 = vshrl.u32 %v6367_v4, 16  ;;  %v1411_v36 = vrot.slane %v1410_v18, 4 }
 0x125   : > { %1538 = vrot.lane.b32.xlu1 %v1448_v52, %s5573_s26  ;;  %v6325_v52 = vld [vmem:[#allocation6 + $0x50] sm:$0xff]  ;;  %v2224_v29 = vmax.f32 %v2192_v17, %v6336_v58  ;;  %v2225_v13 = vmax.f32 %v2193_v45, %v6342_v9  ;;  %v6382_v63 = vmax.f32 %v1978_v31, %v2021_v54  ;;  %619 = vst.msk [vmem:[#allocation3 + $0xd4] sm:$0x1] %vm614_vm14, %v5576_v43  ;;  %v6420_v17 = vld [vmem:[%s9925_s2] ss:$0 sm:$0xff]  ;;  %v836_v37 = vshrl.u32 %v6257_v24, 16 }
 0x126   : > { %1540 = vrot.lane.b32.xlu2 %v1449_v53, %s5573_s26  ;;  %v6327_v53 = vld [vmem:[#allocation6 + $0x58] sm:$0x3]  ;;  %v6354_v26 = vpop.permute.xlu0 %1039  ;;  %v1865_v42 = vrot.slane %v6325_v52, 1  ;;  %v2028_v16 = vrot.slane %v6325_v52, 2  ;;  %v527_v30 = vadd.f32 %v6420_v17, %v526_v23  ;;  %v2174_v45 = vmax.f32 %v2138_v12, %v6377_v2  ;;  %1670 = vst.msk [vmem:[#allocation6 + $0x1a8] sm:$0x3] %vm1301_vm12, %v5575_v40  ;;  %vm6575_vm12 = vmand %vm611_vm6, %vm677_vm15 }
 0x127   : > { %v1867_v49 = vrot.slane %v6327_v53, 1  ;;  %v6394_v19 = vpop.permute.xlu1 %1472  ;;  %v2247_v28 = vpack.c.bf16 %v2225_v13, %v2224_v29  ;;  %v2030_v34 = vrot.slane %v6327_v53, 2  ;;  %1706 = vst.msk [vmem:[#allocation6 + $0x1a9] sm:$0x1] %vm1313_vm9, %v5575_v40  ;;  %v847_v56 = vshll.u32 %v6367_v4, 16  ;;  %v6467_v13 = vld [vmem:[#allocation6 + $0x128] sm:$0xff] }
 0x128   : > { %v6406_v7 = vpop.permute.xlu2 %1480  ;;  %v1866_v31 = vsel %vm1848_vm10, %v1864_v39, %v1865_v42  ;;  %v627_v53 = vsel %vm6398_vm4, 0, %v6404_v22  ;;  %1616 = vst.msk [vmem:[#allocation4 + $0x18] sm:$0xe] %vm1615_vm3, %v6291_v50  ;;  %v2029_v59 = vsel %vm2011_vm11, %v2027_v57, %v2028_v16  ;;  %v6443_v40 = vrot.slane %v836_v37, 7 }
 0x129   : > { %v1868_v33 = vsel %vm1848_vm10, %v1865_v42, %v1867_v49  ;;  %5151 = vmatmul.msk.bf16.gmra.mxu3 %vm404_vm1, %v2247_v28  ;;  %v1981_v20 = vmax.f32 %v6323_v46, %v1866_v31  ;;  %v1412_v29 = vrot.slane %v6367_v4, 7  ;;  %v6450_v46 = vmax.f32 %v1980_v47, %v2026_v14  ;;  %708 = vst [vmem:[#allocation3 + $0x74] sm:$0x1] %v707_v48  ;;  %v6457_v42 = vld [vmem:[#allocation3 + $0x14] sm:$0x1]  ;;  %v1776_v47 = vld [vmem:[#allocation6 + $0x120] sm:$0xff] }
 0x12a   : > { %v1982_v54 = vmax.f32 %v6325_v52, %v1868_v33  ;;  %v6452_v52 = vrot.slane %v844_v21, 7  ;;  %v6454_v39 = vmax.f32 %v527_v30, 0.0  ;;  %v2031_v50 = vsel %vm2011_vm11, %v2028_v16, %v2030_v34  ;;  %v1742_v49 = vld [vmem:[#allocation6 + $0x10] sm:$0x3]  ;;  %588 = vst.msk [vmem:[#allocation2 + $0x48] sm:$0xff] %vm578_vm2, %v6312_v35 }
 0x12b   : > { %v6460_v12 = vmax.f32 %v2174_v45, %v6390_v15  ;;  %v1414_v25 = vrot.slane %v1412_v29, 4  ;;  %v1852_v14 = vrot.slane %v1742_v49, 1  ;;  %v679_v48 = vld [vmem:[#allocation3 + $0x8] sm:$0x1]  ;;  %612 = vst.msk [vmem:[#allocation3] sm:$0xf] %vm611_vm6, %v5576_v43  ;;  %v6471_v28 = vmax.f32 %v1981_v20, %v2029_v59  ;;  %v528_v59 = vpop.f32.mrf.mxu2 }
 0x12c   : > { %1494 = vrot.lane.b32.xlu0 %v1410_v18, %s5573_s26  ;;  %v2015_v18 = vrot.slane %v1742_v49, 2  ;;  %v2176_v35 = vmax.f32 %v6377_v2, %v6390_v15  ;;  %v680_v23 = vsel %vm6350_vm0, 0, %v679_v48  ;;  %v730_v31 = vld [vmem:[#allocation3 + $0xd4] sm:$0x1]  ;;  %613 = vst.msk [vmem:[#allocation3 + $0x4] sm:$0xf] %vm611_vm6, %v5576_v43  ;;  %v6480_v33 = vmax.f32 %v1982_v54, %v2031_v50 }
 0x12d   : > { %1107 = vrot.lane.b32.xlu1 %v969_v11, %s5574_s29  ;;  %v839_v11 = vshll.u32 %v6257_v24, 16  ;;  %v1413_v24 = vsel %vm5808_vm5, %v1411_v36, %v1412_v29  ;;  %v2177_v57 = vmax.f32 %v6382_v63, %v6450_v46  ;;  %v1909_v16 = vrot.slane %v1776_v47, 1  ;;  %681 = vst [vmem:[#allocation3 + $0x8] sm:$0x1] %v680_v23  ;;  %v1778_v20 = vld [vmem:[#allocation6 + $0x130] sm:$0x3] }
 0x12e   : > { %1109 = vrot.lane.b32.xlu2 %v970_v32, %s5574_s29  ;;  %v6441_v60 = vpop.permute.xlu0 %1518  ;;  %v1853_v21 = vsel %vm1848_vm10, %v1850_v10, %v1852_v14  ;;  %v2016_v30 = vsel %vm2011_vm11, %v2013_v27, %v2015_v18  ;;  %v731_v34 = vsel %vm6350_vm0, 0, %v730_v31  ;;  %v1910_v45 = vrot.slane %v6467_v13, 1  ;;  %617 = vst.msk [vmem:[#allocation3 + $0xcc] sm:$0xf] %vm611_vm6, %v5576_v43  ;;  %v6525_v23 = vld [vmem:[#allocation3 + $0x20] sm:$0x1] }
 0x12f   : > { %v841_v8 = vor.u32 %v839_v11, %v6443_v40  ;;  %v6493_v32 = vpop.permute.xlu1 %1043  ;;  %v1976_v36 = vmax.f32 %v6199_v1, %v1853_v21  ;;  %732 = vst [vmem:[#allocation3 + $0xd4] sm:$0x1] %v731_v34  ;;  %v6499_v37 = vpack.c.bf16 %v6454_v39, %v6454_v39  ;;  %v2072_v54 = vrot.slane %v1776_v47, 2  ;;  %v491_v34 = vpop.f32.mrf.mxu0 }
 0x130   : > { %v6504_v27 = vpop.permute.xlu2 %1049  ;;  %v1911_v1 = vsel %vm1848_vm10, %v1909_v16, %v1910_v45  ;;  %v1912_v11 = vrot.slane %v1778_v20, 1  ;;  %v2073_v29 = vrot.slane %v6467_v13, 2  ;;  %v2075_v50 = vrot.slane %v1778_v20, 2  ;;  %618 = vst.msk [vmem:[#allocation3 + $0xd0] sm:$0xf] %vm611_vm6, %v5576_v43 }
 0x131   : > { %v2139_v49 = vmax.f32 %v1976_v36, %v2016_v30  ;;  %v1999_v18 = vmax.f32 %v1776_v47, %v1911_v1  ;;  %v2194_v48 = vmax.f32 %v6058_v5, %v6336_v58  ;;  %628 = vst [vmem:[#allocation3 + $0xc] sm:$0x1] %v627_v53  ;;  %v849_v22 = vor.u32 %v847_v56, %v6452_v52  ;;  %v6537_v53 = vld [vmem:[#allocation6 + $0x60] sm:$0xff] }
 0x132   : > { %v1913_v31 = vsel %vm1848_vm10, %v1910_v45, %v1912_v11  ;;  %v2074_v16 = vsel %vm2011_vm11, %v2072_v54, %v2073_v29  ;;  %v2076_v47 = vsel %vm2011_vm11, %v2073_v29, %v2075_v50  ;;  %v623_v5 = vld [vmem:[#allocation3] sm:$0x1]  ;;  %1299 = vst.msk [vmem:[#allocation4] sm:$0xf] %vm1298_vm7, %v5576_v43  ;;  %v1450_v20 = vrot.slane %v6499_v37, 7  ;;  %v6557_v11 = vld [vmem:[#allocation6 + $0x68] sm:$0xff] }
 0x133   : > { %v2175_v21 = vmax.f32 %v2139_v49, %v6382_v63  ;;  %v2000_v30 = vmax.f32 %v6467_v13, %v1913_v31  ;;  %v624_v45 = vsel %vm6398_vm4, 0, %v623_v5  ;;  %v2195_v13 = vmax.f32 %v6060_v6, %v6342_v9  ;;  %v6552_v56 = vld [vmem:[#allocation3 + $0x6c] sm:$0x1]  ;;  %1300 = vst.msk [vmem:[#allocation4 + $0x4] sm:$0xf] %vm1298_vm7, %v5576_v43 }
 0x134   : > { %1063 = vrot.lane.b32.xlu0 %v841_v8, %s5574_s29  ;;  %v1246_v8 = vld [vmem:[#allocation3 + $0x74] sm:$0x1]  ;;  %625 = vst [vmem:[#allocation3] sm:$0x1] %v624_v45  ;;  %v6565_v6 = vmax.f32 %v2176_v35, %v6471_v28  ;;  %v842_v50 = vrot.slane %v6443_v40, 4  ;;  %v6585_v2 = vmax.f32 %v2177_v57, %v6480_v33  ;;  %v1870_v57 = vrot.slane %v6557_v11, 1 }
 0x135   : > { %1496 = vrot.lane.b32.xlu1 %v1413_v24, %s5573_s26  ;;  %v529_v24 = vadd.f32 %v6420_v17, %v528_v59  ;;  %v2207_v54 = vmax.f32 %v2175_v21, %v6450_v46  ;;  %v6554_v59 = vmax.f32 %v2000_v30, %v2076_v47  ;;  %v1754_v49 = vld [vmem:[#allocation6 + $0x70] sm:$0x3]  ;;  %1303 = vst.msk [vmem:[#allocation4 + $0xc] sm:$0xf] %vm1298_vm7, %v5576_v43  ;;  %v2032_v45 = vrot.slane %v6537_v53, 2 }
 0x136   : > { %1498 = vrot.lane.b32.xlu2 %v1414_v25, %s5573_s26  ;;  %v6514_v14 = vpop.permute.xlu0 %1087  ;;  %v1247_v25 = vsel %vm6398_vm4, %v6301_v0, %v1246_v8  ;;  %v6532_v0 = vmax.f32 %v1999_v18, %v2074_v16  ;;  %v1869_v8 = vrot.slane %v6537_v53, 1  ;;  %v674_v18 = vld [vmem:[#allocation3 + $0xcc] sm:$0x1]  ;;  %1304 = vst.msk [vmem:[#allocation4 + $0x10] sm:$0xf] %vm1298_vm7, %v5576_v43  ;;  %v850_v63 = vsel %vm5862_vm8, %v842_v50, %v849_v22 }
 0x137   : > { %1248 = vst [vmem:[#allocation3 + $0x74] sm:$0x1] %v1247_v25  ;;  %v6543_v36 = vmax.f32 %v529_v24, 0.0  ;;  %v6567_v29 = vpop.permute.xlu1 %1520  ;;  %v2238_v24 = vpack.c.bf16 %v2207_v54, %v6460_v12  ;;  %v2227_v40 = vmax.f32 %v2195_v13, %v6554_v59  ;;  %v492_v12 = vadd.f32 %v6420_v17, %v491_v34 }
 0x138   : > { %v2226_v1 = vmax.f32 %v2194_v48, %v6532_v0  ;;  %v6588_v35 = vpop.permute.xlu2 %1047  ;;  %v675_v25 = vsel %vm6398_vm4, 0, %v674_v18  ;;  %v1186_v16 = vld [vmem:[#allocation3 + $0xc] sm:$0xf]  ;;  %v1872_v5 = vrot.slane %v1754_v49, 1  ;;  %1307 = vst.msk [vmem:[#allocation4 + $0xd8] sm:$0xf] %vm1298_vm7, %v5576_v43  ;;  %v1871_v22 = vsel %vm1848_vm10, %v1869_v8, %v1870_v57  ;;  %v493_v18 = vpop.f32.mrf.mxu0 }
 0x139   : > { %v6597_v31 = vpack.c.bf16 %v6543_v36, %v6543_v36  ;;  %5142 = vmatmul.msk.bf16.vlgmr.msra.gmra.mxu1 %vm404_vm1, %v2238_v24  ;;  %676 = vst [vmem:[#allocation3 + $0xcc] sm:$0x1] %v675_v25  ;;  %v1187_v34 = vsel %vm6575_vm12, %v6354_v26, %v1186_v16  ;;  %v2033_v13 = vrot.slane %v6557_v11, 2  ;;  %v6618_v54 = vmax.f32 %v492_v12, 0.0  ;;  %v6630_v12 = vld [vmem:[#allocation6 + $0x140] sm:$0xff] }
 0x13a   : > { %v2248_v21 = vpack.c.bf16 %v2227_v40, %v2226_v1  ;;  %1188 = vst [vmem:[#allocation3 + $0xc] sm:$0xf] %v1187_v34  ;;  %v1451_v1 = vrot.slane %v1450_v20, 4  ;;  %v1873_v50 = vsel %vm1848_vm10, %v1870_v57, %v1872_v5  ;;  %v2035_v24 = vrot.slane %v1754_v49, 2 }
 0x13b   : > { %1308 = vst.msk [vmem:[#allocation4 + $0xdc] sm:$0xf] %vm1298_vm7, %v5576_v43  ;;  %v980_v8 = vshrl.u32 %v6597_v31, 16  ;;  %v851_v40 = vrot.slane %v6452_v52, 4  ;;  %v494_v25 = vadd.f32 %v6420_v17, %v493_v18  ;;  %v1983_v49 = vmax.f32 %v6537_v53, %v1871_v22  ;;  %v1781_v53 = vld [vmem:[#allocation6 + $0x148] sm:$0x3] }
 0x13c   : > { %1542 = vrot.lane.b32.xlu0 %v1450_v20, %s5573_s26  ;;  %5152 = vmatmul.msk.bf16.gmra.mxu3 %vm404_vm1, %v2248_v21  ;;  %1310 = vst.msk [vmem:[#allocation4 + $0xe4] sm:$0xf] %vm1298_vm7, %v5576_v43  ;;  %v983_v20 = vshll.u32 %v6597_v31, 16  ;;  %v972_v57 = vshrl.u32 %v6499_v37, 16  ;;  %v975_v16 = vshll.u32 %v6499_v37, 16  ;;  %v1984_v52 = vmax.f32 %v6557_v11, %v1873_v50 }
 0x13d   : > { %1065 = vrot.lane.b32.xlu1 %v850_v63, %s5574_s29  ;;  %v6628_v63 = vld [vmem:[#allocation6 + $0x138] sm:$0xff]  ;;  %1311 = vst.msk [vmem:[#allocation4 + $0xe8] sm:$0xf] %vm1298_vm7, %v5576_v43  ;;  %v2034_v21 = vsel %vm2011_vm11, %v2032_v45, %v2033_v13  ;;  %v2036_v5 = vsel %vm2011_vm11, %v2033_v13, %v2035_v24  ;;  %v1452_v18 = vrot.slane %v6597_v31, 7  ;;  %v6651_v22 = vmax.f32 %v494_v25, 0.0 }
 0x13e   : > { %v6607_v30 = vpop.permute.xlu0 %1041  ;;  %1067 = vrot.lane.b32.xlu2 %v851_v40, %s5574_s29  ;;  %1314 = vst.msk [vmem:[#allocation4] sm:$0x1] %vm1313_vm9, %v5576_v43  ;;  %v974_v47 = vrot.slane %v972_v57, 7  ;;  %v1914_v11 = vrot.slane %v6628_v63, 1  ;;  %v1915_v45 = vrot.slane %v6630_v12, 1  ;;  %v6657_v13 = vrot.slane %v980_v8, 7  ;;  %v531_v40 = vpop.f32.mrf.mxu2 }
 0x13f   : > { %v6644_v34 = vpop.permute.xlu1 %1089  ;;  %1315 = vst.msk [vmem:[#allocation4 + $0xc] sm:$0x1] %vm1313_vm9, %v5576_v43  ;;  %v6661_v31 = vpack.c.bf16 %v6618_v54, %v6618_v54  ;;  %v2178_v50 = vmax.f32 %v6390_v15, %v6471_v28  ;;  %v1453_v24 = vsel %vm5808_vm5, %v1451_v1, %v1452_v18  ;;  %v1917_v26 = vrot.slane %v1781_v53, 1 }
 0x140   : > { %v6649_v37 = vpop.permute.xlu2 %1528  ;;  %1332 = vst.msk [vmem:[#allocation4 + $0xd8] sm:$0x1] %vm1313_vm9, %v5576_v43  ;;  %v977_v25 = vor.u32 %v975_v16, %v974_v47  ;;  %v1916_v8 = vsel %vm1848_vm10, %v1914_v11, %v1915_v45  ;;  %v2077_v4 = vrot.slane %v6628_v63, 2  ;;  %v6676_v15 = vmax.f32 %v1983_v49, %v2034_v21  ;;  %v6682_v16 = vld [vmem:[#allocation3 + $0x18] sm:$0x1] }
 0x141   : > { %1333 = vst.msk [vmem:[#allocation4 + $0xe4] sm:$0x1] %vm1313_vm9, %v5576_v43  ;;  %v6678_v1 = vmax.f32 %v1984_v52, %v2036_v5  ;;  %v2179_v10 = vmax.f32 %v6450_v46, %v6480_v33  ;;  %v6689_v11 = vpack.c.bf16 %v6651_v22, %v6651_v22  ;;  %v1918_v43 = vsel %vm1848_vm10, %v1915_v45, %v1917_v26  ;;  %v6701_v5 = vld [vmem:[#allocation6 + $0x78] sm:$0xff] }
 0x142   : > { %1617 = vst.msk [vmem:[#allocation4 + $0x1c] sm:$0xf] %vm1298_vm7, %v6394_v19  ;;  %v2078_v49 = vrot.slane %v6630_v12, 2  ;;  %v2080_v52 = vrot.slane %v1781_v53, 2  ;;  %v1454_v46 = vrot.slane %v1452_v18, 4  ;;  %v2196_v19 = vmax.f32 %v6336_v58, %v6532_v0 }
 0x143   : > { %1621 = vst.msk [vmem:[#allocation4 + $0x2c] sm:$0x1] %vm1313_vm9, %v6406_v7  ;;  %v2197_v21 = vmax.f32 %v6342_v9, %v6554_v59  ;;  %v630_v7 = vsel %vm6398_vm4, 0, %v6682_v16  ;;  %v532_v58 = vadd.f32 %v6420_v17, %v531_v40  ;;  %v6713_v18 = vld [vmem:[#allocation6 + $0x88] sm:$0x3]  ;;  %v978_v45 = vrot.slane %v974_v47, 4 }
 0x144   : > { %1111 = vrot.lane.b32.xlu0 %v977_v25, %s5574_s29  ;;  %v6703_v25 = vld [vmem:[#allocation6 + $0x80] sm:$0xff]  ;;  %603 = vst.msk [vmem:[#allocation2 + $0xc0] sm:$0xff] %vm578_vm2, %v6454_v39  ;;  %v2079_v26 = vsel %vm2011_vm11, %v2077_v4, %v2078_v49  ;;  %v985_v4 = vor.u32 %v983_v20, %v6657_v13  ;;  %v10068_v40 = vsel %vm6350_vm0, 0, %v6457_v42  ;;  %v10069_v47 = vsel %vm6350_vm0, 0, %v6525_v23 }
 0x145   : > { %1544 = vrot.lane.b32.xlu1 %v1453_v24, %s5573_s26  ;;  %v2001_v24 = vmax.f32 %v6628_v63, %v1916_v8  ;;  %v2002_v63 = vmax.f32 %v6630_v12, %v1918_v43  ;;  %v2081_v12 = vsel %vm2011_vm11, %v2078_v49, %v2080_v52  ;;  %1640 = vst.msk [vmem:[#allocation4 + $0x78] sm:$0xe] %vm1615_vm3, %v6441_v60  ;;  %v861_v8 = vshrl.u32 %v6689_v11, 16  ;;  %v6741_v52 = vld [vmem:[#allocation3 + $0x80] sm:$0x1] }
 0x146   : > { %v6670_v57 = vpop.permute.xlu0 %1476  ;;  %1546 = vrot.lane.b32.xlu2 %v1454_v46, %s5573_s26  ;;  %684 = vst [vmem:[#allocation3 + $0x14] sm:$0x1] %v10068_v40  ;;  %v1415_v60 = vrot.slane %v6661_v31, 7  ;;  %v1874_v49 = vrot.slane %v6701_v5, 1  ;;  %v986_v46 = vsel %vm5862_vm8, %v978_v45, %v985_v4  ;;  %v6753_v23 = vmax.f32 %v2178_v50, %v6676_v15  ;;  %v533_v40 = vpop.f32.mrf.mxu2 }
 0x147   : > { %v6718_v9 = vpop.permute.xlu1 %1045  ;;  %v6720_v39 = vmax.f32 %v2001_v24, %v2079_v26  ;;  %v6722_v53 = vmax.f32 %v2002_v63, %v2081_v12  ;;  %v1875_v24 = vrot.slane %v6703_v25, 1  ;;  %687 = vst [vmem:[#allocation3 + $0x20] sm:$0x1] %v10069_v47  ;;  %v1877_v63 = vrot.slane %v6713_v18, 1 }
 0x148   : > { %v6730_v43 = vpop.permute.xlu2 %1097  ;;  %v10070_v26 = vpack.c.bf16 %v6585_v2, %v6565_v6  ;;  %604 = vst.msk [vmem:[#allocation2 + $0xc8] sm:$0xff] %vm578_vm2, %v6543_v36  ;;  %v2038_v12 = vrot.slane %v6703_v25, 2  ;;  %v10071_v6 = vsel %vm6398_vm4, 0, %v6552_v56  ;;  %v6766_v36 = vmax.f32 %v2179_v10, %v6678_v1 }
 0x149   : > { %v2228_v20 = vmax.f32 %v2196_v19, %v6720_v39  ;;  %v2229_v42 = vmax.f32 %v2197_v21, %v6722_v53  ;;  %v1876_v19 = vsel %vm1848_vm10, %v1874_v49, %v1875_v24  ;;  %v2037_v21 = vrot.slane %v6701_v5, 2  ;;  %652 = vst [vmem:[#allocation3 + $0x6c] sm:$0x1] %v10071_v6 }
 0x14a   : > { %5143 = vmatmul.msk.bf16.gmra.mxu1 %vm404_vm1, %v10070_v26  ;;  %v864_v2 = vshll.u32 %v6689_v11, 16  ;;  %v6769_v4 = vmax.f32 %v532_v58, 0.0  ;;  %1641 = vst.msk [vmem:[#allocation4 + $0x7c] sm:$0xf] %vm1298_vm7, %v6567_v29  ;;  %v6773_v49 = vrot.slane %v861_v8, 7  ;;  %v710_v47 = vsel %vm6350_vm0, 0, %v6741_v52 }
 0x14b   : > { %v2249_v50 = vpack.c.bf16 %v2229_v42, %v2228_v20  ;;  %v6780_v10 = vsel %vm1848_vm10, %v1875_v24, %v1877_v63  ;;  %v2040_v56 = vrot.slane %v6713_v18, 2  ;;  %1196 = vst.msk [vmem:[#allocation3 + $0x1c] sm:$0xf] %vm611_vm6, %v6588_v35  ;;  %v1416_v58 = vrot.slane %v1415_v60, 4  ;;  %v1784_v63 = vld [vmem:[#allocation6 + $0x160] sm:$0x3] }
 0x14c   : > { %1500 = vrot.lane.b32.xlu0 %v1415_v60, %s5573_s26  ;;  %v1985_v29 = vmax.f32 %v6701_v5, %v1876_v19  ;;  %v987_v8 = vrot.slane %v6657_v13, 4  ;;  %v853_v20 = vshrl.u32 %v6661_v31, 16  ;;  %589 = vst.msk [vmem:[#allocation2 + $0x50] sm:$0xff] %vm578_vm2, %v6618_v54  ;;  %v2039_v24 = vsel %vm2011_vm11, %v2037_v21, %v2038_v12  ;;  %v1783_v19 = vld [vmem:[#allocation6 + $0x158] sm:$0xff] }
 0x14d   : > { %1113 = vrot.lane.b32.xlu1 %v986_v46, %s5574_s29  ;;  %5153 = vmatmul.msk.bf16.gmra.mxu3 %vm404_vm1, %v2249_v50  ;;  %v534_v42 = vadd.f32 %v6420_v17, %v533_v40  ;;  %v856_v18 = vshll.u32 %v6661_v31, 16  ;;  %v1417_v35 = vrot.slane %v6689_v11, 7  ;;  %v1782_v46 = vld [vmem:[#allocation6 + $0x150] sm:$0xff]  ;;  %v1190_v60 = vld [vmem:[#allocation3 + $0x14] sm:$0x1]  ;;  %v2240_v5 = vpack.c.bf16 %v6766_v36, %v6753_v23  ;;  %590 = vst.msk [vmem:[#allocation2 + $0x58] sm:$0xff] %vm578_vm2, %v6651_v22 }
 0x14e   : > { %v6759_v45 = vpop.permute.xlu0 %1524  ;;  %1189 = vst.msk [vmem:[#allocation3 + $0x10] sm:$0xf] %vm611_vm6, %v6607_v30  ;;  %v6801_v54 = vpack.c.bf16 %v6769_v4, %v6769_v4  ;;  %v1986_v13 = vmax.f32 %v6703_v25, %v6780_v10  ;;  %1115 = vrot.lane.b32.xlu2 %v987_v8, %s5574_s29  ;;  %v6808_v26 = vrot.slane %v853_v20, 7  ;;  %v1191_v21 = vsel %vm6398_vm4, %v6493_v32, %v1190_v60  ;;  %v1197_v6 = vld [vmem:[#allocation3 + $0x20] sm:$0x1]  ;;  %v496_v10 = vpop.f32.mrf.mxu0 }
 0x14f   : > { %v6806_v31 = vpop.permute.xlu1 %1478  ;;  %1245 = vst.msk [vmem:[#allocation3 + $0x70] sm:$0xf] %vm611_vm6, %v6644_v34  ;;  %v2041_v30 = vsel %vm2011_vm11, %v2038_v12, %v2040_v56  ;;  %v2180_v25 = vmax.f32 %v6471_v28, %v6676_v15  ;;  %v6820_v40 = vmax.f32 %v534_v42, 0.0  ;;  %v1198_v8 = vsel %vm6398_vm4, %v6504_v27, %v1197_v6 }
 0x150   : > { %v6818_v50 = vpop.permute.xlu2 %1486  ;;  %1192 = vst [vmem:[#allocation3 + $0x14] sm:$0x1] %v1191_v21  ;;  %v6825_v32 = vmax.f32 %v1985_v29, %v2039_v24  ;;  %v1418_v34 = vsel %vm5808_vm5, %v1416_v58, %v1417_v35  ;;  %v1919_v20 = vrot.slane %v1782_v46, 1  ;;  %v1242_v12 = vld [vmem:[#allocation3 + $0x6c] sm:$0xf]  ;;  %v858_v56 = vor.u32 %v856_v18, %v6808_v26 }
 0x151   : > { %1199 = vst [vmem:[#allocation3 + $0x20] sm:$0x1] %v1198_v8  ;;  %v6831_v28 = vpack.c.bf16 %v6820_v40, %v6820_v40  ;;  %v1920_v60 = vrot.slane %v1783_v19, 1  ;;  %v1922_v27 = vrot.slane %v1784_v63, 1  ;;  %v1243_v29 = vsel %vm6575_vm12, %v6514_v14, %v1242_v12 }
 0x152   : > { %1645 = vst.msk [vmem:[#allocation4 + $0x8c] sm:$0x1] %vm1313_vm9, %v6649_v37  ;;  %v2082_v58 = vrot.slane %v1782_v46, 2  ;;  %v2083_v24 = vrot.slane %v1783_v19, 2  ;;  %v2085_v21 = vrot.slane %v1784_v63, 2  ;;  %v1419_v18 = vrot.slane %v1417_v35, 4 }
 0x153   : > { %1244 = vst [vmem:[#allocation3 + $0x6c] sm:$0xf] %v1243_v29  ;;  %v1921_v6 = vsel %vm1848_vm10, %v1919_v20, %v1920_v60  ;;  %v1923_v8 = vsel %vm1848_vm10, %v1920_v60, %v1922_v27  ;;  %v6851_v29 = vld [vmem:[#allocation6 + $0x90] sm:$0xff]  ;;  %v6857_v35 = vmax.f32 %v1986_v13, %v2041_v30  ;;  %v2199_v22 = vmax.f32 %v6554_v59, %v6722_v53  ;;  %v6876_v60 = vld [vmem:[#allocation3 + $0x2c] sm:$0x1] }
 0x154   : > { %1069 = vrot.lane.b32.xlu0 %v858_v56, %s5574_s29  ;;  %v2003_v14 = vmax.f32 %v1782_v46, %v1921_v6  ;;  %v2004_v12 = vmax.f32 %v1783_v19, %v1923_v8  ;;  %v2084_v37 = vsel %vm2011_vm11, %v2082_v58, %v2083_v24  ;;  %v2086_v63 = vsel %vm2011_vm11, %v2083_v24, %v2085_v21  ;;  %v6853_v56 = vld [vmem:[#allocation6 + $0x98] sm:$0xff]  ;;  %v653_v20 = vld [vmem:[#allocation3 + $0x78] sm:$0x1]  ;;  %v6864_v19 = vld [vmem:[#allocation6 + $0xa0] sm:$0x3] }
 0x155   : > { %1502 = vrot.lane.b32.xlu1 %v1418_v34, %s5573_s26  ;;  %v2198_v34 = vmax.f32 %v6532_v0, %v6720_v39  ;;  %1619 = vst.msk [vmem:[#allocation4 + $0x24] sm:$0xe] %vm1615_vm3, %v6670_v57  ;;  %v2181_v0 = vmax.f32 %v6480_v33, %v6678_v1  ;;  %v497_v46 = vadd.f32 %v6420_v17, %v496_v10  ;;  %v997_v57 = vshrl.u32 %v6831_v28, 16 }
 0x156   : > { %v6835_v42 = vpop.permute.xlu0 %1093  ;;  %631 = vst [vmem:[#allocation3 + $0x18] sm:$0x1] %v630_v7  ;;  %1504 = vrot.lane.b32.xlu2 %v1419_v18, %s5573_s26  ;;  %v6872_v30 = vmax.f32 %v2003_v14, %v2084_v37  ;;  %v6874_v33 = vmax.f32 %v2004_v12, %v2086_v63  ;;  %v859_v59 = vrot.slane %v6808_v26, 4  ;;  %v1455_v7 = vrot.slane %v6801_v54, 7  ;;  %v498_v18 = vpop.f32.mrf.mxu0  ;;  %v6936_v63 = vld [vmem:[#allocation6 + $0x168] sm:$0xff] }
 0x157   : > { %v1527_v13 = vpop.permute.xlu1 %1526  ;;  %711 = vst [vmem:[#allocation3 + $0x80] sm:$0x1] %v710_v47  ;;  %v866_v10 = vor.u32 %v864_v2, %v6773_v49  ;;  %v1879_v27 = vrot.slane %v6851_v29, 1  ;;  %v1880_v58 = vrot.slane %v6853_v56, 1  ;;  %v6894_v26 = vmax.f32 %v2180_v25, %v6825_v32 }
 0x158   : > { %v6883_v16 = vpop.permute.xlu2 %1055  ;;  %605 = vst.msk [vmem:[#allocation2 + $0xd0] sm:$0xff] %vm578_vm2, %v6769_v4  ;;  %v2230_v52 = vmax.f32 %v2198_v34, %v6872_v30  ;;  %v2231_v47 = vmax.f32 %v2199_v22, %v6874_v33  ;;  %v1882_v24 = vrot.slane %v6864_v19, 1  ;;  %v6904_v11 = vmax.f32 %v2181_v0, %v6857_v35  ;;  %v6938_v0 = vld [vmem:[#allocation6 + $0x170] sm:$0xff] }
 0x159   : > { %1643 = vst.msk [vmem:[#allocation4 + $0x84] sm:$0xe] %vm1615_vm3, %v6759_v45  ;;  %v654_v2 = vsel %vm6398_vm4, 0, %v653_v20  ;;  %v558_v4 = vmax.f32 %v497_v46, 0.0  ;;  %v867_v25 = vsel %vm5862_vm8, %v859_v59, %v866_v10  ;;  %v6914_v23 = vrot.slane %v997_v57, 7 }
 0x15a   : > { %5144 = vmatmul.msk.bf16.gmra.mxu1 %vm404_vm1, %v2240_v5  ;;  %1620 = vst.msk [vmem:[#allocation4 + $0x28] sm:$0xf] %vm1298_vm7, %v6806_v31  ;;  %v1000_v36 = vshll.u32 %v6831_v28, 16  ;;  %v2250_v5 = vpack.c.bf16 %v2231_v47, %v2230_v52  ;;  %v689_v45 = vsel %vm6350_vm0, 0, %v6876_v60  ;;  %v1456_v6 = vrot.slane %v1455_v7, 4 }
 0x15b   : > { %1624 = vst.msk [vmem:[#allocation4 + $0x38] sm:$0x1] %vm1313_vm9, %v6818_v50  ;;  %v1881_v8 = vsel %vm1848_vm10, %v1879_v27, %v1880_v58  ;;  %v2042_v31 = vrot.slane %v6851_v29, 2  ;;  %v2043_v34 = vrot.slane %v6853_v56, 2  ;;  %v6931_v14 = vsel %vm1848_vm10, %v1880_v58, %v1882_v24  ;;  %v1787_v20 = vld [vmem:[#allocation6 + $0x178] sm:$0x3] }
 0x15c   : > { %1548 = vrot.lane.b32.xlu0 %v1455_v7, %s5573_s26  ;;  %606 = vst.msk [vmem:[#allocation2 + $0xd8] sm:$0xff] %vm578_vm2, %v6820_v40  ;;  %v868_v12 = vrot.slane %v6773_v49, 4  ;;  %v499_v50 = vadd.f32 %v6420_v17, %v498_v18  ;;  %v989_v37 = vshrl.u32 %v6801_v54, 16  ;;  %v2241_v40 = vpack.c.bf16 %v6904_v11, %v6894_v26 }
 0x15d   : > { %1071 = vrot.lane.b32.xlu1 %v867_v25, %s5574_s29  ;;  %5154 = vmatmul.msk.bf16.gmra.mxu3 %vm404_vm1, %v2250_v5  ;;  %v1193_v22 = vld [vmem:[#allocation3 + $0x18] sm:$0xf]  ;;  %655 = vst [vmem:[#allocation3 + $0x78] sm:$0x1] %v654_v2  ;;  %v6942_v46 = vpack.c.bf16 %v558_v4, %v558_v4  ;;  %v992_v57 = vshll.u32 %v6801_v54, 16  ;;  %v1457_v49 = vrot.slane %v6831_v28, 7  ;;  %v1987_v7 = vmax.f32 %v6851_v29, %v1881_v8  ;;  %v536_v29 = vpop.f32.mrf.mxu2 }
 0x15e   : > { %v1483_v21 = vpop.permute.xlu0 %1482  ;;  %v1194_v60 = vsel %vm6575_vm12, %v6718_v9, %v1193_v22  ;;  %v1253_v59 = vld [vmem:[#allocation3 + $0x80] sm:$0x1]  ;;  %1644 = vst.msk [vmem:[#allocation4 + $0x88] sm:$0xf] %vm1298_vm7, %v1527_v13  ;;  %v2045_v10 = vrot.slane %v6864_v19, 2  ;;  %1073 = vrot.lane.b32.xlu2 %v868_v12, %s5574_s29  ;;  %v6953_v58 = vrot.slane %v989_v37, 7  ;;  %v1988_v9 = vmax.f32 %v6853_v56, %v6931_v14 }
 0x15f   : > { %v1096_v27 = vpop.permute.xlu1 %1095  ;;  %1195 = vst [vmem:[#allocation3 + $0x18] sm:$0xf] %v1194_v60  ;;  %v1254_v54 = vsel %vm6398_vm4, %v6730_v43, %v1253_v59  ;;  %v2044_v52 = vsel %vm2011_vm11, %v2042_v31, %v2043_v34  ;;  %v559_v47 = vmax.f32 %v499_v50, 0.0  ;;  %v2182_v19 = vmax.f32 %v6676_v15, %v6825_v32 }
 0x160   : > { %v1535_v13 = vpop.permute.xlu2 %1534  ;;  %1255 = vst [vmem:[#allocation3 + $0x80] sm:$0x1] %v1254_v54  ;;  %v2183_v24 = vmax.f32 %v6678_v1, %v6857_v35  ;;  %v994_v2 = vor.u32 %v992_v57, %v6953_v58  ;;  %v1458_v43 = vsel %vm5808_vm5, %v1456_v6, %v1457_v49  ;;  %v1924_v56 = vrot.slane %v6936_v63, 1  ;;  %v632_v6 = vld [vmem:[#allocation3 + $0x24] sm:$0x1]  ;;  %v7006_v54 = vld [vmem:[#allocation6 + $0xa8] sm:$0xff] }
 0x161   : > { %690 = vst [vmem:[#allocation3 + $0x2c] sm:$0x1] %v689_v45  ;;  %v1925_v18 = vrot.slane %v6938_v0, 1  ;;  %v1927_v5 = vrot.slane %v1787_v20, 1  ;;  %v2087_v8 = vrot.slane %v6936_v63, 2  ;;  %v2046_v31 = vsel %vm2011_vm11, %v2043_v34, %v2045_v10 }
 0x162   : > { %591 = vst.msk [vmem:[#allocation2 + $0x60] sm:$0xff] %vm578_vm2, %v558_v4  ;;  %v6975_v14 = vmax.f32 %v1987_v7, %v2044_v52  ;;  %v1459_v12 = vrot.slane %v1457_v49, 4  ;;  %v2088_v45 = vrot.slane %v6938_v0, 2  ;;  %v6980_v50 = vpack.c.bf16 %v559_v47, %v559_v47  ;;  %v7008_v52 = vld [vmem:[#allocation6 + $0xb0] sm:$0xff] }
 0x163   : > { %1622 = vst.msk [vmem:[#allocation4 + $0x30] sm:$0xe] %vm1615_vm3, %v1483_v21  ;;  %v1926_v37 = vsel %vm1848_vm10, %v1924_v56, %v1925_v18  ;;  %v1928_v4 = vsel %vm1848_vm10, %v1925_v18, %v1927_v5  ;;  %v2090_v22 = vrot.slane %v1787_v20, 2  ;;  %v2200_v21 = vmax.f32 %v6720_v39, %v6872_v30  ;;  %v7020_v18 = vld [vmem:[#allocation6 + $0xb8] sm:$0x3] }
 0x164   : > { %1117 = vrot.lane.b32.xlu0 %v994_v2, %s5574_s29  ;;  %v1249_v34 = vld [vmem:[#allocation3 + $0x78] sm:$0xf]  ;;  %1252 = vst.msk [vmem:[#allocation3 + $0x7c] sm:$0xf] %vm611_vm6, %v1096_v27  ;;  %v2005_v57 = vmax.f32 %v6936_v63, %v1926_v37  ;;  %v2006_v49 = vmax.f32 %v6938_v0, %v1928_v4  ;;  %v2089_v60 = vsel %vm2011_vm11, %v2087_v8, %v2088_v45  ;;  %v633_v20 = vsel %vm6398_vm4, 0, %v632_v6 }
 0x165   : > { %1550 = vrot.lane.b32.xlu1 %v1458_v43, %s5573_s26  ;;  %v1250_v59 = vsel %vm6575_vm12, %v6835_v42, %v1249_v34  ;;  %1648 = vst.msk [vmem:[#allocation4 + $0x98] sm:$0x1] %vm1313_vm9, %v1535_v13  ;;  %v2091_v7 = vsel %vm2011_vm11, %v2088_v45, %v2090_v22  ;;  %v2201_v63 = vmax.f32 %v6722_v53, %v6874_v33  ;;  %v712_v0 = vld [vmem:[#allocation3 + $0x8c] sm:$0x1]  ;;  %v878_v53 = vshrl.u32 %v6980_v50, 16  ;;  %v538_v6 = vpop.f32.mrf.mxu2 }
 0x166   : > { %v6968_v25 = vpop.permute.xlu0 %1051  ;;  %1251 = vst [vmem:[#allocation3 + $0x78] sm:$0xf] %v1250_v59  ;;  %1552 = vrot.lane.b32.xlu2 %v1459_v12, %s5573_s26  ;;  %v7001_v39 = vmax.f32 %v2005_v57, %v2089_v60  ;;  %v7003_v27 = vmax.f32 %v2006_v49, %v2091_v7  ;;  %v537_v42 = vadd.f32 %v6420_v17, %v536_v29  ;;  %v995_v43 = vrot.slane %v6953_v58, 4  ;;  %v656_v34 = vld [vmem:[#allocation3 + $0x84] sm:$0x1] }
 0x167   : > { %v1485_v10 = vpop.permute.xlu1 %1484  ;;  %v7010_v13 = vmax.f32 %v1988_v9, %v2046_v31  ;;  %592 = vst.msk [vmem:[#allocation2 + $0x68] sm:$0xff] %vm578_vm2, %v559_v47  ;;  %v1002_v56 = vor.u32 %v1000_v36, %v6914_v23  ;;  %v713_v47 = vsel %vm6350_vm0, 0, %v712_v0  ;;  %v1420_v8 = vrot.slane %v6942_v46, 7 }
 0x168   : > { %v7014_v2 = vpop.permute.xlu2 %1103  ;;  %v1204_v29 = vld [vmem:[#allocation3 + $0x2c] sm:$0x1]  ;;  %634 = vst [vmem:[#allocation3 + $0x24] sm:$0x1] %v633_v20  ;;  %v2232_v5 = vmax.f32 %v2200_v21, %v7001_v39  ;;  %v2233_v9 = vmax.f32 %v2201_v63, %v7003_v27  ;;  %v1884_v58 = vrot.slane %v7006_v54, 1  ;;  %v1885_v31 = vrot.slane %v7008_v52, 1 }
 0x169   : > { %v1205_v28 = vsel %vm6398_vm4, %v6883_v16, %v1204_v29  ;;  %1623 = vst.msk [vmem:[#allocation4 + $0x34] sm:$0xf] %vm1298_vm7, %v1485_v10  ;;  %v1003_v36 = vsel %vm5862_vm8, %v995_v43, %v1002_v56  ;;  %v574_v26 = vmax.f32 %v537_v42, 0.0  ;;  %v1887_v11 = vrot.slane %v7020_v18, 1  ;;  %v1788_v20 = vld [vmem:[#allocation6 + $0x180] sm:$0xff]  ;;  %v1789_v42 = vld [vmem:[#allocation6 + $0x188] sm:$0xff] }
 0x16a   : > { %5145 = vmatmul.msk.bf16.gmra.mxu1 %vm404_vm1, %v2241_v40  ;;  %1206 = vst [vmem:[#allocation3 + $0x2c] sm:$0x1] %v1205_v28  ;;  %v2251_v45 = vpack.c.bf16 %v2233_v9, %v2232_v5  ;;  %v7045_v16 = vmax.f32 %v2182_v19, %v6975_v14  ;;  %v7051_v40 = vmax.f32 %v2183_v24, %v7010_v13  ;;  %v881_v37 = vshll.u32 %v6980_v50, 16  ;;  %v1790_v9 = vld [vmem:[#allocation6 + $0x190] sm:$0x3] }
 0x16b   : > { %714 = vst [vmem:[#allocation3 + $0x8c] sm:$0x1] %v713_v47  ;;  %v7055_v4 = vrot.slane %v878_v53, 7  ;;  %v1421_v15 = vrot.slane %v1420_v8, 4  ;;  %v1004_v19 = vrot.slane %v6914_v23, 4  ;;  %v539_v22 = vadd.f32 %v6420_v17, %v538_v6  ;;  %v501_v53 = vpop.f32.mrf.mxu0 }
 0x16c   : > { %1506 = vrot.lane.b32.xlu0 %v1420_v8, %s5573_s26  ;;  %607 = vst.msk [vmem:[#allocation2 + $0xe0] sm:$0xff] %vm578_vm2, %v574_v26  ;;  %v7062_v1 = vsel %vm1848_vm10, %v1884_v58, %v1885_v31  ;;  %v2047_v24 = vrot.slane %v7006_v54, 2  ;;  %v870_v57 = vshrl.u32 %v6942_v46, 16  ;;  %v873_v49 = vshll.u32 %v6942_v46, 16 }
 0x16d   : > { %1119 = vrot.lane.b32.xlu1 %v1003_v36, %s5574_s29  ;;  %5155 = vmatmul.msk.bf16.gmra.mxu3 %vm404_vm1, %v2251_v45  ;;  %v7069_v60 = vsel %vm1848_vm10, %v1885_v31, %v1887_v11  ;;  %v2048_v21 = vrot.slane %v7008_v52, 2  ;;  %v575_v23 = vmax.f32 %v539_v22, 0.0  ;;  %v1422_v59 = vrot.slane %v6980_v50, 7 }
 0x16e   : > { %v1531_v12 = vpop.permute.xlu0 %1530  ;;  %1121 = vrot.lane.b32.xlu2 %v1004_v19, %s5574_s29  ;;  %v2242_v7 = vpack.c.bf16 %v7051_v40, %v7045_v16  ;;  %v7076_v0 = vpack.c.bf16 %v574_v26, %v574_v26  ;;  %v872_v10 = vrot.slane %v870_v57, 7  ;;  %v1989_v56 = vmax.f32 %v7006_v54, %v7062_v1  ;;  %v691_v54 = vld [vmem:[#allocation3 + $0x38] sm:$0x1] }
 0x16f   : > { %1646 = vst.msk [vmem:[#allocation4 + $0x90] sm:$0xe] %vm1615_vm3, %v1531_v12  ;;  %v1054_v17 = vpop.permute.xlu1 %1053  ;;  %v1200_v63 = vld [vmem:[#allocation3 + $0x24] sm:$0xf]  ;;  %v2050_v29 = vrot.slane %v7020_v18, 2  ;;  %v657_v5 = vsel %vm6398_vm4, 0, %v656_v34  ;;  %v1990_v47 = vmax.f32 %v7008_v52, %v7069_v60  ;;  %v1423_v28 = vsel %vm5808_vm5, %v1421_v15, %v1422_v59 }
 0x170   : > { %1203 = vst.msk [vmem:[#allocation3 + $0x28] sm:$0xf] %vm611_vm6, %v1054_v17  ;;  %v1493_v46 = vpop.permute.xlu2 %1492  ;;  %v1201_v43 = vsel %vm6575_vm12, %v6968_v25, %v1200_v63  ;;  %v875_v8 = vor.u32 %v873_v49, %v872_v10  ;;  %v1929_v36 = vrot.slane %v1788_v20, 1  ;;  %v2049_v18 = vsel %vm2011_vm11, %v2047_v24, %v2048_v21 }
 0x171   : > { %1627 = vst.msk [vmem:[#allocation4 + $0x44] sm:$0x1] %vm1313_vm9, %v1493_v46  ;;  %v7096_v31 = vpack.c.bf16 %v575_v23, %v575_v23  ;;  %v1930_v12 = vrot.slane %v1789_v42, 1  ;;  %v2202_v52 = vmax.f32 %v6872_v30, %v7001_v39  ;;  %v1932_v45 = vrot.slane %v1790_v9, 1 }
 0x172   : > { %1202 = vst [vmem:[#allocation3 + $0x24] sm:$0xf] %v1201_v43  ;;  %v1260_v58 = vld [vmem:[#allocation3 + $0x8c] sm:$0x1]  ;;  %v2092_v26 = vrot.slane %v1788_v20, 2  ;;  %v2093_v11 = vrot.slane %v1789_v42, 2  ;;  %v2203_v60 = vmax.f32 %v6874_v33, %v7003_v27  ;;  %v883_v46 = vor.u32 %v881_v37, %v7055_v4 }
 0x173   : > { %608 = vst.msk [vmem:[#allocation2 + $0xe8] sm:$0xff] %vm578_vm2, %v575_v23  ;;  %v1261_v6 = vsel %vm6398_vm4, %v7014_v2, %v1260_v58  ;;  %v1424_v16 = vrot.slane %v1422_v59, 4  ;;  %v1931_v40 = vsel %vm1848_vm10, %v1929_v36, %v1930_v12  ;;  %v2095_v15 = vrot.slane %v1790_v9, 2  ;;  %v7113_v2 = vld [vmem:[%s9925_s2] ss:$0 sm:$0xff]  ;;  %v503_v43 = vpop.f32.mrf.mxu0  ;;  %v541_v36 = vpop.f32.mrf.mxu2 }
 0x174   : > { %1075 = vrot.lane.b32.xlu0 %v875_v8, %s5574_s29  ;;  %658 = vst [vmem:[#allocation3 + $0x84] sm:$0x1] %v657_v5  ;;  %v692_v19 = vsel %vm6350_vm0, 0, %v691_v54  ;;  %v1933_v30 = vsel %vm1848_vm10, %v1930_v12, %v1932_v45  ;;  %v2007_v22 = vmax.f32 %v1788_v20, %v1931_v40  ;;  %v2094_v34 = vsel %vm2011_vm11, %v2092_v26, %v2093_v11  ;;  %v1792_v12 = vld [vmem:[#allocation6 + $0x1a0] sm:$0xff] }
 0x175   : > { %1508 = vrot.lane.b32.xlu1 %v1423_v28, %s5573_s26  ;;  %1262 = vst [vmem:[#allocation3 + $0x8c] sm:$0x1] %v1261_v6  ;;  %v502_v1 = vadd.f32 %v7113_v2, %v501_v53  ;;  %v2008_v57 = vmax.f32 %v1789_v42, %v1933_v30  ;;  %v2096_v49 = vsel %vm2011_vm11, %v2093_v11, %v2095_v15  ;;  %v876_v17 = vrot.slane %v872_v10, 4 }
 0x176   : > { %v7092_v25 = vpop.permute.xlu0 %1099  ;;  %693 = vst [vmem:[#allocation3 + $0x38] sm:$0x1] %v692_v19  ;;  %1510 = vrot.lane.b32.xlu2 %v1424_v16, %s5573_s26  ;;  %v2051_v23 = vsel %vm2011_vm11, %v2048_v21, %v2050_v29  ;;  %v7122_v59 = vmax.f32 %v2007_v22, %v2094_v34  ;;  %v2184_v42 = vmax.f32 %v6825_v32, %v6975_v14  ;;  %v1014_v10 = vshrl.u32 %v7096_v31, 16  ;;  %v635_v29 = vld [vmem:[#allocation3 + $0x30] sm:$0x1] }
 0x177   : > { %v1533_v24 = vpop.permute.xlu1 %1532  ;;  %v7124_v63 = vmax.f32 %v502_v1, 0.0  ;;  %v2185_v33 = vmax.f32 %v6857_v35, %v7010_v13  ;;  %v7134_v21 = vmax.f32 %v2008_v57, %v2096_v49  ;;  %v1460_v50 = vrot.slane %v7076_v0, 7  ;;  %v715_v1 = vld [vmem:[#allocation3 + $0x98] sm:$0x1] }
 0x178   : > { %1647 = vst.msk [vmem:[#allocation4 + $0x94] sm:$0xf] %vm1298_vm7, %v1533_v24  ;;  %v1062_v20 = vpop.permute.xlu2 %1061  ;;  %v2234_v53 = vmax.f32 %v2202_v52, %v7122_v59  ;;  %v884_v37 = vsel %vm5862_vm8, %v876_v17, %v883_v46  ;;  %v1006_v35 = vshrl.u32 %v7076_v0, 16  ;;  %v7144_v5 = vmax.f32 %v1989_v56, %v2049_v18  ;;  %v1791_v18 = vld [vmem:[#allocation6 + $0x198] sm:$0xff]  ;;  %v1793_v52 = vld [vmem:[#allocation6 + $0x1a8] sm:$0x3] }
 0x179   : > { %593 = vst.msk [vmem:[#allocation2 + $0x70] sm:$0xff] %vm578_vm2, %v7124_v63  ;;  %v7146_v9 = vmax.f32 %v1990_v47, %v2051_v23  ;;  %v2235_v28 = vmax.f32 %v2203_v60, %v7134_v21  ;;  %v504_v56 = vadd.f32 %v7113_v2, %v503_v43  ;;  %v1009_v58 = vshll.u32 %v7076_v0, 16 }
 0x17a   : > { %5146 = vmatmul.msk.bf16.gmra.mxu1 %vm404_vm1, %v2242_v7  ;;  %v1017_v7 = vshll.u32 %v7096_v31, 16  ;;  %v7157_v47 = vrot.slane %v1006_v35, 7  ;;  %v885_v26 = vrot.slane %v7055_v4, 4  ;;  %v542_v11 = vadd.f32 %v7113_v2, %v541_v36 }
 0x17b   : > { %v1256_v8 = vld [vmem:[#allocation3 + $0x84] sm:$0xf]  ;;  %v2252_v6 = vpack.c.bf16 %v2235_v28, %v2234_v53  ;;  %v7164_v16 = vrot.slane %v1014_v10, 7  ;;  %v1461_v15 = vrot.slane %v1460_v50, 4  ;;  %v1462_v0 = vrot.slane %v7096_v31, 7 }
 0x17c   : > { %v1257_v54 = vsel %vm6575_vm12, %v7092_v25, %v1256_v8  ;;  %1554 = vrot.lane.b32.xlu0 %v1460_v50, %s5573_s26  ;;  %v636_v25 = vsel %vm6398_vm4, 0, %v635_v29  ;;  %v2216_v19 = vmax.f32 %v2184_v42, %v7144_v5  ;;  %v2217_v30 = vmax.f32 %v2185_v33, %v7146_v9  ;;  %v543_v8 = vpop.f32.mrf.mxu2 }
 0x17d   : > { %1077 = vrot.lane.b32.xlu1 %v884_v37, %s5574_s29  ;;  %1258 = vst [vmem:[#allocation3 + $0x84] sm:$0xf] %v1257_v54  ;;  %v1211_v45 = vld [vmem:[#allocation3 + $0x38] sm:$0x1]  ;;  %5156 = vmatmul.msk.bf16.gmra.mxu3 %vm404_vm1, %v2252_v6  ;;  %v1934_v22 = vrot.slane %v1791_v18, 1  ;;  %v1935_v34 = vrot.slane %v1792_v12, 1  ;;  %v1011_v49 = vor.u32 %v1009_v58, %v7157_v47  ;;  %v1463_v33 = vsel %vm5808_vm5, %v1461_v15, %v1462_v0 }
 0x17e   : > { %v1489_v32 = vpop.permute.xlu0 %1488  ;;  %v1212_v40 = vsel %vm6398_vm4, %v1062_v20, %v1211_v45  ;;  %637 = vst [vmem:[#allocation3 + $0x30] sm:$0x1] %v636_v25  ;;  %1079 = vrot.lane.b32.xlu2 %v885_v26, %s5574_s29  ;;  %v561_v57 = vmax.f32 %v504_v56, 0.0  ;;  %v1937_v60 = vrot.slane %v1793_v52, 1  ;;  %v2097_v17 = vrot.slane %v1791_v18, 2 }
 0x17f   : > { %1625 = vst.msk [vmem:[#allocation4 + $0x3c] sm:$0xe] %vm1615_vm3, %v1489_v32  ;;  %v1102_v4 = vpop.permute.xlu1 %1101  ;;  %v7176_v23 = vmax.f32 %v542_v11, 0.0  ;;  %v1936_v20 = vsel %vm1848_vm10, %v1934_v22, %v1935_v34  ;;  %v2098_v46 = vrot.slane %v1792_v12, 2  ;;  %v2100_v42 = vrot.slane %v1793_v52, 2 }
 0x180   : > { %1213 = vst [vmem:[#allocation3 + $0x38] sm:$0x1] %v1212_v40  ;;  %v1541_v24 = vpop.permute.xlu2 %1540  ;;  %v1938_v53 = vsel %vm1848_vm10, %v1935_v34, %v1937_v60  ;;  %v2009_v50 = vmax.f32 %v1791_v18, %v1936_v20  ;;  %v2204_v37 = vmax.f32 %v7001_v39, %v7122_v59  ;;  %v716_v29 = vsel %vm6350_vm0, 0, %v715_v1  ;;  %v659_v25 = vld [vmem:[#allocation3 + $0x90] sm:$0x1] }
 0x181   : > { %1259 = vst.msk [vmem:[#allocation3 + $0x88] sm:$0xf] %vm611_vm6, %v1102_v4  ;;  %v2010_v32 = vmax.f32 %v1792_v12, %v1938_v53  ;;  %v2099_v43 = vsel %vm2011_vm11, %v2097_v17, %v2098_v46  ;;  %v2101_v35 = vsel %vm2011_vm11, %v2098_v46, %v2100_v42  ;;  %v2205_v39 = vmax.f32 %v7003_v27, %v7134_v21  ;;  %v694_v4 = vld [vmem:[#allocation3 + $0x44] sm:$0x1] }
 0x182   : > { %1651 = vst.msk [vmem:[#allocation4 + $0xa4] sm:$0x1] %vm1313_vm9, %v1541_v24  ;;  %v2172_v28 = vmax.f32 %v2009_v50, %v2099_v43  ;;  %v2243_v59 = vpack.c.bf16 %v2217_v30, %v2216_v19  ;;  %v1464_v36 = vrot.slane %v1462_v0, 4  ;;  %v544_v58 = vadd.f32 %v7113_v2, %v543_v8 }
 0x183   : > { %594 = vst.msk [vmem:[#allocation2 + $0x78] sm:$0xff] %vm578_vm2, %v561_v57  ;;  %v2173_v56 = vmax.f32 %v2010_v32, %v2101_v35  ;;  %v747_v18 = vpack.c.bf16 %v7124_v63, %v7124_v63  ;;  %v1012_v52 = vrot.slane %v7157_v47, 4  ;;  %v1019_v6 = vor.u32 %v1017_v7, %v7164_v16 }
 0x184   : > { %609 = vst.msk [vmem:[#allocation2 + $0xf0] sm:$0xff] %vm578_vm2, %v7176_v23  ;;  %1123 = vrot.lane.b32.xlu0 %v1011_v49, %s5574_s29  ;;  %v2236_v21 = vmax.f32 %v2204_v37, %v2172_v28  ;;  %v577_v26 = vmax.f32 %v544_v58, 0.0  ;;  %v748_v63 = vpack.c.bf16 %v561_v57, %v561_v57  ;;  %v2186_v0 = vmax.f32 %v6975_v14, %v7144_v5  ;;  %v7250_v58 = vld [vmem:[%s9931_s8] ss:$0 sm:$0xff] }
 0x185   : > { %1556 = vrot.lane.b32.xlu1 %v1463_v33, %s5573_s26  ;;  %717 = vst [vmem:[#allocation3 + $0x98] sm:$0x1] %v716_v29  ;;  %v1207_v54 = vld [vmem:[#allocation3 + $0x30] sm:$0xf]  ;;  %v2237_v45 = vmax.f32 %v2205_v39, %v2173_v56  ;;  %v1425_v47 = vrot.slane %v747_v18, 7  ;;  %v1020_v31 = vsel %vm5862_vm8, %v1012_v52, %v1019_v6  ;;  %v887_v11 = vshrl.u32 %v747_v18, 16 }
 0x186   : > { %v1058_v10 = vpop.permute.xlu0 %1057  ;;  %1558 = vrot.lane.b32.xlu2 %v1464_v36, %s5573_s26  ;;  %610 = vst.msk [vmem:[#allocation2 + $0xf8] sm:$0xff] %vm578_vm2, %v577_v26  ;;  %v2187_v19 = vmax.f32 %v7010_v13, %v7146_v9  ;;  %v895_v22 = vshrl.u32 %v748_v63, 16  ;;  %v1021_v34 = vrot.slane %v7164_v16, 4  ;;  %v660_v1 = vsel %vm6398_vm4, 0, %v659_v25 }
 0x187   : > { %v1208_v12 = vsel %vm6575_vm12, %v1058_v10, %v1207_v54  ;;  %v1491_v27 = vpop.permute.xlu1 %1490  ;;  %v2253_v40 = vpack.c.bf16 %v2237_v45, %v2236_v21  ;;  %v695_v24 = vsel %vm6350_vm0, 0, %v694_v4  ;;  %v1426_v14 = vrot.slane %v1425_v47, 4  ;;  %661 = vst [vmem:[#allocation3 + $0x90] sm:$0x1] %v660_v1  ;;  %v2359_v45 = vpop.f32.mrf.mxu3 }
 0x188   : > { %1209 = vst [vmem:[#allocation3 + $0x30] sm:$0xf] %v1208_v12  ;;  %v1110_v2 = vpop.permute.xlu2 %1109  ;;  %v889_v57 = vrot.slane %v887_v11, 7  ;;  %v890_v49 = vshll.u32 %v747_v18, 16  ;;  %v1427_v13 = vrot.slane %v748_v63, 7  ;;  %v7228_v16 = vpack.c.bf16 %v7176_v23, %v7176_v23 }
 0x189   : > { %1626 = vst.msk [vmem:[#allocation4 + $0x40] sm:$0xf] %vm1298_vm7, %v1491_v27  ;;  %v2218_v20 = vmax.f32 %v2186_v0, %v6040_v51  ;;  %v2219_v46 = vmax.f32 %v2187_v19, %v6042_v61  ;;  %v7233_v42 = vpack.c.bf16 %v577_v26, %v577_v26  ;;  %v897_v33 = vrot.slane %v895_v22, 7  ;;  %v718_v19 = vld [vmem:[#allocation3 + $0xa4] sm:$0x1] }
 0x18a   : > { %5147 = vmatmul.msk.bf16.gmra.mxu1 %vm404_vm1, %v2243_v59  ;;  %696 = vst [vmem:[#allocation3 + $0x44] sm:$0x1] %v695_v24  ;;  %v898_v10 = vshll.u32 %v748_v63, 16  ;;  %v892_v53 = vor.u32 %v890_v49, %v889_v57  ;;  %v1428_v50 = vsel %vm5808_vm5, %v1426_v14, %v1427_v13  ;;  %v1023_v23 = vshrl.u32 %v7228_v16, 16 }
 0x18b   : > { %v2244_v32 = vpack.c.bf16 %v2219_v46, %v2218_v20  ;;  %v1031_v43 = vshrl.u32 %v7233_v42, 16  ;;  %v1429_v35 = vrot.slane %v1427_v13, 4  ;;  %v893_v8 = vrot.slane %v889_v57, 4 }
 0x18c   : > { %v1267_v15 = vld [vmem:[#allocation3 + $0x98] sm:$0x1]  ;;  %1512 = vrot.lane.b32.xlu0 %v1425_v47, %s5573_s26  ;;  %v1025_v39 = vrot.slane %v1023_v23, 7  ;;  %v1026_v59 = vshll.u32 %v7228_v16, 16  ;;  %v900_v36 = vor.u32 %v898_v10, %v897_v33  ;;  %v1034_v18 = vshll.u32 %v7233_v42, 16 }
 0x18d   : > { %1125 = vrot.lane.b32.xlu1 %v1020_v31, %s5574_s29  ;;  %v1268_v30 = vsel %vm6398_vm4, %v1110_v2, %v1267_v15  ;;  %5157 = vmatmul.msk.bf16.gmra.mxu3 %vm404_vm1, %v2253_v40  ;;  %v1033_v52 = vrot.slane %v1031_v43, 7  ;;  %v2360_v26 = vadd.f32 %v7250_v58, %v2359_v45  ;;  %v2188_v63 = vmax.f32 %v7144_v5, %v6040_v51  ;;  %v697_v23 = vld [vmem:[#allocation3 + $0x50] sm:$0x1] }
 0x18e   : > { %v1537_v7 = vpop.permute.xlu0 %1536  ;;  %1269 = vst [vmem:[#allocation3 + $0x98] sm:$0x1] %v1268_v30  ;;  %1127 = vrot.lane.b32.xlu2 %v1021_v34, %s5574_s29  ;;  %v1263_v29 = vld [vmem:[#allocation3 + $0x90] sm:$0xf]  ;;  %v1028_v27 = vor.u32 %v1026_v59, %v1025_v39  ;;  %v901_v21 = vsel %vm5862_vm8, %v893_v8, %v900_v36  ;;  %v2189_v47 = vmax.f32 %v7146_v9, %v6042_v61  ;;  %v902_v31 = vrot.slane %v897_v33, 4 }
 0x18f   : > { %1649 = vst.msk [vmem:[#allocation4 + $0x9c] sm:$0xe] %vm1615_vm3, %v1537_v7  ;;  %v1060_v60 = vpop.permute.xlu1 %1059  ;;  %v638_v7 = vld [vmem:[#allocation3 + $0x3c] sm:$0x1]  ;;  %v2415_v11 = vmax.f32 %v2360_v26, 0.0  ;;  %v1029_v25 = vrot.slane %v1025_v39, 4  ;;  %v1036_v40 = vor.u32 %v1034_v18, %v1033_v52  ;;  %v2220_v5 = vmax.f32 %v2188_v63, %v6044_v62  ;;  %v2361_v22 = vpop.f32.mrf.mxu3 }
 0x190   : > { %1210 = vst.msk [vmem:[#allocation3 + $0x34] sm:$0xf] %vm611_vm6, %v1060_v60  ;;  %v1499_v17 = vpop.permute.xlu2 %1498  ;;  %v639_v15 = vsel %vm6398_vm4, 0, %v638_v7  ;;  %v719_v51 = vsel %vm6350_vm0, 0, %v718_v19  ;;  %v2221_v9 = vmax.f32 %v2189_v47, %v6056_v3  ;;  %v1465_v30 = vrot.slane %v7228_v16, 7 }
 0x191   : > { %1630 = vst.msk [vmem:[#allocation4 + $0x50] sm:$0x1] %vm1313_vm9, %v1499_v17  ;;  %v1218_v56 = vld [vmem:[#allocation3 + $0x44] sm:$0x1]  ;;  %v1037_v4 = vsel %vm5862_vm8, %v1029_v25, %v1036_v40  ;;  %v2362_v34 = vadd.f32 %v7250_v58, %v2361_v22  ;;  %v1038_v24 = vrot.slane %v1033_v52, 4  ;;  %v1467_v49 = vrot.slane %v7233_v42, 7 }
 0x192   : > { %640 = vst [vmem:[#allocation3 + $0x3c] sm:$0x1] %v639_v15  ;;  %v2245_v62 = vpack.c.bf16 %v2221_v9, %v2220_v5  ;;  %v1466_v3 = vrot.slane %v1465_v30, 4  ;;  %v721_v63 = vld [vmem:[#allocation3 + $0xb0] sm:$0x1] }
 0x193   : > { %2447 = vst.msk [vmem:[#allocation5 + $0x80] sm:$0xff] %vm578_vm2, %v2415_v11  ;;  %v2416_v14 = vmax.f32 %v2362_v34, 0.0  ;;  %v1469_v10 = vrot.slane %v1467_v49, 4  ;;  %v722_v11 = vsel %vm6350_vm0, 0, %v721_v63 }
 0x194   : > { %1081 = vrot.lane.b32.xlu0 %v892_v53, %s5574_s29  ;;  %720 = vst [vmem:[#allocation3 + $0xa4] sm:$0x1] %v719_v51  ;;  %v1468_v17 = vsel %vm5808_vm5, %v1466_v3, %v1467_v49  ;;  %v662_v53 = vld [vmem:[#allocation3 + $0x9c] sm:$0x1] }
 0x195   : > { %1514 = vrot.lane.b32.xlu1 %v1428_v50, %s5573_s26  ;;  %2448 = vst.msk [vmem:[#allocation5 + $0x88] sm:$0xff] %vm578_vm2, %v2416_v14  ;;  %v665_v14 = vld [vmem:[#allocation3 + $0xa8] sm:$0x1] }
 0x196   : > { %v1106_v37 = vpop.permute.xlu0 %1105  ;;  %1516 = vrot.lane.b32.xlu2 %v1429_v35, %s5573_s26  ;;  %723 = vst [vmem:[#allocation3 + $0xb0] sm:$0x1] %v722_v11 }
 0x197   : > { %v1264_v28 = vsel %vm6575_vm12, %v1106_v37, %v1263_v29  ;;  %v1539_v54 = vpop.permute.xlu1 %1538  ;;  %v663_v37 = vsel %vm6398_vm4, 0, %v662_v53 }
 0x198   : > { %1265 = vst [vmem:[#allocation3 + $0x90] sm:$0xf] %v1264_v28  ;;  %v1068_v12 = vpop.permute.xlu2 %1067 }
 0x199   : > { %1650 = vst.msk [vmem:[#allocation4 + $0xa0] sm:$0xf] %vm1298_vm7, %v1539_v54  ;;  %v1219_v6 = vsel %vm6398_vm4, %v1068_v12, %v1218_v56  ;;  %v1214_v57 = vld [vmem:[#allocation3 + $0x3c] sm:$0xf] }
 0x19a   : > { %5148 = vmatmul.msk.bf16.gmra.mxu1 %vm404_vm1, %v2244_v32  ;;  %1220 = vst [vmem:[#allocation3 + $0x44] sm:$0x1] %v1219_v6  ;;  %v698_v32 = vsel %vm6350_vm0, 0, %v697_v23 }
 0x19b   : > { %v1274_v16 = vld [vmem:[#allocation3 + $0xa4] sm:$0x1]  ;;  %664 = vst [vmem:[#allocation3 + $0x9c] sm:$0x1] %v663_v37 }
 0x19c   : > { %1129 = vrot.lane.b32.xlu0 %v1028_v27, %s5574_s29  ;;  %699 = vst [vmem:[#allocation3 + $0x50] sm:$0x1] %v698_v32  ;;  %v641_v27 = vld [vmem:[#allocation3 + $0x48] sm:$0x1] }
 0x19d   : > { %1083 = vrot.lane.b32.xlu1 %v901_v21, %s5574_s29  ;;  %v642_v45 = vsel %vm6398_vm4, 0, %v641_v27 }
 0x19e   : > { %v1495_v2 = vpop.permute.xlu0 %1494  ;;  %1085 = vrot.lane.b32.xlu2 %v902_v31, %s5574_s29  ;;  %643 = vst [vmem:[#allocation3 + $0x48] sm:$0x1] %v642_v45 }
 0x19f   : > { %1628 = vst.msk [vmem:[#allocation4 + $0x48] sm:$0xe] %vm1615_vm3, %v1495_v2  ;;  %v1108_v0 = vpop.permute.xlu1 %1107 }
 0x1a0   : > { %1266 = vst.msk [vmem:[#allocation3 + $0x94] sm:$0xf] %vm611_vm6, %v1108_v0  ;;  %v1547_v61 = vpop.permute.xlu2 %1546 }
 0x1a1   : > { %1654 = vst.msk [vmem:[#allocation4 + $0xb0] sm:$0x1] %vm1313_vm9, %v1547_v61 }
 0x1a2   : > { %v1270_v28 = vld [vmem:[#allocation3 + $0x9c] sm:$0xf] }
 0x1a3   : > { %v1225_v52 = vld [vmem:[#allocation3 + $0x50] sm:$0x1] }
 0x1a4   : > { %1560 = vrot.lane.b32.xlu0 %v1465_v30, %s5573_s26 }
 0x1a5   : > { %1131 = vrot.lane.b32.xlu1 %v1037_v4, %s5574_s29  ;;  %v1221_v61 = vld [vmem:[#allocation3 + $0x48] sm:$0xf] }
 0x1a6   : > { %v1064_v1 = vpop.permute.xlu0 %1063  ;;  %1133 = vrot.lane.b32.xlu2 %v1038_v24, %s5574_s29  ;;  %v1281_v24 = vld [vmem:[#allocation3 + $0xb0] sm:$0x1] }
 0x1a7   : > { %v1215_v44 = vsel %vm6575_vm12, %v1064_v1, %v1214_v57  ;;  %v1497_v13 = vpop.permute.xlu1 %1496  ;;  %v666_v57 = vsel %vm6398_vm4, 0, %v665_v14 }
 0x1a8   : > { %1216 = vst [vmem:[#allocation3 + $0x3c] sm:$0xf] %v1215_v44  ;;  %v1116_v60 = vpop.permute.xlu2 %1115  ;;  %v700_v44 = vld [vmem:[#allocation3 + $0x5c] sm:$0x1] }
 0x1a9   : > { %1629 = vst.msk [vmem:[#allocation4 + $0x4c] sm:$0xf] %vm1298_vm7, %v1497_v13  ;;  %v1275_v20 = vsel %vm6398_vm4, %v1116_v60, %v1274_v16 }
 0x1aa   : > { %5149 = vmatmul.msk.bf16.gmra.mxu1 %vm404_vm1, %v2245_v62  ;;  %1276 = vst [vmem:[#allocation3 + $0xa4] sm:$0x1] %v1275_v20 }
 0x1ab   : > { %667 = vst [vmem:[#allocation3 + $0xa8] sm:$0x1] %v666_v57 }
 0x1ac   : > { %v2364_v46 = vpop.f32.mrf.mxu3 }
 0x1ad   : > { %1562 = vrot.lane.b32.xlu1 %v1468_v17, %s5573_s26  ;;  %v2365_v42 = vadd.f32 %v7250_v58, %v2364_v46  ;;  %v701_v17 = vsel %vm6350_vm0, 0, %v700_v44 }
 0x1ae   : > { %v1543_v33 = vpop.permute.xlu0 %1542  ;;  %1564 = vrot.lane.b32.xlu2 %v1469_v10, %s5573_s26  ;;  %702 = vst [vmem:[#allocation3 + $0x5c] sm:$0x1] %v701_v17  ;;  %v727_v17 = vld [vmem:[#allocation3 + $0xc8] sm:$0x1] }
 0x1af   : > { %1652 = vst.msk [vmem:[#allocation4 + $0xa8] sm:$0xe] %vm1615_vm3, %v1543_v33  ;;  %v2417_v50 = vmax.f32 %v2365_v42, 0.0  ;;  %v1066_v55 = vpop.permute.xlu1 %1065 }
 0x1b0   : > { %1217 = vst.msk [vmem:[#allocation3 + $0x40] sm:$0xf] %vm611_vm6, %v1066_v55  ;;  %v1505_v43 = vpop.permute.xlu2 %1504 }
 0x1b1   : > { %2449 = vst.msk [vmem:[#allocation5 + $0x90] sm:$0xff] %vm578_vm2, %v2417_v50 }
 0x1b2   : > { %1633 = vst.msk [vmem:[#allocation4 + $0x5c] sm:$0x1] %vm1313_vm9, %v1505_v43  ;;  %v1277_v50 = vld [vmem:[#allocation3 + $0xa8] sm:$0xf] }
 0x1b4   : > { %v2366_v35 = vpop.f32.mrf.mxu3 }
 0x1b5   : > { %v2367_v29 = vadd.f32 %v7250_v58, %v2366_v35 }
 0x1b6   : > { %v1112_v39 = vpop.permute.xlu0 %1111  ;;  %v2319_v59 = vpop.f32.mrf.mxu1 }
 0x1b7   : > { %v2418_v8 = vmax.f32 %v2367_v29, 0.0  ;;  %v1271_v36 = vsel %vm6575_vm12, %v1112_v39, %v1270_v28  ;;  %v1545_v54 = vpop.permute.xlu1 %1544  ;;  %v2320_v56 = vadd.f32 %v7250_v58, %v2319_v59  ;;  %v644_v59 = vld [vmem:[#allocation3 + $0x54] sm:$0x1] }
 0x1b8   : > { %1272 = vst [vmem:[#allocation3 + $0x9c] sm:$0xf] %v1271_v36  ;;  %v1074_v18 = vpop.permute.xlu2 %1073 }
 0x1b9   : > { %2450 = vst.msk [vmem:[#allocation5 + $0x98] sm:$0xff] %vm578_vm2, %v2418_v8  ;;  %v2399_v12 = vmax.f32 %v2320_v56, 0.0  ;;  %v1226_v6 = vsel %vm6398_vm4, %v1074_v18, %v1225_v52  ;;  %v1232_v8 = vld [vmem:[#allocation3 + $0x5c] sm:$0x1] }
 0x1ba   : > { %1653 = vst.msk [vmem:[#allocation4 + $0xac] sm:$0xf] %vm1298_vm7, %v1545_v54  ;;  %v645_v54 = vsel %vm6398_vm4, 0, %v644_v59  ;;  %v724_v18 = vld [vmem:[#allocation3 + $0xbc] sm:$0x1] }
 0x1bb   : > { %2431 = vst.msk [vmem:[#allocation5] sm:$0xff] %vm578_vm2, %v2399_v12  ;;  %v725_v27 = vsel %vm6350_vm0, 0, %v724_v18 }
 0x1bc   : > { %1227 = vst [vmem:[#allocation3 + $0x50] sm:$0x1] %v1226_v6 }
 0x1bd   : > { %646 = vst [vmem:[#allocation3 + $0x54] sm:$0x1] %v645_v54 }
 0x1be   : > { %v1501_v21 = vpop.permute.xlu0 %1500  ;;  %v2321_v26 = vpop.f32.mrf.mxu1  ;;  %726 = vst [vmem:[#allocation3 + $0xbc] sm:$0x1] %v725_v27 }
 0x1bf   : > { %v2369_v2 = vpop.f32.mrf.mxu3  ;;  %1631 = vst.msk [vmem:[#allocation4 + $0x54] sm:$0xe] %vm1615_vm3, %v1501_v21  ;;  %v2322_v47 = vadd.f32 %v7250_v58, %v2321_v26  ;;  %v1114_v7 = vpop.permute.xlu1 %1113 }
 0x1c0   : > { %v2370_v31 = vadd.f32 %v7250_v58, %v2369_v2  ;;  %1273 = vst.msk [vmem:[#allocation3 + $0xa0] sm:$0xf] %vm611_vm6, %v1114_v7  ;;  %v1553_v25 = vpop.permute.xlu2 %1552 }
 0x1c1   : > { %v2400_v40 = vmax.f32 %v2322_v47, 0.0  ;;  %1657 = vst.msk [vmem:[#allocation4 + $0xbc] sm:$0x1] %vm1313_vm9, %v1553_v25 }
 0x1c2   : > { %v2419_v15 = vmax.f32 %v2370_v31, 0.0 }
 0x1c3   : > { %2432 = vst.msk [vmem:[#allocation5 + $0x8] sm:$0xff] %vm578_vm2, %v2400_v40 }
 0x1c4   : > { %2451 = vst.msk [vmem:[#allocation5 + $0xa0] sm:$0xff] %vm578_vm2, %v2419_v15  ;;  %v1228_v31 = vld [vmem:[#allocation3 + $0x54] sm:$0xf] }
 0x1c6   : > { %v1070_v0 = vpop.permute.xlu0 %1069 }
 0x1c7   : > { %v2324_v19 = vpop.f32.mrf.mxu1  ;;  %v2371_v51 = vpop.f32.mrf.mxu3  ;;  %v1222_v30 = vsel %vm6575_vm12, %v1070_v0, %v1221_v61 }
 0x1c8   : > { %v2325_v5 = vadd.f32 %v7250_v58, %v2324_v19  ;;  %v2372_v9 = vadd.f32 %v7250_v58, %v2371_v51  ;;  %v1503_v4 = vpop.permute.xlu1 %1502  ;;  %1223 = vst [vmem:[#allocation3 + $0x48] sm:$0xf] %v1222_v30  ;;  %v1122_v22 = vpop.permute.xlu2 %1121  ;;  %v1288_v51 = vld [vmem:[#allocation3 + $0xbc] sm:$0x1] }
 0x1c9   : > { %1632 = vst.msk [vmem:[#allocation4 + $0x58] sm:$0xf] %vm1298_vm7, %v1503_v4  ;;  %v1282_v62 = vsel %vm6398_vm4, %v1122_v22, %v1281_v24 }
 0x1ca   : > { %v2401_v34 = vmax.f32 %v2325_v5, 0.0  ;;  %v2420_v1 = vmax.f32 %v2372_v9, 0.0  ;;  %1283 = vst [vmem:[#allocation3 + $0xb0] sm:$0x1] %v1282_v62  ;;  %v668_v9 = vld [vmem:[#allocation3 + $0xb4] sm:$0x1] }
 0x1cb   : > { %v669_v4 = vsel %vm6398_vm4, 0, %v668_v9 }
 0x1cc   : > { %2433 = vst.msk [vmem:[#allocation5 + $0x10] sm:$0xff] %vm578_vm2, %v2401_v34  ;;  %v703_v34 = vld [vmem:[#allocation3 + $0x68] sm:$0x1] }
 0x1cd   : > { %2452 = vst.msk [vmem:[#allocation5 + $0xa8] sm:$0xff] %vm578_vm2, %v2420_v1  ;;  %v704_v14 = vsel %vm6350_vm0, 0, %v703_v34 }
 0x1ce   : > { %v1549_v3 = vpop.permute.xlu0 %1548  ;;  %670 = vst [vmem:[#allocation3 + $0xb4] sm:$0x1] %v669_v4 }
 0x1cf   : > { %v2326_v49 = vpop.f32.mrf.mxu1  ;;  %1655 = vst.msk [vmem:[#allocation4 + $0xb4] sm:$0xe] %vm1615_vm3, %v1549_v3 }
 0x1d0   : > { %v2327_v13 = vadd.f32 %v7250_v58, %v2326_v49  ;;  %v2374_v60 = vpop.f32.mrf.mxu3  ;;  %v1072_v16 = vpop.permute.xlu1 %1071  ;;  %705 = vst [vmem:[#allocation3 + $0x68] sm:$0x1] %v704_v14 }
 0x1d1   : > { %v2375_v20 = vadd.f32 %v7250_v58, %v2374_v60  ;;  %1224 = vst.msk [vmem:[#allocation3 + $0x4c] sm:$0xf] %vm611_vm6, %v1072_v16  ;;  %v1511_v46 = vpop.permute.xlu2 %1510 }
 0x1d2   : > { %v2402_v42 = vmax.f32 %v2327_v13, 0.0  ;;  %1636 = vst.msk [vmem:[#allocation4 + $0x68] sm:$0x1] %vm1313_vm9, %v1511_v46 }
 0x1d3   : > { %v2421_v33 = vmax.f32 %v2375_v20, 0.0 }
 0x1d4   : > { %2434 = vst.msk [vmem:[#allocation5 + $0x18] sm:$0xff] %vm578_vm2, %v2402_v42 }
 0x1d5   : > { %2453 = vst.msk [vmem:[#allocation5 + $0xb0] sm:$0xff] %vm578_vm2, %v2421_v33  ;;  %v1284_v16 = vld [vmem:[#allocation3 + $0xb4] sm:$0xf] }
 0x1d6   : > { %v1118_v10 = vpop.permute.xlu0 %1117 }
 0x1d7   : > { %v2329_v53 = vpop.f32.mrf.mxu1  ;;  %v1278_v23 = vsel %vm6575_vm12, %v1118_v10, %v1277_v50  ;;  %v728_v10 = vsel %vm6350_vm0, 0, %v727_v17 }
 0x1d8   : > { %v2330_v37 = vadd.f32 %v7250_v58, %v2329_v53  ;;  %v2376_v55 = vpop.f32.mrf.mxu3  ;;  %v1551_v32 = vpop.permute.xlu1 %1550  ;;  %1279 = vst [vmem:[#allocation3 + $0xa8] sm:$0xf] %v1278_v23 }
 0x1d9   : > { %v2377_v43 = vadd.f32 %v7250_v58, %v2376_v55  ;;  %v1080_v35 = vpop.permute.xlu2 %1079  ;;  %1656 = vst.msk [vmem:[#allocation4 + $0xb8] sm:$0xf] %vm1298_vm7, %v1551_v32  ;;  %v1239_v55 = vld [vmem:[#allocation3 + $0x68] sm:$0x1] }
 0x1da   : > { %v2403_v29 = vmax.f32 %v2330_v37, 0.0  ;;  %v1233_v39 = vsel %vm6398_vm4, %v1080_v35, %v1232_v8  ;;  %729 = vst [vmem:[#allocation3 + $0xc8] sm:$0x1] %v728_v10 }
 0x1db   : > { %v2422_v28 = vmax.f32 %v2377_v43, 0.0  ;;  %1234 = vst [vmem:[#allocation3 + $0x5c] sm:$0x1] %v1233_v39  ;;  %v647_v43 = vld [vmem:[#allocation3 + $0x60] sm:$0x1] }
 0x1dc   : > { %2435 = vst.msk [vmem:[#allocation5 + $0x20] sm:$0xff] %vm578_vm2, %v2403_v29  ;;  %v648_v35 = vsel %vm6398_vm4, 0, %v647_v43 }
 0x1dd   : > { %2454 = vst.msk [vmem:[#allocation5 + $0xb8] sm:$0xff] %vm578_vm2, %v2422_v28 }
 0x1de   : > { %v1507_v36 = vpop.permute.xlu0 %1506  ;;  %649 = vst [vmem:[#allocation3 + $0x60] sm:$0x1] %v648_v35 }
 0x1df   : > { %v2331_v56 = vpop.f32.mrf.mxu1  ;;  %1634 = vst.msk [vmem:[#allocation4 + $0x60] sm:$0xe] %vm1615_vm3, %v1507_v36 }
 0x1e0   : > { %v2332_v12 = vadd.f32 %v7250_v58, %v2331_v56  ;;  %v2379_v52 = vpop.f32.mrf.mxu3  ;;  %v1120_v6 = vpop.permute.xlu1 %1119 }
 0x1e1   : > { %v2380_v21 = vadd.f32 %v7250_v58, %v2379_v52  ;;  %1280 = vst.msk [vmem:[#allocation3 + $0xac] sm:$0xf] %vm611_vm6, %v1120_v6  ;;  %v1559_v45 = vpop.permute.xlu2 %1558  ;;  %v1295_v54 = vld [vmem:[#allocation3 + $0xc8] sm:$0x1]  ;;  %v671_v52 = vld [vmem:[#allocation3 + $0xc0] sm:$0x1] }
 0x1e2   : > { %v2404_v26 = vmax.f32 %v2332_v12, 0.0  ;;  %1660 = vst.msk [vmem:[#allocation4 + $0xc8] sm:$0x1] %vm1313_vm9, %v1559_v45  ;;  %v672_v27 = vsel %vm6398_vm4, 0, %v671_v52 }
 0x1e3   : > { %v2423_v2 = vmax.f32 %v2380_v21, 0.0  ;;  %673 = vst [vmem:[#allocation3 + $0xc0] sm:$0x1] %v672_v27 }
 0x1e4   : > { %2436 = vst.msk [vmem:[#allocation5 + $0x28] sm:$0xff] %vm578_vm2, %v2404_v26 }
 0x1e5   : > { %2455 = vst.msk [vmem:[#allocation5 + $0xc0] sm:$0xff] %vm578_vm2, %v2423_v2  ;;  %v1235_v45 = vld [vmem:[#allocation3 + $0x60] sm:$0xf] }
 0x1e6   : > { %v1076_v63 = vpop.permute.xlu0 %1075 }
 0x1e7   : > { %v2334_v47 = vpop.f32.mrf.mxu1  ;;  %v1229_v25 = vsel %vm6575_vm12, %v1076_v63, %v1228_v31 }
 0x1e8   : > { %v2335_v7 = vadd.f32 %v7250_v58, %v2334_v47  ;;  %v2381_v11 = vpop.f32.mrf.mxu3  ;;  %v1509_v40 = vpop.permute.xlu1 %1508  ;;  %1230 = vst [vmem:[#allocation3 + $0x54] sm:$0xf] %v1229_v25 }
 0x1e9   : > { %v2382_v15 = vadd.f32 %v7250_v58, %v2381_v11  ;;  %v1128_v0 = vpop.permute.xlu2 %1127  ;;  %1635 = vst.msk [vmem:[#allocation4 + $0x64] sm:$0xf] %vm1298_vm7, %v1509_v40 }
 0x1ea   : > { %v2405_v19 = vmax.f32 %v2335_v7, 0.0  ;;  %v1289_v5 = vsel %vm6398_vm4, %v1128_v0, %v1288_v51 }
 0x1eb   : > { %v2424_v61 = vmax.f32 %v2382_v15, 0.0  ;;  %1290 = vst [vmem:[#allocation3 + $0xbc] sm:$0x1] %v1289_v5  ;;  %v1291_v15 = vld [vmem:[#allocation3 + $0xc0] sm:$0xf] }
 0x1ec   : > { %2437 = vst.msk [vmem:[#allocation5 + $0x30] sm:$0xff] %vm578_vm2, %v2405_v19 }
 0x1ed   : > { %2456 = vst.msk [vmem:[#allocation5 + $0xc8] sm:$0xff] %vm578_vm2, %v2424_v61 }
 0x1ee   : > { %v1555_v30 = vpop.permute.xlu0 %1554 }
 0x1ef   : > { %v2336_v22 = vpop.f32.mrf.mxu1  ;;  %1658 = vst.msk [vmem:[#allocation4 + $0xc0] sm:$0xe] %vm1615_vm3, %v1555_v30 }
 0x1f0   : > { %v2337_v1 = vadd.f32 %v7250_v58, %v2336_v22  ;;  %v2384_v24 = vpop.f32.mrf.mxu3  ;;  %v1078_v62 = vpop.permute.xlu1 %1077 }
 0x1f1   : > { %v2385_v3 = vadd.f32 %v7250_v58, %v2384_v24  ;;  %1231 = vst.msk [vmem:[#allocation3 + $0x58] sm:$0xf] %vm611_vm6, %v1078_v62  ;;  %v1517_v57 = vpop.permute.xlu2 %1516 }
 0x1f2   : > { %v2406_v49 = vmax.f32 %v2337_v1, 0.0  ;;  %1639 = vst.msk [vmem:[#allocation4 + $0x74] sm:$0x1] %vm1313_vm9, %v1517_v57 }
 0x1f3   : > { %v2425_v44 = vmax.f32 %v2385_v3, 0.0 }
 0x1f4   : > { %2438 = vst.msk [vmem:[#allocation5 + $0x38] sm:$0xff] %vm578_vm2, %v2406_v49 }
 0x1f5   : > { %2457 = vst.msk [vmem:[#allocation5 + $0xd0] sm:$0xff] %vm578_vm2, %v2425_v44 }
 0x1f6   : > { %v1124_v13 = vpop.permute.xlu0 %1123 }
 0x1f7   : > { %v2339_v60 = vpop.f32.mrf.mxu1  ;;  %v1285_v42 = vsel %vm6575_vm12, %v1124_v13, %v1284_v16 }
 0x1f8   : > { %v2340_v20 = vadd.f32 %v7250_v58, %v2339_v60  ;;  %v2386_v46 = vpop.f32.mrf.mxu3  ;;  %v1557_v33 = vpop.permute.xlu1 %1556  ;;  %1286 = vst [vmem:[#allocation3 + $0xb4] sm:$0xf] %v1285_v42 }
 0x1f9   : > { %v2387_v53 = vadd.f32 %v7250_v58, %v2386_v46  ;;  %v1086_v50 = vpop.permute.xlu2 %1085  ;;  %1659 = vst.msk [vmem:[#allocation4 + $0xc4] sm:$0xf] %vm1298_vm7, %v1557_v33 }
 0x1fa   : > { %v2407_v37 = vmax.f32 %v2340_v20, 0.0  ;;  %v1240_v32 = vsel %vm6398_vm4, %v1086_v50, %v1239_v55 }
 0x1fb   : > { %v2426_v23 = vmax.f32 %v2387_v53, 0.0  ;;  %1241 = vst [vmem:[#allocation3 + $0x68] sm:$0x1] %v1240_v32 }
 0x1fc   : > { %2439 = vst.msk [vmem:[#allocation5 + $0x40] sm:$0xff] %vm578_vm2, %v2407_v37 }
 0x1fd   : > { %2458 = vst.msk [vmem:[#allocation5 + $0xd8] sm:$0xff] %vm578_vm2, %v2426_v23 }
 0x1fe   : > { %v1513_v38 = vpop.permute.xlu0 %1512 }
 0x1ff   : > { %v2341_v29 = vpop.f32.mrf.mxu1  ;;  %1637 = vst.msk [vmem:[#allocation4 + $0x6c] sm:$0xe] %vm1615_vm3, %v1513_v38 }
 0x200   : > { %v2342_v8 = vadd.f32 %v7250_v58, %v2341_v29  ;;  %v1126_v28 = vpop.permute.xlu1 %1125  ;;  %v2389_v36 = vpop.f32.mrf.mxu3 }
 0x201   : > { %1287 = vst.msk [vmem:[#allocation3 + $0xb8] sm:$0xf] %vm611_vm6, %v1126_v28  ;;  %v1134_v39 = vpop.permute.xlu2 %1133  ;;  %v2390_v56 = vadd.f32 %v7250_v58, %v2389_v36 }
 0x202   : > { %v2408_v59 = vmax.f32 %v2342_v8, 0.0  ;;  %v1296_v18 = vsel %vm6398_vm4, %v1134_v39, %v1295_v54 }
 0x203   : > { %v2427_v12 = vmax.f32 %v2390_v56, 0.0  ;;  %1297 = vst [vmem:[#allocation3 + $0xc8] sm:$0x1] %v1296_v18 }
 0x204   : > { %2440 = vst.msk [vmem:[#allocation5 + $0x48] sm:$0xff] %vm578_vm2, %v2408_v59 }
 0x205   : > { %2459 = vst.msk [vmem:[#allocation5 + $0xe0] sm:$0xff] %vm578_vm2, %v2427_v12 }
 0x206   : > { %v1082_v6 = vpop.permute.xlu0 %1081 }
 0x207   : > { %v2344_v21 = vpop.f32.mrf.mxu1  ;;  %v1236_v2 = vsel %vm6575_vm12, %v1082_v6, %v1235_v45 }
 0x208   : > { %v2345_v26 = vadd.f32 %v7250_v58, %v2344_v21  ;;  %v1515_v63 = vpop.permute.xlu1 %1514  ;;  %1237 = vst [vmem:[#allocation3 + $0x60] sm:$0xf] %v1236_v2  ;;  %v2391_v7 = vpop.f32.mrf.mxu3 }
 0x209   : > { %v1565_v47 = vpop.permute.xlu2 %1564  ;;  %1638 = vst.msk [vmem:[#allocation4 + $0x70] sm:$0xf] %vm1298_vm7, %v1515_v63  ;;  %v2392_v41 = vadd.f32 %v7250_v58, %v2391_v7 }
 0x20a   : > { %v2409_v31 = vmax.f32 %v2345_v26, 0.0  ;;  %1663 = vst.msk [vmem:[#allocation4 + $0xd4] sm:$0x1] %vm1313_vm9, %v1565_v47 }
 0x20b   : > { %v2428_v11 = vmax.f32 %v2392_v41, 0.0 }
 0x20c   : > { %2441 = vst.msk [vmem:[#allocation5 + $0x50] sm:$0xff] %vm578_vm2, %v2409_v31 }
 0x20d   : > { %2460 = vst.msk [vmem:[#allocation5 + $0xe8] sm:$0xff] %vm578_vm2, %v2428_v11 }
 0x20e   : > { %v1130_v25 = vpop.permute.xlu0 %1129 }
 0x20f   : > { %v2346_v40 = vpop.f32.mrf.mxu1  ;;  %v1292_v19 = vsel %vm6575_vm12, %v1130_v25, %v1291_v15 }
 0x210   : > { %v2347_v0 = vadd.f32 %v7250_v58, %v2346_v40  ;;  %v1084_v51 = vpop.permute.xlu1 %1083  ;;  %1293 = vst [vmem:[#allocation3 + $0xc0] sm:$0xf] %v1292_v19  ;;  %v2394_v5 = vpop.f32.mrf.mxu3 }
 0x211   : > { %1238 = vst.msk [vmem:[#allocation3 + $0x64] sm:$0xf] %vm611_vm6, %v1084_v51  ;;  %v2395_v9 = vadd.f32 %v7250_v58, %v2394_v5 }
 0x212   : > { %v2410_v61 = vmax.f32 %v2347_v0, 0.0 }
 0x213   : > { %v2429_v30 = vmax.f32 %v2395_v9, 0.0 }
 0x214   : > { %2442 = vst.msk [vmem:[#allocation5 + $0x58] sm:$0xff] %vm578_vm2, %v2410_v61 }
 0x215   : > { %2461 = vst.msk [vmem:[#allocation5 + $0xf0] sm:$0xff] %vm578_vm2, %v2429_v30 }
 0x216   : > { %v1561_v4 = vpop.permute.xlu0 %1560 }
 0x217   : > { %v2349_v22 = vpop.f32.mrf.mxu1  ;;  %1661 = vst.msk [vmem:[#allocation4 + $0xcc] sm:$0xe] %vm1615_vm3, %v1561_v4 }
 0x218   : > { %v2350_v34 = vadd.f32 %v7250_v58, %v2349_v22  ;;  %v1132_v48 = vpop.permute.xlu1 %1131  ;;  %v2396_v24 = vpop.f32.mrf.mxu3 }
 0x219   : > { %1294 = vst.msk [vmem:[#allocation3 + $0xc4] sm:$0xf] %vm611_vm6, %v1132_v48  ;;  %v2397_v62 = vadd.f32 %v7250_v58, %v2396_v24 }
 0x21a   : > { %v2411_v1 = vmax.f32 %v2350_v34, 0.0 }
 0x21b   : > { %v2430_v14 = vmax.f32 %v2397_v62, 0.0 }
 0x21c   : > { %2443 = vst.msk [vmem:[#allocation5 + $0x60] sm:$0xff] %vm578_vm2, %v2411_v1 }
 0x21d   : > { %2462 = vst.msk [vmem:[#allocation5 + $0xf8] sm:$0xff] %vm578_vm2, %v2430_v14 }
 0x21f   : > { %v2351_v3 = vpop.f32.mrf.mxu1 }
 0x220   : > { %v2352_v57 = vadd.f32 %v7250_v58, %v2351_v3  ;;  %v1563_v49 = vpop.permute.xlu1 %1562 }
 0x221   : > { %1662 = vst.msk [vmem:[#allocation4 + $0xd0] sm:$0xf] %vm1298_vm7, %v1563_v49 }
 0x222   : > { %v2412_v44 = vmax.f32 %v2352_v57, 0.0 }
 0x224   : > { %2444 = vst.msk [vmem:[#allocation5 + $0x68] sm:$0xff] %vm578_vm2, %v2412_v44 }
 0x227   : > { %v2354_v13 = vpop.f32.mrf.mxu1 }
 0x228   : > { %v2355_v60 = vadd.f32 %v7250_v58, %v2354_v13 }
 0x22a   : > { %v2413_v16 = vmax.f32 %v2355_v60, 0.0 }
 0x22c   : > { %2445 = vst.msk [vmem:[#allocation5 + $0x70] sm:$0xff] %vm578_vm2, %v2413_v16 }
 0x22f   : > { %v2356_v17 = vpop.f32.mrf.mxu1 }
 0x230   : > { %v2357_v20 = vadd.f32 %v7250_v58, %v2356_v17 }
 0x232   : > { %v2414_v46 = vmax.f32 %v2357_v20, 0.0 }
 0x234   : > { %2446 = vst.msk [vmem:[#allocation5 + $0x78] sm:$0xff] %vm578_vm2, %v2414_v46 }
 0x235 PF: > { %s5316_s26 = smul.u32 96, %s5555_s12  ;;  %vm2596_vm1 = vsmask.f32 7424  ;;  %s5577_s17 = smov 8   ;;  %vm2709_vm2 = vcmask 1046528   ;;  %vm3085_vm5 = vcmask 1043456  }
 0x236   : > { %s5578_s18 = smov 16   ;;  %s5579_s24 = smov 24   ;;  %vm3408_vm8 = vsmask.f32 6400  ;;  %vm3497_vm9 = vcmask 1045504   ;;  %vm2892_vm10 = vcmask 64512  }
 0x237   : > { %s7438_s29 = scalar_lea.vmem [#allocation3], %s5316_s26  ;;  %s5580_s25 = smov 32   ;;  %vm2909_vm11 = vcmask 130048   ;;  %vm2926_vm13 = vcmask 195584   ;;  %vm2943_vm14 = vcmask 261120   ;;  %vm2960_vm15 = vcmask 326656  }
 0x238   : > { %v7441_v42 = vld [vmem:[%s7438_s29 + $0x30] sm:$0xff]  ;;  %v2516_v58 = vld [vmem:[%s7438_s29 + $0x38] sm:$0x1]  ;;  %v2510_v53 = vld [vmem:[%s7438_s29 + $0x20] sm:$0x1]  ;;  %s5581_s14 = smov 40  }
 0x239   : > { %v7445_v33 = vld [vmem:[%s7438_s29 + $0x18] sm:$0xff]  ;;  %v2584_v10 = vunpack.c.l.b16 %v2516_v58  ;;  %v7449_v50 = vld [vmem:[%s7438_s29] sm:$0xff]  ;;  %v2504_v37 = vld [vmem:[%s7438_s29 + $0x8] sm:$0x1]  ;;  %v2646_v55 = vshrl.u32 %v7441_v42, 16  ;;  %v2648_v23 = vshll.u32 %v7441_v42, 16  ;;  %v2582_v32 = vunpack.c.l.b16 %v2510_v53 }
 0x23a   : > { %v2622_v43 = vshrl.u32 %v7445_v33, 16  ;;  %v2519_v38 = vld [vmem:[%s7438_s29 + $0x44] sm:$0x1]  ;;  %v2624_v29 = vshll.u32 %v7445_v33, 16  ;;  %v2580_v8 = vunpack.c.l.b16 %v2504_v37  ;;  %v2598_v28 = vshrl.u32 %v7449_v50, 16  ;;  %v7461_v39 = vld [vmem:[%s7438_s29 + $0x3c] sm:$0xff] }
 0x23b   : > { %v7456_v35 = vpack.c.b16 %v2584_v10, %v2584_v10  ;;  %v2650_v59 = vrot.slane %v2648_v23, 1  ;;  %v7463_v36 = vpack.c.b16 %v2582_v32, %v2582_v32  ;;  %v2600_v54 = vshll.u32 %v7449_v50, 16  ;;  %v2513_v27 = vld [vmem:[%s7438_s29 + $0x2c] sm:$0x1]  ;;  %v7475_v63 = vld [vmem:[%s7438_s29 + $0x24] sm:$0xff]  ;;  %v7489_v30 = vld [vmem:[%s7438_s29 + $0x54] sm:$0xff] }
 0x23c   : > { %v2585_v56 = vunpack.c.l.b16 %v2519_v38  ;;  %v2626_v12 = vrot.slane %v2624_v29, 1  ;;  %v7467_v52 = vpack.c.b16 %v2580_v8, %v2580_v8  ;;  %v2658_v6 = vshrl.u32 %v7461_v39, 16  ;;  %v7481_v0 = vld [vmem:[%s7438_s29 + $0xc] sm:$0xff]  ;;  %v2507_v19 = vld [vmem:[%s7438_s29 + $0x14] sm:$0x1]  ;;  %s9937_s19 = smov 48  }
 0x23d   : > { %v2653_v18 = vshll.u32 %v7456_v35, 16  ;;  %v2651_v21 = vor.u32 %v2650_v59, %v2646_v55  ;;  %v2629_v45 = vshll.u32 %v7463_v36, 16  ;;  %v2602_v26 = vrot.slane %v2600_v54, 1  ;;  %v2525_v4 = vld [vmem:[%s7438_s29 + $0x5c] sm:$0x1]  ;;  %v7507_v53 = vld [vmem:[%s7438_s29 + $0x48] sm:$0xff] }
 0x23e   : > { %v7472_v2 = vpack.c.b16 %v2585_v56, %v2585_v56  ;;  %v2627_v31 = vor.u32 %v2626_v12, %v2622_v43  ;;  %v2605_v7 = vshll.u32 %v7467_v52, 16  ;;  %v2660_v41 = vshll.u32 %v7461_v39, 16  ;;  %v2522_v17 = vld [vmem:[%s7438_s29 + $0x50] sm:$0x1]  ;;  %s9984_s20 = smov 56   ;;  %s9958_s28 = smov 64  }
 0x23f   : > { %v2655_v47 = vrot.slane %v2653_v18, 1  ;;  %v2631_v11 = vrot.slane %v2629_v45, 1  ;;  %v2603_v25 = vor.u32 %v2602_v26, %v2598_v28  ;;  %v2583_v15 = vunpack.c.l.b16 %v2513_v27 }
 0x240   : > { %v2665_v40 = vshll.u32 %v7472_v2, 16  ;;  %v2607_v61 = vrot.slane %v2605_v7, 1  ;;  %v2662_v5 = vrot.slane %v2660_v41, 1  ;;  %v2634_v9 = vshrl.u32 %v7475_v63, 16 }
 0x241   : > { %v7485_v51 = vsel %vm2596_vm1, %v2651_v21, %v2655_v47  ;;  %v7495_v22 = vsel %vm2596_vm1, %v2627_v31, %v2631_v11  ;;  %v2591_v48 = vpack.c.b16 %v2583_v15, %v2583_v15  ;;  %v2636_v1 = vshll.u32 %v7475_v63, 16 }
 0x242   : > { %2701 = vrot.lane.b32.xlu2 %v7485_v51, %s5577_s17  ;;  %v2667_v34 = vrot.slane %v2665_v40, 1  ;;  %2697 = vrot.lane.b32.xlu1 %v7495_v22, %s5577_s17  ;;  %v2608_v24 = vsel %vm2596_vm1, %v2603_v25, %v2607_v61  ;;  %v2663_v62 = vor.u32 %v2662_v5, %v2658_v6  ;;  %v2581_v14 = vunpack.c.l.b16 %v2507_v19 }
 0x243   : > { %v2610_v3 = vshrl.u32 %v7481_v0, 16  ;;  %2693 = vrot.lane.b32.xlu0 %v2608_v24, %s5577_s17  ;;  %v2638_v57 = vrot.slane %v2636_v1, 1  ;;  %v2641_v49 = vshll.u32 %v2591_v48, 16  ;;  %v2612_v44 = vshll.u32 %v7481_v0, 16 }
 0x244   : > { %v2587_v13 = vunpack.c.l.b16 %v2525_v4  ;;  %v2589_v60 = vpack.c.b16 %v2581_v14, %v2581_v14  ;;  %v2684_v16 = vshll.u32 %v7489_v30, 16  ;;  %v7510_v37 = vsel %vm2596_vm1, %v2663_v62, %v2667_v34 }
 0x245   : > { %v2639_v20 = vor.u32 %v2638_v57, %v2634_v9  ;;  %v2643_v46 = vrot.slane %v2641_v49, 1  ;;  %v2614_v58 = vrot.slane %v2612_v44, 1  ;;  %v2682_v23 = vshrl.u32 %v7489_v30, 16  ;;  %v5325_v44 = vld [vmem:[%s7438_s29 + $0x60] sm:$0xff] }
 0x246   : > { %v2595_v10 = vpack.c.b16 %v2587_v13, %v2587_v13  ;;  %v2617_v55 = vshll.u32 %v2589_v60, 16  ;;  %v2686_v32 = vrot.slane %v2684_v16, 1  ;;  %v2586_v8 = vunpack.c.l.b16 %v2522_v17  ;;  %v2528_v13 = vld [vmem:[%s7438_s29 + $0x68] sm:$0x1] }
 0x247   : > { %v7514_v43 = vsel %vm2596_vm1, %v2639_v20, %v2643_v46  ;;  %v2615_v38 = vor.u32 %v2614_v58, %v2610_v3  ;;  %v2670_v54 = vshrl.u32 %v7507_v53, 16  ;;  %v2672_v56 = vshll.u32 %v7507_v53, 16 }
 0x248   : > { %v2689_v29 = vshll.u32 %v2595_v10, 16  ;;  %v2619_v28 = vrot.slane %v2617_v55, 1  ;;  %v2594_v59 = vpack.c.b16 %v2586_v8, %v2586_v8  ;;  %v2710_v12 = vrot.slane %v7449_v50, 1 }
 0x249   : > { %v2711_v6 = vrot.slane %v7467_v52, 1  ;;  %v2687_v27 = vor.u32 %v2686_v32, %v2682_v23  ;;  %v2674_v45 = vrot.slane %v2672_v56, 1  ;;  %v2719_v52 = vrot.slane %v7475_v63, 1 }
 0x24a   : > { %2703 = vrot.lane.b32.xlu2 %v7510_v37, %s5577_s17  ;;  %2699 = vrot.lane.b32.xlu1 %v7514_v43, %s5577_s17  ;;  %v2620_v18 = vsel %vm2596_vm1, %v2615_v38, %v2619_v28  ;;  %v2691_v21 = vrot.slane %v2689_v29, 1  ;;  %v2677_v26 = vshll.u32 %v2594_v59, 16  ;;  %v2720_v25 = vrot.slane %v2591_v48, 1 }
 0x24b   : > { %2695 = vrot.lane.b32.xlu0 %v2620_v18, %s5577_s17  ;;  %v2675_v47 = vor.u32 %v2674_v45, %v2670_v54  ;;  %v2712_v7 = vsel %vm2709_vm2, %v2710_v12, %v2711_v6  ;;  %v2716_v40 = vrot.slane %v7445_v33, 1  ;;  %v2717_v15 = vrot.slane %v7463_v36, 1 }
 0x24c   : > { %v2679_v31 = vrot.slane %v2677_v26, 1  ;;  %v7528_v41 = vsel %vm2596_vm1, %v2687_v27, %v2691_v21  ;;  %v2713_v19 = vrot.slane %v7481_v0, 1  ;;  %v2714_v61 = vrot.slane %v2589_v60, 1 }
 0x24d   : > { %v7543_v5 = vsel %vm2709_vm2, %v2719_v52, %v2720_v25  ;;  %v7546_v9 = vsel %vm2709_vm2, %v2716_v40, %v2717_v15  ;;  %v2728_v34 = vrot.slane %v7507_v53, 1  ;;  %v2729_v36 = vrot.slane %v2594_v59, 1 }
 0x24e   : > { %v7531_v11 = vsel %vm2596_vm1, %v2675_v47, %v2679_v31  ;;  %v2715_v4 = vsel %vm2709_vm2, %v2713_v19, %v2714_v61  ;;  %v2725_v48 = vrot.slane %v7461_v39, 1  ;;  %v2726_v1 = vrot.slane %v7472_v2, 1 }
 0x24f   : > { %v2722_v24 = vrot.slane %v7441_v42, 1  ;;  %v2723_v62 = vrot.slane %v7456_v35, 1  ;;  %v7560_v14 = vsel %vm2709_vm2, %v2728_v34, %v2729_v36  ;;  %v2731_v35 = vrot.slane %v7489_v30, 1 }
 0x250   : > { %v7563_v3 = vsel %vm2709_vm2, %v2725_v48, %v2726_v1  ;;  %v2732_v2 = vrot.slane %v2595_v10, 1  ;;  %v2772_v60 = vunpack.c.l.b16 %v2528_v13  ;;  %v2777_v17 = vshll.u32 %v5325_v44, 16 }
 0x251   : > { %v7566_v57 = vsel %vm2709_vm2, %v2722_v24, %v2723_v62  ;;  %v2775_v20 = vshrl.u32 %v5325_v44, 16  ;;  %v2802_v29 = vrot.slane %v5325_v44, 1  ;;  %vm2977_vm0 = vcmask 392192  }
 0x252   : > { %2734 = vrot.lane.b32.xlu2 %v2712_v7, %s5578_s18  ;;  %2707 = vrot.lane.b32.xlu1 %v7528_v41, %s5577_s17  ;;  %v7576_v49 = vsel %vm2709_vm2, %v2731_v35, %v2732_v2  ;;  %v2773_v16 = vpack.c.b16 %v2772_v60, %v2772_v60  ;;  %v2779_v46 = vrot.slane %v2777_v17, 1  ;;  %vm10042_vm3 = vcmask 523264  }
 0x253   : > { %2705 = vrot.lane.b32.xlu0 %v7531_v11, %s5577_s17  ;;  %vm2994_vm4 = vcmask 457728   ;;  %vm3068_vm6 = vcmask 588800   ;;  %vm3789_vm7 = vcmask 31744   ;;  %vm3822_vm12 = vcmask 97280  }
 0x254   : > { %v2782_v58 = vshll.u32 %v2773_v16, 16  ;;  %v2780_v10 = vor.u32 %v2779_v46, %v2775_v20  ;;  %v2803_v8 = vrot.slane %v2773_v16, 1 }
 0x256   : > { %v2784_v55 = vrot.slane %v2782_v58, 1  ;;  %v7630_v28 = vsel %vm2709_vm2, %v2802_v29, %v2803_v8 }
 0x258   : > { %v2785_v23 = vsel %vm2596_vm1, %v2780_v10, %v2784_v55 }
 0x25a   : > { %2740 = vrot.lane.b32.xlu2 %v7543_v5, %s5578_s18  ;;  %2738 = vrot.lane.b32.xlu1 %v7546_v9, %s5578_s18 }
 0x25b   : > { %2736 = vrot.lane.b32.xlu0 %v2715_v4, %s5578_s18 }
 0x262   : > { %2746 = vrot.lane.b32.xlu2 %v7560_v14, %s5578_s18  ;;  %2744 = vrot.lane.b32.xlu1 %v7563_v3, %s5578_s18 }
 0x263   : > { %2742 = vrot.lane.b32.xlu0 %v7566_v57, %s5578_s18 }
 0x26a   : > { %2757 = vrot.lane.b32.xlu2 %v7445_v33, %s5579_s24  ;;  %2755 = vrot.lane.b32.xlu1 %v7481_v0, %s5579_s24 }
 0x26b   : > { %2748 = vrot.lane.b32.xlu0 %v7576_v49, %s5578_s18 }
 0x272   : > { %2763 = vrot.lane.b32.xlu2 %v7461_v39, %s5579_s24  ;;  %2761 = vrot.lane.b32.xlu1 %v7441_v42, %s5579_s24 }
 0x273   : > { %2759 = vrot.lane.b32.xlu0 %v7475_v63, %s5579_s24 }
 0x27a   : > { %2769 = vrot.lane.b32.xlu2 %v5325_v44, %s5579_s24  ;;  %2767 = vrot.lane.b32.xlu1 %v7489_v30, %s5579_s24 }
 0x27b   : > { %2765 = vrot.lane.b32.xlu0 %v7507_v53, %s5579_s24 }
 0x282   : > { %2790 = vrot.lane.b32.xlu2 %v7514_v43, %s5580_s25  ;;  %2788 = vrot.lane.b32.xlu1 %v7495_v22, %s5580_s25 }
 0x283   : > { %2786 = vrot.lane.b32.xlu0 %v2620_v18, %s5580_s25 }
 0x28a   : > { %2796 = vrot.lane.b32.xlu2 %v7531_v11, %s5580_s25  ;;  %2794 = vrot.lane.b32.xlu1 %v7510_v37, %s5580_s25 }
 0x28b   : > { %2792 = vrot.lane.b32.xlu0 %v7485_v51, %s5580_s25 }
 0x292   : > { %2805 = vrot.lane.b32.xlu2 %v2715_v4, %s5581_s14  ;;  %2800 = vrot.lane.b32.xlu1 %v2785_v23, %s5580_s25 }
 0x293   : > { %2798 = vrot.lane.b32.xlu0 %v7528_v41, %s5580_s25 }
 0x29a   : > { %2811 = vrot.lane.b32.xlu2 %v7566_v57, %s5581_s14  ;;  %2809 = vrot.lane.b32.xlu1 %v7543_v5, %s5581_s14 }
 0x29b   : > { %2807 = vrot.lane.b32.xlu0 %v7546_v9, %s5581_s14 }
 0x29c   : > { %v7619_v32 = vpop.permute.xlu2 %2701 }
 0x29d   : > { %10072 = vst [vmem:[#allocation13_spill] sm:$0xff] %v7619_v32 }
 0x2a2   : > { %2817 = vrot.lane.b32.xlu2 %v7576_v49, %s5581_s14  ;;  %2815 = vrot.lane.b32.xlu1 %v7560_v14, %s5581_s14 }
 0x2a3   : > { %2813 = vrot.lane.b32.xlu0 %v7563_v3, %s5581_s14 }
 0x2a4   : > { %v7627_v38 = vpop.permute.xlu2 %2703 }
 0x2a5   : > { %10073 = vst [vmem:[#allocation14_spill] sm:$0xff] %v7627_v38 }
 0x2aa   : > { %2828 = vrot.lane.b32.xlu2 %v7475_v63, %s9937_s19  ;;  %2826 = vrot.lane.b32.xlu1 %v7445_v33, %s9937_s19  ;;  %v7653_v33 = vld [vmem:[%s7438_s29 + $0x6c] sm:$0xff] }
 0x2ab   : > { %2819 = vrot.lane.b32.xlu0 %v7630_v28, %s5581_s14  ;;  %v2848_v27 = vshll.u32 %v7653_v33, 16  ;;  %v2846_v26 = vshrl.u32 %v7653_v33, 16 }
 0x2ac   : > { %v7638_v59 = vpop.permute.xlu2 %2734 }
 0x2b2   : > { %2834 = vrot.lane.b32.xlu2 %v7507_v53, %s9937_s19  ;;  %2832 = vrot.lane.b32.xlu1 %v7461_v39, %s9937_s19 }
 0x2b3   : > { %2830 = vrot.lane.b32.xlu0 %v7441_v42, %s9937_s19  ;;  %v2531_v42 = vld [vmem:[%s7438_s29 + $0x74] sm:$0x1] }
 0x2b4   : > { %v7646_v54 = vpop.permute.xlu2 %2740  ;;  %v7648_v63 = vpop.permute.xlu1 %2697  ;;  %v2843_v12 = vunpack.c.l.b16 %v2531_v42 }
 0x2b5   : > { %10074 = vst [vmem:[#allocation15_spill] sm:$0xff] %v7646_v54  ;;  %v7650_v56 = vpop.permute.xlu0 %2693 }
 0x2b6   : > { %10075 = vst [vmem:[#allocation16_spill] sm:$0xff] %v7648_v63 }
 0x2ba   : > { %2840 = vrot.lane.b32.xlu2 %v7653_v33, %s9937_s19  ;;  %2838 = vrot.lane.b32.xlu1 %v5325_v44, %s9937_s19 }
 0x2bb   : > { %2836 = vrot.lane.b32.xlu0 %v7489_v30, %s9937_s19  ;;  %v7675_v30 = vpack.c.b16 %v2843_v12, %v2843_v12  ;;  %s7701_s19 = scalar_lea.vmem [#allocation4], %s5316_s26  ;;  %s9960_s26 = smov 4  }
 0x2bc   : > { %v7660_v39 = vpop.permute.xlu2 %2746  ;;  %v7662_v53 = vpop.permute.xlu1 %2699  ;;  %v7712_v15 = vld [vmem:[%s7701_s19] sm:$0xff]  ;;  %v3170_v62 = vld [vmem:[%s7701_s19 + $0x38] sm:$0x3]  ;;  %v3167_v13 = vld [vmem:[%s7701_s19 + $0x2c] sm:$0x3] }
 0x2bd   : > { %10076 = vst [vmem:[#allocation17_spill] sm:$0xff] %v7660_v39  ;;  %v7665_v18 = vpop.permute.xlu0 %2695  ;;  %v2853_v47 = vshll.u32 %v7675_v30, 16  ;;  %v9946_v36 = vshll.u32 %v7712_v15, 16  ;;  %v3164_v17 = vld [vmem:[%s7701_s19 + $0x20] sm:$0x3]  ;;  %v7749_v20 = vld [vmem:[%s7701_s19 + $0x30] sm:$0xff]  ;;  %v3244_v46 = vunpack.c.l.b16 %v3170_v62  ;;  %v3243_v10 = vunpack.c.l.b16 %v3167_v13 }
 0x2be   : > { %10077 = vst [vmem:[#allocation18_spill] sm:$0xff] %v7662_v53  ;;  %v7752_v58 = vld [vmem:[%s7701_s19 + $0x24] sm:$0xff]  ;;  %v7759_v29 = vld [vmem:[%s7701_s19 + $0x18] sm:$0xff]  ;;  %v3242_v8 = vunpack.c.l.b16 %v3164_v17  ;;  %v10127_v39 = vshll.u32 %v7712_v15, 16 }
 0x2bf   : > { %v2855_v31 = vrot.slane %v2853_v47, 1  ;;  %v3261_v2 = vrot.slane %v9946_v36, 1  ;;  %v7774_v47 = vshll.u32 %v7749_v20, 16  ;;  %v3173_v62 = vld [vmem:[%s7701_s19 + $0x44] sm:$0x3]  ;;  %v7804_v17 = vld [vmem:[%s7701_s19 + $0x54] sm:$0xff] }
 0x2c1   : > { %10088 = vst [vmem:[#allocation29_spill] sm:$0xff] %v7774_v47  ;;  %v3309_v13 = vrot.slane %v7774_v47, 1 }
 0x2c2   : > { %2861 = vrot.lane.b32.xlu2 %v7485_v51, %s9984_s20  ;;  %2859 = vrot.lane.b32.xlu1 %v7514_v43, %s9984_s20  ;;  %v2850_v51 = vrot.slane %v2848_v27, 1  ;;  %v2873_v27 = vrot.slane %v7653_v33, 1  ;;  %v9942_v33 = vshll.u32 %v7752_v58, 16 }
 0x2c3   : > { %2857 = vrot.lane.b32.xlu0 %v7495_v22, %s9984_s20 }
 0x2c4   : > { %v7673_v6 = vpop.permute.xlu2 %2757  ;;  %v7678_v21 = vpop.permute.xlu1 %2707  ;;  %v2851_v43 = vor.u32 %v2850_v51, %v2846_v26  ;;  %v2874_v26 = vrot.slane %v7675_v30, 1  ;;  %v7771_v51 = vpack.c.b16 %v3244_v46, %v3244_v46  ;;  %v3179_v30 = vld [vmem:[%s7701_s19 + $0x5c] sm:$0x3] }
 0x2c5   : > { %10078 = vst [vmem:[#allocation19_spill] sm:$0xff] %v7678_v21  ;;  %v7680_v45 = vpop.permute.xlu0 %2705  ;;  %v3247_v46 = vunpack.c.l.b16 %v3179_v30  ;;  %v3245_v30 = vunpack.c.l.b16 %v3173_v62 }
 0x2c6   : > { %10079 = vst [vmem:[#allocation20_spill] sm:$0xff] %v7680_v45  ;;  %v2856_v25 = vsel %vm2596_vm1, %v2851_v43, %v2855_v31  ;;  %v7780_v43 = vpack.c.b16 %v3243_v10, %v3243_v10  ;;  %v9947_v10 = vshrl.u32 %v7752_v58, 16 }
 0x2c7   : > { %10087 = vst [vmem:[#allocation28_spill] sm:$0xff] %v7771_v51  ;;  %v7849_v36 = vpack.c.b16 %v3245_v30, %v3245_v30 }
 0x2c9   : > { %10099 = vst [vmem:[#allocation40_spill] sm:$0xff] %v7849_v36  ;;  %v10111_v21 = vshll.u32 %v7849_v36, 16 }
 0x2ca   : > { %2867 = vrot.lane.b32.xlu2 %v7528_v41, %s9984_s20  ;;  %2865 = vrot.lane.b32.xlu1 %v7531_v11, %s9984_s20  ;;  %v3161_v41 = vld [vmem:[%s7701_s19 + $0x14] sm:$0x3] }
 0x2cb   : > { %2863 = vrot.lane.b32.xlu0 %v7510_v37, %s9984_s20  ;;  %v3158_v37 = vld [vmem:[%s7701_s19 + $0x8] sm:$0x3]  ;;  %v3241_v4 = vunpack.c.l.b16 %v3161_v41 }
 0x2cc   : > { %v7690_v22 = vpop.permute.xlu2 %2763  ;;  %v7692_v7 = vpop.permute.xlu1 %2738  ;;  %v3240_v19 = vunpack.c.l.b16 %v3158_v37  ;;  %v3176_v37 = vld [vmem:[%s7701_s19 + $0x50] sm:$0x3] }
 0x2cd   : > { %10080 = vst [vmem:[#allocation21_spill] sm:$0xff] %v7690_v22  ;;  %v7694_v52 = vpop.permute.xlu0 %2736  ;;  %v7724_v48 = vpack.c.b16 %v3241_v4, %v3241_v4  ;;  %v2875_v4 = vsel %vm2709_vm2, %v2873_v27, %v2874_v26 }
 0x2ce   : > { %10081 = vst [vmem:[#allocation22_spill] sm:$0xff] %v7692_v7  ;;  %v7719_v34 = vpack.c.b16 %v3240_v19, %v3240_v19 }
 0x2cf   : > { %v9939_v16 = vshll.u32 %v7724_v48, 16 }
 0x2d0   : > { %v9944_v44 = vshll.u32 %v7719_v34, 16 }
 0x2d1   : > { %v3278_v12 = vrot.slane %v9939_v16, 1  ;;  %v7818_v16 = vld [vmem:[%s7701_s19 + $0x3c] sm:$0xff] }
 0x2d2   : > { %2876 = vrot.lane.b32.xlu2 %v7546_v9, %s9958_s28  ;;  %2871 = vrot.lane.b32.xlu1 %v2856_v25, %s9984_s20  ;;  %v7717_v9 = vld [vmem:[%s7701_s19 + $0xc] sm:$0xff]  ;;  %v9943_v25 = vshll.u32 %v7759_v29, 16 }
 0x2d3   : > { %2869 = vrot.lane.b32.xlu0 %v2785_v23, %s9984_s20  ;;  %v9940_v1 = vshll.u32 %v7717_v9, 16  ;;  %v3266_v23 = vrot.slane %v9944_v44, 1  ;;  %s5586_s20 = smov 12  }
 0x2d4   : > { %v7707_v11 = vpop.permute.xlu2 %2769  ;;  %v7709_v40 = vpop.permute.xlu1 %2744  ;;  %v3285_v27 = vrot.slane %v9943_v25, 1 }
 0x2d5   : > { %10082 = vst [vmem:[#allocation23_spill] sm:$0xff] %v7707_v11  ;;  %v7714_v61 = vpop.permute.xlu0 %2742 }
 0x2d6   : > { %10083 = vst [vmem:[#allocation24_spill] sm:$0xff] %v7709_v40 }
 0x2d7   : > { %10084 = vst [vmem:[#allocation25_spill] sm:$0xff] %v7714_v61 }
 0x2da   : > { %2882 = vrot.lane.b32.xlu2 %v7563_v3, %s9958_s28  ;;  %2880 = vrot.lane.b32.xlu1 %v7566_v57, %s9958_s28  ;;  %v9949_v3 = vshrl.u32 %v7712_v15, 16  ;;  %v9941_v57 = vshrl.u32 %v7717_v9, 16 }
 0x2db   : > { %2878 = vrot.lane.b32.xlu0 %v7543_v5, %s9958_s28  ;;  %v3273_v5 = vrot.slane %v9940_v1, 1 }
 0x2dc   : > { %v7731_v24 = vpop.permute.xlu2 %2790  ;;  %v7734_v35 = vpop.permute.xlu1 %2755  ;;  %v3262_v55 = vor.u32 %v3261_v2, %v9949_v3  ;;  %v7799_v2 = vshrl.u32 %v7749_v20, 16 }
 0x2dd   : > { %10085 = vst [vmem:[#allocation26_spill] sm:$0xff] %v7731_v24  ;;  %v7741_v60 = vpop.permute.xlu0 %2748  ;;  %v3274_v42 = vor.u32 %v3273_v5, %v9941_v57  ;;  %v9945_v5 = vshll.u32 %v7771_v51, 16  ;;  %v7826_v57 = vpack.c.b16 %v3247_v46, %v3247_v46 }
 0x2de   : > { %10086 = vst [vmem:[#allocation27_spill] sm:$0xff] %v7741_v60  ;;  %v3310_v1 = vor.u32 %v3309_v13, %v7799_v2 }
 0x2df   : > { %v7794_v19 = vsel %vm2596_vm1, %v3274_v42, %v3278_v12  ;;  %10093 = vst [vmem:[#allocation34_spill] sm:$0xff] %v7799_v2  ;;  %v3246_v42 = vunpack.c.l.b16 %v3176_v37  ;;  %v9950_v12 = vshrl.u32 %v7759_v29, 16  ;;  %v3314_v37 = vrot.slane %v9945_v5, 1 }
 0x2e0   : > { %10092 = vst [vmem:[#allocation33_spill] sm:$0xff] %v7794_v19 }
 0x2e1   : > { %10094 = vst [vmem:[#allocation35_spill] sm:$0xff] %v7826_v57  ;;  %v7838_v44 = vpack.c.b16 %v3246_v42, %v3246_v42  ;;  %v3286_v5 = vor.u32 %v3285_v27, %v9950_v12  ;;  %v7857_v42 = vsel %vm2596_vm1, %v3310_v1, %v3314_v37  ;;  %v7876_v37 = vshrl.u32 %v7818_v16, 16 }
 0x2e2   : > { %2888 = vrot.lane.b32.xlu2 %v7630_v28, %s9958_s28  ;;  %2886 = vrot.lane.b32.xlu1 %v7576_v49, %s9958_s28  ;;  %v7786_v49 = vpack.c.b16 %v3242_v8, %v3242_v8  ;;  %v7811_v8 = vld [vmem:[%s7701_s19 + $0x48] sm:$0xff]  ;;  %10102 = vst [vmem:[#allocation43_spill] sm:$0xff] %v7857_v42 }
 0x2e3   : > { %2884 = vrot.lane.b32.xlu0 %v7560_v14, %s9958_s28  ;;  %v3267_v14 = vsel %vm2596_vm1, %v3262_v55, %v3266_v23  ;;  %v3297_v55 = vrot.slane %v9942_v33, 1  ;;  %v9948_v23 = vshll.u32 %v7780_v43, 16  ;;  %v7829_v33 = vshll.u32 %v7804_v17, 16  ;;  %10096 = vst [vmem:[#allocation37_spill] sm:$0xff] %v7838_v44 }
 0x2e4   : > { %v7778_v28 = vpop.permute.xlu2 %2796  ;;  %v7784_v31 = vpop.permute.xlu1 %2761  ;;  %v9951_v26 = vshll.u32 %v7786_v49, 16  ;;  %v7841_v13 = vshll.u32 %v7811_v8, 16  ;;  %v7868_v30 = vshrl.u32 %v7811_v8, 16  ;;  %10107 = vst [vmem:[#allocation48_spill] sm:$0xff] %v7876_v37  ;;  %v10110_v27 = vshll.u32 %v7838_v44, 16 }
 0x2e5   : > { %10089 = vst [vmem:[#allocation30_spill] sm:$0xff] %v7778_v28  ;;  %v7790_v41 = vpop.permute.xlu0 %2759  ;;  %v3298_v62 = vor.u32 %v3297_v55, %v9947_v10  ;;  %v7852_v55 = vshll.u32 %v7818_v16, 16  ;;  %v3345_v3 = vrot.slane %v7829_v33, 1 }
 0x2e6   : > { %10090 = vst [vmem:[#allocation31_spill] sm:$0xff] %v7784_v31  ;;  %v3338_v32 = vrot.slane %v10110_v27, 1 }
 0x2e7   : > { %10091 = vst [vmem:[#allocation32_spill] sm:$0xff] %v7790_v41  ;;  %v3321_v61 = vrot.slane %v7852_v55, 1  ;;  %v10137_v41 = vshll.u32 %v7786_v49, 16 }
 0x2e8   : > { %10095 = vst [vmem:[#allocation36_spill] sm:$0xff] %v7829_v33 }
 0x2e9   : > { %10097 = vst [vmem:[#allocation38_spill] sm:$0xff] %v7841_v13  ;;  %v3322_v60 = vor.u32 %v3321_v61, %v7876_v37  ;;  %v3374_v61 = vrot.slane %v7759_v29, 1 }
 0x2ea   : > { %3354 = vrot.lane.b32.xlu2 %v7794_v19, %s9960_s26  ;;  %3352 = vrot.lane.b32.xlu1 %v3267_v14, %s9960_s26  ;;  %v3302_v14 = vrot.slane %v9948_v23, 1  ;;  %10100 = vst [vmem:[#allocation41_spill] sm:$0xff] %v7852_v55  ;;  %v7860_v23 = vshrl.u32 %v7804_v17, 16  ;;  %v10144_v19 = vshrl.u32 %v7717_v9, 16 }
 0x2eb   : > { %2890 = vrot.lane.b32.xlu0 %v2875_v4, %s9958_s28  ;;  %v3290_v4 = vrot.slane %v9951_v26, 1  ;;  %10105 = vst [vmem:[#allocation46_spill] sm:$0xff] %v7868_v30  ;;  %v3333_v26 = vrot.slane %v7841_v13, 1  ;;  %s5587_s28 = smov 20  }
 0x2ec   : > { %v7832_v25 = vpop.permute.xlu2 %2805  ;;  %v7843_v46 = vpop.permute.xlu1 %2767  ;;  %10103 = vst [vmem:[#allocation44_spill] sm:$0xff] %v7860_v23  ;;  %v7865_v12 = vsel %vm2596_vm1, %v3298_v62, %v3302_v14  ;;  %v3346_v62 = vor.u32 %v3345_v3, %v7860_v23  ;;  %v10108_v14 = vshll.u32 %v7826_v57, 16  ;;  %v3326_v3 = vrot.slane %v10111_v21, 1 }
 0x2ed   : > { %10098 = vst [vmem:[#allocation39_spill] sm:$0xff] %v7843_v46  ;;  %v7854_v10 = vpop.permute.xlu0 %2765  ;;  %v7873_v1 = vsel %vm2596_vm1, %v3286_v5, %v3290_v4  ;;  %v3334_v4 = vor.u32 %v3333_v26, %v7868_v30  ;;  %v3375_v21 = vrot.slane %v7786_v49, 1  ;;  %v10126_v46 = vshrl.u32 %v7712_v15, 16 }
 0x2ee   : > { %10101 = vst [vmem:[#allocation42_spill] sm:$0xff] %v7854_v10  ;;  %v3350_v22 = vrot.slane %v10108_v14, 1  ;;  %v7908_v26 = vsel %vm2596_vm1, %v3322_v60, %v3326_v3  ;;  %v3372_v60 = vrot.slane %v7724_v48, 1  ;;  %v3418_v28 = vrot.slane %v10144_v19, 1 }
 0x2ef   : > { %10104 = vst [vmem:[#allocation45_spill] sm:$0xff] %v7865_v12  ;;  %v7905_v54 = vsel %vm2596_vm1, %v3334_v4, %v3338_v32  ;;  %v3371_v32 = vrot.slane %v7717_v9, 1  ;;  %v3369_v4 = vrot.slane %v7719_v34, 1 }
 0x2f0   : > { %10106 = vst [vmem:[#allocation47_spill] sm:$0xff] %v7873_v1  ;;  %v7902_v14 = vsel %vm2596_vm1, %v3346_v62, %v3350_v22  ;;  %v3368_v62 = vrot.slane %v7712_v15, 1 }
 0x2f1   : > { %10112 = vst [vmem:[#allocation50_spill] sm:$0xff] %v7902_v14 }
 0x2f2   : > { %3360 = vrot.lane.b32.xlu2 %v7857_v42, %s9960_s26  ;;  %3358 = vrot.lane.b32.xlu1 %v7865_v12, %s9960_s26  ;;  %10113 = vst [vmem:[#allocation51_spill] sm:$0xff] %v7905_v54 }
 0x2f3   : > { %3356 = vrot.lane.b32.xlu0 %v7873_v1, %s9960_s26  ;;  %10114 = vst [vmem:[#allocation52_spill] sm:$0xff] %v7908_v26  ;;  %v3409_v1 = vrot.slane %v10126_v46, 1 }
 0x2f4   : > { %v7889_v5 = vpop.permute.xlu2 %2811  ;;  %v7894_v11 = vpop.permute.xlu1 %2788 }
 0x2f5   : > { %10109 = vst [vmem:[#allocation49_spill] sm:$0xff] %v7889_v5  ;;  %v7899_v31 = vpop.permute.xlu0 %2786  ;;  %v7929_v5 = vsel %vm2709_vm2, %v3374_v61, %v3375_v21  ;;  %v3036_v61 = vld [vmem:[%s9926_s3 + $0x20] sm:$0xf] }
 0x2f6   : > { %10118 = vst [vmem:[#allocation56_spill] sm:$0xff] %v7929_v5 }
 0x2fa   : > { %3366 = vrot.lane.b32.xlu2 %v7902_v14, %s9960_s26  ;;  %3364 = vrot.lane.b32.xlu1 %v7905_v54, %s9960_s26  ;;  %v7932_v54 = vsel %vm2709_vm2, %v3371_v32, %v3372_v60  ;;  %v3383_v14 = vrot.slane %v7818_v16, 1  ;;  %v3380_v32 = vrot.slane %v7749_v20, 1  ;;  %v7952_v60 = vrot.slane %v7771_v51, 1 }
 0x2fb   : > { %3362 = vrot.lane.b32.xlu0 %v7908_v26, %s9960_s26  ;;  %10119 = vst [vmem:[#allocation57_spill] sm:$0xff] %v7932_v54  ;;  %v3370_v26 = vsel %vm2709_vm2, %v3368_v62, %v3369_v4  ;;  %v3058_v62 = vunpack.c.l.b16 %v3036_v61  ;;  %v3410_v61 = vrot.slane %v10127_v39, 2  ;;  %v5330_v39 = vld [vmem:[%s9926_s3 + $0x18] sm:$0xff]  ;;  %s5588_s26 = smov 28  }
 0x2fc   : > { %v7918_v22 = vpop.permute.xlu2 %2817  ;;  %v7922_v27 = vpop.permute.xlu1 %2794  ;;  %10122 = vst [vmem:[#allocation60_spill] sm:$0xff] %v7952_v60 }
 0x2fd   : > { %10115 = vst [vmem:[#allocation53_spill] sm:$0xff] %v7918_v22  ;;  %v7926_v3 = vpop.permute.xlu0 %2792  ;;  %v3063_v22 = vpack.c.b16 %v3058_v62, %v3058_v62 }
 0x2fe   : > { %10116 = vst [vmem:[#allocation54_spill] sm:$0xff] %v7922_v27  ;;  %v7939_v27 = vrot.slane %v7849_v36, 1 }
 0x2ff   : > { %10117 = vst [vmem:[#allocation55_spill] sm:$0xff] %v7926_v3  ;;  %v3412_v3 = vshrl.u32 %v7719_v34, 16  ;;  %v3087_v24 = vsel %vm3085_vm5, %v3063_v22, 0  ;;  %v7988_v22 = vrot.slane %v7826_v57, 1  ;;  %vm3855_vm5 = vcmask 162816  }
 0x300   : > { %10120 = vst [vmem:[#allocation58_spill] sm:$0xff] %v7939_v27  ;;  %3092 = vmatpush.bf16.msra.mxu0 %v3087_v24  ;;  %5353 = vmatpush.bf16.msra.mxu3 %v3087_v24  ;;  %v10134_v24 = vshrl.u32 %v7759_v29, 16 }
 0x301   : > { %v3414_v12 = vrot.slane %v3412_v3, 1  ;;  %v3389_v3 = vrot.slane %v7804_v17, 1  ;;  %10132 = vst [vmem:[#allocation66_spill] sm:$0xff] %v7988_v22 }
 0x302   : > { %3396 = vrot.lane.b32.xlu2 %v7929_v5, %s5577_s17  ;;  %3394 = vrot.lane.b32.xlu1 %v7932_v54, %s5577_s17  ;;  %v3377_v54 = vrot.slane %v7752_v58, 1  ;;  %v7972_v5 = vsel %vm2709_vm2, %v3380_v32, %v7952_v60  ;;  %v3411_v32 = vor.u32 %v3410_v61, %v3409_v1  ;;  %v3427_v46 = vrot.slane %v10134_v24, 1 }
 0x303   : > { %3392 = vrot.lane.b32.xlu0 %v3370_v26, %s5577_s17  ;;  %v7962_v26 = vsel %vm2709_vm2, %v3383_v14, %v7939_v27  ;;  %10129 = vst [vmem:[#allocation64_spill] sm:$0xff] %v7972_v5  ;;  %v10130_v14 = vrot.slane %v7780_v43, 1  ;;  %v10136_v27 = vshll.u32 %v7759_v29, 16  ;;  %v10139_v1 = vshrl.u32 %v7752_v58, 16 }
 0x304   : > { %v7948_v21 = vpop.permute.xlu2 %2828  ;;  %v7954_v4 = vpop.permute.xlu1 %2800  ;;  %10125 = vst [vmem:[#allocation63_spill] sm:$0xff] %v7962_v26  ;;  %v10140_v24 = vshll.u32 %v7752_v58, 16  ;;  %3093 = vmatpush.bf16.msra.mxu0 %v5330_v39  ;;  %5354 = vmatpush.bf16.msra.mxu3 %v5330_v39 }
 0x305   : > { %10121 = vst [vmem:[#allocation59_spill] sm:$0xff] %v7948_v21  ;;  %v7958_v53 = vpop.permute.xlu0 %2798  ;;  %v7978_v62 = vsel %vm2709_vm2, %v3377_v54, %v10130_v14  ;;  %v3386_v54 = vrot.slane %v7811_v8, 1  ;;  %v7994_v14 = vrot.slane %v7838_v44, 1  ;;  %v3436_v61 = vrot.slane %v10139_v1, 1 }
 0x306   : > { %10123 = vst [vmem:[#allocation61_spill] sm:$0xff] %v7954_v4  ;;  %v10128_v4 = vshll.u32 %v7719_v34, 16  ;;  %v3437_v7 = vrot.slane %v10140_v24, 2  ;;  %v8026_v1 = vsel %vm2709_vm2, %v3389_v3, %v7988_v22  ;;  %v10145_v21 = vshll.u32 %v7717_v9, 16 }
 0x307   : > { %10124 = vst [vmem:[#allocation62_spill] sm:$0xff] %v7958_v53  ;;  %v3430_v53 = vshrl.u32 %v7786_v49, 16  ;;  %v10146_v3 = vshll.u32 %v7724_v48, 16 }
 0x308   : > { %v3415_v42 = vrot.slane %v10128_v4, 2  ;;  %10131 = vst [vmem:[#allocation65_spill] sm:$0xff] %v7978_v62  ;;  %v3419_v39 = vrot.slane %v10145_v21, 2  ;;  %v3438_v10 = vor.u32 %v3437_v7, %v3436_v61  ;;  %v8050_v7 = vshrl.u32 %v7838_v44, 16 }
 0x309   : > { %10133 = vst [vmem:[#allocation67_spill] sm:$0xff] %v7994_v14  ;;  %v3432_v45 = vrot.slane %v3430_v53, 1  ;;  %v3424_v22 = vrot.slane %v10146_v3, 2  ;;  %v8060_v21 = vshrl.u32 %v7771_v51, 16  ;;  %v3446_v3 = vrot.slane %v7774_v47, 2 }
 0x30a   : > { %3402 = vrot.lane.b32.xlu2 %v7962_v26, %s5577_s17  ;;  %3400 = vrot.lane.b32.xlu1 %v7972_v5, %s5577_s17  ;;  %v3416_v4 = vor.u32 %v3415_v42, %v3414_v12  ;;  %v3428_v26 = vrot.slane %v10136_v27, 2  ;;  %v3433_v5 = vrot.slane %v10137_v41, 2  ;;  %v3421_v12 = vshrl.u32 %v7724_v48, 16  ;;  %v5329_v41 = vld [vmem:[%s9926_s3 + $0x10] sm:$0xff]  ;;  %10148 = vst [vmem:[#allocation72_spill] sm:$0xff] %v8050_v7 }
 0x30b   : > { %3398 = vrot.lane.b32.xlu0 %v7978_v62, %s5577_s17  ;;  %v10141_v62 = vshrl.u32 %v7780_v43, 16  ;;  %v10143_v27 = vshll.u32 %v7780_v43, 16  ;;  %3094 = vmatpush.bf16.msra.mxu0 %v5329_v41 }
 0x30c   : > { %v8000_v60 = vpop.permute.xlu2 %2834  ;;  %v8007_v42 = vpop.permute.xlu1 %2809  ;;  %v3417_v24 = vsel %vm3408_vm8, %v3411_v32, %v3416_v4  ;;  %v3429_v63 = vor.u32 %v3428_v26, %v3427_v46  ;;  %v3423_v38 = vrot.slane %v3421_v12, 1  ;;  %5355 = vmatpush.bf16.msra.mxu3 %v5329_v41  ;;  %v3420_v32 = vor.u32 %v3419_v39, %v3418_v28  ;;  %v5327_v12 = vld [vmem:[%s9926_s3] sm:$0xff] }
 0x30d   : > { %10135 = vst [vmem:[#allocation68_spill] sm:$0xff] %v8000_v60  ;;  %v8015_v60 = vrot.slane %v10141_v62, 1  ;;  %v3442_v53 = vrot.slane %v10143_v27, 2  ;;  %v8031_v62 = vsel %vm2709_vm2, %v3386_v54, %v7994_v14  ;;  %v3434_v27 = vor.u32 %v3433_v5, %v3432_v45  ;;  %v5328_v54 = vld [vmem:[%s9926_s3 + $0x8] sm:$0xff] }
 0x30e   : > { %10138 = vst [vmem:[#allocation69_spill] sm:$0xff] %v8007_v42  ;;  %v8022_v42 = vpop.permute.xlu0 %2807  ;;  %v8045_v45 = vshrl.u32 %v7849_v36, 16  ;;  %v3425_v4 = vor.u32 %v3424_v22, %v3423_v38  ;;  %v3463_v38 = vrot.slane %v7868_v30, 1  ;;  %v3464_v28 = vrot.slane %v7841_v13, 2 }
 0x30f   : > { %10142 = vst [vmem:[#allocation70_spill] sm:$0xff] %v8015_v60  ;;  %v3443_v40 = vor.u32 %v3442_v53, %v8015_v60  ;;  %v8057_v5 = vsel %vm3408_vm8, %v3429_v63, %v3434_v27  ;;  %3095 = vmatpush.bf16.msra.mxu0 %v5328_v54  ;;  %v3454_v63 = vrot.slane %v7876_v37, 1  ;;  %v3455_v53 = vrot.slane %v7852_v55, 2 }
 0x310   : > { %10147 = vst [vmem:[#allocation71_spill] sm:$0xff] %v8045_v45  ;;  %5356 = vmatpush.bf16.msra.mxu3 %v5328_v54  ;;  %v8075_v41 = vrot.slane %v8045_v45, 1  ;;  %v8082_v22 = vrot.slane %v8050_v7, 1  ;;  %v3445_v39 = vrot.slane %v7799_v2, 1  ;;  %v8089_v54 = vrot.slane %v8060_v21, 1  ;;  %v10190_v45 = vld [vmem:[#allocation55_spill] sm:$0xff] }
 0x311   : > { %v8065_v46 = vsel %vm3408_vm8, %v3438_v10, %v3443_v40  ;;  %v10150_v40 = vshll.u32 %v7849_v36, 16  ;;  %v10154_v55 = vshll.u32 %v7771_v51, 16  ;;  %v8094_v37 = vsel %vm3408_vm8, %v3420_v32, %v3425_v4 }
 0x312   : > { %3481 = vrot.lane.b32.xlu2 %v3417_v24, %s5586_s20  ;;  %3406 = vrot.lane.b32.xlu1 %v8026_v1, %s5577_s17  ;;  %10149 = vst [vmem:[#allocation73_spill] sm:$0xff] %v8075_v41  ;;  %v10152_v24 = vshll.u32 %v7838_v44, 16  ;;  %v3447_v4 = vor.u32 %v3446_v3, %v3445_v39  ;;  %v8110_v2 = vshrl.u32 %v7826_v57, 16  ;;  %v10157_v39 = vshll.u32 %v7826_v57, 16 }
 0x313   : > { %3404 = vrot.lane.b32.xlu0 %v8031_v62, %s5577_s17  ;;  %v3460_v10 = vrot.slane %v10150_v40, 2  ;;  %10151 = vst [vmem:[#allocation74_spill] sm:$0xff] %v8082_v22  ;;  %v3451_v40 = vrot.slane %v10154_v55, 2  ;;  %3096 = vmatpush.bf16.msra.mxu0 %v5327_v12  ;;  %v3456_v55 = vor.u32 %v3455_v53, %v3454_v63  ;;  %v3472_v53 = vrot.slane %v7860_v23, 1 }
 0x314   : > { %v8054_v19 = vpop.permute.xlu2 %2840  ;;  %v8062_v26 = vpop.permute.xlu1 %2815  ;;  %v3469_v27 = vrot.slane %v10152_v24, 2  ;;  %10153 = vst [vmem:[#allocation75_spill] sm:$0xff] %v8089_v54  ;;  %5357 = vmatpush.bf16.msra.mxu3 %v5327_v12  ;;  %v3465_v24 = vor.u32 %v3464_v28, %v3463_v38  ;;  %v3478_v3 = vrot.slane %v10157_v39, 2 }
 0x315   : > { %v3461_v32 = vor.u32 %v3460_v10, %v8075_v41  ;;  %v3452_v12 = vor.u32 %v3451_v40, %v8089_v54  ;;  %10155 = vst [vmem:[#allocation76_spill] sm:$0xff] %v8110_v2  ;;  %v3473_v10 = vrot.slane %v7829_v33, 2  ;;  %v3502_v40 = vrot.slane %v7724_v48, 2  ;;  %v10181_v41 = vld [vmem:[#allocation53_spill] sm:$0xff] }
 0x316   : > { %v8070_v61 = vpop.permute.xlu0 %2813  ;;  %v3470_v13 = vor.u32 %v3469_v27, %v8082_v22  ;;  %v8126_v27 = vrot.slane %v8110_v2, 1  ;;  %v5466_v22 = vld [vmem:[%s7438_s29 + $0x24] sm:$0xff] }
 0x317   : > { %v8118_v28 = vsel %vm3408_vm8, %v3456_v55, %v3461_v32  ;;  %v8121_v63 = vsel %vm3408_vm8, %v3447_v4, %v3452_v12  ;;  %v3498_v55 = vrot.slane %v7712_v15, 2  ;;  %v3499_v32 = vrot.slane %v7719_v34, 2 }
 0x318   : > { %v8115_v38 = vsel %vm3408_vm8, %v3465_v24, %v3470_v13  ;;  %10156 = vst [vmem:[#allocation77_spill] sm:$0xff] %v8126_v27  ;;  %v3501_v13 = vrot.slane %v7717_v9, 2  ;;  %v3474_v12 = vor.u32 %v3473_v10, %v3472_v53  ;;  %v3479_v39 = vor.u32 %v3478_v3, %v8126_v27  ;;  %v10171_v27 = vld [vmem:[#allocation69_spill] sm:$0xff] }
 0x319   : > { %v3500_v48 = vsel %vm3497_vm9, %v3498_v55, %v3499_v32  ;;  %v3510_v15 = vrot.slane %v7749_v20, 2  ;;  %v3511_v34 = vrot.slane %v7771_v51, 2  ;;  %v3507_v10 = vrot.slane %v7752_v58, 2 }
 0x31a   : > { %3487 = vrot.lane.b32.xlu2 %v8065_v46, %s5586_s20  ;;  %3485 = vrot.lane.b32.xlu1 %v8057_v5, %s5586_s20  ;;  %v8148_v23 = vsel %vm3497_vm9, %v3501_v13, %v3502_v40  ;;  %v8152_v54 = vsel %vm3408_vm8, %v3474_v12, %v3479_v39  ;;  %v3508_v3 = vrot.slane %v7780_v43, 2  ;;  %v2894_v13 = vsel %vm2892_vm10, %v7449_v50, %v7650_v56 }
 0x31b   : > { %3483 = vrot.lane.b32.xlu0 %v8094_v37, %s5586_s20  ;;  %v3504_v55 = vrot.slane %v7759_v29, 2  ;;  %v3505_v32 = vrot.slane %v7786_v49, 2  ;;  %v8173_v39 = vsel %vm3497_vm9, %v3510_v15, %v3511_v34  ;;  %v3520_v15 = vrot.slane %v7826_v57, 2 }
 0x31c   : > { %v8103_v30 = vpop.permute.xlu2 %2861  ;;  %v8107_v47 = vpop.permute.xlu1 %2826  ;;  %v8178_v51 = vsel %vm3497_vm9, %v3507_v10, %v3508_v3  ;;  %v3516_v34 = vrot.slane %v7811_v8, 2 }
 0x31d   : > { %v8183_v56 = vsel %vm3497_vm9, %v3504_v55, %v3505_v32  ;;  %v3514_v55 = vrot.slane %v7849_v36, 2  ;;  %v10170_v36 = vld [vmem:[#allocation26_spill] sm:$0xff] }
 0x31e   : > { %v8112_v60 = vpop.permute.xlu0 %2819 }
 0x322   : > { %3493 = vrot.lane.b32.xlu2 %v8115_v38, %s5586_s20  ;;  %3491 = vrot.lane.b32.xlu1 %v8118_v28, %s5586_s20 }
 0x323   : > { %3489 = vrot.lane.b32.xlu0 %v8121_v63, %s5586_s20 }
 0x324   : > { %v8138_v24 = vpop.permute.xlu2 %2867  ;;  %v8142_v4 = vpop.permute.xlu1 %2832 }
 0x326   : > { %v8145_v33 = vpop.permute.xlu0 %2830 }
 0x32a   : > { %3524 = vrot.lane.b32.xlu2 %v8148_v23, %s5578_s18  ;;  %3522 = vrot.lane.b32.xlu1 %v3500_v48, %s5578_s18  ;;  %v2911_v48 = vsel %vm2909_vm11, %v2894_v13, %v7638_v59  ;;  %v3519_v59 = vrot.slane %v7804_v17, 2  ;;  %v3513_v13 = vrot.slane %v7818_v16, 2 }
 0x32b   : > { %3495 = vrot.lane.b32.xlu0 %v8152_v54, %s5586_s20  ;;  %v2928_v50 = vsel %vm2926_vm13, %v2911_v48, %v7734_v35 }
 0x32c   : > { %v2877_v53 = vpop.permute.xlu2 %2876  ;;  %v8166_v40 = vpop.permute.xlu1 %2838  ;;  %v2945_v49 = vsel %vm2943_vm14, %v2928_v50, %v7899_v31  ;;  %v3517_v31 = vrot.slane %v7838_v44, 2  ;;  %v8207_v57 = vsel %vm3497_vm9, %v3519_v59, %v3520_v15 }
 0x32d   : > { %v2962_v10 = vsel %vm2960_vm15, %v2945_v49, %v7832_v25  ;;  %v8215_v49 = vsel %vm3497_vm9, %v3513_v13, %v3514_v55 }
 0x32e   : > { %v8170_v12 = vpop.permute.xlu0 %2836  ;;  %v2979_v32 = vsel %vm2977_vm0, %v2962_v10, %v8107_v47  ;;  %v8211_v25 = vsel %vm3497_vm9, %v3516_v34, %v3517_v31 }
 0x332   : > { %3530 = vrot.lane.b32.xlu2 %v8173_v39, %s5578_s18  ;;  %3528 = vrot.lane.b32.xlu1 %v8178_v51, %s5578_s18 }
 0x333   : > { %3526 = vrot.lane.b32.xlu0 %v8183_v56, %s5578_s18 }
 0x334   : > { %v8195_v35 = vpop.permute.xlu2 %2882  ;;  %v2860_v3 = vpop.permute.xlu1 %2859 }
 0x336   : > { %v2858_v48 = vpop.permute.xlu0 %2857 }
 0x337   : > { %v2996_v50 = vsel %vm2994_vm4, %v2979_v32, %v2858_v48  ;;  %v10159_v32 = vld [vmem:[#allocation24_spill] sm:$0xff] }
 0x338   : > { %v3013_v44 = vsel %vm10042_vm3, %v2996_v50, %v2877_v53  ;;  %v10162_v50 = vld [vmem:[#allocation59_spill] sm:$0xff] }
 0x339   : > { %5218 = vmatmul.msk.bf16.vlgmr.msra.gmra.mxu0 %vm3068_vm6, %v3013_v44  ;;  %v2896_v44 = vsel %vm2892_vm10, %v7481_v0, %v7665_v18  ;;  %v5463_v18 = vld [vmem:[%s7438_s29 + $0x3c] sm:$0xff] }
 0x33a   : > { %3536 = vrot.lane.b32.xlu2 %v8207_v57, %s5578_s18  ;;  %3534 = vrot.lane.b32.xlu1 %v8211_v25, %s5578_s18  ;;  %v2913_v34 = vsel %vm2909_vm11, %v2896_v44, %v7694_v52 }
 0x33b   : > { %3532 = vrot.lane.b32.xlu0 %v8215_v49, %s5578_s18  ;;  %v2930_v13 = vsel %vm2926_vm13, %v2913_v34, %v7673_v6 }
 0x33c   : > { %v8223_v47 = vpop.permute.xlu2 %2888  ;;  %v8225_v53 = vpop.permute.xlu1 %2865  ;;  %v2947_v55 = vsel %vm2943_vm14, %v2930_v13, %v7894_v11 }
 0x33d   : > { %v2964_v0 = vsel %vm2960_vm15, %v2947_v55, %v8022_v42  ;;  %v10161_v42 = vld [vmem:[#allocation42_spill] sm:$0xff] }
 0x33e   : > { %v8227_v59 = vpop.permute.xlu0 %2863  ;;  %v2981_v44 = vsel %vm2977_vm0, %v2964_v0, %v10162_v50  ;;  %v10165_v50 = vld [vmem:[#allocation16_spill] sm:$0xff] }
 0x33f   : > { %v2998_v13 = vsel %vm2994_vm4, %v2981_v44, %v2860_v3  ;;  %v10164_v3 = vld [vmem:[#allocation33_spill] sm:$0xff] }
 0x342   : > { %3547 = vrot.lane.b32.xlu2 %v7752_v58, %s5587_s28  ;;  %3545 = vrot.lane.b32.xlu1 %v7759_v29, %s5587_s28 }
 0x343   : > { %3543 = vrot.lane.b32.xlu0 %v7717_v9, %s5587_s28  ;;  %v10158_v9 = vld [vmem:[#allocation14_spill] sm:$0xff] }
 0x344   : > { %v8238_v15 = vpop.permute.xlu2 %3354  ;;  %v8242_v31 = vpop.permute.xlu1 %2871  ;;  %v2904_v52 = vsel %vm2892_vm10, %v5463_v18, %v10158_v9  ;;  %v8272_v9 = vld [vmem:[%s7701_s19 + $0x60] sm:$0xff] }
 0x345   : > { %v2921_v6 = vsel %vm2909_vm11, %v2904_v52, %v10159_v32  ;;  %v10163_v52 = vld [vmem:[#allocation30_spill] sm:$0xff] }
 0x346   : > { %v8244_v10 = vpop.permute.xlu0 %2869  ;;  %v2938_v48 = vsel %vm2926_vm13, %v2921_v6, %v10161_v42  ;;  %v5464_v42 = vld [vmem:[%s7438_s29 + $0x18] sm:$0xff] }
 0x347   : > { %v2955_v32 = vsel %vm2943_vm14, %v2938_v48, %v10163_v52  ;;  %v2898_v48 = vsel %vm2892_vm10, %v5464_v42, %v10165_v50  ;;  %v5465_v42 = vld [vmem:[%s7438_s29 + $0x48] sm:$0xff]  ;;  %v10169_v50 = vld [vmem:[#allocation20_spill] sm:$0xff] }
 0x348   : > { %v2972_v6 = vsel %vm2960_vm15, %v2955_v32, %v8062_v26  ;;  %v10167_v26 = vld [vmem:[#allocation22_spill] sm:$0xff] }
 0x349   : > { %v2989_v0 = vsel %vm2977_vm0, %v2972_v6, %v8170_v12 }
 0x34a   : > { %3553 = vrot.lane.b32.xlu2 %v7811_v8, %s5587_s28  ;;  %3551 = vrot.lane.b32.xlu1 %v7818_v16, %s5587_s28  ;;  %v3006_v12 = vsel %vm2994_vm4, %v2989_v0, %v8138_v24  ;;  %v10172_v0 = vld [vmem:[#allocation43_spill] sm:$0xff] }
 0x34b   : > { %3549 = vrot.lane.b32.xlu0 %v7749_v20, %s5587_s28 }
 0x34c   : > { %v8263_v11 = vpop.permute.xlu2 %3360  ;;  %v2881_v34 = vpop.permute.xlu1 %2880 }
 0x34d   : > { %10160 = vst [vmem:[#allocation14_spill] sm:$0xff] %v8263_v11  ;;  %v2906_v11 = vsel %vm2892_vm10, %v5465_v42, %v10169_v50  ;;  %v10180_v50 = vld [vmem:[#allocation62_spill] sm:$0xff] }
 0x34e   : > { %v2879_v55 = vpop.permute.xlu0 %2878 }
 0x34f   : > { %v3015_v18 = vsel %vm10042_vm3, %v2998_v13, %v2879_v55  ;;  %v2915_v13 = vsel %vm2909_vm11, %v2898_v48, %v10167_v26 }
 0x350   : > { %5219 = vmatmul.msk.bf16.gmra.mxu0 %vm3068_vm6, %v3015_v18  ;;  %v10168_v18 = vld [vmem:[#allocation32_spill] sm:$0xff] }
 0x351   : > { %v2932_v52 = vsel %vm2926_vm13, %v2915_v13, %v10168_v18 }
 0x352   : > { %3574 = vrot.lane.b32.xlu2 %v10164_v3, %s5579_s24  ;;  %3557 = vrot.lane.b32.xlu1 %v8272_v9, %s5587_s28  ;;  %v3182_v3 = vld [vmem:[%s7701_s19 + $0x68] sm:$0x3]  ;;  %v2949_v48 = vsel %vm2943_vm14, %v2932_v52, %v10170_v36 }
 0x353   : > { %3555 = vrot.lane.b32.xlu0 %v7804_v17, %s5587_s28  ;;  %v3560_v26 = vunpack.c.l.b16 %v3182_v3  ;;  %v2966_v24 = vsel %vm2960_vm15, %v2949_v48, %v10171_v27  ;;  %v10176_v52 = vld [vmem:[#allocation39_spill] sm:$0xff] }
 0x354   : > { %v8290_v44 = vpop.permute.xlu2 %3366  ;;  %v2887_v55 = vpop.permute.xlu1 %2886  ;;  %v2983_v13 = vsel %vm2977_vm0, %v2966_v24, %v8145_v33  ;;  %v8329_v33 = vshll.u32 %v8272_v9, 16 }
 0x355   : > { %10166 = vst [vmem:[#allocation24_spill] sm:$0xff] %v8290_v44  ;;  %v3023_v6 = vsel %vm10042_vm3, %v3006_v12, %v2887_v55  ;;  %v10173_v55 = vld [vmem:[#allocation45_spill] sm:$0xff]  ;;  %v8326_v42 = vpack.c.b16 %v3560_v26, %v3560_v26  ;;  %v3000_v24 = vsel %vm2994_vm4, %v2983_v13, %v8103_v30  ;;  %v8340_v26 = vshrl.u32 %v8272_v9, 16  ;;  %v10185_v13 = vld [vmem:[#allocation51_spill] sm:$0xff] }
 0x356   : > { %v8298_v32 = vpop.permute.xlu0 %2884  ;;  %5223 = vmatmul.msk.bf16.vlgmr.msra.gmra.mxu3 %vm3068_vm6, %v3023_v6  ;;  %v10174_v12 = vld [vmem:[#allocation17_spill] sm:$0xff]  ;;  %v10175_v6 = vld [vmem:[#allocation47_spill] sm:$0xff]  ;;  %10179 = vst [vmem:[#allocation30_spill] sm:$0xff] %v8329_v33 }
 0x357   : > { %v2923_v18 = vsel %vm2909_vm11, %v2906_v11, %v10174_v12  ;;  %10178 = vst [vmem:[#allocation59_spill] sm:$0xff] %v8326_v42  ;;  %v3017_v12 = vsel %vm10042_vm3, %v3000_v24, %v2881_v34  ;;  %v10184_v34 = vld [vmem:[#allocation50_spill] sm:$0xff] }
 0x358   : > { %v2940_v27 = vsel %vm2926_vm13, %v2923_v18, %v10176_v52  ;;  %10182 = vst [vmem:[#allocation33_spill] sm:$0xff] %v8340_v26  ;;  %v3567_v52 = vrot.slane %v8329_v33, 1 }
 0x359   : > { %v2957_v48 = vsel %vm2943_vm14, %v2940_v27, %v10180_v50  ;;  %v10183_v27 = vld [vmem:[#allocation18_spill] sm:$0xff] }
 0x35a   : > { %3580 = vrot.lane.b32.xlu2 %v10172_v0, %s5579_s24  ;;  %3578 = vrot.lane.b32.xlu1 %v10173_v55, %s5579_s24  ;;  %v2974_v18 = vsel %vm2960_vm15, %v2957_v48, %v10181_v41  ;;  %v2900_v50 = vsel %vm2892_vm10, %v5466_v22, %v10183_v27  ;;  %v10186_v48 = vld [vmem:[#allocation52_spill] sm:$0xff] }
 0x35b   : > { %3576 = vrot.lane.b32.xlu0 %v10175_v6, %s5579_s24  ;;  %v2991_v30 = vsel %vm2977_vm0, %v2974_v18, %v8166_v40  ;;  %v3568_v40 = vor.u32 %v3567_v52, %v8340_v26  ;;  %v10191_v52 = vld [vmem:[#allocation49_spill] sm:$0xff] }
 0x35c   : > { %v8320_v36 = vpop.permute.xlu2 %3396  ;;  %v8324_v3 = vpop.permute.xlu1 %3352  ;;  %v3008_v41 = vsel %vm2994_vm4, %v2991_v30, %v8244_v10  ;;  %v10189_v10 = vld [vmem:[#allocation31_spill] sm:$0xff] }
 0x35d   : > { %10177 = vst [vmem:[#allocation42_spill] sm:$0xff] %v8324_v3  ;;  %v10015_v3 = vshll.u32 %v8326_v42, 16  ;;  %v3025_v44 = vsel %vm10042_vm3, %v3008_v41, %v8223_v47 }
 0x35e   : > { %v2891_v11 = vpop.permute.xlu0 %2890 }
 0x35f   : > { %v3572_v18 = vrot.slane %v10015_v3, 1  ;;  %v10192_v3 = vld [vmem:[#allocation56_spill] sm:$0xff] }
 0x360   : > { %5220 = vmatmul.msk.bf16.gmra.mxu0 %vm3068_vm6, %v3017_v12  ;;  %v10188_v12 = vld [vmem:[#allocation15_spill] sm:$0xff] }
 0x361   : > { %v2917_v22 = vsel %vm2909_vm11, %v2900_v50, %v10188_v12  ;;  %v8376_v50 = vsel %vm2596_vm1, %v3568_v40, %v3572_v18 }
 0x362   : > { %3586 = vrot.lane.b32.xlu2 %v10184_v34, %s5579_s24  ;;  %3584 = vrot.lane.b32.xlu1 %v10185_v13, %s5579_s24  ;;  %v2934_v30 = vsel %vm2926_vm13, %v2917_v22, %v10189_v10  ;;  %v5467_v22 = vld [vmem:[%s7438_s29 + $0x54] sm:$0xff]  ;;  %v10193_v10 = vld [vmem:[#allocation19_spill] sm:$0xff] }
 0x363   : > { %3582 = vrot.lane.b32.xlu0 %v10186_v48, %s5579_s24  ;;  %v2908_v7 = vsel %vm2892_vm10, %v5467_v22, %v10193_v10  ;;  %v10200_v22 = vld [vmem:[#allocation61_spill] sm:$0xff]  ;;  %v10201_v10 = vld [vmem:[#allocation63_spill] sm:$0xff] }
 0x364   : > { %v8357_v24 = vpop.permute.xlu2 %3402  ;;  %v8361_v27 = vpop.permute.xlu1 %3358 }
 0x365   : > { %10187 = vst [vmem:[#allocation16_spill] sm:$0xff] %v8357_v24  ;;  %v2951_v24 = vsel %vm2943_vm14, %v2934_v30, %v10190_v45  ;;  %v10194_v45 = vld [vmem:[#allocation57_spill] sm:$0xff] }
 0x366   : > { %v8368_v14 = vpop.permute.xlu0 %3356  ;;  %5224 = vmatmul.msk.bf16.gmra.mxu3 %vm3068_vm6, %v3025_v44  ;;  %v2968_v12 = vsel %vm2960_vm15, %v2951_v24, %v10191_v52  ;;  %v10195_v44 = vld [vmem:[#allocation27_spill] sm:$0xff] }
 0x367   : > { %v2985_v47 = vsel %vm2977_vm0, %v2968_v12, %v8142_v4  ;;  %v2925_v41 = vsel %vm2909_vm11, %v2908_v7, %v10195_v44  ;;  %v10199_v4 = vld [vmem:[#allocation23_spill] sm:$0xff]  ;;  %v8416_v44 = vrot.slane %v8326_v42, 1 }
 0x368   : > { %v3002_v24 = vsel %vm2994_vm4, %v2985_v47, %v8227_v59  ;;  %v2942_v52 = vsel %vm2926_vm13, %v2925_v41, %v10199_v4  ;;  %v10202_v47 = vld [vmem:[#allocation64_spill] sm:$0xff]  ;;  %v10204_v41 = vld [vmem:[#allocation13_spill] sm:$0xff] }
 0x369   : > { %v3019_v12 = vsel %vm10042_vm3, %v3002_v24, %v8195_v35  ;;  %v2959_v7 = vsel %vm2943_vm14, %v2942_v52, %v10200_v22  ;;  %10203 = vst [vmem:[#allocation26_spill] sm:$0xff] %v8416_v44  ;;  %v5468_v35 = vld [vmem:[%s7438_s29 + $0x30] sm:$0xff]  ;;  %s5589_s29 = smov 36  }
 0x36a   : > { %3595 = vrot.lane.b32.xlu2 %v10192_v3, %s5588_s26  ;;  %3593 = vrot.lane.b32.xlu1 %v10194_v45, %s5588_s26  ;;  %v2976_v59 = vsel %vm2960_vm15, %v2959_v7, %v8112_v60  ;;  %v3590_v45 = vrot.slane %v8272_v9, 1  ;;  %v2902_v24 = vsel %vm2892_vm10, %v5468_v35, %v10204_v41  ;;  %v10205_v60 = vld [vmem:[#allocation65_spill] sm:$0xff] }
 0x36b   : > { %3588 = vrot.lane.b32.xlu0 %v8376_v50, %s5579_s24  ;;  %v2993_v4 = vsel %vm2977_vm0, %v2976_v59, %v8054_v19  ;;  %v10208_v59 = vld [vmem:[#allocation21_spill] sm:$0xff] }
 0x36c   : > { %v8395_v40 = vpop.permute.xlu2 %3481  ;;  %v8397_v18 = vpop.permute.xlu1 %3364  ;;  %v3010_v7 = vsel %vm2994_vm4, %v2993_v4, %v8242_v31  ;;  %v8439_v19 = vsel %vm2709_vm2, %v3590_v45, %v8416_v44  ;;  %v10210_v45 = vld [vmem:[#allocation68_spill] sm:$0xff] }
 0x36d   : > { %10196 = vst [vmem:[#allocation22_spill] sm:$0xff] %v8395_v40  ;;  %v3027_v35 = vsel %vm10042_vm3, %v3010_v7, %v2891_v11 }
 0x36e   : > { %10197 = vst [vmem:[#allocation32_spill] sm:$0xff] %v8397_v18  ;;  %v8399_v30 = vpop.permute.xlu0 %3362  ;;  %v10209_v18 = vld [vmem:[#allocation54_spill] sm:$0xff] }
 0x36f   : > { %10198 = vst [vmem:[#allocation20_spill] sm:$0xff] %v8399_v30 }
 0x370   : > { %5221 = vmatmul.msk.bf16.gmra.mxu0 %vm3068_vm6, %v3019_v12  ;;  %v10206_v12 = vld [vmem:[#allocation25_spill] sm:$0xff] }
 0x371   : > { %v2919_v22 = vsel %vm2909_vm11, %v2902_v24, %v10206_v12 }
 0x372   : > { %3601 = vrot.lane.b32.xlu2 %v10201_v10, %s5588_s26  ;;  %3599 = vrot.lane.b32.xlu1 %v10202_v47, %s5588_s26  ;;  %v2936_v41 = vsel %vm2926_vm13, %v2919_v22, %v10208_v59 }
 0x373   : > { %3597 = vrot.lane.b32.xlu0 %v10205_v60, %s5588_s26  ;;  %v2953_v24 = vsel %vm2943_vm14, %v2936_v41, %v10209_v18  ;;  %v3610_v41 = vrot.slane %v8329_v33, 2 }
 0x374   : > { %v8425_v52 = vpop.permute.xlu2 %3487  ;;  %v8431_v40 = vpop.permute.xlu1 %3394  ;;  %v2970_v31 = vsel %vm2960_vm15, %v2953_v24, %v8070_v61 }
 0x375   : > { %v2987_v4 = vsel %vm2977_vm0, %v2970_v31, %v10210_v45  ;;  %v10213_v31 = vshll.u32 %v8326_v42, 16 }
 0x376   : > { %v8433_v30 = vpop.permute.xlu0 %3392  ;;  %5225 = vmatmul.msk.bf16.gmra.mxu3 %vm3068_vm6, %v3027_v35  ;;  %v3004_v18 = vsel %vm2994_vm4, %v2987_v4, %v8225_v53  ;;  %v8475_v53 = vshrl.u32 %v8326_v42, 16 }
 0x377   : > { %10207 = vst [vmem:[#allocation69_spill] sm:$0xff] %v8433_v30  ;;  %v3021_v22 = vsel %vm10042_vm3, %v3004_v18, %v8298_v32  ;;  %v3609_v32 = vrot.slane %v8340_v26, 1  ;;  %v3615_v45 = vrot.slane %v10213_v31, 2  ;;  %vm3954_vm3 = vcmask 359424  }
 0x378   : > { %v8484_v24 = vrot.slane %v8475_v53, 1 }
 0x379   : > { %v3611_v4 = vor.u32 %v3610_v41, %v3609_v32 }
 0x37a   : > { %3607 = vrot.lane.b32.xlu2 %v8439_v19, %s5588_s26  ;;  %3605 = vrot.lane.b32.xlu1 %v8026_v1, %s5588_s26  ;;  %10212 = vst [vmem:[#allocation45_spill] sm:$0xff] %v8484_v24  ;;  %v3616_v18 = vor.u32 %v3615_v45, %v8484_v24 }
 0x37b   : > { %3603 = vrot.lane.b32.xlu0 %v8031_v62, %s5588_s26 }
 0x37c   : > { %v8453_v11 = vpop.permute.xlu2 %3493  ;;  %v8457_v12 = vpop.permute.xlu1 %3400  ;;  %v8502_v31 = vsel %vm3408_vm8, %v3611_v4, %v3616_v18 }
 0x37d   : > { %10211 = vst [vmem:[#allocation43_spill] sm:$0xff] %v8457_v12  ;;  %v3635_v12 = vrot.slane %v8326_v42, 2 }
 0x37e   : > { %v8461_v61 = vpop.permute.xlu0 %3398 }
 0x380   : > { %5222 = vmatmul.msk.bf16.gmra.mxu0 %vm3068_vm6, %v3021_v22  ;;  %vm10044_vm6 = vcmask 293888  }
 0x382   : > { %3622 = vrot.lane.b32.xlu2 %v8065_v46, %s5580_s25  ;;  %3620 = vrot.lane.b32.xlu1 %v8057_v5, %s5580_s25 }
 0x383   : > { %3618 = vrot.lane.b32.xlu0 %v8094_v37, %s5580_s25 }
 0x384   : > { %v8472_v7 = vpop.permute.xlu2 %3524  ;;  %v8477_v35 = vpop.permute.xlu1 %3406 }
 0x386   : > { %v8479_v59 = vpop.permute.xlu0 %3404 }
 0x38a   : > { %3628 = vrot.lane.b32.xlu2 %v8115_v38, %s5580_s25  ;;  %3626 = vrot.lane.b32.xlu1 %v8118_v28, %s5580_s25 }
 0x38b   : > { %3624 = vrot.lane.b32.xlu0 %v8121_v63, %s5580_s25 }
 0x38c   : > { %v8494_v37 = vpop.permute.xlu2 %3530  ;;  %v8497_v22 = vpop.permute.xlu1 %3485 }
 0x38d   : > { %10214 = vst [vmem:[#allocation17_spill] sm:$0xff] %v8494_v37 }
 0x38e   : > { %v8499_v30 = vpop.permute.xlu0 %3483 }
 0x392   : > { %3637 = vrot.lane.b32.xlu2 %v8148_v23, %s5589_s29  ;;  %3632 = vrot.lane.b32.xlu1 %v8502_v31, %s5580_s25 }
 0x393   : > { %3630 = vrot.lane.b32.xlu0 %v8152_v54, %s5580_s25 }
 0x394   : > { %v8509_v37 = vpop.permute.xlu2 %3536  ;;  %v8511_v32 = vpop.permute.xlu1 %3491 }
 0x395   : > { %10215 = vst [vmem:[#allocation47_spill] sm:$0xff] %v8511_v32 }
 0x396   : > { %v8513_v41 = vpop.permute.xlu0 %3489 }
 0x397   : > { %10216 = vst [vmem:[#allocation39_spill] sm:$0xff] %v8513_v41  ;;  %v3634_v41 = vrot.slane %v8272_v9, 2 }
 0x39a   : > { %3643 = vrot.lane.b32.xlu2 %v8173_v39, %s5589_s29  ;;  %3641 = vrot.lane.b32.xlu1 %v8178_v51, %s5589_s29 }
 0x39b   : > { %3639 = vrot.lane.b32.xlu0 %v8183_v56, %s5589_s29 }
 0x39c   : > { %v8518_v45 = vpop.permute.xlu2 %3547  ;;  %v8520_v23 = vpop.permute.xlu1 %3522 }
 0x39d   : > { %10217 = vst [vmem:[#allocation62_spill] sm:$0xff] %v8520_v23  ;;  %v8536_v23 = vsel %vm3497_vm9, %v3634_v41, %v3635_v12  ;;  %v8562_v41 = vld [vmem:[%s7701_s19 + $0x6c] sm:$0xff] }
 0x39e   : > { %v8522_v4 = vpop.permute.xlu0 %3495 }
 0x3a2   : > { %3649 = vrot.lane.b32.xlu2 %v8207_v57, %s5589_s29  ;;  %3647 = vrot.lane.b32.xlu1 %v8211_v25, %s5589_s29 }
 0x3a3   : > { %3645 = vrot.lane.b32.xlu0 %v8215_v49, %s5589_s29 }
 0x3a4   : > { %v8527_v18 = vpop.permute.xlu2 %3553  ;;  %v8529_v32 = vpop.permute.xlu1 %3528 }
 0x3a5   : > { %10218 = vst [vmem:[#allocation53_spill] sm:$0xff] %v8527_v18 }
 0x3a6   : > { %v8533_v33 = vpop.permute.xlu0 %3526 }
 0x3aa   : > { %3660 = vrot.lane.b32.xlu2 %v7752_v58, %s5581_s14  ;;  %3658 = vrot.lane.b32.xlu1 %v7759_v29, %s5581_s14 }
 0x3ab   : > { %3651 = vrot.lane.b32.xlu0 %v8536_v23, %s5589_s29  ;;  %s5590_s29 = smov 44  }
 0x3ac   : > { %v8543_v18 = vpop.permute.xlu2 %3574  ;;  %v8545_v26 = vpop.permute.xlu1 %3534 }
 0x3ad   : > { %10219 = vst [vmem:[#allocation18_spill] sm:$0xff] %v8543_v18 }
 0x3ae   : > { %10220 = vst [vmem:[#allocation50_spill] sm:$0xff] %v8545_v26  ;;  %v8547_v24 = vpop.permute.xlu0 %3532 }
 0x3af   : > { %10221 = vst [vmem:[#allocation51_spill] sm:$0xff] %v8547_v24 }
 0x3b2   : > { %3666 = vrot.lane.b32.xlu2 %v7811_v8, %s5581_s14  ;;  %3664 = vrot.lane.b32.xlu1 %v7818_v16, %s5581_s14  ;;  %v3185_v8 = vld [vmem:[%s7701_s19 + $0x74] sm:$0x3] }
 0x3b3   : > { %3662 = vrot.lane.b32.xlu0 %v7749_v20, %s5581_s14  ;;  %v3675_v18 = vunpack.c.l.b16 %v3185_v8  ;;  %v8592_v8 = vshrl.u32 %v8562_v41, 16 }
 0x3b4   : > { %v8555_v58 = vpop.permute.xlu2 %3580  ;;  %v8557_v29 = vpop.permute.xlu1 %3545 }
 0x3b5   : > { %v8582_v42 = vpack.c.b16 %v3675_v18, %v3675_v18  ;;  %10228 = vst [vmem:[#allocation19_spill] sm:$0xff] %v8592_v8 }
 0x3b6   : > { %v8559_v12 = vpop.permute.xlu0 %3543 }
 0x3b7   : > { %10222 = vst [vmem:[#allocation52_spill] sm:$0xff] %v8559_v12 }
 0x3ba   : > { %3672 = vrot.lane.b32.xlu2 %v8562_v41, %s5581_s14  ;;  %3670 = vrot.lane.b32.xlu1 %v8272_v9, %s5581_s14 }
 0x3bb   : > { %3668 = vrot.lane.b32.xlu0 %v7804_v17, %s5581_s14  ;;  %v8585_v17 = vshll.u32 %v8562_v41, 16  ;;  %s10230_s14 = smov 48  }
 0x3bc   : > { %v8570_v16 = vpop.permute.xlu2 %3586  ;;  %v8572_v20 = vpop.permute.xlu1 %3551 }
 0x3bd   : > { %10223 = vst [vmem:[#allocation15_spill] sm:$0xff] %v8570_v16 }
 0x3be   : > { %10224 = vst [vmem:[#allocation31_spill] sm:$0xff] %v8572_v20  ;;  %v8575_v24 = vpop.permute.xlu0 %3549 }
 0x3bf   : > { %10225 = vst [vmem:[#allocation55_spill] sm:$0xff] %v8585_v17 }
 0x3c2   : > { %3693 = vrot.lane.b32.xlu2 %v10172_v0, %s5590_s29  ;;  %3691 = vrot.lane.b32.xlu1 %v10173_v55, %s5590_s29  ;;  %v3682_v0 = vrot.slane %v8585_v17, 1  ;;  %v3685_v55 = vshll.u32 %v8582_v42, 16 }
 0x3c3   : > { %3689 = vrot.lane.b32.xlu0 %v10175_v6, %s5590_s29 }
 0x3c4   : > { %v8580_v12 = vpop.permute.xlu2 %3595  ;;  %v8587_v44 = vpop.permute.xlu1 %3557  ;;  %v3683_v18 = vor.u32 %v3682_v0, %v8592_v8  ;;  %v3687_v16 = vrot.slane %v3685_v55, 1 }
 0x3c5   : > { %10226 = vst [vmem:[#allocation49_spill] sm:$0xff] %v8587_v44 }
 0x3c6   : > { %v8589_v20 = vpop.permute.xlu0 %3555  ;;  %v8607_v26 = vsel %vm2596_vm1, %v3683_v18, %v3687_v16  ;;  %v8643_v18 = vrot.slane %v8582_v42, 1 }
 0x3c7   : > { %10227 = vst [vmem:[#allocation56_spill] sm:$0xff] %v8589_v20 }
 0x3c8   : > { %10235 = vst [vmem:[#allocation64_spill] sm:$0xff] %v8643_v18 }
 0x3ca   : > { %3699 = vrot.lane.b32.xlu2 %v10184_v34, %s5590_s29  ;;  %3697 = vrot.lane.b32.xlu1 %v10185_v13, %s5590_s29 }
 0x3cb   : > { %3695 = vrot.lane.b32.xlu0 %v10186_v48, %s5590_s29 }
 0x3cc   : > { %v8599_v6 = vpop.permute.xlu2 %3601  ;;  %v8602_v44 = vpop.permute.xlu1 %3578 }
 0x3cd   : > { %10229 = vst [vmem:[#allocation57_spill] sm:$0xff] %v8599_v6 }
 0x3ce   : > { %v8604_v20 = vpop.permute.xlu0 %3576 }
 0x3d2   : > { %3708 = vrot.lane.b32.xlu2 %v10192_v3, %s10230_s14  ;;  %3703 = vrot.lane.b32.xlu1 %v8607_v26, %s5590_s29 }
 0x3d3   : > { %3701 = vrot.lane.b32.xlu0 %v8376_v50, %s5590_s29  ;;  %s5591_s29 = smov 52  }
 0x3d4   : > { %v8613_v34 = vpop.permute.xlu2 %3607  ;;  %v8615_v13 = vpop.permute.xlu1 %3584 }
 0x3d5   : > { %10231 = vst [vmem:[#allocation27_spill] sm:$0xff] %v8615_v13 }
 0x3d6   : > { %v8617_v48 = vpop.permute.xlu0 %3582 }
 0x3d7   : > { %10232 = vst [vmem:[#allocation23_spill] sm:$0xff] %v8617_v48  ;;  %v3725_v48 = vrot.slane %v8585_v17, 2 }
 0x3da   : > { %3714 = vrot.lane.b32.xlu2 %v10201_v10, %s10230_s14  ;;  %3712 = vrot.lane.b32.xlu1 %v10202_v47, %s10230_s14 }
 0x3db   : > { %3710 = vrot.lane.b32.xlu0 %v10205_v60, %s10230_s14  ;;  %v3705_v60 = vrot.slane %v8562_v41, 1 }
 0x3dc   : > { %v8625_v3 = vpop.permute.xlu2 %3622  ;;  %v8627_v16 = vpop.permute.xlu1 %3593 }
 0x3dd   : > { %10233 = vst [vmem:[#allocation61_spill] sm:$0xff] %v8627_v16  ;;  %v8649_v13 = vsel %vm2709_vm2, %v3705_v60, %v8643_v18  ;;  %v3724_v60 = vrot.slane %v8592_v8, 1 }
 0x3de   : > { %v8629_v0 = vpop.permute.xlu0 %3588  ;;  %10236 = vst [vmem:[#allocation13_spill] sm:$0xff] %v8649_v13 }
 0x3df   : > { %v3726_v18 = vor.u32 %v3725_v48, %v3724_v60 }
 0x3e2   : > { %3720 = vrot.lane.b32.xlu2 %v8439_v19, %s10230_s14  ;;  %3718 = vrot.lane.b32.xlu1 %v8026_v1, %s10230_s14  ;;  %v8654_v1 = vshrl.u32 %v8582_v42, 16 }
 0x3e3   : > { %3716 = vrot.lane.b32.xlu0 %v8031_v62, %s10230_s14 }
 0x3e4   : > { %v8637_v10 = vpop.permute.xlu2 %3628  ;;  %v8639_v47 = vpop.permute.xlu1 %3599 }
 0x3e5   : > { %10234 = vst [vmem:[#allocation63_spill] sm:$0xff] %v8637_v10 }
 0x3e6   : > { %v8645_v16 = vpop.permute.xlu0 %3597 }
 0x3ea   : > { %3735 = vrot.lane.b32.xlu2 %v8065_v46, %s5591_s29  ;;  %3733 = vrot.lane.b32.xlu1 %v8057_v5, %s5591_s29  ;;  %v8667_v46 = vrot.slane %v8654_v1, 1  ;;  %v3730_v5 = vrot.slane %v3685_v55, 2 }
 0x3eb   : > { %3722 = vrot.lane.b32.xlu0 %v8649_v13, %s10230_s14  ;;  %s10242_s14 = smov 56  }
 0x3ec   : > { %v8658_v62 = vpop.permute.xlu2 %3637  ;;  %v8660_v10 = vpop.permute.xlu1 %3605  ;;  %v3731_v13 = vor.u32 %v3730_v5, %v8667_v46 }
 0x3ed   : > { %10237 = vst [vmem:[#allocation65_spill] sm:$0xff] %v8658_v62 }
 0x3ee   : > { %10238 = vst [vmem:[#allocation25_spill] sm:$0xff] %v8660_v10  ;;  %v8662_v6 = vpop.permute.xlu0 %3603  ;;  %v8680_v17 = vsel %vm3408_vm8, %v3726_v18, %v3731_v13 }
 0x3ef   : > { %10239 = vst [vmem:[#allocation21_spill] sm:$0xff] %v8662_v6 }
 0x3f2   : > { %3741 = vrot.lane.b32.xlu2 %v8115_v38, %s5591_s29  ;;  %3739 = vrot.lane.b32.xlu1 %v8118_v28, %s5591_s29 }
 0x3f3   : > { %3737 = vrot.lane.b32.xlu0 %v8121_v63, %s5591_s29 }
 0x3f4   : > { %v8673_v62 = vpop.permute.xlu2 %3643  ;;  %v8675_v6 = vpop.permute.xlu1 %3620 }
 0x3f6   : > { %v8677_v8 = vpop.permute.xlu0 %3618 }
 0x3f7   : > { %10240 = vst [vmem:[#allocation54_spill] sm:$0xff] %v8677_v8  ;;  %v5470_v8 = vld [vmem:[%s7701_s19 + $0x18] sm:$0xff] }
 0x3fa   : > { %3747 = vrot.lane.b32.xlu2 %v8680_v17, %s5591_s29  ;;  %3745 = vrot.lane.b32.xlu1 %v8502_v31, %s5591_s29 }
 0x3fb   : > { %3743 = vrot.lane.b32.xlu0 %v8152_v54, %s5591_s29  ;;  %s5592_s29 = smov 60  }
 0x3fc   : > { %v8685_v38 = vpop.permute.xlu2 %3649  ;;  %v8687_v28 = vpop.permute.xlu1 %3626 }
 0x3fd   : > { %10241 = vst [vmem:[#allocation68_spill] sm:$0xff] %v8687_v28  ;;  %v10293_v28 = vld [vmem:[#allocation46_spill] sm:$0xff] }
 0x3fe   : > { %v8689_v63 = vpop.permute.xlu0 %3624 }
 0x402   : > { %3756 = vrot.lane.b32.xlu2 %v8173_v39, %s10242_s14  ;;  %3754 = vrot.lane.b32.xlu1 %v8178_v51, %s10242_s14  ;;  %v3749_v39 = vrot.slane %v8562_v41, 2 }
 0x403   : > { %3752 = vrot.lane.b32.xlu0 %v8183_v56, %s10242_s14  ;;  %v3750_v56 = vrot.slane %v8582_v42, 2 }
 0x404   : > { %v8697_v55 = vpop.permute.xlu2 %3660  ;;  %v8699_v13 = vpop.permute.xlu1 %3632 }
 0x405   : > { %v3751_v60 = vsel %vm3497_vm9, %v3749_v39, %v3750_v56  ;;  %v3795_v39 = vsel %vm3789_vm7, %v5470_v8, %v8368_v14  ;;  %v8731_v56 = vld [vmem:[%s7701_s19 + $0x48] sm:$0xff]  ;;  %vm3888_vm9 = vcmask 228352  }
 0x406   : > { %v8701_v54 = vpop.permute.xlu0 %3630 }
 0x407   : > { %10243 = vst [vmem:[#allocation78_spill] sm:$0xff] %v8701_v54 }
 0x40a   : > { %3762 = vrot.lane.b32.xlu2 %v8207_v57, %s10242_s14  ;;  %3760 = vrot.lane.b32.xlu1 %v8211_v25, %s10242_s14  ;;  %v5469_v57 = vld [vmem:[%s7701_s19 + $0x24] sm:$0xff] }
 0x40b   : > { %3758 = vrot.lane.b32.xlu0 %v8215_v49, %s10242_s14 }
 0x40c   : > { %v8709_v51 = vpop.permute.xlu2 %3666  ;;  %v3642_v48 = vpop.permute.xlu1 %3641 }
 0x40d   : > { %10244 = vst [vmem:[#allocation79_spill] sm:$0xff] %v8709_v51  ;;  %v8745_v51 = vld [vmem:[%s7701_s19 + $0x30] sm:$0xff] }
 0x40e   : > { %v8713_v18 = vpop.permute.xlu0 %3639  ;;  %10248 = vst [vmem:[#allocation83_spill] sm:$0xff] %v8745_v51 }
 0x412   : > { %3773 = vrot.lane.b32.xlu2 %v5469_v57, %s5592_s29  ;;  %3766 = vrot.lane.b32.xlu1 %v3751_v60, %s10242_s14  ;;  %v8738_v60 = vld [vmem:[%s7701_s19 + $0x3c] sm:$0xff] }
 0x413   : > { %3764 = vrot.lane.b32.xlu0 %v8536_v23, %s10242_s14  ;;  %v3811_v23 = vsel %vm2892_vm10, %v3795_v39, %v8320_v36  ;;  %10247 = vst [vmem:[#allocation82_spill] sm:$0xff] %v8738_v60  ;;  %s10251_s14 = smov 4  }
 0x414   : > { %v8721_v25 = vpop.permute.xlu2 %3672  ;;  %v8723_v49 = vpop.permute.xlu1 %3647 }
 0x415   : > { %10245 = vst [vmem:[#allocation80_spill] sm:$0xff] %v8723_v49  ;;  %v3828_v49 = vsel %vm3822_vm12, %v3811_v23, %v8497_v22 }
 0x416   : > { %v8725_v5 = vpop.permute.xlu0 %3645  ;;  %v3844_v8 = vsel %vm2909_vm11, %v3828_v49, %v8533_v33  ;;  %v5474_v33 = vld [vmem:[%s7701_s19 + $0x54] sm:$0xff] }
 0x417   : > { %10246 = vst [vmem:[#allocation81_spill] sm:$0xff] %v8725_v5  ;;  %v3861_v5 = vsel %vm3855_vm5, %v3844_v8, %v8518_v45 }
 0x418   : > { %v3877_v22 = vsel %vm2926_vm13, %v3861_v5, %v8602_v44 }
 0x419   : > { %v3894_v23 = vsel %vm3888_vm9, %v3877_v22, %v8645_v16  ;;  %v5475_v16 = vld [vmem:[%s7701_s19 + $0xc] sm:$0xff] }
 0x41a   : > { %3779 = vrot.lane.b32.xlu2 %v8731_v56, %s5592_s29  ;;  %3777 = vrot.lane.b32.xlu1 %v8738_v60, %s5592_s29  ;;  %v3910_v44 = vsel %vm2943_vm14, %v3894_v23, %v8625_v3  ;;  %v3793_v5 = vsel %vm3789_vm7, %v5475_v16, %v8238_v15  ;;  %v8783_v3 = vld [vmem:[%s7701_s19 + $0x78] sm:$0xff] }
 0x41b   : > { %3775 = vrot.lane.b32.xlu0 %v8745_v51, %s5592_s29  ;;  %v3927_v8 = vsel %vm10044_vm6, %v3910_v44, %v3642_v48  ;;  %v10252_v48 = vshrl.u32 %v7780_v43, 16 }
 0x41c   : > { %v3694_v14 = vpop.permute.xlu2 %3693  ;;  %v8751_v36 = vpop.permute.xlu1 %3658 }
 0x41d   : > { %10249 = vst [vmem:[#allocation84_spill] sm:$0xff] %v8751_v36  ;;  %v3809_v36 = vsel %vm2892_vm10, %v3793_v5, %v8431_v40 }
 0x41e   : > { %v8753_v39 = vpop.permute.xlu0 %3651  ;;  %v3826_v60 = vsel %vm3822_vm12, %v3809_v36, %v8499_v30 }
 0x41f   : > { %v3842_v15 = vsel %vm2909_vm11, %v3826_v60, %v8472_v7  ;;  %v3797_v7 = vsel %vm3789_vm7, %v5469_v57, %v8361_v27  ;;  %v10255_v27 = vld [vmem:[#allocation72_spill] sm:$0xff]  ;;  %v8836_v57 = vshll.u32 %v8783_v3, 16 }
 0x420   : > { %v3859_v40 = vsel %vm3855_vm5, %v3842_v15, %v8557_v29  ;;  %v3813_v60 = vsel %vm2892_vm10, %v3797_v7, %v8461_v61 }
 0x422   : > { %3785 = vrot.lane.b32.xlu2 %v8562_v41, %s5592_s29  ;;  %3783 = vrot.lane.b32.xlu1 %v8272_v9, %s5592_s29 }
 0x423   : > { %3781 = vrot.lane.b32.xlu0 %v5474_v33, %s5592_s29 }
 0x424   : > { %v8767_v49 = vpop.permute.xlu2 %3699  ;;  %v8771_v45 = vpop.permute.xlu1 %3664 }
 0x425   : > { %10250 = vst [vmem:[#allocation85_spill] sm:$0xff] %v8767_v49 }
 0x426   : > { %v3663_v22 = vpop.permute.xlu0 %3662 }
 0x427   : > { %v3943_v49 = vsel %vm2960_vm15, %v3927_v8, %v3663_v22  ;;  %v8822_v8 = vsel %vm3822_vm12, %v3813_v60, %v8425_v52  ;;  %v10257_v22 = vld [vmem:[#allocation24_spill] sm:$0xff] }
 0x428   : > { %v8786_v23 = vsel %vm3954_vm3, %v3943_v49, %v3694_v14  ;;  %v3875_v14 = vsel %vm2926_vm13, %v3859_v40, %v8604_v20  ;;  %v3188_v49 = vld [vmem:[%s7701_s19 + $0x80] sm:$0x3]  ;;  %v3846_v61 = vsel %vm2909_vm11, %v8822_v8, %v8529_v32  ;;  %v3805_v52 = vsel %vm3789_vm7, %v5474_v33, %v10257_v22  ;;  %v10258_v40 = vld [vmem:[#allocation32_spill] sm:$0xff] }
 0x429   : > { %v3892_v29 = vsel %vm3888_vm9, %v3875_v14, %v8580_v12  ;;  %v4038_v16 = vunpack.c.l.b16 %v3188_v49  ;;  %v10256_v12 = vld [vmem:[#allocation71_spill] sm:$0xff]  ;;  %v3863_v15 = vsel %vm3855_vm5, %v3846_v61, %v8575_v24  ;;  %v3803_v14 = vsel %vm3789_vm7, %v8731_v56, %v10258_v40  ;;  %v10261_v61 = vld [vmem:[#allocation50_spill] sm:$0xff] }
 0x42a   : > { %4056 = vrot.lane.b32.xlu2 %v8060_v21, %s10251_s14  ;;  %4054 = vrot.lane.b32.xlu1 %v10252_v48, %s10251_s14  ;;  %v3908_v5 = vsel %vm2943_vm14, %v3892_v29, %v8675_v6  ;;  %v3821_v49 = vsel %vm2892_vm10, %v3805_v52, %v8477_v35  ;;  %v3819_v33 = vsel %vm2892_vm10, %v3803_v14, %v8479_v59  ;;  %v4045_v56 = vrot.slane %v8836_v57, 1  ;;  %v10262_v52 = vld [vmem:[#allocation49_spill] sm:$0xff] }
 0x42b   : > { %3787 = vrot.lane.b32.xlu0 %v8783_v3, %s5592_s29  ;;  %v3925_v20 = vsel %vm10044_vm6, %v3908_v5, %v8713_v18  ;;  %v8833_v18 = vpack.c.b16 %v4038_v16, %v4038_v16  ;;  %v8856_v29 = vsel %vm3822_vm12, %v3821_v49, %v8522_v4  ;;  %v8861_v16 = vshrl.u32 %v8783_v3, 16  ;;  %s5310_s29 = sshll.u32 %s5559_s13, 5 }
 0x42c   : > { %v8799_v30 = vpop.permute.xlu2 %3708  ;;  %v8803_v36 = vpop.permute.xlu1 %3670  ;;  %v3941_v32 = vsel %vm2960_vm15, %v3925_v20, %v8697_v55  ;;  %v3879_v55 = vsel %vm2926_vm13, %v3863_v15, %v8555_v58  ;;  %v3854_v4 = vsel %vm2909_vm11, %v8856_v29, %v8509_v37  ;;  %v8876_v20 = vsel %vm3822_vm12, %v3819_v33, %v8453_v11 }
 0x42d   : > { %10253 = vst [vmem:[#allocation86_spill] sm:$0xff] %v8799_v30  ;;  %v10045_v35 = vshll.u32 %v8833_v18, 16  ;;  %v3896_v5 = vsel %vm3888_vm9, %v3879_v55, %v8639_v47  ;;  %v3852_v22 = vsel %vm2909_vm11, %v8876_v20, %v10261_v61  ;;  %v3871_v15 = vsel %vm3855_vm5, %v3854_v4, %v10262_v52  ;;  %v10265_v4 = vld [vmem:[#allocation15_spill] sm:$0xff] }
 0x42e   : > { %v8806_v44 = vpop.permute.xlu0 %3668  ;;  %v3912_v59 = vsel %vm2943_vm14, %v3896_v5, %v8689_v63  ;;  %10260 = vst [vmem:[#allocation71_spill] sm:$0xff] %v8876_v20  ;;  %v4046_v37 = vor.u32 %v4045_v56, %v8861_v16  ;;  %v3887_v14 = vsel %vm2926_vm13, %v3871_v15, %v8629_v0  ;;  %v8903_v56 = vshrl.u32 %v8833_v18, 16 }
 0x42f   : > { %10254 = vst [vmem:[#allocation87_spill] sm:$0xff] %v8806_v44  ;;  %v4050_v11 = vrot.slane %v10045_v35, 1  ;;  %v3929_v49 = vsel %vm10044_vm6, %v3912_v59, %v8673_v62  ;;  %v4076_v35 = vrot.slane %v8783_v3, 1 }
 0x431   : > { %v8911_v15 = vsel %vm2596_vm1, %v4046_v37, %v4050_v11 }
 0x432   : > { %4062 = vrot.lane.b32.xlu2 %v8110_v2, %s10251_s14  ;;  %4060 = vrot.lane.b32.xlu1 %v10255_v27, %s10251_s14 }
 0x433   : > { %4058 = vrot.lane.b32.xlu0 %v10256_v12, %s10251_s14 }
 0x434   : > { %v8831_v6 = vpop.permute.xlu2 %3714  ;;  %v3692_v48 = vpop.permute.xlu1 %3691 }
 0x435   : > { %v3958_v7 = vsel %vm3954_vm3, %v3941_v32, %v3692_v48  ;;  %v10263_v32 = vld [vmem:[#allocation56_spill] sm:$0xff] }
 0x436   : > { %v8850_v60 = vpop.permute.xlu0 %3689  ;;  %v3869_v40 = vsel %vm3855_vm5, %v3852_v22, %v10263_v32  ;;  %v3904_v22 = vsel %vm3888_vm9, %v3887_v14, %v8613_v34 }
 0x437   : > { %10259 = vst [vmem:[#allocation72_spill] sm:$0xff] %v8850_v60  ;;  %v3885_v61 = vsel %vm2926_vm13, %v3869_v40, %v10265_v4  ;;  %v10278_v4 = vld [vmem:[#allocation70_spill] sm:$0xff] }
 0x438   : > { %v3902_v62 = vsel %vm3888_vm9, %v3885_v61, %v8660_v10 }
 0x439   : > { %v3918_v59 = vsel %vm2943_vm14, %v3902_v62, %v8701_v54  ;;  %v10267_v62 = vld [vmem:[#allocation60_spill] sm:$0xff] }
 0x43a   : > { %4068 = vrot.lane.b32.xlu2 %v8607_v26, %s10251_s14  ;;  %4066 = vrot.lane.b32.xlu1 %v8475_v53, %s10251_s14  ;;  %v3935_v11 = vsel %vm10044_vm6, %v3918_v59, %v8685_v38  ;;  %v10268_v38 = vrot.slane %v7780_v43, 1 }
 0x43b   : > { %4064 = vrot.lane.b32.xlu0 %v8376_v50, %s10251_s14  ;;  %v3945_v50 = vsel %vm2960_vm15, %v3929_v49, %v8771_v45  ;;  %v3920_v45 = vsel %vm2943_vm14, %v3904_v22, %v8699_v13  ;;  %v10266_v22 = vld [vmem:[#allocation58_spill] sm:$0xff] }
 0x43c   : > { %v8887_v48 = vpop.permute.xlu2 %3720  ;;  %v8898_v33 = vpop.permute.xlu1 %3697  ;;  %v3937_v49 = vsel %vm10044_vm6, %v3920_v45, %v8753_v39  ;;  %v3951_v39 = vsel %vm2960_vm15, %v3935_v11, %v8803_v36  ;;  %vm10049_vm6 = vcmask 424960   ;;  %v10270_v11 = vld [vmem:[#allocation66_spill] sm:$0xff] }
 0x43d   : > { %10264 = vst [vmem:[#allocation24_spill] sm:$0xff] %v8898_v33  ;;  %v3953_v14 = vsel %vm2960_vm15, %v3937_v49, %v8721_v25  ;;  %v10291_v33 = vld [vmem:[#allocation29_spill] sm:$0xff] }
 0x43e   : > { %v3696_v55 = vpop.permute.xlu0 %3695 }
 0x43f   : > { %v3962_v5 = vsel %vm3954_vm3, %v3945_v50, %v3696_v55 }
 0x442   : > { %4074 = vrot.lane.b32.xlu2 %v8903_v56, %s10251_s14  ;;  %4072 = vrot.lane.b32.xlu1 %v8911_v15, %s10251_s14 }
 0x443   : > { %4070 = vrot.lane.b32.xlu0 %v8654_v1, %s10251_s14 }
 0x444   : > { %v3736_v37 = vpop.permute.xlu2 %3735  ;;  %v3704_v40 = vpop.permute.xlu1 %3703 }
 0x445   : > { %v3970_v50 = vsel %vm3954_vm3, %v3953_v14, %v3704_v40  ;;  %v10271_v40 = vld [vmem:[#allocation67_spill] sm:$0xff] }
 0x446   : > { %v3702_v55 = vpop.permute.xlu0 %3701 }
 0x447   : > { %v3968_v61 = vsel %vm3954_vm3, %v3951_v39, %v3702_v55 }
 0x44a   : > { %4083 = vrot.lane.b32.xlu2 %v10266_v22, %s5577_s17  ;;  %4081 = vrot.lane.b32.xlu1 %v10267_v62, %s5577_s17 }
 0x44b   : > { %4079 = vrot.lane.b32.xlu0 %v10268_v38, %s5577_s17  ;;  %v10274_v38 = vld [vmem:[#allocation64_spill] sm:$0xff] }
 0x44c   : > { %v8942_v45 = vpop.permute.xlu2 %3741  ;;  %v3713_v25 = vpop.permute.xlu1 %3712 }
 0x44d   : > { %10269 = vst [vmem:[#allocation32_spill] sm:$0xff] %v8942_v45 }
 0x44e   : > { %v3711_v36 = vpop.permute.xlu0 %3710 }
 0x44f   : > { %v3974_v59 = vsel %vm2977_vm0, %v3958_v7, %v3711_v36  ;;  %v10275_v7 = vld [vmem:[#allocation13_spill] sm:$0xff] }
 0x450   : > { %v8946_v49 = vsel %vm10049_vm6, %v3974_v59, %v3736_v37  ;;  %v10276_v37 = vld [vmem:[#allocation26_spill] sm:$0xff]  ;;  %v8969_v59 = vrot.slane %v8833_v18, 1 }
 0x452   : > { %4089 = vrot.lane.b32.xlu2 %v8439_v19, %s5577_s17  ;;  %4087 = vrot.lane.b32.xlu1 %v10270_v11, %s5577_s17  ;;  %v8978_v10 = vsel %vm2709_vm2, %v4076_v35, %v8969_v59 }
 0x453   : > { %4085 = vrot.lane.b32.xlu0 %v10271_v40, %s5577_s17 }
 0x454   : > { %v3748_v14 = vpop.permute.xlu2 %3747  ;;  %v8954_v39 = vpop.permute.xlu1 %3718 }
 0x455   : > { %10272 = vst [vmem:[#allocation50_spill] sm:$0xff] %v8954_v39 }
 0x456   : > { %v8956_v55 = vpop.permute.xlu0 %3716 }
 0x457   : > { %10273 = vst [vmem:[#allocation49_spill] sm:$0xff] %v8956_v55 }
 0x45a   : > { %4095 = vrot.lane.b32.xlu2 %v10274_v38, %s5577_s17  ;;  %4093 = vrot.lane.b32.xlu1 %v10275_v7, %s5577_s17 }
 0x45b   : > { %4091 = vrot.lane.b32.xlu0 %v10276_v37, %s5577_s17 }
 0x45c   : > { %v8964_v19 = vpop.permute.xlu2 %3756  ;;  %v8966_v36 = vpop.permute.xlu1 %3733 }
 0x45d   : > { %10277 = vst [vmem:[#allocation58_spill] sm:$0xff] %v8966_v36  ;;  %v10281_v36 = vld [vmem:[#allocation73_spill] sm:$0xff] }
 0x45e   : > { %v3723_v39 = vpop.permute.xlu0 %3722 }
 0x45f   : > { %v3986_v44 = vsel %vm2977_vm0, %v3970_v50, %v3723_v39  ;;  %v3976_v50 = vsel %vm2977_vm0, %v8786_v23, %v3713_v25  ;;  %v10280_v39 = vld [vmem:[#allocation74_spill] sm:$0xff]  ;;  %v3984_v23 = vsel %vm2977_vm0, %v3968_v61, %v8887_v48  ;;  %v9008_v25 = vrot.slane %v8903_v56, 1 }
 0x460   : > { %v8974_v54 = vsel %vm10049_vm6, %v3986_v44, %v3748_v14  ;;  %v3978_v44 = vsel %vm2977_vm0, %v3962_v5, %v8831_v6 }
 0x462   : > { %4108 = vrot.lane.b32.xlu2 %v10278_v4, %s5586_s20  ;;  %4099 = vrot.lane.b32.xlu1 %v8969_v59, %s5577_s17 }
 0x463   : > { %4097 = vrot.lane.b32.xlu0 %v8978_v10, %s5577_s17 }
 0x464   : > { %v8986_v32 = vpop.permute.xlu2 %3762  ;;  %v3740_v20 = vpop.permute.xlu1 %3739 }
 0x465   : > { %10279 = vst [vmem:[#allocation60_spill] sm:$0xff] %v8986_v32  ;;  %v3995_v35 = vsel %vm10049_vm6, %v3978_v44, %v3740_v20  ;;  %v10282_v32 = vld [vmem:[#allocation75_spill] sm:$0xff]  ;;  %v4101_v44 = vrot.slane %v8861_v16, 1 }
 0x466   : > { %v3738_v14 = vpop.permute.xlu0 %3737 }
 0x467   : > { %v3993_v4 = vsel %vm10049_vm6, %v3976_v50, %v3738_v14  ;;  %v4102_v50 = vrot.slane %v8836_v57, 2  ;;  %v10285_v14 = vshll.u32 %v8833_v18, 16 }
 0x469   : > { %v4105_v60 = vrot.slane %v10285_v14, 2  ;;  %v4103_v48 = vor.u32 %v4102_v50, %v4101_v44 }
 0x46a   : > { %4114 = vrot.lane.b32.xlu2 %v10280_v39, %s5586_s20  ;;  %4112 = vrot.lane.b32.xlu1 %v10281_v36, %s5586_s20 }
 0x46b   : > { %4110 = vrot.lane.b32.xlu0 %v10282_v32, %s5586_s20  ;;  %v4106_v61 = vor.u32 %v4105_v60, %v9008_v25 }
 0x46c   : > { %v9000_v30 = vpop.permute.xlu2 %3773  ;;  %v3746_v6 = vpop.permute.xlu1 %3745 }
 0x46d   : > { %10283 = vst [vmem:[#allocation67_spill] sm:$0xff] %v9000_v30  ;;  %v4001_v20 = vsel %vm10049_vm6, %v3984_v23, %v3746_v6  ;;  %v10286_v30 = vld [vmem:[#allocation45_spill] sm:$0xff]  ;;  %v9024_v55 = vsel %vm3408_vm8, %v4103_v48, %v4106_v61  ;;  %vm4020_vm6 = vcmask 490496  }
 0x46e   : > { %v9005_v5 = vpop.permute.xlu0 %3743  ;;  %v10287_v6 = vld [vmem:[#allocation77_spill] sm:$0xff] }
 0x46f   : > { %10284 = vst [vmem:[#allocation64_spill] sm:$0xff] %v9005_v5 }
 0x472   : > { %4120 = vrot.lane.b32.xlu2 %v10286_v30, %s5586_s20  ;;  %4118 = vrot.lane.b32.xlu1 %v8502_v31, %s5586_s20  ;;  %v10289_v31 = vld [vmem:[#allocation34_spill] sm:$0xff] }
 0x473   : > { %4116 = vrot.lane.b32.xlu0 %v10287_v6, %s5586_s20  ;;  %v4135_v44 = vrot.slane %v10289_v31, 7  ;;  %v4139_v6 = vrot.slane %v10293_v28, 7  ;;  %v10297_v28 = vld [vmem:[#allocation44_spill] sm:$0xff] }
 0x474   : > { %v3780_v23 = vpop.permute.xlu2 %3779  ;;  %v3755_v5 = vpop.permute.xlu1 %3754 }
 0x475   : > { %v4136_v48 = vor.u32 %v4135_v44, %v10291_v33  ;;  %v10295_v33 = vld [vmem:[#allocation38_spill] sm:$0xff] }
 0x476   : > { %v9021_v45 = vpop.permute.xlu0 %3752  ;;  %v4140_v2 = vor.u32 %v4139_v6, %v10295_v33  ;;  %v4009_v33 = vsel %vm2994_vm4, %v3993_v4, %v8964_v19  ;;  %v10299_v19 = vld [vmem:[#allocation33_spill] sm:$0xff] }
 0x477   : > { %10288 = vst [vmem:[#allocation13_spill] sm:$0xff] %v9021_v45  ;;  %v4143_v4 = vrot.slane %v10299_v19, 7 }
 0x47a   : > { %4126 = vrot.lane.b32.xlu2 %v9024_v55, %s5586_s20  ;;  %4124 = vrot.lane.b32.xlu1 %v8667_v46, %s5586_s20 }
 0x47b   : > { %4122 = vrot.lane.b32.xlu0 %v8680_v17, %s5586_s20 }
 0x47c   : > { %v3786_v60 = vpop.permute.xlu2 %3785  ;;  %v9033_v50 = vpop.permute.xlu1 %3760 }
 0x47d   : > { %10290 = vst [vmem:[#allocation26_spill] sm:$0xff] %v9033_v50  ;;  %v10294_v50 = vld [vmem:[#allocation48_spill] sm:$0xff] }
 0x47e   : > { %v3759_v14 = vpop.permute.xlu0 %3758  ;;  %v4137_v51 = vrot.slane %v10294_v50, 7 }
 0x47f   : > { %v4011_v45 = vsel %vm2994_vm4, %v3995_v35, %v3759_v14 }
 0x480   : > { %v9038_v61 = vsel %vm4020_vm6, %v4011_v45, %v3780_v23  ;;  %v10296_v23 = vld [vmem:[#allocation41_spill] sm:$0xff] }
 0x481   : > { %10292 = vst [vmem:[#allocation70_spill] sm:$0xff] %v9038_v61  ;;  %v4138_v61 = vor.u32 %v4137_v51, %v10296_v23 }
 0x482   : > { %4158 = vrot.lane.b32.xlu2 %v4135_v44, %s5578_s18  ;;  %4156 = vrot.lane.b32.xlu1 %v4136_v48, %s5578_s18  ;;  %v4141_v48 = vrot.slane %v10297_v28, 7  ;;  %v10301_v28 = vld [vmem:[#allocation59_spill] sm:$0xff] }
 0x483   : > { %4128 = vrot.lane.b32.xlu0 %v9008_v25, %s5586_s20 }
 0x484   : > { %v9045_v31 = vpop.permute.xlu2 %4056  ;;  %v3767_v35 = vpop.permute.xlu1 %3766 }
 0x486   : > { %v3765_v14 = vpop.permute.xlu0 %3764 }
 0x487   : > { %v4017_v45 = vsel %vm2994_vm4, %v4001_v20, %v3765_v14  ;;  %v4007_v20 = vsel %vm2994_vm4, %v8946_v49, %v3755_v5  ;;  %v10300_v5 = vld [vmem:[#allocation30_spill] sm:$0xff] }
 0x488   : > { %v9052_v44 = vsel %vm4020_vm6, %v4017_v45, %v3786_v60  ;;  %v4144_v23 = vor.u32 %v4143_v4, %v10300_v5 }
 0x48a   : > { %4164 = vrot.lane.b32.xlu2 %v4140_v2, %s5578_s18  ;;  %4162 = vrot.lane.b32.xlu1 %v4137_v51, %s5578_s18  ;;  %v10298_v51 = vld [vmem:[#allocation36_spill] sm:$0xff] }
 0x48b   : > { %4160 = vrot.lane.b32.xlu0 %v4138_v61, %s5578_s18  ;;  %v4142_v45 = vor.u32 %v4141_v48, %v10298_v51 }
 0x48c   : > { %v9058_v50 = vpop.permute.xlu2 %4062  ;;  %v3778_v11 = vpop.permute.xlu1 %3777 }
 0x48d   : > { %v9065_v60 = vsel %vm4020_vm6, %v4009_v33, %v3778_v11  ;;  %v4019_v33 = vsel %vm2994_vm4, %v8974_v54, %v3767_v35  ;;  %v10305_v35 = vld [vmem:[#allocation28_spill] sm:$0xff] }
 0x48e   : > { %v3776_v14 = vpop.permute.xlu0 %3775 }
 0x48f   : > { %v9068_v2 = vsel %vm4020_vm6, %v4007_v20, %v3776_v14 }
 0x492   : > { %4170 = vrot.lane.b32.xlu2 %v4141_v48, %s5578_s18  ;;  %4168 = vrot.lane.b32.xlu1 %v4142_v45, %s5578_s18 }
 0x493   : > { %4166 = vrot.lane.b32.xlu0 %v4139_v6, %s5578_s18 }
 0x494   : > { %v9074_v61 = vpop.permute.xlu2 %4068  ;;  %v9077_v49 = vpop.permute.xlu1 %3783 }
 0x496   : > { %v9079_v11 = vpop.permute.xlu0 %3781 }
 0x49a   : > { %4199 = vrot.lane.b32.xlu2 %v10301_v28, %s5587_s28  ;;  %4174 = vrot.lane.b32.xlu1 %v4143_v4, %s5578_s18  ;;  %v10303_v4 = vld [vmem:[#allocation40_spill] sm:$0xff] }
 0x49b   : > { %4172 = vrot.lane.b32.xlu0 %v4144_v23, %s5578_s18 }
 0x49c   : > { %v9086_v48 = vpop.permute.xlu2 %4074  ;;  %v4055_v6 = vpop.permute.xlu1 %4054 }
 0x49e   : > { %v3788_v20 = vpop.permute.xlu0 %3787 }
 0x49f   : > { %v9091_v14 = vsel %vm4020_vm6, %v4019_v33, %v3788_v20 }
 0x4a0   : > { %10302 = vst [vmem:[#allocation74_spill] sm:$0xff] %v9091_v14 }
 0x4a2   : > { %4284 = vrot.lane.b32.xlu2 %v10286_v30, %s5580_s25  ;;  %4255 = vrot.lane.b32.xlu1 %v10276_v37, %s5588_s26  ;;  %v10304_v30 = vld [vmem:[#allocation19_spill] sm:$0xff] }
 0x4a3   : > { %4230 = vrot.lane.b32.xlu0 %v8475_v53, %s5579_s24  ;;  %v4145_v37 = vrot.slane %v10304_v30, 7 }
 0x4a4   : > { %v4084_v51 = vpop.permute.xlu2 %4083  ;;  %v4061_v45 = vpop.permute.xlu1 %4060 }
 0x4a6   : > { %v4059_v19 = vpop.permute.xlu0 %4058 }
 0x4a7   : > { %v4303_v5 = vsel %vm3789_vm7, %v10303_v4, %v4059_v19  ;;  %v10306_v19 = vld [vmem:[#allocation55_spill] sm:$0xff] }
 0x4a8   : > { %v9102_v54 = vsel %vm2892_vm10, %v4303_v5, %v4084_v51  ;;  %v4146_v51 = vor.u32 %v4145_v37, %v10306_v19 }
 0x4aa   : > { %4247 = vrot.lane.b32.xlu2 %v10267_v62, %s5588_s26  ;;  %4222 = vrot.lane.b32.xlu1 %v8060_v21, %s5579_s24 }
 0x4ab   : > { %4191 = vrot.lane.b32.xlu0 %v10305_v35, %s5587_s28 }
 0x4ac   : > { %v4090_v53 = vpop.permute.xlu2 %4089  ;;  %v4067_v23 = vpop.permute.xlu1 %4066 }
 0x4ae   : > { %v4065_v33 = vpop.permute.xlu0 %4064 }
 0x4af   : > { %v4309_v20 = vsel %vm3789_vm7, %v8272_v9, %v4065_v33 }
 0x4b0   : > { %v9115_v5 = vsel %vm2892_vm10, %v4309_v20, %v4090_v53 }
 0x4b2   : > { %4201 = vrot.lane.b32.xlu2 %v8562_v41, %s5587_s28  ;;  %4176 = vrot.lane.b32.xlu1 %v4146_v51, %s5578_s18 }
 0x4b3   : > { %4276 = vrot.lane.b32.xlu0 %v10282_v32, %s5580_s25  ;;  %v4299_v32 = vsel %vm3789_vm7, %v7780_v43, %v4055_v6 }
 0x4b4   : > { %v4096_v21 = vpop.permute.xlu2 %4095  ;;  %v4073_v62 = vpop.permute.xlu1 %4072 }
 0x4b6   : > { %v4071_v30 = vpop.permute.xlu0 %4070 }
 0x4b7   : > { %v4315_v14 = vsel %vm3789_vm7, %v8582_v42, %v4071_v30 }
 0x4b8   : > { %v9125_v9 = vsel %vm2892_vm10, %v4315_v14, %v4096_v21  ;;  %v10308_v14 = vld [vmem:[#allocation37_spill] sm:$0xff] }
 0x4ba   : > { %4203 = vrot.lane.b32.xlu2 %v8582_v42, %s5587_s28  ;;  %4232 = vrot.lane.b32.xlu1 %v8607_v26, %s5579_s24  ;;  %v10307_v26 = vld [vmem:[#allocation35_spill] sm:$0xff] }
 0x4bb   : > { %4178 = vrot.lane.b32.xlu0 %v4145_v37, %s5578_s18  ;;  %v4307_v43 = vsel %vm3789_vm7, %v10307_v26, %v9058_v50  ;;  %v4305_v37 = vsel %vm3789_vm7, %v10308_v14, %v4061_v45  ;;  %v4313_v50 = vsel %vm3789_vm7, %v8562_v41, %v9074_v61 }
 0x4bc   : > { %v4109_v53 = vpop.permute.xlu2 %4108  ;;  %v4082_v33 = vpop.permute.xlu1 %4081 }
 0x4be   : > { %v4080_v20 = vpop.permute.xlu0 %4079 }
 0x4bf   : > { %v4321_v19 = vsel %vm2892_vm10, %v4299_v32, %v4080_v20 }
 0x4c0   : > { %v9136_v51 = vsel %vm3822_vm12, %v4321_v19, %v4109_v53  ;;  %v4311_v53 = vsel %vm3789_vm7, %v10301_v28, %v4067_v23  ;;  %v4317_v28 = vsel %vm3789_vm7, %v8783_v3, %v4073_v62 }
 0x4c2   : > { %4286 = vrot.lane.b32.xlu2 %v8680_v17, %s5580_s25  ;;  %4234 = vrot.lane.b32.xlu1 %v8654_v1, %s5579_s24 }
 0x4c3   : > { %4257 = vrot.lane.b32.xlu0 %v10275_v7, %s5588_s26 }
 0x4c4   : > { %v4115_v42 = vpop.permute.xlu2 %4114  ;;  %v4088_v6 = vpop.permute.xlu1 %4087 }
 0x4c5   : > { %v9150_v21 = vsel %vm2892_vm10, %v4307_v43, %v4088_v6 }
 0x4c6   : > { %v4086_v30 = vpop.permute.xlu0 %4085 }
 0x4c7   : > { %v4327_v17 = vsel %vm2892_vm10, %v4305_v37, %v4086_v30 }
 0x4c8   : > { %v4349_v1 = vsel %vm3822_vm12, %v4327_v17, %v4115_v42 }
 0x4ca   : > { %4193 = vrot.lane.b32.xlu2 %v10303_v4, %s5587_s28  ;;  %4288 = vrot.lane.b32.xlu1 %v8667_v46, %s5580_s25  ;;  %v4147_v46 = vrot.slane %v8861_v16, 7 }
 0x4cb   : > { %4259 = vrot.lane.b32.xlu0 %v10274_v38, %s5588_s26  ;;  %v4319_v38 = vsel %vm3789_vm7, %v8833_v18, %v9086_v48  ;;  %v4301_v48 = vsel %vm3789_vm7, %v10305_v35, %v9045_v31 }
 0x4cc   : > { %v4121_v7 = vpop.permute.xlu2 %4120  ;;  %v4094_v45 = vpop.permute.xlu1 %4093 }
 0x4cd   : > { %v4335_v32 = vsel %vm2892_vm10, %v4313_v50, %v4094_v45 }
 0x4ce   : > { %v4092_v20 = vpop.permute.xlu0 %4091 }
 0x4cf   : > { %v4333_v4 = vsel %vm2892_vm10, %v4311_v53, %v4092_v20 }
 0x4d0   : > { %v9168_v19 = vsel %vm3822_vm12, %v4333_v4, %v4121_v7  ;;  %v3191_v7 = vld [vmem:[%s7701_s19 + $0x8c] sm:$0x3] }
 0x4d2   : > { %4278 = vrot.lane.b32.xlu2 %v10281_v36, %s5580_s25  ;;  %4249 = vrot.lane.b32.xlu1 %v10266_v22, %s5588_s26  ;;  %v4148_v22 = vor.u32 %v4147_v46, %v8836_v57  ;;  %v4323_v57 = vsel %vm2892_vm10, %v4301_v48, %v4082_v33 }
 0x4d3   : > { %4224 = vrot.lane.b32.xlu0 %v10256_v12, %s5579_s24 }
 0x4d4   : > { %v4127_v41 = vpop.permute.xlu2 %4126  ;;  %v4100_v61 = vpop.permute.xlu1 %4099 }
 0x4d5   : > { %v4341_v23 = vsel %vm2892_vm10, %v4319_v38, %v4100_v61 }
 0x4d6   : > { %v4098_v36 = vpop.permute.xlu0 %4097 }
 0x4d7   : > { %v4339_v42 = vsel %vm2892_vm10, %v4317_v28, %v4098_v36 }
 0x4d8   : > { %v9186_v12 = vsel %vm3822_vm12, %v4339_v42, %v4127_v41 }
 0x4da   : > { %4182 = vrot.lane.b32.xlu2 %v4147_v46, %s5578_s18  ;;  %4205 = vrot.lane.b32.xlu1 %v8783_v3, %s5587_s28 }
 0x4db   : > { %4180 = vrot.lane.b32.xlu0 %v4148_v22, %s5578_s18 }
 0x4dc   : > { %v9192_v16 = vpop.permute.xlu2 %4158  ;;  %v4113_v62 = vpop.permute.xlu1 %4112 }
 0x4dd   : > { %v4347_v43 = vsel %vm3822_vm12, %v9102_v54, %v4113_v62 }
 0x4de   : > { %v4111_v6 = vpop.permute.xlu0 %4110 }
 0x4df   : > { %v4345_v37 = vsel %vm3822_vm12, %v4323_v57, %v4111_v6 }
 0x4e2   : > { %4261 = vrot.lane.b32.xlu2 %v8978_v10, %s5588_s26  ;;  %4207 = vrot.lane.b32.xlu1 %v8833_v18, %s5587_s28  ;;  %v5343_v10 = vld [vmem:[%s7701_s19 + $0x84] sm:$0xff] }
 0x4e3   : > { %4236 = vrot.lane.b32.xlu0 %v8911_v15, %s5579_s24  ;;  %v4150_v17 = vshrl.u32 %v5343_v10, 16 }
 0x4e4   : > { %v9207_v3 = vpop.permute.xlu2 %4164  ;;  %v4119_v31 = vpop.permute.xlu1 %4118 }
 0x4e5   : > { %v9211_v35 = vsel %vm3822_vm12, %v9115_v5, %v4119_v31  ;;  %v4269_v57 = vrot.slane %v4150_v17, 1 }
 0x4e6   : > { %v9213_v54 = vpop.permute.xlu0 %4116 }
 0x4ea   : > { %4263 = vrot.lane.b32.xlu2 %v8969_v59, %s5588_s26  ;;  %4290 = vrot.lane.b32.xlu1 %v9024_v55, %s5580_s25  ;;  %v4152_v55 = vrot.slane %v4150_v17, 7 }
 0x4eb   : > { %4238 = vrot.lane.b32.xlu0 %v8903_v56, %s5579_s24  ;;  %v4153_v56 = vshll.u32 %v5343_v10, 16 }
 0x4ec   : > { %v4171_v18 = vpop.permute.xlu2 %4170  ;;  %v4125_v15 = vpop.permute.xlu1 %4124 }
 0x4ed   : > { %v9223_v33 = vsel %vm2909_vm11, %v4349_v1, %v4171_v18  ;;  %v9227_v5 = vsel %vm3822_vm12, %v9125_v9, %v4125_v15  ;;  %v4189_v1 = vunpack.c.l.b16 %v3191_v7  ;;  %v4155_v53 = vor.u32 %v4153_v56, %v4152_v55 }
 0x4ee   : > { %v4123_v30 = vpop.permute.xlu0 %4122  ;;  %v4213_v4 = vrot.slane %v4153_v56, 1  ;;  %v4270_v6 = vrot.slane %v4153_v56, 2 }
 0x4ef   : > { %v9230_v59 = vsel %vm3822_vm12, %v4335_v32, %v4123_v30  ;;  %v9242_v20 = vpack.c.b16 %v4189_v1, %v4189_v1  ;;  %v4351_v1 = vsel %vm3822_vm12, %v9150_v21, %v9213_v54 }
 0x4f2   : > { %4226 = vrot.lane.b32.xlu2 %v10255_v27, %s5579_s24  ;;  %4195 = vrot.lane.b32.xlu1 %v10308_v14, %s5587_s28  ;;  %v4216_v27 = vshll.u32 %v9242_v20, 16  ;;  %v4214_v14 = vor.u32 %v4213_v4, %v4150_v17 }
 0x4f3   : > { %4292 = vrot.lane.b32.xlu0 %v9008_v25, %s5580_s25 }
 0x4f4   : > { %v4200_v9 = vpop.permute.xlu2 %4199  ;;  %v4157_v50 = vpop.permute.xlu1 %4156  ;;  %v4218_v41 = vrot.slane %v4216_v27, 1  ;;  %v4273_v31 = vrot.slane %v4216_v27, 2 }
 0x4f6   : > { %v4129_v45 = vpop.permute.xlu0 %4128  ;;  %v4219_v28 = vsel %vm2596_vm1, %v4214_v14, %v4218_v41 }
 0x4f7   : > { %v9240_v32 = vsel %vm3822_vm12, %v4341_v23, %v4129_v45  ;;  %v4244_v23 = vrot.slane %v5343_v10, 1 }
 0x4fa   : > { %4184 = vrot.lane.b32.xlu2 %v4155_v53, %s5578_s18  ;;  %4280 = vrot.lane.b32.xlu1 %v10280_v39, %s5580_s25  ;;  %v4245_v39 = vrot.slane %v9242_v20, 1 }
 0x4fb   : > { %4251 = vrot.lane.b32.xlu0 %v10271_v40, %s5588_s26  ;;  %v4220_v40 = vshrl.u32 %v9242_v20, 16 }
 0x4fc   : > { %v4285_v25 = vpop.permute.xlu2 %4284  ;;  %v4163_v46 = vpop.permute.xlu1 %4162  ;;  %v4246_v62 = vsel %vm2709_vm2, %v4244_v23, %v4245_v39  ;;  %vm4689_vm2 = vcmask 1041408  }
 0x4fd   : > { %v9251_v38 = vsel %vm2909_vm11, %v4345_v37, %v4163_v46  ;;  %v4272_v37 = vrot.slane %v4220_v40, 1 }
 0x4fe   : > { %v9253_v61 = vpop.permute.xlu0 %4160 }
 0x4ff   : > { %v4274_v18 = vor.u32 %v4273_v31, %v4272_v37 }
 0x502   : > { %4240 = vrot.lane.b32.xlu2 %v4219_v28, %s5579_s24  ;;  %4186 = vrot.lane.b32.xlu1 %v4152_v55, %s5578_s18  ;;  %s10309_s18 = smov 64  }
 0x503   : > { %4209 = vrot.lane.b32.xlu0 %v5343_v10, %s5587_s28  ;;  %v4271_v10 = vor.u32 %v4270_v6, %v4269_v57 }
 0x504   : > { %v4248_v36 = vpop.permute.xlu2 %4247  ;;  %v9261_v42 = vpop.permute.xlu1 %4168 }
 0x505   : > { %v4275_v55 = vsel %vm3408_vm8, %v4271_v10, %v4274_v18  ;;  %vm10331_vm8 = vcmask 293888  }
 0x506   : > { %v4167_v22 = vpop.permute.xlu0 %4166 }
 0x507   : > { %v9264_v48 = vsel %vm2909_vm11, %v4347_v43, %v4167_v22 }
 0x50a   : > { %4265 = vrot.lane.b32.xlu1 %v4246_v62, %s5588_s26 }
 0x50b   : > { %4211 = vrot.lane.b32.xlu0 %v9242_v20, %s5587_s28 }
 0x50c   : > { %v4175_v15 = vpop.permute.xlu1 %4174  ;;  %v9272_v30 = vpop.permute.xlu2 %4201 }
 0x50d   : > { %v4383_v53 = vsel %vm2909_vm11, %v4351_v1, %v4175_v15 }
 0x50e   : > { %v4173_v43 = vpop.permute.xlu0 %4172  ;;  %v4410_v27 = vsel %vm3855_vm5, %v4383_v53, %v4200_v9  ;;  %v10313_v53 = vld [vmem:[#allocation83_spill] sm:$0xff] }
 0x50f   : > { %v4381_v7 = vsel %vm2909_vm11, %v8856_v29, %v4173_v43 }
 0x510   : > { %v4408_v17 = vsel %vm3855_vm5, %v4381_v7, %v10262_v52 }
 0x511   : > { %v4435_v56 = vsel %vm2926_vm13, %v4408_v17, %v8629_v0  ;;  %v4365_v0 = vsel %vm2909_vm11, %v8822_v8, %v4157_v50 }
 0x512   : > { %v4462_v45 = vsel %vm3888_vm9, %v4435_v56, %v8613_v34  ;;  %4294 = vrot.lane.b32.xlu1 %v4275_v55, %s5580_s25  ;;  %v4396_v14 = vsel %vm3855_vm5, %v4365_v0, %v8575_v24  ;;  %v10315_v0 = vld [vmem:[#allocation39_spill] sm:$0xff] }
 0x513   : > { %v4489_v29 = vsel %vm2943_vm14, %v4462_v45, %v8699_v13  ;;  %4242 = vrot.lane.b32.xlu0 %v4220_v40, %s5579_s24  ;;  %v4423_v8 = vsel %vm2926_vm13, %v4396_v14, %v8555_v58 }
 0x514   : > { %v4546_v52 = vshll.u32 %v4489_v29, 16  ;;  %v4256_v4 = vpop.permute.xlu1 %4255  ;;  %v4204_v54 = vpop.permute.xlu2 %4203  ;;  %v4544_v23 = vshrl.u32 %v4489_v29, 16  ;;  %v4450_v24 = vsel %vm3888_vm9, %v4423_v8, %v8639_v47  ;;  %v10311_v47 = vld [vmem:[#allocation76_spill] sm:$0xff] }
 0x516   : > { %v4231_v21 = vpop.permute.xlu0 %4230  ;;  %v4548_v41 = vrot.slane %v4546_v52, 1 }
 0x517   : > { %v4437_v34 = vsel %vm2926_vm13, %v4410_v27, %v4231_v21  ;;  %v9337_v27 = vpop.f32.mrf.mxu0 }
 0x518   : > { %v4464_v13 = vsel %vm3888_vm9, %v4437_v34, %v4256_v4  ;;  %v4549_v50 = vor.u32 %v4548_v41, %v4544_v23  ;;  %v10317_v23 = vld [vmem:[#allocation31_spill] sm:$0xff] }
 0x519   : > { %v4491_v46 = vsel %vm2943_vm14, %v4464_v13, %v4285_v25  ;;  %v4367_v25 = vsel %vm2909_vm11, %v9136_v51, %v9192_v16 }
 0x51a   : > { %v4550_v28 = vshll.u32 %v4491_v46, 16  ;;  %4197 = vrot.lane.b32.xlu1 %v10307_v26, %s5587_s28  ;;  %v4477_v26 = vsel %vm2943_vm14, %v4450_v24, %v8689_v63  ;;  %s5315_s28 = sshll.u32 %s5555_s12, 7 }
 0x51b   : > { %4296 = vrot.lane.b32.xlu0 %v4272_v37, %s5580_s25  ;;  %v10310_v37 = vld [vmem:[#allocation66_spill] sm:$0xff]  ;;  %v4506_v31 = vshll.u32 %v4477_v26, 16  ;;  %v4504_v7 = vshrl.u32 %v4477_v26, 16 }
 0x51c   : > { %v4552_v9 = vrot.slane %v4550_v28, 1  ;;  %v4223_v40 = vpop.permute.xlu1 %4222  ;;  %v4287_v57 = vpop.permute.xlu2 %4286  ;;  %v10316_v28 = vld [vmem:[#allocation77_spill] sm:$0xff] }
 0x51d   : > { %v4508_v15 = vrot.slane %v4506_v31, 1 }
 0x51e   : > { %v4192_v22 = vpop.permute.xlu0 %4191  ;;  %v4553_v62 = vsel %vm2596_vm1, %v4549_v50, %v4552_v9  ;;  %v10318_v50 = vld [vmem:[#allocation23_spill] sm:$0xff] }
 0x51f   : > { %4592 = vrot.lane.b32.xlu2 %v4553_v62, %s10309_s18  ;;  %v4398_v58 = vsel %vm3855_vm5, %v4367_v25, %v4192_v22  ;;  %v4509_v55 = vor.u32 %v4508_v15, %v4504_v7  ;;  %v4628_v62 = vld [vmem:[%s9928_s5 + $0x30] sm:$0x3]  ;;  %v10319_v25 = vld [vmem:[#allocation57_spill] sm:$0xff] }
 0x520   : > { %v4425_v6 = vsel %vm2926_vm13, %v4398_v58, %v4223_v40 }
 0x521   : > { %v4452_v51 = vsel %vm3888_vm9, %v4425_v6, %v4248_v36  ;;  %v10312_v36 = vld [vmem:[#allocation14_spill] sm:$0xff]  ;;  %v4658_v6 = vunpack.c.l.b16 %v4628_v62 }
 0x522   : > { %4253 = vrot.lane.b32.xlu1 %v10310_v37, %s5588_s26  ;;  %v3799_v29 = vsel %vm3789_vm7, %v10313_v53, %v10312_v36  ;;  %v9362_v37 = vpop.f32.mrf.mxu0  ;;  %v10322_v62 = vld [vmem:[#allocation82_spill] sm:$0xff] }
 0x523   : > { %4228 = vrot.lane.b32.xlu0 %v10311_v47, %s5579_s24 }
 0x524   : > { %v4177_v10 = vpop.permute.xlu1 %4176  ;;  %v4194_v17 = vpop.permute.xlu2 %4193 }
 0x525   : > { %v4385_v20 = vsel %vm2909_vm11, %v9211_v35, %v4177_v10  ;;  %v4665_v10 = vpack.c.b16 %v4658_v6, %v4658_v6  ;;  %v4401_v36 = vsel %vm3855_vm5, %v9251_v38, %v4194_v17  ;;  %v10323_v6 = vld [vmem:[#allocation16_spill] sm:$0xff] }
 0x526   : > { %v4277_v16 = vpop.permute.xlu0 %4276  ;;  %v4412_v34 = vsel %vm3855_vm5, %v4385_v20, %v9272_v30 }
 0x527   : > { %v4479_v18 = vsel %vm2943_vm14, %v4452_v51, %v4277_v16  ;;  %4267 = vrot.lane.b32.xlu2 %v4245_v39, %s5588_s26  ;;  %v10314_v39 = vld [vmem:[#allocation43_spill] sm:$0xff]  ;;  %v10320_v51 = vld [vmem:[#allocation68_spill] sm:$0xff]  ;;  %v4691_v15 = vsel %vm4689_vm2, %v4665_v10, 0  ;;  %vm10344_vm2 = vcmask 523264   ;;  %s9684_s26 = scalar_lea.vmem [#allocation5], %s5315_s28 }
 0x528   : > { %v4510_v63 = vshll.u32 %v4479_v18, 16  ;;  %v3815_v52 = vsel %vm2892_vm10, %v3799_v29, %v10314_v39  ;;  %5358 = vmatpush.bf16.msra.mxu2 %v4691_v15  ;;  %4694 = vmatpush.bf16.msra.mxu1 %v4691_v15 }
 0x529   : > { %v9335_v4 = vsel %vm3822_vm12, %v3815_v52, %v10315_v0 }
 0x52a   : > { %v4512_v43 = vrot.slane %v4510_v63, 1  ;;  %v4369_v21 = vsel %vm2909_vm11, %v9335_v4, %v9253_v61  ;;  %v9377_v29 = vpop.f32.mrf.mxu0 }
 0x52b   : > { %v4399_v8 = vsel %vm3855_vm5, %v4369_v21, %v10317_v23 }
 0x52c   : > { %v4233_v56 = vpop.permute.xlu1 %4232  ;;  %v4513_v45 = vsel %vm2596_vm1, %v4509_v55, %v4512_v43  ;;  %v4279_v14 = vpop.permute.xlu2 %4278  ;;  %v4426_v30 = vsel %vm2926_vm13, %v4399_v8, %v10318_v50  ;;  %v5349_v55 = vld [vmem:[%s9928_s5 + $0x28] sm:$0xff] }
 0x52d   : > { %v4439_v35 = vsel %vm2926_vm13, %v4412_v34, %v4233_v56  ;;  %v4453_v58 = vsel %vm3888_vm9, %v4426_v30, %v10319_v25  ;;  %5359 = vmatpush.bf16.msra.mxu2 %v5349_v55  ;;  %4695 = vmatpush.bf16.msra.mxu1 %v5349_v55  ;;  %v5348_v34 = vld [vmem:[%s9928_s5 + $0x20] sm:$0xff]  ;;  %v5345_v30 = vld [vmem:[%s9928_s5 + $0x8] sm:$0xff]  ;;  %v10325_v55 = vld [vmem:[#allocation53_spill] sm:$0xff] }
 0x52e   : > { %v4179_v1 = vpop.permute.xlu0 %4178  ;;  %v4480_v16 = vsel %vm2943_vm14, %v4453_v58, %v10320_v51 }
 0x52f   : > { %4584 = vrot.lane.b32.xlu2 %v4513_v45, %s10309_s18  ;;  %v4387_v61 = vsel %vm2909_vm11, %v9168_v19, %v4179_v1  ;;  %v4516_v56 = vshll.u32 %v4480_v16, 16  ;;  %v4514_v17 = vshrl.u32 %v4480_v16, 16 }
 0x530   : > { %v4414_v24 = vsel %vm3855_vm5, %v4387_v61, %v4204_v54 }
 0x531   : > { %v4518_v52 = vrot.slane %v4516_v56, 1  ;;  %5360 = vmatpush.bf16.msra.mxu2 %v5348_v34  ;;  %4696 = vmatpush.bf16.msra.mxu1 %v5348_v34 }
 0x534   : > { %v4235_v13 = vpop.permute.xlu1 %4234  ;;  %v9364_v19 = vpop.permute.xlu2 %4182 }
 0x535   : > { %v4441_v26 = vsel %vm2926_vm13, %v4414_v24, %v4235_v13  ;;  %v5347_v13 = vld [vmem:[%s9928_s5 + $0x18] sm:$0xff] }
 0x536   : > { %v4258_v41 = vpop.permute.xlu0 %4257  ;;  %5361 = vmatpush.bf16.msra.mxu2 %v5347_v13  ;;  %4697 = vmatpush.bf16.msra.mxu1 %v5347_v13 }
 0x537   : > { %v4466_v46 = vsel %vm3888_vm9, %v4439_v35, %v4258_v41  ;;  %4282 = vrot.lane.b32.xlu2 %v10316_v28, %s5580_s25  ;;  %v4519_v41 = vor.u32 %v4518_v52, %v4514_v17 }
 0x538   : > { %v4493_v9 = vsel %vm2943_vm14, %v4466_v46, %v4287_v57 }
 0x539   : > { %v4556_v40 = vshll.u32 %v4493_v9, 16  ;;  %v4554_v18 = vshrl.u32 %v4493_v9, 16  ;;  %v5346_v9 = vld [vmem:[%s9928_s5 + $0x10] sm:$0xff] }
 0x53a   : > { %5362 = vmatpush.bf16.msra.mxu2 %v5346_v9  ;;  %4698 = vmatpush.bf16.msra.mxu1 %v5346_v9 }
 0x53b   : > { %v4558_v47 = vrot.slane %v4556_v40, 1 }
 0x53c   : > { %v4289_v22 = vpop.permute.xlu1 %4288  ;;  %v4262_v0 = vpop.permute.xlu2 %4261 }
 0x53d   : > { %v4559_v43 = vor.u32 %v4558_v47, %v4554_v18 }
 0x53e   : > { %v4260_v57 = vpop.permute.xlu0 %4259  ;;  %5363 = vmatpush.bf16.msra.mxu2 %v5345_v30  ;;  %4699 = vmatpush.bf16.msra.mxu1 %v5345_v30 }
 0x53f   : > { %v4468_v31 = vsel %vm3888_vm9, %v4441_v26, %v4260_v57  ;;  %v5344_v57 = vld [vmem:[%s9928_s5] sm:$0xff] }
 0x540   : > { %v4495_v54 = vsel %vm2943_vm14, %v4468_v31, %v4289_v22  ;;  %v10321_v22 = vld [vmem:[#allocation20_spill] sm:$0xff] }
 0x541   : > { %v4560_v63 = vshll.u32 %v4495_v54, 16  ;;  %v3801_v58 = vsel %vm3789_vm7, %v10322_v62, %v10321_v22  ;;  %v10324_v54 = vld [vmem:[#allocation47_spill] sm:$0xff]  ;;  %v9447_v22 = vpop.f32.mrf.mxu3 }
 0x542   : > { %v3817_v47 = vsel %vm2892_vm10, %v3801_v58, %v10323_v6  ;;  %5364 = vmatpush.bf16.msra.mxu2 %v5344_v57  ;;  %4700 = vmatpush.bf16.msra.mxu1 %v5344_v57 }
 0x543   : > { %v4562_v7 = vrot.slane %v4560_v63, 1  ;;  %v9411_v10 = vsel %vm3822_vm12, %v3817_v47, %v10324_v54 }
 0x544   : > { %v4250_v1 = vpop.permute.xlu1 %4249  ;;  %v4264_v61 = vpop.permute.xlu2 %4263 }
 0x545   : > { %v4563_v45 = vsel %vm2596_vm1, %v4559_v43, %v4562_v7 }
 0x546   : > { %4594 = vrot.lane.b32.xlu0 %v4563_v45, %s10309_s18  ;;  %v4225_v53 = vpop.permute.xlu0 %4224  ;;  %v4391_v45 = vsel %vm2909_vm11, %v9227_v5, %v9364_v19  ;;  %v10328_v19 = vld [vmem:[#allocation17_spill] sm:$0xff] }
 0x547   : > { %v4428_v20 = vsel %vm2926_vm13, %v4401_v36, %v4225_v53  ;;  %v10326_v36 = vld [vmem:[#allocation27_spill] sm:$0xff] }
 0x548   : > { %v4455_v39 = vsel %vm3888_vm9, %v4428_v20, %v4250_v1 }
 0x549   : > { %v4482_v21 = vsel %vm2943_vm14, %v4455_v39, %v4279_v14  ;;  %v9390_v14 = vpop.f32.mrf.mxu0 }
 0x54a   : > { %v4520_v38 = vshll.u32 %v4482_v21, 16 }
 0x54c   : > { %v4522_v35 = vrot.slane %v4520_v38, 1  ;;  %v4206_v46 = vpop.permute.xlu1 %4205  ;;  %v4227_v63 = vpop.permute.xlu2 %4226 }
 0x54e   : > { %v4181_v28 = vpop.permute.xlu0 %4180  ;;  %v4523_v8 = vsel %vm2596_vm1, %v4519_v41, %v4522_v35  ;;  %v3848_v41 = vsel %vm2909_vm11, %v9335_v4, %v10328_v19  ;;  %v9480_v19 = vpop.f32.mrf.mxu3 }
 0x54f   : > { %4586 = vrot.lane.b32.xlu1 %v4523_v8, %s10309_s18  ;;  %v4389_v26 = vsel %vm2909_vm11, %v9230_v59, %v4181_v28  ;;  %v4373_v59 = vsel %vm2909_vm11, %v9411_v10, %v9207_v3  ;;  %v3865_v30 = vsel %vm3855_vm5, %v3848_v41, %v10317_v23 }
 0x550   : > { %v4416_v31 = vsel %vm3855_vm5, %v4389_v26, %v4206_v46  ;;  %v4402_v56 = vsel %vm3855_vm5, %v4373_v59, %v10325_v55  ;;  %v10329_v46 = vld [vmem:[#allocation63_spill] sm:$0xff] }
 0x551   : > { %v9413_v16 = vpop.f32.mrf.mxu0  ;;  %v4429_v53 = vsel %vm2926_vm13, %v4402_v56, %v10326_v36 }
 0x554   : > { %v4208_v40 = vpop.permute.xlu1 %4207  ;;  %v9435_v35 = vpop.permute.xlu2 %4184 }
 0x555   : > { %v4418_v3 = vsel %vm3855_vm5, %v4391_v45, %v4208_v40  ;;  %v10334_v45 = vld [vmem:[#allocation79_spill] sm:$0xff] }
 0x556   : > { %v4237_v24 = vpop.permute.xlu0 %4236 }
 0x557   : > { %v4443_v18 = vsel %vm2926_vm13, %v4416_v31, %v4237_v24  ;;  %v10330_v31 = vld [vmem:[#allocation81_spill] sm:$0xff] }
 0x558   : > { %v4470_v43 = vsel %vm3888_vm9, %v4443_v18, %v4262_v0  ;;  %v10327_v0 = vld [vmem:[#allocation21_spill] sm:$0xff] }
 0x559   : > { %v9430_v52 = vpop.f32.mrf.mxu0  ;;  %v4456_v21 = vsel %vm3888_vm9, %v4429_v53, %v10327_v0 }
 0x55a   : > { %v4483_v28 = vsel %vm2943_vm14, %v4456_v21, %v10329_v46 }
 0x55b   : > { %v4526_v4 = vshll.u32 %v4483_v28, 16 }
 0x55c   : > { %v4291_v15 = vpop.permute.xlu1 %4290  ;;  %v4241_v18 = vpop.permute.xlu2 %4240 }
 0x55d   : > { %v4497_v1 = vsel %vm2943_vm14, %v4470_v43, %v4291_v15  ;;  %v4528_v59 = vrot.slane %v4526_v4, 1  ;;  %v10332_v43 = vld [vmem:[#allocation42_spill] sm:$0xff] }
 0x55e   : > { %v4239_v7 = vpop.permute.xlu0 %4238  ;;  %v4566_v20 = vshll.u32 %v4497_v1, 16  ;;  %v4564_v8 = vshrl.u32 %v4497_v1, 16  ;;  %v4524_v1 = vshrl.u32 %v4483_v28, 16 }
 0x55f   : > { %v4445_v39 = vsel %vm2926_vm13, %v4418_v3, %v4239_v7  ;;  %v10335_v3 = vld [vmem:[#allocation24_spill] sm:$0xff] }
 0x560   : > { %v4568_v38 = vrot.slane %v4566_v20, 1  ;;  %v4472_v17 = vsel %vm3888_vm9, %v4445_v39, %v4264_v61  ;;  %v3881_v61 = vsel %vm2926_vm13, %v3865_v30, %v10318_v50  ;;  %v4529_v21 = vor.u32 %v4528_v59, %v4524_v1 }
 0x561   : > { %v3898_v26 = vsel %vm3888_vm9, %v3881_v61, %v10319_v25  ;;  %v3113_v47 = vpop.f32.mrf.mxu0  ;;  %v5476_v25 = vld [vmem:[%s7701_s19] sm:$0xff]  ;;  %v10339_v61 = vld [vmem:[#allocation52_spill] sm:$0xff] }
 0x562   : > { %v4569_v40 = vor.u32 %v4568_v38, %v4564_v8  ;;  %v3914_v50 = vsel %vm2943_vm14, %v3898_v26, %v10320_v51  ;;  %v3791_v7 = vsel %vm3789_vm7, %v5476_v25, %v10332_v43  ;;  %v10333_v51 = vld [vmem:[#allocation69_spill] sm:$0xff]  ;;  %v10338_v8 = vld [vmem:[#allocation62_spill] sm:$0xff]  ;;  %vm10341_vm7 = vcmask 424960  }
 0x563   : > { %v3931_v54 = vsel %vm10331_vm8, %v3914_v50, %v10330_v31  ;;  %v10336_v38 = vld [vmem:[#allocation49_spill] sm:$0xff] }
 0x564   : > { %v4196_v34 = vpop.permute.xlu1 %4195  ;;  %v3947_v53 = vsel %vm2960_vm15, %v3931_v54, %v10334_v45 }
 0x565   : > { %v4404_v62 = vsel %vm3855_vm5, %v9264_v48, %v4196_v34  ;;  %v3964_v20 = vsel %vm3954_vm3, %v3947_v53, %v10335_v3  ;;  %v9474_v34 = vld [vmem:[%s9927_s4] ss:$0 sm:$0xff]  ;;  %v10349_v53 = vld [vmem:[#allocation72_spill] sm:$0xff] }
 0x566   : > { %v4293_v13 = vpop.permute.xlu0 %4292  ;;  %v4431_v57 = vsel %vm2926_vm13, %v4404_v62, %v4227_v63  ;;  %v3807_v63 = vsel %vm2892_vm10, %v3791_v7, %v10333_v51  ;;  %v3099_v4 = vadd.f32 %v9474_v34, %v9337_v27  ;;  %v3106_v51 = vadd.f32 %v9474_v34, %v9390_v14  ;;  %v10351_v14 = vld [vmem:[#allocation58_spill] sm:$0xff] }
 0x567   : > { %v4499_v5 = vsel %vm2943_vm14, %v4472_v17, %v4293_v13  ;;  %v3980_v17 = vsel %vm2977_vm0, %v3964_v20, %v10336_v38  ;;  %v10337_v13 = vld [vmem:[#allocation22_spill] sm:$0xff]  ;;  %v4393_v20 = vsel %vm2909_vm11, %v9186_v12, %v9435_v35  ;;  %v10353_v12 = vld [vmem:[#allocation13_spill] sm:$0xff] }
 0x568   : > { %v4570_v9 = vshll.u32 %v4499_v5, 16  ;;  %v3824_v5 = vsel %vm3822_vm12, %v3807_v63, %v10337_v13  ;;  %vm4672_vm12 = vcmask 818176   ;;  %v3138_v27 = vmax.f32 %v3099_v4, 0.0  ;;  %v10348_v63 = vld [vmem:[#allocation84_spill] sm:$0xff]  ;;  %v10350_v13 = vld [vmem:[#allocation86_spill] sm:$0xff] }
 0x569   : > { %v3114_v4 = vadd.f32 %v9474_v34, %v3113_v47 }
 0x56a   : > { %v4572_v24 = vrot.slane %v4570_v9, 1  ;;  %v3840_v9 = vsel %vm2909_vm11, %v3824_v5, %v10338_v8  ;;  %v10352_v8 = vld [vmem:[#allocation71_spill] sm:$0xff] }
 0x56c   : > { %v4573_v58 = vsel %vm2596_vm1, %v4569_v40, %v4572_v24  ;;  %v4281_v23 = vpop.permute.xlu1 %4280  ;;  %v3857_v40 = vsel %vm3855_vm5, %v3840_v9, %v10339_v61  ;;  %v10340_v24 = vld [vmem:[#allocation32_spill] sm:$0xff]  ;;  %v4377_v9 = vsel %vm2909_vm11, %v10352_v8, %v9261_v42 }
 0x56d   : > { %4596 = vrot.lane.b32.xlu2 %v4573_v58, %s10309_s18  ;;  %v3997_v62 = vsel %vm10341_vm7, %v3980_v17, %v10340_v24  ;;  %v10342_v58 = vld [vmem:[#allocation26_spill] sm:$0xff]  ;;  %v3141_v17 = vmax.f32 %v3106_v51, 0.0 }
 0x56e   : > { %v4252_v6 = vpop.permute.xlu0 %4251  ;;  %v4013_v26 = vsel %vm2994_vm4, %v3997_v62, %v10342_v58  ;;  %v10354_v58 = vld [vmem:[#allocation56_spill] sm:$0xff] }
 0x56f   : > { %v4458_v48 = vsel %vm3888_vm9, %v4431_v57, %v4252_v6  ;;  %v4030_v50 = vsel %vm4020_vm6, %v4013_v26, %v9079_v11  ;;  %v10343_v6 = vld [vmem:[#allocation18_spill] sm:$0xff]  ;;  %v3128_v11 = vpop.f32.mrf.mxu3  ;;  %v4405_v26 = vsel %vm3855_vm5, %v4377_v9, %v10354_v58 }
 0x570   : > { %v4485_v15 = vsel %vm2943_vm14, %v4458_v48, %v4281_v23  ;;  %v9494_v23 = vpop.f32.mrf.mxu0  ;;  %v3873_v31 = vsel %vm2926_vm13, %v3857_v40, %v10343_v6  ;;  %v10345_v48 = vld [vmem:[#allocation61_spill] sm:$0xff] }
 0x571   : > { %v4530_v56 = vshll.u32 %v4485_v15, 16  ;;  %v3890_v59 = vsel %vm3888_vm9, %v3873_v31, %v10345_v48  ;;  %v10346_v15 = vld [vmem:[#allocation54_spill] sm:$0xff] }
 0x572   : > { %v3906_v25 = vsel %vm2943_vm14, %v3890_v59, %v10346_v15  ;;  %v10356_v59 = vld [vmem:[#allocation15_spill] sm:$0xff]  ;;  %v3144_v15 = vmax.f32 %v3114_v4, 0.0 }
 0x573   : > { %v4532_v39 = vrot.slane %v4530_v56, 1  ;;  %v10347_v56 = vld [vmem:[#allocation65_spill] sm:$0xff]  ;;  %v4432_v47 = vsel %vm2926_vm13, %v4405_v26, %v10356_v59  ;;  %v10359_v59 = vld [vmem:[#allocation51_spill] sm:$0xff] }
 0x574   : > { %v4187_v41 = vpop.permute.xlu1 %4186  ;;  %v3923_v1 = vsel %vm10331_vm8, %v3906_v25, %v10347_v56 }
 0x575   : > { %v4533_v28 = vsel %vm2596_vm1, %v4529_v21, %v4532_v39  ;;  %v3939_v45 = vsel %vm2960_vm15, %v3923_v1, %v10348_v63  ;;  %v4395_v42 = vsel %vm2909_vm11, %v9240_v32, %v4187_v41  ;;  %v10357_v32 = vld [vmem:[#allocation25_spill] sm:$0xff] }
 0x576   : > { %4588 = vrot.lane.b32.xlu0 %v4533_v28, %s10309_s18  ;;  %v4210_v30 = vpop.permute.xlu0 %4209  ;;  %v3956_v3 = vsel %vm3954_vm3, %v3939_v45, %v10349_v53  ;;  %v4459_v41 = vsel %vm3888_vm9, %v4432_v47, %v10357_v32  ;;  %v3850_v47 = vsel %vm2909_vm11, %v9411_v10, %v10359_v59  ;;  %vm10366_vm11 = vmmov %vm10341_vm7 }
 0x577   : > { %v4420_v21 = vsel %vm3855_vm5, %v4393_v20, %v4210_v30  ;;  %v3972_v5 = vsel %vm2977_vm0, %v3956_v3, %v10350_v13  ;;  %v10358_v3 = vld [vmem:[#allocation78_spill] sm:$0xff] }
 0x578   : > { %v9519_v38 = vpop.f32.mrf.mxu0  ;;  %v3989_v28 = vsel %vm10341_vm7, %v3972_v5, %v10351_v14  ;;  %v4447_v61 = vsel %vm2926_vm13, %v4420_v21, %v4241_v18  ;;  %v4486_v20 = vsel %vm2943_vm14, %v4459_v41, %v10358_v3 }
 0x579   : > { %v4593_v57 = vpop.permute.xlu2 %4592  ;;  %v4005_v35 = vsel %vm2994_vm4, %v3989_v28, %v10353_v12  ;;  %v4536_v28 = vshll.u32 %v4486_v20, 16  ;;  %v4534_v58 = vshrl.u32 %v4486_v20, 16  ;;  %v10367_v20 = vld [vmem:[#allocation60_spill] sm:$0xff] }
 0x57a   : > { %v4609_v54 = vsel %vm10344_vm2, %v4030_v50, %v4593_v57  ;;  %v9537_v50 = vpop.f32.mrf.mxu3  ;;  %v10355_v57 = vld [vmem:[#allocation67_spill] sm:$0xff] }
 0x57b   : > { %5303 = vmatmul.msk.bf16.vlgmr.msra.gmra.mxu2 %vm4672_vm12, %v4609_v54  ;;  %v4022_v6 = vsel %vm4020_vm6, %v4005_v35, %v10355_v57  ;;  %v3129_v35 = vadd.f32 %v9474_v34, %v3128_v11  ;;  %v3109_v11 = vadd.f32 %v9474_v34, %v9413_v16  ;;  %v3116_v16 = vadd.f32 %v9474_v34, %v9494_v23  ;;  %v10360_v23 = vld [vmem:[#allocation80_spill] sm:$0xff] }
 0x57c   : > { %v4266_v43 = vpop.permute.xlu1 %4265 }
 0x57d   : > { %v4474_v30 = vsel %vm3888_vm9, %v4447_v61, %v4266_v43 }
 0x57e   : > { %4774 = vrot.lane.b32.xlu0 %v3138_v27, %s5577_s17  ;;  %v4212_v7 = vpop.permute.xlu0 %4211 }
 0x57f   : > { %v4422_v31 = vsel %vm3855_vm5, %v4395_v42, %v4212_v7 }
 0x580   : > { %v3120_v25 = vpop.f32.mrf.mxu0 }
 0x581   : > { %v4268_v39 = vpop.permute.xlu2 %4267  ;;  %v3121_v63 = vadd.f32 %v9474_v34, %v3120_v25  ;;  %v3111_v25 = vadd.f32 %v9474_v34, %v9430_v52  ;;  %v3119_v52 = vadd.f32 %v9474_v34, %v9519_v38 }
 0x582   : > { %v9557_v13 = vpop.f32.mrf.mxu3 }
 0x583   : > { %v3147_v5 = vmax.f32 %v3121_v63, 0.0  ;;  %v3143_v32 = vmax.f32 %v3111_v25, 0.0  ;;  %v3146_v3 = vmax.f32 %v3119_v52, 0.0 }
 0x584   : > { %v4295_v40 = vpop.permute.xlu1 %4294 }
 0x585   : > { %v4501_v62 = vsel %vm2943_vm14, %v4474_v30, %v4295_v40  ;;  %v3101_v40 = vadd.f32 %v9474_v34, %v9362_v37 }
 0x586   : > { %4780 = vrot.lane.b32.xlu0 %v3141_v17, %s5577_s17  ;;  %v4243_v24 = vpop.permute.xlu0 %4242  ;;  %v4576_v54 = vshll.u32 %v4501_v62, 16  ;;  %v4574_v45 = vshrl.u32 %v4501_v62, 16 }
 0x587   : > { %v4449_v27 = vsel %vm2926_vm13, %v4422_v31, %v4243_v24  ;;  %v4538_v24 = vrot.slane %v4536_v28, 1  ;;  %v3139_v26 = vmax.f32 %v3101_v40, 0.0  ;;  %v3104_v31 = vadd.f32 %v9474_v34, %v9377_v29 }
 0x588   : > { %v4578_v56 = vrot.slane %v4576_v54, 1  ;;  %v4476_v7 = vsel %vm3888_vm9, %v4449_v27, %v4268_v39  ;;  %v3142_v54 = vmax.f32 %v3109_v11, 0.0 }
 0x589   : > { %v4585_v18 = vpop.permute.xlu2 %4584  ;;  %v3140_v27 = vmax.f32 %v3104_v31, 0.0 }
 0x58a   : > { %v4601_v48 = vsel %vm10344_vm2, %v4022_v6, %v4585_v18  ;;  %v4579_v21 = vor.u32 %v4578_v56, %v4574_v45  ;;  %v4539_v18 = vor.u32 %v4538_v24, %v4534_v58  ;;  %v3135_v57 = vpop.f32.mrf.mxu3  ;;  %v10365_v45 = vld [vmem:[#allocation64_spill] sm:$0xff]  ;;  %v10374_v24 = vld [vmem:[#allocation74_spill] sm:$0xff] }
 0x58b   : > { %5299 = vmatmul.msk.bf16.vlgmr.msra.gmra.mxu1 %vm4672_vm12, %v4601_v48  ;;  %v3136_v6 = vadd.f32 %v9474_v34, %v3135_v57 }
 0x58c   : > { %v4198_v43 = vpop.permute.xlu1 %4197 }
 0x58d   : > { %v4407_v8 = vsel %vm3855_vm5, %v9223_v33, %v4198_v43  ;;  %v3150_v33 = vmax.f32 %v3129_v35, 0.0  ;;  %v3153_v48 = vmax.f32 %v3136_v6, 0.0  ;;  %v3145_v43 = vmax.f32 %v3116_v16, 0.0  ;;  %v9645_v35 = vld [vmem:[%s9929_s6] ss:$0 sm:$0xff] }
 0x58e   : > { %4786 = vrot.lane.b32.xlu0 %v3144_v15, %s5577_s17  ;;  %v4297_v1 = vpop.permute.xlu0 %4296  ;;  %v3867_v15 = vsel %vm3855_vm5, %v3850_v47, %v10325_v55  ;;  %v3124_v55 = vadd.f32 %v9474_v34, %v9447_v22  ;;  %v3131_v22 = vadd.f32 %v9474_v34, %v9537_v50  ;;  %v3134_v50 = vadd.f32 %v9474_v34, %v9557_v13  ;;  %v10372_v13 = vld [vmem:[#allocation70_spill] sm:$0xff] }
 0x58f   : > { %v4503_v51 = vsel %vm2943_vm14, %v4476_v7, %v4297_v1  ;;  %v3883_v29 = vsel %vm2926_vm13, %v3867_v15, %v10326_v36  ;;  %v10362_v36 = vld [vmem:[#allocation87_spill] sm:$0xff] }
 0x590   : > { %v4580_v53 = vshll.u32 %v4503_v51, 16  ;;  %v3900_v10 = vsel %vm3888_vm9, %v3883_v29, %v10327_v0  ;;  %v10363_v0 = vld [vmem:[#allocation85_spill] sm:$0xff]  ;;  %v10364_v51 = vld [vmem:[#allocation50_spill] sm:$0xff]  ;;  %v3151_v28 = vmax.f32 %v3131_v22, 0.0 }
 0x591   : > { %v4283_v61 = vpop.permute.xlu2 %4282  ;;  %v3916_v41 = vsel %vm2943_vm14, %v3900_v10, %v10329_v46  ;;  %v3148_v46 = vmax.f32 %v3124_v55, 0.0 }
 0x592   : > { %v4582_v17 = vrot.slane %v4580_v53, 1 }
 0x594   : > { %v4583_v14 = vsel %vm2596_vm1, %v4579_v21, %v4582_v17  ;;  %v4254_v39 = vpop.permute.xlu1 %4253 }
 0x595   : > { %4598 = vrot.lane.b32.xlu1 %v4583_v14, %s10309_s18 }
 0x596   : > { %4792 = vrot.lane.b32.xlu0 %v3147_v5, %s5577_s17  ;;  %v4229_v9 = vpop.permute.xlu0 %4228  ;;  %v3126_v5 = vadd.f32 %v9474_v34, %v9480_v19  ;;  %v3152_v19 = vmax.f32 %v3134_v50, 0.0  ;;  %v2483_v50 = vld [vmem:[%s9684_s26] sm:$0xff] }
 0x597   : > { %v4434_v12 = vsel %vm2926_vm13, %v4407_v8, %v4229_v9 }
 0x598   : > { %v4461_v30 = vsel %vm3888_vm9, %v4434_v12, %v4254_v39  ;;  %v3149_v39 = vmax.f32 %v3126_v5, 0.0 }
 0x599   : > { %v4488_v62 = vsel %vm2943_vm14, %v4461_v30, %v4283_v61 }
 0x59a   : > { %v4540_v4 = vshll.u32 %v4488_v62, 16 }
 0x59c   : > { %v4542_v42 = vrot.slane %v4540_v4, 1 }
 0x59d   : > { %4776 = vrot.lane.b32.xlu1 %v3139_v26, %s5577_s17 }
 0x59e   : > { %4798 = vrot.lane.b32.xlu0 %v3150_v33, %s5577_s17  ;;  %v4543_v37 = vsel %vm2596_vm1, %v4539_v18, %v4542_v42  ;;  %vm10361_vm1 = vmmov %vm10331_vm8 }
 0x59f   : > { %4590 = vrot.lane.b32.xlu2 %v4543_v37, %s10309_s18  ;;  %v3933_v56 = vsel %vm10361_vm1, %v3916_v41, %v10360_v23  ;;  %s5030_s18 = sshll.u32 %s5725_s21, 4  ;;  %s5031_s18 = int_to_ptr.vmem [resolvable:$true] %s5030_s18 }
 0x5a0   : > { %v3949_v7 = vsel %vm2960_vm15, %v3933_v56, %v10362_v36 }
 0x5a1   : > { %v3966_v1 = vsel %vm3954_vm3, %v3949_v7, %v10363_v0 }
 0x5a2   : > { %v3982_v63 = vsel %vm2977_vm0, %v3966_v1, %v10364_v51  ;;  %vm10368_vm0 = vmmov %vm10344_vm2 }
 0x5a3   : > { %v3999_v53 = vsel %vm10366_vm11, %v3982_v63, %v10365_v45  ;;  %vm10369_vm3 = vmmov %vm10368_vm0 }
 0x5a4   : > { %v4015_v21 = vsel %vm2994_vm4, %v3999_v53, %v10367_v20  ;;  %vm10370_vm4 = vmmov %vm10368_vm0 }
 0x5a5   : > { %4782 = vrot.lane.b32.xlu1 %v3142_v54, %s5577_s17  ;;  %v4032_v38 = vsel %vm4020_vm6, %v4015_v21, %v9077_v49  ;;  %vm10371_vm5 = vmmov %vm10368_vm0 }
 0x5a6   : > { %4804 = vrot.lane.b32.xlu0 %v3153_v48, %s5577_s17  ;;  %vm10373_vm9 = vmmov %vm10368_vm0 }
 0x5a7   : > { %4778 = vrot.lane.b32.xlu2 %v3140_v27, %s5577_s17  ;;  %vm10375_vm6 = vmmov %vm10368_vm0 }
 0x5ad   : > { %4788 = vrot.lane.b32.xlu1 %v3145_v43, %s5577_s17 }
 0x5af   : > { %4784 = vrot.lane.b32.xlu2 %v3143_v32, %s5577_s17 }
 0x5b5   : > { %4794 = vrot.lane.b32.xlu1 %v3148_v46, %s5577_s17 }
 0x5b7   : > { %4790 = vrot.lane.b32.xlu2 %v3146_v3, %s5577_s17 }
 0x5b8   : > { %v4595_v17 = vpop.permute.xlu0 %4594 }
 0x5b9   : > { %v4611_v14 = vsel %vm10368_vm0, %v4032_v38, %v4595_v17 }
 0x5ba   : > { %5304 = vmatmul.msk.bf16.gmra.mxu2 %vm4672_vm12, %v4611_v14 }
 0x5bd   : > { %4800 = vrot.lane.b32.xlu1 %v3151_v28, %s5577_s17  ;;  %v2484_v28 = vld [vmem:[%s9684_s26 + $0x8] sm:$0xff] }
 0x5bf   : > { %4796 = vrot.lane.b32.xlu2 %v3149_v39, %s5577_s17 }
 0x5c1   : > { %v4587_v8 = vpop.permute.xlu1 %4586 }
 0x5c2   : > { %v4603_v49 = vsel %vm10369_vm3, %v9068_v2, %v4587_v8  ;;  %v2485_v8 = vld [vmem:[%s9684_s26 + $0x10] sm:$0xff] }
 0x5c3   : > { %5300 = vmatmul.msk.bf16.gmra.mxu1 %vm4672_vm12, %v4603_v49  ;;  %v2487_v49 = vld [vmem:[%s9684_s26 + $0x20] sm:$0xff] }
 0x5c7   : > { %v4597_v9 = vpop.permute.xlu2 %4596  ;;  %4802 = vrot.lane.b32.xlu2 %v3152_v19, %s5577_s17 }
 0x5c8   : > { %v4613_v61 = vsel %vm10370_vm4, %v9052_v44, %v4597_v9  ;;  %v2486_v9 = vld [vmem:[%s9684_s26 + $0x18] sm:$0xff] }
 0x5ca   : > { %5305 = vmatmul.msk.bf16.gmra.mxu2 %vm4672_vm12, %v4613_v61 }
 0x5e8   : > { %v4589_v40 = vpop.permute.xlu0 %4588 }
 0x5e9   : > { %v4605_v12 = vsel %vm10371_vm5, %v9065_v60, %v4589_v40  ;;  %v2488_v40 = vld [vmem:[%s9684_s26 + $0x28] sm:$0xff] }
 0x5ea   : > { %5301 = vmatmul.msk.bf16.gmra.mxu1 %vm4672_vm12, %v4605_v12  ;;  %v2490_v12 = vld [vmem:[%s9684_s26 + $0x38] sm:$0xff] }
 0x5f0   : > { %v4775_v61 = vpop.permute.xlu0 %4774 }
 0x5f9   : > { %v4591_v34 = vpop.permute.xlu2 %4590 }
 0x5fa   : > { %v4607_v2 = vsel %vm10373_vm9, %v10372_v13, %v4591_v34  ;;  %v2489_v13 = vld [vmem:[%s9684_s26 + $0x30] sm:$0xff] }
 0x5fb   : > { %5302 = vmatmul.msk.bf16.gmra.mxu1 %vm4672_vm12, %v4607_v2 }
 0x5fe   : > { %v4722_v31 = vpop.f32.mrf.mxu2 }
 0x5ff   : > { %v4723_v10 = vadd.f32 %v9645_v35, %v4722_v31 }
 0x601   : > { %v4750_v41 = vmax.f32 %v4723_v10, 0.0  ;;  %v9693_v19 = vpop.permute.xlu2 %4778 }
 0x606   : > { %v4724_v54 = vpop.f32.mrf.mxu2 }
 0x607   : > { %v4599_v44 = vpop.permute.xlu1 %4598  ;;  %v4725_v36 = vadd.f32 %v9645_v35, %v4724_v54 }
 0x608   : > { %v4702_v30 = vpop.f32.mrf.mxu1  ;;  %v4615_v62 = vsel %vm10375_vm6, %v10374_v24, %v4599_v44  ;;  %v2493_v44 = vld [vmem:[%s9684_s26 + $0x50] sm:$0xff]  ;;  %v2492_v24 = vld [vmem:[%s9684_s26 + $0x48] sm:$0xff] }
 0x609   : > { %v4703_v60 = vadd.f32 %v9645_v35, %v4702_v30  ;;  %5306 = vmatmul.msk.bf16.gmra.mxu2 %vm4672_vm12, %v4615_v62  ;;  %v4751_v1 = vmax.f32 %v4725_v36, 0.0  ;;  %v9701_v34 = vpop.permute.xlu2 %4784  ;;  %v4781_v30 = vpop.permute.xlu0 %4780 }
 0x60b   : > { %v4742_v4 = vmax.f32 %v4703_v60, 0.0  ;;  %v2494_v60 = vld [vmem:[%s9684_s26 + $0x58] sm:$0xff] }
 0x60d   : > { %4838 = vrot.lane.b32.xlu1 %v4742_v4, %s5579_s24  ;;  %v2496_v4 = vld [vmem:[%s9684_s26 + $0x68] sm:$0xff] }
 0x60f   : > { %v9707_v2 = vpop.permute.xlu1 %4776 }
 0x610   : > { %v4704_v58 = vpop.f32.mrf.mxu1 }
 0x611   : > { %v4705_v26 = vadd.f32 %v9645_v35, %v4704_v58  ;;  %v9714_v62 = vpop.permute.xlu2 %4790 }
 0x613   : > { %v4743_v33 = vmax.f32 %v4705_v26, 0.0  ;;  %v4787_v26 = vpop.permute.xlu0 %4786 }
 0x615   : > { %4840 = vrot.lane.b32.xlu2 %v4743_v33, %s5579_s24  ;;  %v2495_v33 = vld [vmem:[%s9684_s26 + $0x60] sm:$0xff] }
 0x617   : > { %v9719_v58 = vpop.permute.xlu1 %4782 }
 0x63d   : > { %v4727_v48 = vpop.f32.mrf.mxu2 }
 0x63e   : > { %v4728_v63 = vadd.f32 %v9645_v35, %v4727_v48 }
 0x640   : > { %v4707_v42 = vpop.f32.mrf.mxu1  ;;  %v4752_v53 = vmax.f32 %v4728_v63, 0.0 }
 0x641   : > { %v4708_v18 = vadd.f32 %v9645_v35, %v4707_v42  ;;  %v9724_v42 = vpop.permute.xlu2 %4796 }
 0x643   : > { %v4744_v57 = vmax.f32 %v4708_v18, 0.0  ;;  %v2497_v18 = vld [vmem:[%s9684_s26 + $0x70] sm:$0xff] }
 0x645   : > { %4842 = vrot.lane.b32.xlu0 %v4744_v57, %s5579_s24  ;;  %v4729_v15 = vpop.f32.mrf.mxu2  ;;  %v9729_v57 = vpop.permute.xlu1 %4788 }
 0x646   : > { %v4730_v55 = vadd.f32 %v9645_v35, %v4729_v15 }
 0x648   : > { %v4709_v37 = vpop.f32.mrf.mxu1  ;;  %v4753_v0 = vmax.f32 %v4730_v55, 0.0 }
 0x649   : > { %v4710_v11 = vadd.f32 %v9645_v35, %v4709_v37  ;;  %v2498_v37 = vld [vmem:[%s9684_s26 + $0x78] sm:$0xff] }
 0x64b   : > { %v4745_v6 = vmax.f32 %v4710_v11, 0.0  ;;  %v4793_v11 = vpop.permute.xlu0 %4792 }
 0x64d   : > { %4844 = vrot.lane.b32.xlu1 %v4745_v6, %s5579_s24  ;;  %v4732_v23 = vpop.f32.mrf.mxu2  ;;  %v9733_v6 = vpop.permute.xlu2 %4802 }
 0x64e   : > { %v4733_v45 = vadd.f32 %v9645_v35, %v4732_v23  ;;  %v9735_v31 = vpop.permute.xlu1 %4794 }
 0x650   : > { %v4754_v3 = vmax.f32 %v4733_v45, 0.0 }
 0x653   : > { %v9737_v54 = vpop.permute.xlu0 %4798 }
 0x655   : > { %v4734_v51 = vpop.f32.mrf.mxu2 }
 0x656   : > { %v4735_v21 = vadd.f32 %v9645_v35, %v4734_v51 }
 0x658   : > { %v4755_v17 = vmax.f32 %v4735_v21, 0.0 }
 0x667   : > { %v4712_v59 = vpop.f32.mrf.mxu1 }
 0x668   : > { %v4713_v47 = vadd.f32 %v9645_v35, %v4712_v59  ;;  %v9739_v59 = vpop.permute.xlu1 %4800 }
 0x66a   : > { %v4746_v27 = vmax.f32 %v4713_v47, 0.0  ;;  %v9741_v47 = vpop.permute.xlu0 %4804 }
 0x66c   : > { %4846 = vrot.lane.b32.xlu2 %v4746_v27, %s5579_s24 }
 0x66f   : > { %v4714_v16 = vpop.f32.mrf.mxu1  ;;  %v4841_v48 = vpop.permute.xlu2 %4840 }
 0x670   : > { %v4715_v29 = vadd.f32 %v9645_v35, %v4714_v16 }
 0x672   : > { %v4747_v25 = vmax.f32 %v4715_v29, 0.0 }
 0x674   : > { %4848 = vrot.lane.b32.xlu0 %v4747_v25, %s5579_s24 }
 0x678   : > { %v4717_v43 = vpop.f32.mrf.mxu1 }
 0x679   : > { %v4718_v32 = vadd.f32 %v9645_v35, %v4717_v43 }
 0x67b   : > { %v4748_v56 = vmax.f32 %v4718_v32, 0.0 }
 0x67c   : > { %4854 = vrot.lane.b32.xlu0 %v4750_v41, %s5579_s24 }
 0x67d   : > { %4850 = vrot.lane.b32.xlu1 %v4748_v56, %s5579_s24 }
 0x67f   : > { %v4839_v16 = vpop.permute.xlu1 %4838 }
 0x680   : > { %v4719_v7 = vpop.f32.mrf.mxu1 }
 0x681   : > { %v4720_v52 = vadd.f32 %v9645_v35, %v4719_v7 }
 0x683   : > { %v4749_v46 = vmax.f32 %v4720_v52, 0.0 }
 0x684   : > { %4860 = vrot.lane.b32.xlu0 %v4753_v0, %s5579_s24 }
 0x685   : > { %4856 = vrot.lane.b32.xlu1 %v4751_v1, %s5579_s24  ;;  %4852 = vrot.lane.b32.xlu2 %v4749_v46, %s5579_s24 }
 0x68c   : > { %v4737_v22 = vpop.f32.mrf.mxu2 }
 0x68d   : > { %v4738_v20 = vadd.f32 %v9645_v35, %v4737_v22  ;;  %4862 = vrot.lane.b32.xlu1 %v4754_v3, %s5579_s24  ;;  %4858 = vrot.lane.b32.xlu2 %v4752_v53, %s5579_s24 }
 0x68f   : > { %v4756_v38 = vmax.f32 %v4738_v20, 0.0 }
 0x691   : > { %4866 = vrot.lane.b32.xlu0 %v4756_v38, %s5579_s24 }
 0x694   : > { %v4739_v5 = vpop.f32.mrf.mxu2 }
 0x695   : > { %v4740_v14 = vadd.f32 %v9645_v35, %v4739_v5  ;;  %4864 = vrot.lane.b32.xlu2 %v4755_v17, %s5579_s24  ;;  %v2491_v35 = vld [vmem:[%s9684_s26 + $0x40] sm:$0xff]  ;;  %s10376_s26 = sand.u32 1, %s5547_s10  }
 0x697   : > { %v4757_v39 = vmax.f32 %v4740_v14, 0.0 }
 0x699   : > { %4868 = vrot.lane.b32.xlu1 %v4757_v39, %s5579_s24  ;;  %4904 = vrot.lane.b32.xlu0 %v2484_v28, %s5580_s25  ;;  %s9755_s24 = scalar_lea.vmem [#allocation2], %s5315_s28 }
 0x69a   : > { %v2466_v56 = vld [vmem:[%s9755_s24] sm:$0xff]  ;;  %v2469_v1 = vld [vmem:[%s9755_s24 + $0x18] sm:$0xff]  ;;  %v2472_v3 = vld [vmem:[%s9755_s24 + $0x30] sm:$0xff] }
 0x69b   : > { %v4950_v55 = vsel %vm2892_vm10, %v2466_v56, %v4775_v61  ;;  %v4953_v51 = vsel %vm2892_vm10, %v2469_v1, %v4781_v30  ;;  %v4956_v21 = vsel %vm2892_vm10, %v2472_v3, %v4787_v26  ;;  %v2467_v38 = vld [vmem:[%s9755_s24 + $0x8] sm:$0xff] }
 0x69c   : > { %v4966_v36 = vsel %vm2926_vm13, %v4950_v55, %v4839_v16  ;;  %v4951_v28 = vsel %vm2892_vm10, %v2467_v38, %v9707_v2  ;;  %v2475_v39 = vld [vmem:[%s9755_s24 + $0x48] sm:$0xff] }
 0x69d   : > { %4902 = vrot.lane.b32.xlu2 %v2483_v50, %s5580_s25  ;;  %v4967_v50 = vsel %vm2926_vm13, %v4951_v28, %v4841_v48  ;;  %v4959_v61 = vsel %vm2892_vm10, %v2475_v39, %v4793_v11  ;;  %v2473_v11 = vld [vmem:[%s9755_s24 + $0x38] sm:$0xff] }
 0x6a1   : > { %4906 = vrot.lane.b32.xlu1 %v2485_v8, %s5580_s25  ;;  %4910 = vrot.lane.b32.xlu0 %v2487_v49, %s5580_s25 }
 0x6a5   : > { %4908 = vrot.lane.b32.xlu2 %v2486_v9, %s5580_s25 }
 0x6a9   : > { %4912 = vrot.lane.b32.xlu1 %v2488_v40, %s5580_s25  ;;  %4916 = vrot.lane.b32.xlu0 %v2490_v12, %s5580_s25  ;;  %v2468_v40 = vld [vmem:[%s9755_s24 + $0x10] sm:$0xff]  ;;  %v2470_v12 = vld [vmem:[%s9755_s24 + $0x20] sm:$0xff] }
 0x6aa   : > { %v4954_v30 = vsel %vm2892_vm10, %v2470_v12, %v9719_v58  ;;  %v2471_v58 = vld [vmem:[%s9755_s24 + $0x28] sm:$0xff] }
 0x6ad   : > { %4914 = vrot.lane.b32.xlu2 %v2489_v13, %s5580_s25 }
 0x6b1   : > { %4918 = vrot.lane.b32.xlu1 %v2491_v35, %s5580_s25  ;;  %4922 = vrot.lane.b32.xlu0 %v2493_v44, %s5580_s25  ;;  %v4952_v44 = vsel %vm2892_vm10, %v2468_v40, %v9693_v19 }
 0x6b5   : > { %4920 = vrot.lane.b32.xlu2 %v2492_v24, %s5580_s25  ;;  %v2478_v24 = vld [vmem:[%s9755_s24 + $0x60] sm:$0xff] }
 0x6b6   : > { %v4962_v19 = vsel %vm2892_vm10, %v2478_v24, %v9737_v54  ;;  %v4957_v54 = vsel %vm2892_vm10, %v2473_v11, %v9729_v57  ;;  %v2474_v57 = vld [vmem:[%s9755_s24 + $0x40] sm:$0xff] }
 0x6b7   : > { %v4843_v15 = vpop.permute.xlu0 %4842 }
 0x6b9   : > { %4924 = vrot.lane.b32.xlu1 %v2494_v60, %s5580_s25  ;;  %4928 = vrot.lane.b32.xlu0 %v2496_v4, %s5580_s25  ;;  %v4968_v60 = vsel %vm2926_vm13, %v4952_v44, %v4843_v15  ;;  %v4955_v15 = vsel %vm2892_vm10, %v2471_v58, %v9701_v34 }
 0x6bd   : > { %4926 = vrot.lane.b32.xlu2 %v2495_v33, %s5580_s25 }
 0x6bf   : > { %v4845_v25 = vpop.permute.xlu1 %4844 }
 0x6c0   : > { %v4969_v63 = vsel %vm2926_vm13, %v4953_v51, %v4845_v25  ;;  %v2481_v25 = vld [vmem:[%s9755_s24 + $0x78] sm:$0xff] }
 0x6c1   : > { %4930 = vrot.lane.b32.xlu1 %v2497_v18, %s5580_s25  ;;  %v4965_v34 = vsel %vm2892_vm10, %v2481_v25, %v9741_v47  ;;  %v4958_v47 = vsel %vm2892_vm10, %v2474_v57, %v9714_v62  ;;  %v2477_v62 = vld [vmem:[%s9755_s24 + $0x58] sm:$0xff] }
 0x6c5   : > { %4932 = vrot.lane.b32.xlu2 %v2498_v37, %s5580_s25  ;;  %s5350_s25 = sshll.u32 %s5555_s12, 4  ;;  %s5497_s12 = scalar_lea.hbm %s9932_s9, 512 }
 0x6c6   : > { %v4847_v27 = vpop.permute.xlu2 %4846  ;;  %s5027_s14 = sadd.s32 %s5350_s25, %s5310_s29  ;;  %s5015_s25 = scalar_lea.sflag [#allocation8], %s10376_s26 }
 0x6c7   : > { %v4970_v4 = vsel %vm2926_vm13, %v4954_v30, %v4847_v27  ;;  %s5311_s20 = sshll.u32 %s5027_s14, 3 }
 0x6c8   : > { %s5029_s19 = scalar_lea.hbm %s9932_s9, %s5311_s20 }
 0x6c9   : > { %s5032_s28 = sshll.u32 %s5029_s19, 4  ;;  %s5033_s28 = int_to_ptr.hbm [resolvable:$true] %s5032_s28 }
 0x6ca   : > { %s5491_s29 = sshra.s32 %s5033_s28, 4  ;;  %s5492_s29 = int_to_ptr.hbm [resolvable:$true] %s5491_s29 }
 0x6cb   : > { %p5498_p4 = scmp.lt.s32.totalorder %s5492_s29, %s9932_s9 }
 0x6df   : > { %v9743_v29 = vpop.permute.xlu2 %4852 }
 0x6e6   : > { %v9745_v10 = vpop.permute.xlu0 %4848 }
 0x6e7   : > { %v9747_v43 = vpop.permute.xlu2 %4858  ;;  %v4971_v56 = vsel %vm2926_vm13, %v4955_v15, %v9745_v10 }
 0x6ee   : > { %v9751_v23 = vpop.permute.xlu0 %4854 }
 0x6ef   : > { %v4851_v32 = vpop.permute.xlu1 %4850  ;;  %v9749_v41 = vpop.permute.xlu2 %4864 }
 0x6f0   : > { %v4972_v17 = vsel %vm2926_vm13, %v4956_v21, %v4851_v32  ;;  %v4973_v32 = vsel %vm2926_vm13, %v4957_v54, %v9743_v29  ;;  %v2476_v29 = vld [vmem:[%s9755_s24 + $0x50] sm:$0xff] }
 0x6f1   : > { %v4960_v51 = vsel %vm2892_vm10, %v2476_v29, %v9735_v31  ;;  %v2479_v31 = vld [vmem:[%s9755_s24 + $0x68] sm:$0xff] }
 0x6f6   : > { %v9764_v46 = vpop.permute.xlu0 %4860 }
 0x6f7   : > { %v4903_v7 = vpop.permute.xlu2 %4902  ;;  %v4857_v0 = vpop.permute.xlu1 %4856 }
 0x6f8   : > { %v4982_v52 = vsel %vm2943_vm14, %v4966_v36, %v4903_v7  ;;  %v4975_v13 = vsel %vm2926_vm13, %v4959_v61, %v4857_v0 }
 0x6f9   : > { %4998 = vst.msk [vmem:[%s5725_s21] sm:$0xff] %vm2960_vm15, %v4982_v52 }
 0x6ff   : > { %v4909_v45 = vpop.permute.xlu2 %4908  ;;  %v4863_v22 = vpop.permute.xlu1 %4862 }
 0x700   : > { %v4985_v53 = vsel %vm2943_vm14, %v4969_v63, %v4909_v45  ;;  %v4978_v48 = vsel %vm2926_vm13, %v4962_v19, %v4863_v22  ;;  %v4976_v63 = vsel %vm2926_vm13, %v4960_v51, %v9747_v43  ;;  %v4974_v45 = vsel %vm2926_vm13, %v4958_v47, %v9751_v23 }
 0x701   : > { %5001 = vst.msk [vmem:[%s5725_s21 + $0x18] sm:$0xff] %vm2960_vm15, %v4985_v53  ;;  %v4961_v43 = vsel %vm2892_vm10, %v2477_v62, %v9724_v42  ;;  %v4963_v23 = vsel %vm2892_vm10, %v2479_v31, %v9739_v59  ;;  %v2480_v42 = vld [vmem:[%s9755_s24 + $0x70] sm:$0xff]  ;;  %s5493_s24 = scalar_lea.hbm %s5492_s29, 128 }
 0x702   : > { %v4979_v38 = vsel %vm2926_vm13, %v4963_v23, %v9749_v41  ;;  %v4964_v59 = vsel %vm2892_vm10, %v2480_v42, %v9733_v6  ;;  %p5494_p0 = scmp.ne.s32.totalorder %s5492_s29, %s5493_s24  ;;  %p5499_p5 = scmp.lt.s32.totalorder %s5497_s12, %s5493_s24 }
 0x703   : > { %v9772_v20 = vpop.permute.xlu0 %4866 }
 0x704   : > { %v4980_v41 = vsel %vm2926_vm13, %v4964_v59, %v9772_v20  ;;  %p5495_p1 = pnand %p5494_p0, %p5695_p3  ;;  %p5500_p6 = por %p5499_p5, %p5498_p4 }
 0x706   : > { %p5496_p2 = pneg %p5495_p1 }
 0x707   : > { %v4915_v5 = vpop.permute.xlu2 %4914 }
 0x708   : > { %v4988_v14 = vsel %vm2943_vm14, %v4972_v17, %v4915_v5  ;;  %v4977_v17 = vsel %vm2926_vm13, %v4961_v43, %v9764_v46  ;;  %p5501_p7 = pnand %p5500_p6, %p5496_p2 }
 0x709   : > { %5004 = vst.msk [vmem:[%s5725_s21 + $0x30] sm:$0xff] %vm2960_vm15, %v4988_v14 }
 0x70b   : > { %v4869_v8 = vpop.permute.xlu1 %4868  ;;  %v4905_v49 = vpop.permute.xlu0 %4904 }
 0x70c   : > { %v4983_v9 = vsel %vm2943_vm14, %v4967_v50, %v4905_v49  ;;  %v4981_v10 = vsel %vm2926_vm13, %v4965_v34, %v4869_v8 }
 0x70d   : > { %4999 = vst.msk [vmem:[%s5725_s21 + $0x8] sm:$0xff] %vm2960_vm15, %v4983_v9 }
 0x70f   : > { %v4921_v2 = vpop.permute.xlu2 %4920 }
 0x710   : > { %v4991_v35 = vsel %vm2943_vm14, %v4975_v13, %v4921_v2 }
 0x711   : > { %5007 = vst.msk [vmem:[%s5725_s21 + $0x48] sm:$0xff] %vm2960_vm15, %v4991_v35 }
 0x713   : > { %v4907_v26 = vpop.permute.xlu1 %4906  ;;  %v4911_v33 = vpop.permute.xlu0 %4910 }
 0x714   : > { %v4984_v18 = vsel %vm2943_vm14, %v4968_v60, %v4907_v26  ;;  %v4986_v37 = vsel %vm2943_vm14, %v4970_v4, %v4911_v33 }
 0x715   : > { %5000 = vst.msk [vmem:[%s5725_s21 + $0x10] sm:$0xff] %vm2960_vm15, %v4984_v18 }
 0x716   : > { %5002 = vst.msk [vmem:[%s5725_s21 + $0x20] sm:$0xff] %vm2960_vm15, %v4986_v37 }
 0x717   : > { %v4927_v27 = vpop.permute.xlu2 %4926 }
 0x718   : > { %v4994_v16 = vsel %vm2943_vm14, %v4978_v48, %v4927_v27 }
 0x719   : > { %5010 = vst.msk [vmem:[%s5725_s21 + $0x60] sm:$0xff] %vm2960_vm15, %v4994_v16 }
 0x71b   : > { %v4913_v55 = vpop.permute.xlu1 %4912  ;;  %v4917_v36 = vpop.permute.xlu0 %4916 }
 0x71c   : > { %v4987_v7 = vsel %vm2943_vm14, %v4971_v56, %v4913_v55  ;;  %v4989_v52 = vsel %vm2943_vm14, %v4973_v32, %v4917_v36 }
 0x71d   : > { %5003 = vst.msk [vmem:[%s5725_s21 + $0x28] sm:$0xff] %vm2960_vm15, %v4987_v7 }
 0x71e   : > { %5005 = vst.msk [vmem:[%s5725_s21 + $0x38] sm:$0xff] %vm2960_vm15, %v4989_v52 }
 0x71f   : > { %v4933_v0 = vpop.permute.xlu2 %4932 }
 0x720   : > { %v4997_v1 = vsel %vm2943_vm14, %v4981_v10, %v4933_v0 }
 0x721   : > { %5013 = vst.msk [vmem:[%s5725_s21 + $0x78] sm:$0xff] %vm2960_vm15, %v4997_v1 }
 0x723   : > { %v4919_v53 = vpop.permute.xlu1 %4918  ;;  %v4923_v3 = vpop.permute.xlu0 %4922 }
 0x724   : > { %v4990_v22 = vsel %vm2943_vm14, %v4974_v45, %v4919_v53  ;;  %v4992_v21 = vsel %vm2943_vm14, %v4976_v63, %v4923_v3 }
 0x725   : > { %5006 = vst.msk [vmem:[%s5725_s21 + $0x40] sm:$0xff] %vm2960_vm15, %v4990_v22 }
 0x726   : > { %5008 = vst.msk [vmem:[%s5725_s21 + $0x50] sm:$0xff] %vm2960_vm15, %v4992_v21 }
 0x72b   : > { %v4925_v5 = vpop.permute.xlu1 %4924  ;;  %v4929_v14 = vpop.permute.xlu0 %4928 }
 0x72c   : > { %v4993_v28 = vsel %vm2943_vm14, %v4977_v17, %v4925_v5  ;;  %v4995_v39 = vsel %vm2943_vm14, %v4979_v38, %v4929_v14 }
 0x72d   : > { %5009 = vst.msk [vmem:[%s5725_s21 + $0x58] sm:$0xff] %vm2960_vm15, %v4993_v28 }
 0x72e   : > { %5011 = vst.msk [vmem:[%s5725_s21 + $0x68] sm:$0xff] %vm2960_vm15, %v4995_v39 }
 0x733   : > { %v4931_v46 = vpop.permute.xlu1 %4930 }
 0x734   : > { %v4996_v50 = vsel %vm2943_vm14, %v4980_v41, %v4931_v46 }
 0x735   : > { %5012 = vst.msk [vmem:[%s5725_s21 + $0x70] sm:$0xff] %vm2960_vm15, %v4996_v50 }
 0x736   : > { %5504 = shalt.err (!%p5501_p7)
}
 0x737   : > { %s5593_s21 = smov 128  }
 0x738   : > { %5365 = dma.vmem_to_hbm [thread:$0]  (%p5695_p3), %s5031_s18, 2048, %s5033_s28, %s5015_s25, %s5593_s21, %s5593_s21, %s5577_s17  }
 0x739 PF: > { %p5371_p9 = scmp.ge.s32.totalorder %s5571_s16, 2  ;;  %s5047_s26 = sand.u32 1, %s5543_s30  }
 0x73a   : > { %s5048_s14 = scalar_lea.sflag [#allocation8], %s5047_s26 }
 0x73b   : > { %p5368_p10 = pnand %p5371_p9, %p5704_p8 }
 0x73d   : > { %p5369_p11 = pneg %p5368_p10 }
 0x73f   : > { %5538 = dma.done.wait (%p5369_p11), %s5048_s14, 2048  }
 0x740   : > { %5540 = vsyncadd (%p5369_p11), %s5048_s14, 4294965248  ;;  %s22_s16 = sadd.s32 1, %s5571_s16   ;;  %s10377_s12 = sld [smem:[#allocation10_spill]] }
 0x741   : > { %p19_p12 = scmp.ge.s32.totalorder %s22_s16, 6   ;;  %s10378_s14 = sld [smem:[#allocation11_spill]] }
 0x742   : > { %s10379_s22 = sld [smem:[#allocation12_spill]]  ;;  %s10380_s30 = smov %s5547_s10 }
 0x743   : > { %s10381_s10 = smov %s5551_s11  ;;  %s10382_s11 = smov %s5713_s27 }
 0x744   : > { %s10383_s13 = smov %s5567_s15  ;;  %21 = sbr.rel (!%p19_p12) target bundleno = 5 (0x5), region = 105 }
 0x748   : > { %s10384_s15 = smov %s10379_s22 }
 0x749   :  { %5054 = vsyncpa [#allocation8], 1 }
 0x74a   :  { %5056 = vsyncpa [#allocation8 + $0x1], 1 }

</bundles_post_ra>
